<compile_context>
chip_gen: v6e
topology: v6e:2x2x1
jax: 0.10.0
libtpu: 0.0.40
codegen_flags: <defaults>
</compile_context>

<pallas_src>
import math

import jax
import jax.numpy as jnp
from jax.experimental import pallas as pl
from jax.experimental.pallas import tpu as pltpu

_BN_EPS = 1e-5


# --------------------------- in-kernel helpers ------------------------------

def _bn_act(y, gamma, beta, relu6):
    """Batch-stat BatchNorm (+ optional ReLU6), one-pass sum / sum-of-squares."""
    inv_n = 1.0 / float(y.shape[0])
    s = jnp.sum(y, axis=0, keepdims=True)
    ss = jnp.sum(y * y, axis=0, keepdims=True)
    mean = s * inv_n
    var = jnp.maximum(ss * inv_n - mean * mean, 0.0)      # biased variance
    y = (y - mean) * jax.lax.rsqrt(var + _BN_EPS)
    y = y * gamma + beta
    if relu6:
        y = jnp.clip(y, 0.0, 6.0)
    return y


def _make_fused_kernel(block_cfg, vmin, vmax):
    """Build the single fused forward kernel.

    block_cfg: tuple of dicts with static ints {'stride', 'inp', 'oup'}.
    Ref order (all VMEM, whole arrays):
      fc_wflat, fc_lc, fc_b_hwc,
      S_init, W_init, init_gamma, init_beta,
      per block: [expand_w, expand_gamma, expand_beta,
                  S_dw, dw_w, dw_gamma, dw_beta,
                  proj_w, proj_gamma, proj_beta],
      final_w, final_gamma, final_beta, out_w, D_mat, Ah2,
      -> out_ref (H, W)
    """

    def kernel(*refs):
        o_ref = refs[-1]
        it = iter(refs[:-1])

        # ---- fc (trainable weights) -> channels-last (H2*W2, C) slab ----
        wflat, lc, b_hwc = next(it), next(it), next(it)
        x0 = jnp.dot(wflat[...], lc[...],
                     preferred_element_type=jnp.float32) + b_hwc[...]

        # ---- init_conv: 3x3 s2 p1 conv via 9 shift-matrix taps + BN + ReLU6 ----
        s_init, w_init, ig, ib = next(it), next(it), next(it), next(it)
        acc = None
        for k in range(9):
            tap = jnp.dot(s_init[k], x0, preferred_element_type=jnp.float32)
            y = jnp.dot(tap, w_init[k], preferred_element_type=jnp.float32)
            acc = y if acc is None else acc + y
        x = _bn_act(acc, ig[...], ib[...], relu6=True)

        # ---- inverted residual blocks ----
        for cfg in block_cfg:
            ew, eg, eb = next(it), next(it), next(it)
            sdw, dww, dg, db = next(it), next(it), next(it), next(it)
            pw, pg, pb = next(it), next(it), next(it)

            # expand 1x1 + BN + ReLU6 (expand_ratio=6, always present)
            h = _bn_act(jnp.dot(x, ew[...], preferred_element_type=jnp.float32),
                        eg[...], eb[...], relu6=True)

            # depthwise 3x3 (stride s, pad 1): taps via shift matmuls,
            # per-channel MAC on the VPU; weights loaded once.
            wd = dww[...]                                   # (9, hidden)
            acc = None
            for k in range(9):
                tap = jnp.dot(sdw[k], h, preferred_element_type=jnp.float32)
                t = tap * wd[k:k + 1, :]
                acc = t if acc is None else acc + t
            hd = _bn_act(acc, dg[...], db[...], relu6=True)

            # project 1x1 + BN (no activation)
            p = _bn_act(jnp.dot(hd, pw[...], preferred_element_type=jnp.float32),
                        pg[...], pb[...], relu6=False)

            # residual (never active with the default channel list; kept for fidelity)
            if cfg['stride'] == 1 and cfg['inp'] == cfg['oup']:
                p = x + p
            x = p

        # ---- final 1x1 conv + BN + ReLU6 ----
        fw, fg, fb = next(it), next(it), next(it)
        xf = _bn_act(jnp.dot(x, fw[...], preferred_element_type=jnp.float32),
                     fg[...], fb[...], relu6=True)

        # ---- output 1x1 conv (1280 -> 1): VPU multiply + lane reduce ----
        ow = next(it)
        v = jnp.sum(xf * ow[...], axis=1, keepdims=True)    # (Hc*Wc, 1)

        # ---- bilinear upsample (align_corners=True), folded to one matmul ----
        # out[r, s] = sum_p Ah2[r, p] * v[p] * D[p, s]
        d_mat, ah2 = next(it), next(it)
        out = jnp.dot(ah2[...], v * d_mat[...],
                      preferred_element_type=jnp.float32)   # (H, W)

        if vmin is not None and vmax is not None:
            out = ((vmax - vmin) * jnp.tanh(out) + (vmax + vmin)) * 0.5
        o_ref[...] = out * 1000.0

    return kernel


# ----------------------- constant-matrix preprocessing -----------------------

def _shift_matrices(h_in, w_in, stride, pad=1, ksize=3):
    """0/1 gather matrices S_k (k=0..8) of shape (H_out*W_out, H_in*W_in).

    tap_k = S_k @ x  for x flattened row-major as (H_in*W_in, C); rows whose
    source pixel falls in the zero-padding region are all-zero.  These are pure
    geometry constants (no activations), built once in the wrapper.
    """
    h_out = (h_in + 2 * pad - ksize) // stride + 1
    w_out = (w_in + 2 * pad - ksize) // stride + 1
    oi = jnp.arange(h_out)
    oj = jnp.arange(w_out)
    mats = []
    for ky in range(ksize):
        for kx in range(ksize):
            ii = oi * stride + ky - pad
            jj = oj * stride + kx - pad
            valid = (((ii >= 0) & (ii < h_in))[:, None]
                     & ((jj >= 0) & (jj < w_in))[None, :])
            q = (jnp.clip(ii, 0, h_in - 1)[:, None] * w_in
                 + jnp.clip(jj, 0, w_in - 1)[None, :])
            sel = jax.nn.one_hot(q.reshape(-1), h_in * w_in, dtype=jnp.float32)
            mats.append(sel * valid.reshape(-1, 1).astype(jnp.float32))
    return jnp.stack(mats, axis=0), h_out, w_out


def _bilinear_matrix(n_out, n_in):
    """1-D bilinear resize matrix, align_corners=True (PyTorch semantics)."""
    if n_out == 1:
        # single output sample maps to source index 0 (PyTorch align_corners)
        return jax.nn.one_hot(jnp.zeros((1,), jnp.int32), n_in, dtype=jnp.float32)
    if n_in == 1:
        return jnp.ones((n_out, 1), jnp.float32)
    scale = (n_in - 1) / (n_out - 1)
    src = jnp.arange(n_out, dtype=jnp.float32) * scale
    lo = jnp.clip(jnp.floor(src), 0, n_in - 1).astype(jnp.int32)
    hi = jnp.minimum(lo + 1, n_in - 1)
    w_hi = src - lo.astype(jnp.float32)
    w_lo = 1.0 - w_hi
    return (w_lo[:, None] * jax.nn.one_hot(lo, n_in, dtype=jnp.float32)
            + w_hi[:, None] * jax.nn.one_hot(hi, n_in, dtype=jnp.float32))


# ------------------------------- parameters ---------------------------------

def init_params(key, model_shape, init_conv_num=4, n_blocks=2, random_state_num=100):
    H, W = model_shape
    H2, W2 = H // 2, W // 2
    keys = iter(jax.random.split(key, 64))

    def u(shape, fan_in):
        bound = 1.0 / math.sqrt(fan_in)
        return jax.random.uniform(next(keys), shape, jnp.float32, -bound, bound)

    params = {}
    fc_out = init_conv_num * H2 * W2
    # deterministic stand-in for torch.manual_seed(1234); torch.rand(100) in [0,1)
    params['latent'] = jax.random.uniform(next(keys), (1, random_state_num), jnp.float32)
    # fc output columns in PyTorch NCHW flat order (c, h, w)
    params['fc_w'] = u((random_state_num, fc_out), random_state_num)
    params['fc_b'] = u((1, fc_out), random_state_num)

    # init_conv: 3x3, stride 2, pad 1, init_conv_num -> 32 ; layout (tap, Cin, Cout)
    params['init_w'] = u((9, init_conv_num, 32), 9 * init_conv_num)
    params['init_gamma'] = jnp.ones((1, 32), jnp.float32)
    params['init_beta'] = jnp.zeros((1, 32), jnp.float32)

    channels = [64, 96, 160, 320, 640, 1280]
    inp = 32
    blocks = []
    for i in range(min(n_blocks, 6)):
        oup = channels[i % len(channels)]
        stride = 2 if i % len(channels) == 0 else 1
        hidden = int(round(inp * 6))
        blocks.append({
            'stride': stride, 'inp': inp, 'oup': oup, 'hidden': hidden,
            'expand_w': u((inp, hidden), inp),
            'expand_gamma': jnp.ones((1, hidden), jnp.float32),
            'expand_beta': jnp.zeros((1, hidden), jnp.float32),
            'dw_w': u((9, hidden), 9),                       # (tap, C)
            'dw_gamma': jnp.ones((1, hidden), jnp.float32),
            'dw_beta': jnp.zeros((1, hidden), jnp.float32),
            'proj_w': u((hidden, oup), hidden),
            'proj_gamma': jnp.ones((1, oup), jnp.float32),
            'proj_beta': jnp.zeros((1, oup), jnp.float32),
        })
        inp = oup
    params['blocks'] = blocks

    params['final_w'] = u((inp, 1280), inp)
    params['final_gamma'] = jnp.ones((1, 1280), jnp.float32)
    params['final_beta'] = jnp.zeros((1, 1280), jnp.float32)
    params['out_w'] = u((1, 1280), 1280)
    return params


# --------------------------------- forward ----------------------------------

def mobilenetv2_fwi_forward(params, model_shape, init_conv_num=4, vmin=None, vmax=None):
    H, W = model_shape
    H2, W2 = H // 2, W // 2
    C = init_conv_num
    HW2 = H2 * W2
    K = params['fc_w'].shape[0]

    # fc weight -> (HW2, K*C); constant latent -> block-diag (K*C, C) so the
    # in-kernel matmul directly produces the channels-last (H2*W2, C) slab
    # (avoids any in-kernel reshape/transpose of the fc output).
    wflat = params['fc_w'].reshape(K, C, HW2).transpose(2, 0, 1).reshape(HW2, K * C)
    b_hwc = params['fc_b'].reshape(C, HW2).T                                 # (HW2, C)
    latent = params['latent'].reshape(K)
    lc = (latent[:, None, None]
          * jnp.eye(C, dtype=jnp.float32)[None, :, :]).reshape(K * C, C)

    args = [wflat, lc, b_hwc]

    # init conv geometry
    s_init, Hc, Wc = _shift_matrices(H2, W2, stride=2)
    args += [s_init, params['init_w'], params['init_gamma'], params['init_beta']]

    block_cfg = []
    for bp in params['blocks']:
        s_dw, Ho, Wo = _shift_matrices(Hc, Wc, stride=bp['stride'])
        args += [bp['expand_w'], bp['expand_gamma'], bp['expand_beta'],
                 s_dw, bp['dw_w'], bp['dw_gamma'], bp['dw_beta'],
                 bp['proj_w'], bp['proj_gamma'], bp['proj_beta']]
        block_cfg.append({'stride': bp['stride'], 'inp': bp['inp'], 'oup': bp['oup']})
        Hc, Wc = Ho, Wo

    args += [params['final_w'], params['final_gamma'], params['final_beta'],
             params['out_w']]

    # bilinear upsample (align_corners=True) as Out = Ah2 @ (v * D)
    ah = _bilinear_matrix(H, Hc)                 # (H, Hc)
    aw = _bilinear_matrix(W, Wc)                 # (W, Wc)
    ah2 = jnp.repeat(ah, Wc, axis=1)             # (H, Hc*Wc)   Ah2[r,p]=Ah[r,p//Wc]
    d_mat = jnp.tile(aw.T, (Hc, 1))              # (Hc*Wc, W)   D[p,s]=Aw[s,p%Wc]
    args += [d_mat, ah2]

    kernel = _make_fused_kernel(tuple(block_cfg), vmin, vmax)
    return pl.pallas_call(
        kernel,
        out_shape=jax.ShapeDtypeStruct((H, W), jnp.float32),
        in_specs=[pl.BlockSpec(memory_space=pltpu.MemorySpace.VMEM)] * len(args),
        out_specs=pl.BlockSpec(memory_space=pltpu.MemorySpace.VMEM),
    )(*args)


# ----------------------------------- main ------------------------------------

if __name__ == "__main__":
    model_shape = (32, 32)          # small velocity-model shape
    init_conv_num = 4
    n_blocks = 2                    # number of inverted residual blocks (<= 6)
    random_state_num = 100
    vmin, vmax = 1.5, 5.5           # km/s bounds -> output in m/s after *1000

    key = jax.random.PRNGKey(0)
    params = init_params(key, model_shape, init_conv_num, n_blocks, random_state_num)

    out = mobilenetv2_fwi_forward(params, model_shape, init_conv_num, vmin, vmax)
    out = jax.block_until_ready(out)

    assert out.shape == model_shape, out.shape
    assert out.dtype == jnp.float32
    assert bool(jnp.all(jnp.isfinite(out)))
    print("KERNEL_OK")
</pallas_src>

<mosaic_0001>
module attributes {stable_mosaic.version = 11 : i64} {
  func.func @kernel(%arg0: memref<256x400xf32, #tpu.memory_space<vmem>>, %arg1: memref<400x4xf32, #tpu.memory_space<vmem>>, %arg2: memref<256x4xf32, #tpu.memory_space<vmem>>, %arg3: memref<9x64x256xf32, #tpu.memory_space<vmem>>, %arg4: memref<9x4x32xf32, #tpu.memory_space<vmem>>, %arg5: memref<1x32xf32, #tpu.memory_space<vmem>>, %arg6: memref<1x32xf32, #tpu.memory_space<vmem>>, %arg7: memref<32x192xf32, #tpu.memory_space<vmem>>, %arg8: memref<1x192xf32, #tpu.memory_space<vmem>>, %arg9: memref<1x192xf32, #tpu.memory_space<vmem>>, %arg10: memref<9x16x64xf32, #tpu.memory_space<vmem>>, %arg11: memref<9x192xf32, #tpu.memory_space<vmem>>, %arg12: memref<1x192xf32, #tpu.memory_space<vmem>>, %arg13: memref<1x192xf32, #tpu.memory_space<vmem>>, %arg14: memref<192x64xf32, #tpu.memory_space<vmem>>, %arg15: memref<1x64xf32, #tpu.memory_space<vmem>>, %arg16: memref<1x64xf32, #tpu.memory_space<vmem>>, %arg17: memref<64x384xf32, #tpu.memory_space<vmem>>, %arg18: memref<1x384xf32, #tpu.memory_space<vmem>>, %arg19: memref<1x384xf32, #tpu.memory_space<vmem>>, %arg20: memref<9x16x16xf32, #tpu.memory_space<vmem>>, %arg21: memref<9x384xf32, #tpu.memory_space<vmem>>, %arg22: memref<1x384xf32, #tpu.memory_space<vmem>>, %arg23: memref<1x384xf32, #tpu.memory_space<vmem>>, %arg24: memref<384x96xf32, #tpu.memory_space<vmem>>, %arg25: memref<1x96xf32, #tpu.memory_space<vmem>>, %arg26: memref<1x96xf32, #tpu.memory_space<vmem>>, %arg27: memref<96x1280xf32, #tpu.memory_space<vmem>>, %arg28: memref<1x1280xf32, #tpu.memory_space<vmem>>, %arg29: memref<1x1280xf32, #tpu.memory_space<vmem>>, %arg30: memref<1x1280xf32, #tpu.memory_space<vmem>>, %arg31: memref<16x32xf32, #tpu.memory_space<vmem>>, %arg32: memref<32x16xf32, #tpu.memory_space<vmem>>, %arg33: memref<32x32xf32, #tpu.memory_space<vmem>>) attributes {dimension_semantics = [], scalar_prefetch = 0 : i64, scratch_operands = 0 : i64, tpu.core_type = #tpu.core_type<tc>} {
    %c0 = arith.constant 0 : index
    %c0_0 = arith.constant 0 : index
    %0 = vector.load %arg0[%c0, %c0_0] : memref<256x400xf32, #tpu.memory_space<vmem>>, vector<256x400xf32>
    %c0_1 = arith.constant 0 : index
    %c0_2 = arith.constant 0 : index
    %1 = vector.load %arg1[%c0_1, %c0_2] : memref<400x4xf32, #tpu.memory_space<vmem>>, vector<400x4xf32>
    %cst = arith.constant dense<0.000000e+00> : vector<256x4xf32>
    %2 = tpu.matmul %0, %1, %cst {dimension_numbers = #tpu.dot_dimension_numbers<[1], [0], [0], [1], [0, 0, 1, 1], [], []>} : vector<256x400xf32>, vector<400x4xf32>, vector<256x4xf32> -> vector<256x4xf32>
    %c0_3 = arith.constant 0 : index
    %c0_4 = arith.constant 0 : index
    %3 = vector.load %arg2[%c0_3, %c0_4] : memref<256x4xf32, #tpu.memory_space<vmem>>, vector<256x4xf32>
    %4 = arith.addf %2, %3 : vector<256x4xf32>
    %c0_5 = arith.constant 0 : index
    %c0_6 = arith.constant 0 : index
    %c0_7 = arith.constant 0 : index
    %5 = vector.load %arg3[%c0_5, %c0_6, %c0_7] : memref<9x64x256xf32, #tpu.memory_space<vmem>>, vector<1x64x256xf32>
    %6 = vector.shape_cast %5 : vector<1x64x256xf32> to vector<64x256xf32>
    %cst_8 = arith.constant dense<0.000000e+00> : vector<64x4xf32>
    %7 = tpu.matmul %6, %4, %cst_8 {dimension_numbers = #tpu.dot_dimension_numbers<[1], [0], [0], [1], [0, 0, 1, 1], [], []>} : vector<64x256xf32>, vector<256x4xf32>, vector<64x4xf32> -> vector<64x4xf32>
    %c0_9 = arith.constant 0 : index
    %c0_10 = arith.constant 0 : index
    %c0_11 = arith.constant 0 : index
    %8 = vector.load %arg4[%c0_9, %c0_10, %c0_11] : memref<9x4x32xf32, #tpu.memory_space<vmem>>, vector<1x4x32xf32>
    %9 = vector.shape_cast %8 : vector<1x4x32xf32> to vector<4x32xf32>
    %cst_12 = arith.constant dense<0.000000e+00> : vector<64x32xf32>
    %10 = tpu.matmul %7, %9, %cst_12 {dimension_numbers = #tpu.dot_dimension_numbers<[1], [0], [0], [1], [0, 0, 1, 1], [], []>} : vector<64x4xf32>, vector<4x32xf32>, vector<64x32xf32> -> vector<64x32xf32>
    %c1 = arith.constant 1 : index
    %c0_13 = arith.constant 0 : index
    %c0_14 = arith.constant 0 : index
    %11 = vector.load %arg3[%c1, %c0_13, %c0_14] : memref<9x64x256xf32, #tpu.memory_space<vmem>>, vector<1x64x256xf32>
    %12 = vector.shape_cast %11 : vector<1x64x256xf32> to vector<64x256xf32>
    %cst_15 = arith.constant dense<0.000000e+00> : vector<64x4xf32>
    %13 = tpu.matmul %12, %4, %cst_15 {dimension_numbers = #tpu.dot_dimension_numbers<[1], [0], [0], [1], [0, 0, 1, 1], [], []>} : vector<64x256xf32>, vector<256x4xf32>, vector<64x4xf32> -> vector<64x4xf32>
    %c1_16 = arith.constant 1 : index
    %c0_17 = arith.constant 0 : index
    %c0_18 = arith.constant 0 : index
    %14 = vector.load %arg4[%c1_16, %c0_17, %c0_18] : memref<9x4x32xf32, #tpu.memory_space<vmem>>, vector<1x4x32xf32>
    %15 = vector.shape_cast %14 : vector<1x4x32xf32> to vector<4x32xf32>
    %cst_19 = arith.constant dense<0.000000e+00> : vector<64x32xf32>
    %16 = tpu.matmul %13, %15, %cst_19 {dimension_numbers = #tpu.dot_dimension_numbers<[1], [0], [0], [1], [0, 0, 1, 1], [], []>} : vector<64x4xf32>, vector<4x32xf32>, vector<64x32xf32> -> vector<64x32xf32>
    %17 = arith.addf %10, %16 : vector<64x32xf32>
    %c2 = arith.constant 2 : index
    %c0_20 = arith.constant 0 : index
    %c0_21 = arith.constant 0 : index
    %18 = vector.load %arg3[%c2, %c0_20, %c0_21] : memref<9x64x256xf32, #tpu.memory_space<vmem>>, vector<1x64x256xf32>
    %19 = vector.shape_cast %18 : vector<1x64x256xf32> to vector<64x256xf32>
    %cst_22 = arith.constant dense<0.000000e+00> : vector<64x4xf32>
    %20 = tpu.matmul %19, %4, %cst_22 {dimension_numbers = #tpu.dot_dimension_numbers<[1], [0], [0], [1], [0, 0, 1, 1], [], []>} : vector<64x256xf32>, vector<256x4xf32>, vector<64x4xf32> -> vector<64x4xf32>
    %c2_23 = arith.constant 2 : index
    %c0_24 = arith.constant 0 : index
    %c0_25 = arith.constant 0 : index
    %21 = vector.load %arg4[%c2_23, %c0_24, %c0_25] : memref<9x4x32xf32, #tpu.memory_space<vmem>>, vector<1x4x32xf32>
    %22 = vector.shape_cast %21 : vector<1x4x32xf32> to vector<4x32xf32>
    %cst_26 = arith.constant dense<0.000000e+00> : vector<64x32xf32>
    %23 = tpu.matmul %20, %22, %cst_26 {dimension_numbers = #tpu.dot_dimension_numbers<[1], [0], [0], [1], [0, 0, 1, 1], [], []>} : vector<64x4xf32>, vector<4x32xf32>, vector<64x32xf32> -> vector<64x32xf32>
    %24 = arith.addf %17, %23 : vector<64x32xf32>
    %c3 = arith.constant 3 : index
    %c0_27 = arith.constant 0 : index
    %c0_28 = arith.constant 0 : index
    %25 = vector.load %arg3[%c3, %c0_27, %c0_28] : memref<9x64x256xf32, #tpu.memory_space<vmem>>, vector<1x64x256xf32>
    %26 = vector.shape_cast %25 : vector<1x64x256xf32> to vector<64x256xf32>
    %cst_29 = arith.constant dense<0.000000e+00> : vector<64x4xf32>
    %27 = tpu.matmul %26, %4, %cst_29 {dimension_numbers = #tpu.dot_dimension_numbers<[1], [0], [0], [1], [0, 0, 1, 1], [], []>} : vector<64x256xf32>, vector<256x4xf32>, vector<64x4xf32> -> vector<64x4xf32>
    %c3_30 = arith.constant 3 : index
    %c0_31 = arith.constant 0 : index
    %c0_32 = arith.constant 0 : index
    %28 = vector.load %arg4[%c3_30, %c0_31, %c0_32] : memref<9x4x32xf32, #tpu.memory_space<vmem>>, vector<1x4x32xf32>
    %29 = vector.shape_cast %28 : vector<1x4x32xf32> to vector<4x32xf32>
    %cst_33 = arith.constant dense<0.000000e+00> : vector<64x32xf32>
    %30 = tpu.matmul %27, %29, %cst_33 {dimension_numbers = #tpu.dot_dimension_numbers<[1], [0], [0], [1], [0, 0, 1, 1], [], []>} : vector<64x4xf32>, vector<4x32xf32>, vector<64x32xf32> -> vector<64x32xf32>
    %31 = arith.addf %24, %30 : vector<64x32xf32>
    %c4 = arith.constant 4 : index
    %c0_34 = arith.constant 0 : index
    %c0_35 = arith.constant 0 : index
    %32 = vector.load %arg3[%c4, %c0_34, %c0_35] : memref<9x64x256xf32, #tpu.memory_space<vmem>>, vector<1x64x256xf32>
    %33 = vector.shape_cast %32 : vector<1x64x256xf32> to vector<64x256xf32>
    %cst_36 = arith.constant dense<0.000000e+00> : vector<64x4xf32>
    %34 = tpu.matmul %33, %4, %cst_36 {dimension_numbers = #tpu.dot_dimension_numbers<[1], [0], [0], [1], [0, 0, 1, 1], [], []>} : vector<64x256xf32>, vector<256x4xf32>, vector<64x4xf32> -> vector<64x4xf32>
    %c4_37 = arith.constant 4 : index
    %c0_38 = arith.constant 0 : index
    %c0_39 = arith.constant 0 : index
    %35 = vector.load %arg4[%c4_37, %c0_38, %c0_39] : memref<9x4x32xf32, #tpu.memory_space<vmem>>, vector<1x4x32xf32>
    %36 = vector.shape_cast %35 : vector<1x4x32xf32> to vector<4x32xf32>
    %cst_40 = arith.constant dense<0.000000e+00> : vector<64x32xf32>
    %37 = tpu.matmul %34, %36, %cst_40 {dimension_numbers = #tpu.dot_dimension_numbers<[1], [0], [0], [1], [0, 0, 1, 1], [], []>} : vector<64x4xf32>, vector<4x32xf32>, vector<64x32xf32> -> vector<64x32xf32>
    %38 = arith.addf %31, %37 : vector<64x32xf32>
    %c5 = arith.constant 5 : index
    %c0_41 = arith.constant 0 : index
    %c0_42 = arith.constant 0 : index
    %39 = vector.load %arg3[%c5, %c0_41, %c0_42] : memref<9x64x256xf32, #tpu.memory_space<vmem>>, vector<1x64x256xf32>
    %40 = vector.shape_cast %39 : vector<1x64x256xf32> to vector<64x256xf32>
    %cst_43 = arith.constant dense<0.000000e+00> : vector<64x4xf32>
    %41 = tpu.matmul %40, %4, %cst_43 {dimension_numbers = #tpu.dot_dimension_numbers<[1], [0], [0], [1], [0, 0, 1, 1], [], []>} : vector<64x256xf32>, vector<256x4xf32>, vector<64x4xf32> -> vector<64x4xf32>
    %c5_44 = arith.constant 5 : index
    %c0_45 = arith.constant 0 : index
    %c0_46 = arith.constant 0 : index
    %42 = vector.load %arg4[%c5_44, %c0_45, %c0_46] : memref<9x4x32xf32, #tpu.memory_space<vmem>>, vector<1x4x32xf32>
    %43 = vector.shape_cast %42 : vector<1x4x32xf32> to vector<4x32xf32>
    %cst_47 = arith.constant dense<0.000000e+00> : vector<64x32xf32>
    %44 = tpu.matmul %41, %43, %cst_47 {dimension_numbers = #tpu.dot_dimension_numbers<[1], [0], [0], [1], [0, 0, 1, 1], [], []>} : vector<64x4xf32>, vector<4x32xf32>, vector<64x32xf32> -> vector<64x32xf32>
    %45 = arith.addf %38, %44 : vector<64x32xf32>
    %c6 = arith.constant 6 : index
    %c0_48 = arith.constant 0 : index
    %c0_49 = arith.constant 0 : index
    %46 = vector.load %arg3[%c6, %c0_48, %c0_49] : memref<9x64x256xf32, #tpu.memory_space<vmem>>, vector<1x64x256xf32>
    %47 = vector.shape_cast %46 : vector<1x64x256xf32> to vector<64x256xf32>
    %cst_50 = arith.constant dense<0.000000e+00> : vector<64x4xf32>
    %48 = tpu.matmul %47, %4, %cst_50 {dimension_numbers = #tpu.dot_dimension_numbers<[1], [0], [0], [1], [0, 0, 1, 1], [], []>} : vector<64x256xf32>, vector<256x4xf32>, vector<64x4xf32> -> vector<64x4xf32>
    %c6_51 = arith.constant 6 : index
    %c0_52 = arith.constant 0 : index
    %c0_53 = arith.constant 0 : index
    %49 = vector.load %arg4[%c6_51, %c0_52, %c0_53] : memref<9x4x32xf32, #tpu.memory_space<vmem>>, vector<1x4x32xf32>
    %50 = vector.shape_cast %49 : vector<1x4x32xf32> to vector<4x32xf32>
    %cst_54 = arith.constant dense<0.000000e+00> : vector<64x32xf32>
    %51 = tpu.matmul %48, %50, %cst_54 {dimension_numbers = #tpu.dot_dimension_numbers<[1], [0], [0], [1], [0, 0, 1, 1], [], []>} : vector<64x4xf32>, vector<4x32xf32>, vector<64x32xf32> -> vector<64x32xf32>
    %52 = arith.addf %45, %51 : vector<64x32xf32>
    %c7 = arith.constant 7 : index
    %c0_55 = arith.constant 0 : index
    %c0_56 = arith.constant 0 : index
    %53 = vector.load %arg3[%c7, %c0_55, %c0_56] : memref<9x64x256xf32, #tpu.memory_space<vmem>>, vector<1x64x256xf32>
    %54 = vector.shape_cast %53 : vector<1x64x256xf32> to vector<64x256xf32>
    %cst_57 = arith.constant dense<0.000000e+00> : vector<64x4xf32>
    %55 = tpu.matmul %54, %4, %cst_57 {dimension_numbers = #tpu.dot_dimension_numbers<[1], [0], [0], [1], [0, 0, 1, 1], [], []>} : vector<64x256xf32>, vector<256x4xf32>, vector<64x4xf32> -> vector<64x4xf32>
    %c7_58 = arith.constant 7 : index
    %c0_59 = arith.constant 0 : index
    %c0_60 = arith.constant 0 : index
    %56 = vector.load %arg4[%c7_58, %c0_59, %c0_60] : memref<9x4x32xf32, #tpu.memory_space<vmem>>, vector<1x4x32xf32>
    %57 = vector.shape_cast %56 : vector<1x4x32xf32> to vector<4x32xf32>
    %cst_61 = arith.constant dense<0.000000e+00> : vector<64x32xf32>
    %58 = tpu.matmul %55, %57, %cst_61 {dimension_numbers = #tpu.dot_dimension_numbers<[1], [0], [0], [1], [0, 0, 1, 1], [], []>} : vector<64x4xf32>, vector<4x32xf32>, vector<64x32xf32> -> vector<64x32xf32>
    %59 = arith.addf %52, %58 : vector<64x32xf32>
    %c8 = arith.constant 8 : index
    %c0_62 = arith.constant 0 : index
    %c0_63 = arith.constant 0 : index
    %60 = vector.load %arg3[%c8, %c0_62, %c0_63] : memref<9x64x256xf32, #tpu.memory_space<vmem>>, vector<1x64x256xf32>
    %61 = vector.shape_cast %60 : vector<1x64x256xf32> to vector<64x256xf32>
    %cst_64 = arith.constant dense<0.000000e+00> : vector<64x4xf32>
    %62 = tpu.matmul %61, %4, %cst_64 {dimension_numbers = #tpu.dot_dimension_numbers<[1], [0], [0], [1], [0, 0, 1, 1], [], []>} : vector<64x256xf32>, vector<256x4xf32>, vector<64x4xf32> -> vector<64x4xf32>
    %c8_65 = arith.constant 8 : index
    %c0_66 = arith.constant 0 : index
    %c0_67 = arith.constant 0 : index
    %63 = vector.load %arg4[%c8_65, %c0_66, %c0_67] : memref<9x4x32xf32, #tpu.memory_space<vmem>>, vector<1x4x32xf32>
    %64 = vector.shape_cast %63 : vector<1x4x32xf32> to vector<4x32xf32>
    %cst_68 = arith.constant dense<0.000000e+00> : vector<64x32xf32>
    %65 = tpu.matmul %62, %64, %cst_68 {dimension_numbers = #tpu.dot_dimension_numbers<[1], [0], [0], [1], [0, 0, 1, 1], [], []>} : vector<64x4xf32>, vector<4x32xf32>, vector<64x32xf32> -> vector<64x32xf32>
    %66 = arith.addf %59, %65 : vector<64x32xf32>
    %c0_69 = arith.constant 0 : index
    %c0_70 = arith.constant 0 : index
    %67 = vector.load %arg5[%c0_69, %c0_70] : memref<1x32xf32, #tpu.memory_space<vmem>>, vector<1x32xf32>
    %c0_71 = arith.constant 0 : index
    %c0_72 = arith.constant 0 : index
    %68 = vector.load %arg6[%c0_71, %c0_72] : memref<1x32xf32, #tpu.memory_space<vmem>>, vector<1x32xf32>
    %cst_73 = arith.constant dense<0.000000e+00> : vector<32xf32>
    %69 = vector.multi_reduction <add>, %66, %cst_73 [0] : vector<64x32xf32> to vector<32xf32>
    %70 = vector.shape_cast %69 : vector<32xf32> to vector<1x32xf32>
    %71 = arith.mulf %66, %66 : vector<64x32xf32>
    %cst_74 = arith.constant dense<0.000000e+00> : vector<32xf32>
    %72 = vector.multi_reduction <add>, %71, %cst_74 [0] : vector<64x32xf32> to vector<32xf32>
    %73 = vector.shape_cast %72 : vector<32xf32> to vector<1x32xf32>
    %cst_75 = arith.constant 1.562500e-02 : f32
    %74 = vector.broadcast %cst_75 : f32 to vector<1x32xf32>
    %75 = arith.mulf %70, %74 : vector<1x32xf32>
    %cst_76 = arith.constant 1.562500e-02 : f32
    %76 = vector.broadcast %cst_76 : f32 to vector<1x32xf32>
    %77 = arith.mulf %73, %76 : vector<1x32xf32>
    %78 = arith.mulf %75, %75 : vector<1x32xf32>
    %79 = arith.subf %77, %78 : vector<1x32xf32>
    %cst_77 = arith.constant 0.000000e+00 : f32
    %80 = vector.broadcast %cst_77 : f32 to vector<1x32xf32>
    %81 = arith.maximumf %79, %80 : vector<1x32xf32>
    %82 = vector.broadcast %75 : vector<1x32xf32> to vector<64x32xf32>
    %83 = arith.subf %66, %82 : vector<64x32xf32>
    %cst_78 = arith.constant 9.99999974E-6 : f32
    %84 = vector.broadcast %cst_78 : f32 to vector<1x32xf32>
    %85 = arith.addf %81, %84 : vector<1x32xf32>
    %86 = math.rsqrt %85 : vector<1x32xf32>
    %87 = vector.broadcast %86 : vector<1x32xf32> to vector<64x32xf32>
    %88 = arith.mulf %83, %87 : vector<64x32xf32>
    %89 = vector.broadcast %67 : vector<1x32xf32> to vector<64x32xf32>
    %90 = arith.mulf %88, %89 : vector<64x32xf32>
    %91 = vector.broadcast %68 : vector<1x32xf32> to vector<64x32xf32>
    %92 = arith.addf %90, %91 : vector<64x32xf32>
    %cst_79 = arith.constant 0.000000e+00 : f32
    %cst_80 = arith.constant 6.000000e+00 : f32
    %93 = vector.broadcast %cst_79 : f32 to vector<64x32xf32>
    %94 = arith.maximumf %93, %92 : vector<64x32xf32>
    %95 = vector.broadcast %cst_80 : f32 to vector<64x32xf32>
    %96 = arith.minimumf %95, %94 : vector<64x32xf32>
    %c0_81 = arith.constant 0 : index
    %c0_82 = arith.constant 0 : index
    %97 = vector.load %arg7[%c0_81, %c0_82] : memref<32x192xf32, #tpu.memory_space<vmem>>, vector<32x192xf32>
    %cst_83 = arith.constant dense<0.000000e+00> : vector<64x192xf32>
    %98 = tpu.matmul %96, %97, %cst_83 {dimension_numbers = #tpu.dot_dimension_numbers<[1], [0], [0], [1], [0, 0, 1, 1], [], []>} : vector<64x32xf32>, vector<32x192xf32>, vector<64x192xf32> -> vector<64x192xf32>
    %c0_84 = arith.constant 0 : index
    %c0_85 = arith.constant 0 : index
    %99 = vector.load %arg8[%c0_84, %c0_85] : memref<1x192xf32, #tpu.memory_space<vmem>>, vector<1x192xf32>
    %c0_86 = arith.constant 0 : index
    %c0_87 = arith.constant 0 : index
    %100 = vector.load %arg9[%c0_86, %c0_87] : memref<1x192xf32, #tpu.memory_space<vmem>>, vector<1x192xf32>
    %cst_88 = arith.constant dense<0.000000e+00> : vector<192xf32>
    %101 = vector.multi_reduction <add>, %98, %cst_88 [0] : vector<64x192xf32> to vector<192xf32>
    %102 = vector.shape_cast %101 : vector<192xf32> to vector<1x192xf32>
    %103 = arith.mulf %98, %98 : vector<64x192xf32>
    %cst_89 = arith.constant dense<0.000000e+00> : vector<192xf32>
    %104 = vector.multi_reduction <add>, %103, %cst_89 [0] : vector<64x192xf32> to vector<192xf32>
    %105 = vector.shape_cast %104 : vector<192xf32> to vector<1x192xf32>
    %cst_90 = arith.constant 1.562500e-02 : f32
    %106 = vector.broadcast %cst_90 : f32 to vector<1x192xf32>
    %107 = arith.mulf %102, %106 : vector<1x192xf32>
    %cst_91 = arith.constant 1.562500e-02 : f32
    %108 = vector.broadcast %cst_91 : f32 to vector<1x192xf32>
    %109 = arith.mulf %105, %108 : vector<1x192xf32>
    %110 = arith.mulf %107, %107 : vector<1x192xf32>
    %111 = arith.subf %109, %110 : vector<1x192xf32>
    %cst_92 = arith.constant 0.000000e+00 : f32
    %112 = vector.broadcast %cst_92 : f32 to vector<1x192xf32>
    %113 = arith.maximumf %111, %112 : vector<1x192xf32>
    %114 = vector.broadcast %107 : vector<1x192xf32> to vector<64x192xf32>
    %115 = arith.subf %98, %114 : vector<64x192xf32>
    %cst_93 = arith.constant 9.99999974E-6 : f32
    %116 = vector.broadcast %cst_93 : f32 to vector<1x192xf32>
    %117 = arith.addf %113, %116 : vector<1x192xf32>
    %118 = math.rsqrt %117 : vector<1x192xf32>
    %119 = vector.broadcast %118 : vector<1x192xf32> to vector<64x192xf32>
    %120 = arith.mulf %115, %119 : vector<64x192xf32>
    %121 = vector.broadcast %99 : vector<1x192xf32> to vector<64x192xf32>
    %122 = arith.mulf %120, %121 : vector<64x192xf32>
    %123 = vector.broadcast %100 : vector<1x192xf32> to vector<64x192xf32>
    %124 = arith.addf %122, %123 : vector<64x192xf32>
    %cst_94 = arith.constant 0.000000e+00 : f32
    %cst_95 = arith.constant 6.000000e+00 : f32
    %125 = vector.broadcast %cst_94 : f32 to vector<64x192xf32>
    %126 = arith.maximumf %125, %124 : vector<64x192xf32>
    %127 = vector.broadcast %cst_95 : f32 to vector<64x192xf32>
    %128 = arith.minimumf %127, %126 : vector<64x192xf32>
    %c0_96 = arith.constant 0 : index
    %c0_97 = arith.constant 0 : index
    %129 = vector.load %arg11[%c0_96, %c0_97] : memref<9x192xf32, #tpu.memory_space<vmem>>, vector<9x192xf32>
    %c0_98 = arith.constant 0 : index
    %c0_99 = arith.constant 0 : index
    %c0_100 = arith.constant 0 : index
    %130 = vector.load %arg10[%c0_98, %c0_99, %c0_100] : memref<9x16x64xf32, #tpu.memory_space<vmem>>, vector<1x16x64xf32>
    %131 = vector.shape_cast %130 : vector<1x16x64xf32> to vector<16x64xf32>
    %cst_101 = arith.constant dense<0.000000e+00> : vector<16x192xf32>
    %132 = tpu.matmul %131, %128, %cst_101 {dimension_numbers = #tpu.dot_dimension_numbers<[1], [0], [0], [1], [0, 0, 1, 1], [], []>} : vector<16x64xf32>, vector<64x192xf32>, vector<16x192xf32> -> vector<16x192xf32>
    %133 = vector.extract_strided_slice %129 {offsets = [0, 0], sizes = [1, 192], strides = [1, 1]} : vector<9x192xf32> to vector<1x192xf32>
    %134 = vector.broadcast %133 : vector<1x192xf32> to vector<16x192xf32>
    %135 = arith.mulf %132, %134 : vector<16x192xf32>
    %c1_102 = arith.constant 1 : index
    %c0_103 = arith.constant 0 : index
    %c0_104 = arith.constant 0 : index
    %136 = vector.load %arg10[%c1_102, %c0_103, %c0_104] : memref<9x16x64xf32, #tpu.memory_space<vmem>>, vector<1x16x64xf32>
    %137 = vector.shape_cast %136 : vector<1x16x64xf32> to vector<16x64xf32>
    %cst_105 = arith.constant dense<0.000000e+00> : vector<16x192xf32>
    %138 = tpu.matmul %137, %128, %cst_105 {dimension_numbers = #tpu.dot_dimension_numbers<[1], [0], [0], [1], [0, 0, 1, 1], [], []>} : vector<16x64xf32>, vector<64x192xf32>, vector<16x192xf32> -> vector<16x192xf32>
    %139 = vector.extract_strided_slice %129 {offsets = [1, 0], sizes = [1, 192], strides = [1, 1]} : vector<9x192xf32> to vector<1x192xf32>
    %140 = vector.broadcast %139 : vector<1x192xf32> to vector<16x192xf32>
    %141 = arith.mulf %138, %140 : vector<16x192xf32>
    %142 = arith.addf %135, %141 : vector<16x192xf32>
    %c2_106 = arith.constant 2 : index
    %c0_107 = arith.constant 0 : index
    %c0_108 = arith.constant 0 : index
    %143 = vector.load %arg10[%c2_106, %c0_107, %c0_108] : memref<9x16x64xf32, #tpu.memory_space<vmem>>, vector<1x16x64xf32>
    %144 = vector.shape_cast %143 : vector<1x16x64xf32> to vector<16x64xf32>
    %cst_109 = arith.constant dense<0.000000e+00> : vector<16x192xf32>
    %145 = tpu.matmul %144, %128, %cst_109 {dimension_numbers = #tpu.dot_dimension_numbers<[1], [0], [0], [1], [0, 0, 1, 1], [], []>} : vector<16x64xf32>, vector<64x192xf32>, vector<16x192xf32> -> vector<16x192xf32>
    %146 = vector.extract_strided_slice %129 {offsets = [2, 0], sizes = [1, 192], strides = [1, 1]} : vector<9x192xf32> to vector<1x192xf32>
    %147 = vector.broadcast %146 : vector<1x192xf32> to vector<16x192xf32>
    %148 = arith.mulf %145, %147 : vector<16x192xf32>
    %149 = arith.addf %142, %148 : vector<16x192xf32>
    %c3_110 = arith.constant 3 : index
    %c0_111 = arith.constant 0 : index
    %c0_112 = arith.constant 0 : index
    %150 = vector.load %arg10[%c3_110, %c0_111, %c0_112] : memref<9x16x64xf32, #tpu.memory_space<vmem>>, vector<1x16x64xf32>
    %151 = vector.shape_cast %150 : vector<1x16x64xf32> to vector<16x64xf32>
    %cst_113 = arith.constant dense<0.000000e+00> : vector<16x192xf32>
    %152 = tpu.matmul %151, %128, %cst_113 {dimension_numbers = #tpu.dot_dimension_numbers<[1], [0], [0], [1], [0, 0, 1, 1], [], []>} : vector<16x64xf32>, vector<64x192xf32>, vector<16x192xf32> -> vector<16x192xf32>
    %153 = vector.extract_strided_slice %129 {offsets = [3, 0], sizes = [1, 192], strides = [1, 1]} : vector<9x192xf32> to vector<1x192xf32>
    %154 = vector.broadcast %153 : vector<1x192xf32> to vector<16x192xf32>
    %155 = arith.mulf %152, %154 : vector<16x192xf32>
    %156 = arith.addf %149, %155 : vector<16x192xf32>
    %c4_114 = arith.constant 4 : index
    %c0_115 = arith.constant 0 : index
    %c0_116 = arith.constant 0 : index
    %157 = vector.load %arg10[%c4_114, %c0_115, %c0_116] : memref<9x16x64xf32, #tpu.memory_space<vmem>>, vector<1x16x64xf32>
    %158 = vector.shape_cast %157 : vector<1x16x64xf32> to vector<16x64xf32>
    %cst_117 = arith.constant dense<0.000000e+00> : vector<16x192xf32>
    %159 = tpu.matmul %158, %128, %cst_117 {dimension_numbers = #tpu.dot_dimension_numbers<[1], [0], [0], [1], [0, 0, 1, 1], [], []>} : vector<16x64xf32>, vector<64x192xf32>, vector<16x192xf32> -> vector<16x192xf32>
    %160 = vector.extract_strided_slice %129 {offsets = [4, 0], sizes = [1, 192], strides = [1, 1]} : vector<9x192xf32> to vector<1x192xf32>
    %161 = vector.broadcast %160 : vector<1x192xf32> to vector<16x192xf32>
    %162 = arith.mulf %159, %161 : vector<16x192xf32>
    %163 = arith.addf %156, %162 : vector<16x192xf32>
    %c5_118 = arith.constant 5 : index
    %c0_119 = arith.constant 0 : index
    %c0_120 = arith.constant 0 : index
    %164 = vector.load %arg10[%c5_118, %c0_119, %c0_120] : memref<9x16x64xf32, #tpu.memory_space<vmem>>, vector<1x16x64xf32>
    %165 = vector.shape_cast %164 : vector<1x16x64xf32> to vector<16x64xf32>
    %cst_121 = arith.constant dense<0.000000e+00> : vector<16x192xf32>
    %166 = tpu.matmul %165, %128, %cst_121 {dimension_numbers = #tpu.dot_dimension_numbers<[1], [0], [0], [1], [0, 0, 1, 1], [], []>} : vector<16x64xf32>, vector<64x192xf32>, vector<16x192xf32> -> vector<16x192xf32>
    %167 = vector.extract_strided_slice %129 {offsets = [5, 0], sizes = [1, 192], strides = [1, 1]} : vector<9x192xf32> to vector<1x192xf32>
    %168 = vector.broadcast %167 : vector<1x192xf32> to vector<16x192xf32>
    %169 = arith.mulf %166, %168 : vector<16x192xf32>
    %170 = arith.addf %163, %169 : vector<16x192xf32>
    %c6_122 = arith.constant 6 : index
    %c0_123 = arith.constant 0 : index
    %c0_124 = arith.constant 0 : index
    %171 = vector.load %arg10[%c6_122, %c0_123, %c0_124] : memref<9x16x64xf32, #tpu.memory_space<vmem>>, vector<1x16x64xf32>
    %172 = vector.shape_cast %171 : vector<1x16x64xf32> to vector<16x64xf32>
    %cst_125 = arith.constant dense<0.000000e+00> : vector<16x192xf32>
    %173 = tpu.matmul %172, %128, %cst_125 {dimension_numbers = #tpu.dot_dimension_numbers<[1], [0], [0], [1], [0, 0, 1, 1], [], []>} : vector<16x64xf32>, vector<64x192xf32>, vector<16x192xf32> -> vector<16x192xf32>
    %174 = vector.extract_strided_slice %129 {offsets = [6, 0], sizes = [1, 192], strides = [1, 1]} : vector<9x192xf32> to vector<1x192xf32>
    %175 = vector.broadcast %174 : vector<1x192xf32> to vector<16x192xf32>
    %176 = arith.mulf %173, %175 : vector<16x192xf32>
    %177 = arith.addf %170, %176 : vector<16x192xf32>
    %c7_126 = arith.constant 7 : index
    %c0_127 = arith.constant 0 : index
    %c0_128 = arith.constant 0 : index
    %178 = vector.load %arg10[%c7_126, %c0_127, %c0_128] : memref<9x16x64xf32, #tpu.memory_space<vmem>>, vector<1x16x64xf32>
    %179 = vector.shape_cast %178 : vector<1x16x64xf32> to vector<16x64xf32>
    %cst_129 = arith.constant dense<0.000000e+00> : vector<16x192xf32>
    %180 = tpu.matmul %179, %128, %cst_129 {dimension_numbers = #tpu.dot_dimension_numbers<[1], [0], [0], [1], [0, 0, 1, 1], [], []>} : vector<16x64xf32>, vector<64x192xf32>, vector<16x192xf32> -> vector<16x192xf32>
    %181 = vector.extract_strided_slice %129 {offsets = [7, 0], sizes = [1, 192], strides = [1, 1]} : vector<9x192xf32> to vector<1x192xf32>
    %182 = vector.broadcast %181 : vector<1x192xf32> to vector<16x192xf32>
    %183 = arith.mulf %180, %182 : vector<16x192xf32>
    %184 = arith.addf %177, %183 : vector<16x192xf32>
    %c8_130 = arith.constant 8 : index
    %c0_131 = arith.constant 0 : index
    %c0_132 = arith.constant 0 : index
    %185 = vector.load %arg10[%c8_130, %c0_131, %c0_132] : memref<9x16x64xf32, #tpu.memory_space<vmem>>, vector<1x16x64xf32>
    %186 = vector.shape_cast %185 : vector<1x16x64xf32> to vector<16x64xf32>
    %cst_133 = arith.constant dense<0.000000e+00> : vector<16x192xf32>
    %187 = tpu.matmul %186, %128, %cst_133 {dimension_numbers = #tpu.dot_dimension_numbers<[1], [0], [0], [1], [0, 0, 1, 1], [], []>} : vector<16x64xf32>, vector<64x192xf32>, vector<16x192xf32> -> vector<16x192xf32>
    %188 = vector.extract_strided_slice %129 {offsets = [8, 0], sizes = [1, 192], strides = [1, 1]} : vector<9x192xf32> to vector<1x192xf32>
    %189 = vector.broadcast %188 : vector<1x192xf32> to vector<16x192xf32>
    %190 = arith.mulf %187, %189 : vector<16x192xf32>
    %191 = arith.addf %184, %190 : vector<16x192xf32>
    %c0_134 = arith.constant 0 : index
    %c0_135 = arith.constant 0 : index
    %192 = vector.load %arg12[%c0_134, %c0_135] : memref<1x192xf32, #tpu.memory_space<vmem>>, vector<1x192xf32>
    %c0_136 = arith.constant 0 : index
    %c0_137 = arith.constant 0 : index
    %193 = vector.load %arg13[%c0_136, %c0_137] : memref<1x192xf32, #tpu.memory_space<vmem>>, vector<1x192xf32>
    %cst_138 = arith.constant dense<0.000000e+00> : vector<192xf32>
    %194 = vector.multi_reduction <add>, %191, %cst_138 [0] : vector<16x192xf32> to vector<192xf32>
    %195 = vector.shape_cast %194 : vector<192xf32> to vector<1x192xf32>
    %196 = arith.mulf %191, %191 : vector<16x192xf32>
    %cst_139 = arith.constant dense<0.000000e+00> : vector<192xf32>
    %197 = vector.multi_reduction <add>, %196, %cst_139 [0] : vector<16x192xf32> to vector<192xf32>
    %198 = vector.shape_cast %197 : vector<192xf32> to vector<1x192xf32>
    %cst_140 = arith.constant 6.250000e-02 : f32
    %199 = vector.broadcast %cst_140 : f32 to vector<1x192xf32>
    %200 = arith.mulf %195, %199 : vector<1x192xf32>
    %cst_141 = arith.constant 6.250000e-02 : f32
    %201 = vector.broadcast %cst_141 : f32 to vector<1x192xf32>
    %202 = arith.mulf %198, %201 : vector<1x192xf32>
    %203 = arith.mulf %200, %200 : vector<1x192xf32>
    %204 = arith.subf %202, %203 : vector<1x192xf32>
    %cst_142 = arith.constant 0.000000e+00 : f32
    %205 = vector.broadcast %cst_142 : f32 to vector<1x192xf32>
    %206 = arith.maximumf %204, %205 : vector<1x192xf32>
    %207 = vector.broadcast %200 : vector<1x192xf32> to vector<16x192xf32>
    %208 = arith.subf %191, %207 : vector<16x192xf32>
    %cst_143 = arith.constant 9.99999974E-6 : f32
    %209 = vector.broadcast %cst_143 : f32 to vector<1x192xf32>
    %210 = arith.addf %206, %209 : vector<1x192xf32>
    %211 = math.rsqrt %210 : vector<1x192xf32>
    %212 = vector.broadcast %211 : vector<1x192xf32> to vector<16x192xf32>
    %213 = arith.mulf %208, %212 : vector<16x192xf32>
    %214 = vector.broadcast %192 : vector<1x192xf32> to vector<16x192xf32>
    %215 = arith.mulf %213, %214 : vector<16x192xf32>
    %216 = vector.broadcast %193 : vector<1x192xf32> to vector<16x192xf32>
    %217 = arith.addf %215, %216 : vector<16x192xf32>
    %cst_144 = arith.constant 0.000000e+00 : f32
    %cst_145 = arith.constant 6.000000e+00 : f32
    %218 = vector.broadcast %cst_144 : f32 to vector<16x192xf32>
    %219 = arith.maximumf %218, %217 : vector<16x192xf32>
    %220 = vector.broadcast %cst_145 : f32 to vector<16x192xf32>
    %221 = arith.minimumf %220, %219 : vector<16x192xf32>
    %c0_146 = arith.constant 0 : index
    %c0_147 = arith.constant 0 : index
    %222 = vector.load %arg14[%c0_146, %c0_147] : memref<192x64xf32, #tpu.memory_space<vmem>>, vector<192x64xf32>
    %cst_148 = arith.constant dense<0.000000e+00> : vector<16x64xf32>
    %223 = tpu.matmul %221, %222, %cst_148 {dimension_numbers = #tpu.dot_dimension_numbers<[1], [0], [0], [1], [0, 0, 1, 1], [], []>} : vector<16x192xf32>, vector<192x64xf32>, vector<16x64xf32> -> vector<16x64xf32>
    %c0_149 = arith.constant 0 : index
    %c0_150 = arith.constant 0 : index
    %224 = vector.load %arg15[%c0_149, %c0_150] : memref<1x64xf32, #tpu.memory_space<vmem>>, vector<1x64xf32>
    %c0_151 = arith.constant 0 : index
    %c0_152 = arith.constant 0 : index
    %225 = vector.load %arg16[%c0_151, %c0_152] : memref<1x64xf32, #tpu.memory_space<vmem>>, vector<1x64xf32>
    %cst_153 = arith.constant dense<0.000000e+00> : vector<64xf32>
    %226 = vector.multi_reduction <add>, %223, %cst_153 [0] : vector<16x64xf32> to vector<64xf32>
    %227 = vector.shape_cast %226 : vector<64xf32> to vector<1x64xf32>
    %228 = arith.mulf %223, %223 : vector<16x64xf32>
    %cst_154 = arith.constant dense<0.000000e+00> : vector<64xf32>
    %229 = vector.multi_reduction <add>, %228, %cst_154 [0] : vector<16x64xf32> to vector<64xf32>
    %230 = vector.shape_cast %229 : vector<64xf32> to vector<1x64xf32>
    %cst_155 = arith.constant 6.250000e-02 : f32
    %231 = vector.broadcast %cst_155 : f32 to vector<1x64xf32>
    %232 = arith.mulf %227, %231 : vector<1x64xf32>
    %cst_156 = arith.constant 6.250000e-02 : f32
    %233 = vector.broadcast %cst_156 : f32 to vector<1x64xf32>
    %234 = arith.mulf %230, %233 : vector<1x64xf32>
    %235 = arith.mulf %232, %232 : vector<1x64xf32>
    %236 = arith.subf %234, %235 : vector<1x64xf32>
    %cst_157 = arith.constant 0.000000e+00 : f32
    %237 = vector.broadcast %cst_157 : f32 to vector<1x64xf32>
    %238 = arith.maximumf %236, %237 : vector<1x64xf32>
    %239 = vector.broadcast %232 : vector<1x64xf32> to vector<16x64xf32>
    %240 = arith.subf %223, %239 : vector<16x64xf32>
    %cst_158 = arith.constant 9.99999974E-6 : f32
    %241 = vector.broadcast %cst_158 : f32 to vector<1x64xf32>
    %242 = arith.addf %238, %241 : vector<1x64xf32>
    %243 = math.rsqrt %242 : vector<1x64xf32>
    %244 = vector.broadcast %243 : vector<1x64xf32> to vector<16x64xf32>
    %245 = arith.mulf %240, %244 : vector<16x64xf32>
    %246 = vector.broadcast %224 : vector<1x64xf32> to vector<16x64xf32>
    %247 = arith.mulf %245, %246 : vector<16x64xf32>
    %248 = vector.broadcast %225 : vector<1x64xf32> to vector<16x64xf32>
    %249 = arith.addf %247, %248 : vector<16x64xf32>
    %c0_159 = arith.constant 0 : index
    %c0_160 = arith.constant 0 : index
    %250 = vector.load %arg17[%c0_159, %c0_160] : memref<64x384xf32, #tpu.memory_space<vmem>>, vector<64x384xf32>
    %cst_161 = arith.constant dense<0.000000e+00> : vector<16x384xf32>
    %251 = tpu.matmul %249, %250, %cst_161 {dimension_numbers = #tpu.dot_dimension_numbers<[1], [0], [0], [1], [0, 0, 1, 1], [], []>} : vector<16x64xf32>, vector<64x384xf32>, vector<16x384xf32> -> vector<16x384xf32>
    %c0_162 = arith.constant 0 : index
    %c0_163 = arith.constant 0 : index
    %252 = vector.load %arg18[%c0_162, %c0_163] : memref<1x384xf32, #tpu.memory_space<vmem>>, vector<1x384xf32>
    %c0_164 = arith.constant 0 : index
    %c0_165 = arith.constant 0 : index
    %253 = vector.load %arg19[%c0_164, %c0_165] : memref<1x384xf32, #tpu.memory_space<vmem>>, vector<1x384xf32>
    %cst_166 = arith.constant dense<0.000000e+00> : vector<384xf32>
    %254 = vector.multi_reduction <add>, %251, %cst_166 [0] : vector<16x384xf32> to vector<384xf32>
    %255 = vector.shape_cast %254 : vector<384xf32> to vector<1x384xf32>
    %256 = arith.mulf %251, %251 : vector<16x384xf32>
    %cst_167 = arith.constant dense<0.000000e+00> : vector<384xf32>
    %257 = vector.multi_reduction <add>, %256, %cst_167 [0] : vector<16x384xf32> to vector<384xf32>
    %258 = vector.shape_cast %257 : vector<384xf32> to vector<1x384xf32>
    %cst_168 = arith.constant 6.250000e-02 : f32
    %259 = vector.broadcast %cst_168 : f32 to vector<1x384xf32>
    %260 = arith.mulf %255, %259 : vector<1x384xf32>
    %cst_169 = arith.constant 6.250000e-02 : f32
    %261 = vector.broadcast %cst_169 : f32 to vector<1x384xf32>
    %262 = arith.mulf %258, %261 : vector<1x384xf32>
    %263 = arith.mulf %260, %260 : vector<1x384xf32>
    %264 = arith.subf %262, %263 : vector<1x384xf32>
    %cst_170 = arith.constant 0.000000e+00 : f32
    %265 = vector.broadcast %cst_170 : f32 to vector<1x384xf32>
    %266 = arith.maximumf %264, %265 : vector<1x384xf32>
    %267 = vector.broadcast %260 : vector<1x384xf32> to vector<16x384xf32>
    %268 = arith.subf %251, %267 : vector<16x384xf32>
    %cst_171 = arith.constant 9.99999974E-6 : f32
    %269 = vector.broadcast %cst_171 : f32 to vector<1x384xf32>
    %270 = arith.addf %266, %269 : vector<1x384xf32>
    %271 = math.rsqrt %270 : vector<1x384xf32>
    %272 = vector.broadcast %271 : vector<1x384xf32> to vector<16x384xf32>
    %273 = arith.mulf %268, %272 : vector<16x384xf32>
    %274 = vector.broadcast %252 : vector<1x384xf32> to vector<16x384xf32>
    %275 = arith.mulf %273, %274 : vector<16x384xf32>
    %276 = vector.broadcast %253 : vector<1x384xf32> to vector<16x384xf32>
    %277 = arith.addf %275, %276 : vector<16x384xf32>
    %cst_172 = arith.constant 0.000000e+00 : f32
    %cst_173 = arith.constant 6.000000e+00 : f32
    %278 = vector.broadcast %cst_172 : f32 to vector<16x384xf32>
    %279 = arith.maximumf %278, %277 : vector<16x384xf32>
    %280 = vector.broadcast %cst_173 : f32 to vector<16x384xf32>
    %281 = arith.minimumf %280, %279 : vector<16x384xf32>
    %c0_174 = arith.constant 0 : index
    %c0_175 = arith.constant 0 : index
    %282 = vector.load %arg21[%c0_174, %c0_175] : memref<9x384xf32, #tpu.memory_space<vmem>>, vector<9x384xf32>
    %c0_176 = arith.constant 0 : index
    %c0_177 = arith.constant 0 : index
    %c0_178 = arith.constant 0 : index
    %283 = vector.load %arg20[%c0_176, %c0_177, %c0_178] : memref<9x16x16xf32, #tpu.memory_space<vmem>>, vector<1x16x16xf32>
    %284 = vector.shape_cast %283 : vector<1x16x16xf32> to vector<16x16xf32>
    %cst_179 = arith.constant dense<0.000000e+00> : vector<16x384xf32>
    %285 = tpu.matmul %284, %281, %cst_179 {dimension_numbers = #tpu.dot_dimension_numbers<[1], [0], [0], [1], [0, 0, 1, 1], [], []>} : vector<16x16xf32>, vector<16x384xf32>, vector<16x384xf32> -> vector<16x384xf32>
    %286 = vector.extract_strided_slice %282 {offsets = [0, 0], sizes = [1, 384], strides = [1, 1]} : vector<9x384xf32> to vector<1x384xf32>
    %287 = vector.broadcast %286 : vector<1x384xf32> to vector<16x384xf32>
    %288 = arith.mulf %285, %287 : vector<16x384xf32>
    %c1_180 = arith.constant 1 : index
    %c0_181 = arith.constant 0 : index
    %c0_182 = arith.constant 0 : index
    %289 = vector.load %arg20[%c1_180, %c0_181, %c0_182] : memref<9x16x16xf32, #tpu.memory_space<vmem>>, vector<1x16x16xf32>
    %290 = vector.shape_cast %289 : vector<1x16x16xf32> to vector<16x16xf32>
    %cst_183 = arith.constant dense<0.000000e+00> : vector<16x384xf32>
    %291 = tpu.matmul %290, %281, %cst_183 {dimension_numbers = #tpu.dot_dimension_numbers<[1], [0], [0], [1], [0, 0, 1, 1], [], []>} : vector<16x16xf32>, vector<16x384xf32>, vector<16x384xf32> -> vector<16x384xf32>
    %292 = vector.extract_strided_slice %282 {offsets = [1, 0], sizes = [1, 384], strides = [1, 1]} : vector<9x384xf32> to vector<1x384xf32>
    %293 = vector.broadcast %292 : vector<1x384xf32> to vector<16x384xf32>
    %294 = arith.mulf %291, %293 : vector<16x384xf32>
    %295 = arith.addf %288, %294 : vector<16x384xf32>
    %c2_184 = arith.constant 2 : index
    %c0_185 = arith.constant 0 : index
    %c0_186 = arith.constant 0 : index
    %296 = vector.load %arg20[%c2_184, %c0_185, %c0_186] : memref<9x16x16xf32, #tpu.memory_space<vmem>>, vector<1x16x16xf32>
    %297 = vector.shape_cast %296 : vector<1x16x16xf32> to vector<16x16xf32>
    %cst_187 = arith.constant dense<0.000000e+00> : vector<16x384xf32>
    %298 = tpu.matmul %297, %281, %cst_187 {dimension_numbers = #tpu.dot_dimension_numbers<[1], [0], [0], [1], [0, 0, 1, 1], [], []>} : vector<16x16xf32>, vector<16x384xf32>, vector<16x384xf32> -> vector<16x384xf32>
    %299 = vector.extract_strided_slice %282 {offsets = [2, 0], sizes = [1, 384], strides = [1, 1]} : vector<9x384xf32> to vector<1x384xf32>
    %300 = vector.broadcast %299 : vector<1x384xf32> to vector<16x384xf32>
    %301 = arith.mulf %298, %300 : vector<16x384xf32>
    %302 = arith.addf %295, %301 : vector<16x384xf32>
    %c3_188 = arith.constant 3 : index
    %c0_189 = arith.constant 0 : index
    %c0_190 = arith.constant 0 : index
    %303 = vector.load %arg20[%c3_188, %c0_189, %c0_190] : memref<9x16x16xf32, #tpu.memory_space<vmem>>, vector<1x16x16xf32>
    %304 = vector.shape_cast %303 : vector<1x16x16xf32> to vector<16x16xf32>
    %cst_191 = arith.constant dense<0.000000e+00> : vector<16x384xf32>
    %305 = tpu.matmul %304, %281, %cst_191 {dimension_numbers = #tpu.dot_dimension_numbers<[1], [0], [0], [1], [0, 0, 1, 1], [], []>} : vector<16x16xf32>, vector<16x384xf32>, vector<16x384xf32> -> vector<16x384xf32>
    %306 = vector.extract_strided_slice %282 {offsets = [3, 0], sizes = [1, 384], strides = [1, 1]} : vector<9x384xf32> to vector<1x384xf32>
    %307 = vector.broadcast %306 : vector<1x384xf32> to vector<16x384xf32>
    %308 = arith.mulf %305, %307 : vector<16x384xf32>
    %309 = arith.addf %302, %308 : vector<16x384xf32>
    %c4_192 = arith.constant 4 : index
    %c0_193 = arith.constant 0 : index
    %c0_194 = arith.constant 0 : index
    %310 = vector.load %arg20[%c4_192, %c0_193, %c0_194] : memref<9x16x16xf32, #tpu.memory_space<vmem>>, vector<1x16x16xf32>
    %311 = vector.shape_cast %310 : vector<1x16x16xf32> to vector<16x16xf32>
    %cst_195 = arith.constant dense<0.000000e+00> : vector<16x384xf32>
    %312 = tpu.matmul %311, %281, %cst_195 {dimension_numbers = #tpu.dot_dimension_numbers<[1], [0], [0], [1], [0, 0, 1, 1], [], []>} : vector<16x16xf32>, vector<16x384xf32>, vector<16x384xf32> -> vector<16x384xf32>
    %313 = vector.extract_strided_slice %282 {offsets = [4, 0], sizes = [1, 384], strides = [1, 1]} : vector<9x384xf32> to vector<1x384xf32>
    %314 = vector.broadcast %313 : vector<1x384xf32> to vector<16x384xf32>
    %315 = arith.mulf %312, %314 : vector<16x384xf32>
    %316 = arith.addf %309, %315 : vector<16x384xf32>
    %c5_196 = arith.constant 5 : index
    %c0_197 = arith.constant 0 : index
    %c0_198 = arith.constant 0 : index
    %317 = vector.load %arg20[%c5_196, %c0_197, %c0_198] : memref<9x16x16xf32, #tpu.memory_space<vmem>>, vector<1x16x16xf32>
    %318 = vector.shape_cast %317 : vector<1x16x16xf32> to vector<16x16xf32>
    %cst_199 = arith.constant dense<0.000000e+00> : vector<16x384xf32>
    %319 = tpu.matmul %318, %281, %cst_199 {dimension_numbers = #tpu.dot_dimension_numbers<[1], [0], [0], [1], [0, 0, 1, 1], [], []>} : vector<16x16xf32>, vector<16x384xf32>, vector<16x384xf32> -> vector<16x384xf32>
    %320 = vector.extract_strided_slice %282 {offsets = [5, 0], sizes = [1, 384], strides = [1, 1]} : vector<9x384xf32> to vector<1x384xf32>
    %321 = vector.broadcast %320 : vector<1x384xf32> to vector<16x384xf32>
    %322 = arith.mulf %319, %321 : vector<16x384xf32>
    %323 = arith.addf %316, %322 : vector<16x384xf32>
    %c6_200 = arith.constant 6 : index
    %c0_201 = arith.constant 0 : index
    %c0_202 = arith.constant 0 : index
    %324 = vector.load %arg20[%c6_200, %c0_201, %c0_202] : memref<9x16x16xf32, #tpu.memory_space<vmem>>, vector<1x16x16xf32>
    %325 = vector.shape_cast %324 : vector<1x16x16xf32> to vector<16x16xf32>
    %cst_203 = arith.constant dense<0.000000e+00> : vector<16x384xf32>
    %326 = tpu.matmul %325, %281, %cst_203 {dimension_numbers = #tpu.dot_dimension_numbers<[1], [0], [0], [1], [0, 0, 1, 1], [], []>} : vector<16x16xf32>, vector<16x384xf32>, vector<16x384xf32> -> vector<16x384xf32>
    %327 = vector.extract_strided_slice %282 {offsets = [6, 0], sizes = [1, 384], strides = [1, 1]} : vector<9x384xf32> to vector<1x384xf32>
    %328 = vector.broadcast %327 : vector<1x384xf32> to vector<16x384xf32>
    %329 = arith.mulf %326, %328 : vector<16x384xf32>
    %330 = arith.addf %323, %329 : vector<16x384xf32>
    %c7_204 = arith.constant 7 : index
    %c0_205 = arith.constant 0 : index
    %c0_206 = arith.constant 0 : index
    %331 = vector.load %arg20[%c7_204, %c0_205, %c0_206] : memref<9x16x16xf32, #tpu.memory_space<vmem>>, vector<1x16x16xf32>
    %332 = vector.shape_cast %331 : vector<1x16x16xf32> to vector<16x16xf32>
    %cst_207 = arith.constant dense<0.000000e+00> : vector<16x384xf32>
    %333 = tpu.matmul %332, %281, %cst_207 {dimension_numbers = #tpu.dot_dimension_numbers<[1], [0], [0], [1], [0, 0, 1, 1], [], []>} : vector<16x16xf32>, vector<16x384xf32>, vector<16x384xf32> -> vector<16x384xf32>
    %334 = vector.extract_strided_slice %282 {offsets = [7, 0], sizes = [1, 384], strides = [1, 1]} : vector<9x384xf32> to vector<1x384xf32>
    %335 = vector.broadcast %334 : vector<1x384xf32> to vector<16x384xf32>
    %336 = arith.mulf %333, %335 : vector<16x384xf32>
    %337 = arith.addf %330, %336 : vector<16x384xf32>
    %c8_208 = arith.constant 8 : index
    %c0_209 = arith.constant 0 : index
    %c0_210 = arith.constant 0 : index
    %338 = vector.load %arg20[%c8_208, %c0_209, %c0_210] : memref<9x16x16xf32, #tpu.memory_space<vmem>>, vector<1x16x16xf32>
    %339 = vector.shape_cast %338 : vector<1x16x16xf32> to vector<16x16xf32>
    %cst_211 = arith.constant dense<0.000000e+00> : vector<16x384xf32>
    %340 = tpu.matmul %339, %281, %cst_211 {dimension_numbers = #tpu.dot_dimension_numbers<[1], [0], [0], [1], [0, 0, 1, 1], [], []>} : vector<16x16xf32>, vector<16x384xf32>, vector<16x384xf32> -> vector<16x384xf32>
    %341 = vector.extract_strided_slice %282 {offsets = [8, 0], sizes = [1, 384], strides = [1, 1]} : vector<9x384xf32> to vector<1x384xf32>
    %342 = vector.broadcast %341 : vector<1x384xf32> to vector<16x384xf32>
    %343 = arith.mulf %340, %342 : vector<16x384xf32>
    %344 = arith.addf %337, %343 : vector<16x384xf32>
    %c0_212 = arith.constant 0 : index
    %c0_213 = arith.constant 0 : index
    %345 = vector.load %arg22[%c0_212, %c0_213] : memref<1x384xf32, #tpu.memory_space<vmem>>, vector<1x384xf32>
    %c0_214 = arith.constant 0 : index
    %c0_215 = arith.constant 0 : index
    %346 = vector.load %arg23[%c0_214, %c0_215] : memref<1x384xf32, #tpu.memory_space<vmem>>, vector<1x384xf32>
    %cst_216 = arith.constant dense<0.000000e+00> : vector<384xf32>
    %347 = vector.multi_reduction <add>, %344, %cst_216 [0] : vector<16x384xf32> to vector<384xf32>
    %348 = vector.shape_cast %347 : vector<384xf32> to vector<1x384xf32>
    %349 = arith.mulf %344, %344 : vector<16x384xf32>
    %cst_217 = arith.constant dense<0.000000e+00> : vector<384xf32>
    %350 = vector.multi_reduction <add>, %349, %cst_217 [0] : vector<16x384xf32> to vector<384xf32>
    %351 = vector.shape_cast %350 : vector<384xf32> to vector<1x384xf32>
    %cst_218 = arith.constant 6.250000e-02 : f32
    %352 = vector.broadcast %cst_218 : f32 to vector<1x384xf32>
    %353 = arith.mulf %348, %352 : vector<1x384xf32>
    %cst_219 = arith.constant 6.250000e-02 : f32
    %354 = vector.broadcast %cst_219 : f32 to vector<1x384xf32>
    %355 = arith.mulf %351, %354 : vector<1x384xf32>
    %356 = arith.mulf %353, %353 : vector<1x384xf32>
    %357 = arith.subf %355, %356 : vector<1x384xf32>
    %cst_220 = arith.constant 0.000000e+00 : f32
    %358 = vector.broadcast %cst_220 : f32 to vector<1x384xf32>
    %359 = arith.maximumf %357, %358 : vector<1x384xf32>
    %360 = vector.broadcast %353 : vector<1x384xf32> to vector<16x384xf32>
    %361 = arith.subf %344, %360 : vector<16x384xf32>
    %cst_221 = arith.constant 9.99999974E-6 : f32
    %362 = vector.broadcast %cst_221 : f32 to vector<1x384xf32>
    %363 = arith.addf %359, %362 : vector<1x384xf32>
    %364 = math.rsqrt %363 : vector<1x384xf32>
    %365 = vector.broadcast %364 : vector<1x384xf32> to vector<16x384xf32>
    %366 = arith.mulf %361, %365 : vector<16x384xf32>
    %367 = vector.broadcast %345 : vector<1x384xf32> to vector<16x384xf32>
    %368 = arith.mulf %366, %367 : vector<16x384xf32>
    %369 = vector.broadcast %346 : vector<1x384xf32> to vector<16x384xf32>
    %370 = arith.addf %368, %369 : vector<16x384xf32>
    %cst_222 = arith.constant 0.000000e+00 : f32
    %cst_223 = arith.constant 6.000000e+00 : f32
    %371 = vector.broadcast %cst_222 : f32 to vector<16x384xf32>
    %372 = arith.maximumf %371, %370 : vector<16x384xf32>
    %373 = vector.broadcast %cst_223 : f32 to vector<16x384xf32>
    %374 = arith.minimumf %373, %372 : vector<16x384xf32>
    %c0_224 = arith.constant 0 : index
    %c0_225 = arith.constant 0 : index
    %375 = vector.load %arg24[%c0_224, %c0_225] : memref<384x96xf32, #tpu.memory_space<vmem>>, vector<384x96xf32>
    %cst_226 = arith.constant dense<0.000000e+00> : vector<16x96xf32>
    %376 = tpu.matmul %374, %375, %cst_226 {dimension_numbers = #tpu.dot_dimension_numbers<[1], [0], [0], [1], [0, 0, 1, 1], [], []>} : vector<16x384xf32>, vector<384x96xf32>, vector<16x96xf32> -> vector<16x96xf32>
    %c0_227 = arith.constant 0 : index
    %c0_228 = arith.constant 0 : index
    %377 = vector.load %arg25[%c0_227, %c0_228] : memref<1x96xf32, #tpu.memory_space<vmem>>, vector<1x96xf32>
    %c0_229 = arith.constant 0 : index
    %c0_230 = arith.constant 0 : index
    %378 = vector.load %arg26[%c0_229, %c0_230] : memref<1x96xf32, #tpu.memory_space<vmem>>, vector<1x96xf32>
    %cst_231 = arith.constant dense<0.000000e+00> : vector<96xf32>
    %379 = vector.multi_reduction <add>, %376, %cst_231 [0] : vector<16x96xf32> to vector<96xf32>
    %380 = vector.shape_cast %379 : vector<96xf32> to vector<1x96xf32>
    %381 = arith.mulf %376, %376 : vector<16x96xf32>
    %cst_232 = arith.constant dense<0.000000e+00> : vector<96xf32>
    %382 = vector.multi_reduction <add>, %381, %cst_232 [0] : vector<16x96xf32> to vector<96xf32>
    %383 = vector.shape_cast %382 : vector<96xf32> to vector<1x96xf32>
    %cst_233 = arith.constant 6.250000e-02 : f32
    %384 = vector.broadcast %cst_233 : f32 to vector<1x96xf32>
    %385 = arith.mulf %380, %384 : vector<1x96xf32>
    %cst_234 = arith.constant 6.250000e-02 : f32
    %386 = vector.broadcast %cst_234 : f32 to vector<1x96xf32>
    %387 = arith.mulf %383, %386 : vector<1x96xf32>
    %388 = arith.mulf %385, %385 : vector<1x96xf32>
    %389 = arith.subf %387, %388 : vector<1x96xf32>
    %cst_235 = arith.constant 0.000000e+00 : f32
    %390 = vector.broadcast %cst_235 : f32 to vector<1x96xf32>
    %391 = arith.maximumf %389, %390 : vector<1x96xf32>
    %392 = vector.broadcast %385 : vector<1x96xf32> to vector<16x96xf32>
    %393 = arith.subf %376, %392 : vector<16x96xf32>
    %cst_236 = arith.constant 9.99999974E-6 : f32
    %394 = vector.broadcast %cst_236 : f32 to vector<1x96xf32>
    %395 = arith.addf %391, %394 : vector<1x96xf32>
    %396 = math.rsqrt %395 : vector<1x96xf32>
    %397 = vector.broadcast %396 : vector<1x96xf32> to vector<16x96xf32>
    %398 = arith.mulf %393, %397 : vector<16x96xf32>
    %399 = vector.broadcast %377 : vector<1x96xf32> to vector<16x96xf32>
    %400 = arith.mulf %398, %399 : vector<16x96xf32>
    %401 = vector.broadcast %378 : vector<1x96xf32> to vector<16x96xf32>
    %402 = arith.addf %400, %401 : vector<16x96xf32>
    %c0_237 = arith.constant 0 : index
    %c0_238 = arith.constant 0 : index
    %403 = vector.load %arg27[%c0_237, %c0_238] : memref<96x1280xf32, #tpu.memory_space<vmem>>, vector<96x1280xf32>
    %cst_239 = arith.constant dense<0.000000e+00> : vector<16x1280xf32>
    %404 = tpu.matmul %402, %403, %cst_239 {dimension_numbers = #tpu.dot_dimension_numbers<[1], [0], [0], [1], [0, 0, 1, 1], [], []>} : vector<16x96xf32>, vector<96x1280xf32>, vector<16x1280xf32> -> vector<16x1280xf32>
    %c0_240 = arith.constant 0 : index
    %c0_241 = arith.constant 0 : index
    %405 = vector.load %arg28[%c0_240, %c0_241] : memref<1x1280xf32, #tpu.memory_space<vmem>>, vector<1x1280xf32>
    %c0_242 = arith.constant 0 : index
    %c0_243 = arith.constant 0 : index
    %406 = vector.load %arg29[%c0_242, %c0_243] : memref<1x1280xf32, #tpu.memory_space<vmem>>, vector<1x1280xf32>
    %cst_244 = arith.constant dense<0.000000e+00> : vector<1280xf32>
    %407 = vector.multi_reduction <add>, %404, %cst_244 [0] : vector<16x1280xf32> to vector<1280xf32>
    %408 = vector.shape_cast %407 : vector<1280xf32> to vector<1x1280xf32>
    %409 = arith.mulf %404, %404 : vector<16x1280xf32>
    %cst_245 = arith.constant dense<0.000000e+00> : vector<1280xf32>
    %410 = vector.multi_reduction <add>, %409, %cst_245 [0] : vector<16x1280xf32> to vector<1280xf32>
    %411 = vector.shape_cast %410 : vector<1280xf32> to vector<1x1280xf32>
    %cst_246 = arith.constant 6.250000e-02 : f32
    %412 = vector.broadcast %cst_246 : f32 to vector<1x1280xf32>
    %413 = arith.mulf %408, %412 : vector<1x1280xf32>
    %cst_247 = arith.constant 6.250000e-02 : f32
    %414 = vector.broadcast %cst_247 : f32 to vector<1x1280xf32>
    %415 = arith.mulf %411, %414 : vector<1x1280xf32>
    %416 = arith.mulf %413, %413 : vector<1x1280xf32>
    %417 = arith.subf %415, %416 : vector<1x1280xf32>
    %cst_248 = arith.constant 0.000000e+00 : f32
    %418 = vector.broadcast %cst_248 : f32 to vector<1x1280xf32>
    %419 = arith.maximumf %417, %418 : vector<1x1280xf32>
    %420 = vector.broadcast %413 : vector<1x1280xf32> to vector<16x1280xf32>
    %421 = arith.subf %404, %420 : vector<16x1280xf32>
    %cst_249 = arith.constant 9.99999974E-6 : f32
    %422 = vector.broadcast %cst_249 : f32 to vector<1x1280xf32>
    %423 = arith.addf %419, %422 : vector<1x1280xf32>
    %424 = math.rsqrt %423 : vector<1x1280xf32>
    %425 = vector.broadcast %424 : vector<1x1280xf32> to vector<16x1280xf32>
    %426 = arith.mulf %421, %425 : vector<16x1280xf32>
    %427 = vector.broadcast %405 : vector<1x1280xf32> to vector<16x1280xf32>
    %428 = arith.mulf %426, %427 : vector<16x1280xf32>
    %429 = vector.broadcast %406 : vector<1x1280xf32> to vector<16x1280xf32>
    %430 = arith.addf %428, %429 : vector<16x1280xf32>
    %cst_250 = arith.constant 0.000000e+00 : f32
    %cst_251 = arith.constant 6.000000e+00 : f32
    %431 = vector.broadcast %cst_250 : f32 to vector<16x1280xf32>
    %432 = arith.maximumf %431, %430 : vector<16x1280xf32>
    %433 = vector.broadcast %cst_251 : f32 to vector<16x1280xf32>
    %434 = arith.minimumf %433, %432 : vector<16x1280xf32>
    %c0_252 = arith.constant 0 : index
    %c0_253 = arith.constant 0 : index
    %435 = vector.load %arg30[%c0_252, %c0_253] : memref<1x1280xf32, #tpu.memory_space<vmem>>, vector<1x1280xf32>
    %436 = vector.broadcast %435 : vector<1x1280xf32> to vector<16x1280xf32>
    %437 = arith.mulf %434, %436 : vector<16x1280xf32>
    %cst_254 = arith.constant dense<0.000000e+00> : vector<16xf32>
    %438 = vector.multi_reduction <add>, %437, %cst_254 [1] : vector<16x1280xf32> to vector<16xf32>
    %439 = vector.shape_cast %438 : vector<16xf32> to vector<16x1xf32>
    %c0_255 = arith.constant 0 : index
    %c0_256 = arith.constant 0 : index
    %440 = vector.load %arg32[%c0_255, %c0_256] : memref<32x16xf32, #tpu.memory_space<vmem>>, vector<32x16xf32>
    %c0_257 = arith.constant 0 : index
    %c0_258 = arith.constant 0 : index
    %441 = vector.load %arg31[%c0_257, %c0_258] : memref<16x32xf32, #tpu.memory_space<vmem>>, vector<16x32xf32>
    %442 = vector.broadcast %439 : vector<16x1xf32> to vector<16x32xf32>
    %443 = arith.mulf %442, %441 : vector<16x32xf32>
    %cst_259 = arith.constant dense<0.000000e+00> : vector<32x32xf32>
    %444 = tpu.matmul %440, %443, %cst_259 {dimension_numbers = #tpu.dot_dimension_numbers<[1], [0], [0], [1], [0, 0, 1, 1], [], []>} : vector<32x16xf32>, vector<16x32xf32>, vector<32x32xf32> -> vector<32x32xf32>
    %445 = math.tanh %444 : vector<32x32xf32>
    %cst_260 = arith.constant 4.000000e+00 : f32
    %446 = vector.broadcast %cst_260 : f32 to vector<32x32xf32>
    %447 = arith.mulf %446, %445 : vector<32x32xf32>
    %cst_261 = arith.constant 7.000000e+00 : f32
    %448 = vector.broadcast %cst_261 : f32 to vector<32x32xf32>
    %449 = arith.addf %447, %448 : vector<32x32xf32>
    %cst_262 = arith.constant 5.000000e-01 : f32
    %450 = vector.broadcast %cst_262 : f32 to vector<32x32xf32>
    %451 = arith.mulf %449, %450 : vector<32x32xf32>
    %cst_263 = arith.constant 1.000000e+03 : f32
    %452 = vector.broadcast %cst_263 : f32 to vector<32x32xf32>
    %453 = arith.mulf %451, %452 : vector<32x32xf32>
    %c0_264 = arith.constant 0 : index
    %c0_265 = arith.constant 0 : index
    %454 = vector.load %arg33[%c0_264, %c0_265] : memref<32x32xf32, #tpu.memory_space<vmem>>, vector<32x32xf32>
    tpu.vector_store %arg33[%c0_264, %c0_265], %453 {strides = array<i32>} : memref<32x32xf32, #tpu.memory_space<vmem>>, vector<32x32xf32>,
    return
  }
}

</mosaic_0001>

<bundles_post_ra>
// kernel: tpu_custom_call.1
= control target key start
LH: loop header
LB: loop body
LE: loop exit
PB: predicated region body
PF: predicated region fallthrough
CT: control target
= control target key end

     0   :  { %s10497_s6 = smov 1   ;;  %s10498_s10 = smov 2   ;;  %s13324_s0 = inlined_call_operand.smem [shape: u32[34], index: -1, kind: input, shape index: {}] }
   0x1   :  { %s10564_s5 = sld [smem:[%s13324_s0]]   ;;  %s10499_s14 = smov 3  }
   0x2   :  { %s10569_s9 = sld [smem:[%s13324_s0 + %s10497_s6]]   ;;  %s10500_s18 = smov 4  }
   0x3   :  { %s10574_s13 = sld [smem:[%s13324_s0 + %s10498_s10]]   ;;  %s10501_s22 = smov 5  }
   0x4   :  { %s10579_s17 = sld [smem:[%s13324_s0 + %s10499_s14]]   ;;  %s10502_s26 = smov 6  }
   0x5   :  { %s10584_s21 = sld [smem:[%s13324_s0 + %s10500_s18]]   ;;  %s10503_s30 = smov 7  }
   0x6   :  { %s10589_s25 = sld [smem:[%s13324_s0 + %s10501_s22]]   ;;  %s10504_s4 = smov 8  }
   0x7   :  { %13362 = sst [smem:[#allocation39_spill]] %s10564_s5  ;;  %s10505_s10 = smov 9  }
   0x8   :  { %13363 = sst [smem:[#allocation40_spill]] %s10569_s9  ;;  %s10506_s15 = smov 10  }
   0x9   :  { %13364 = sst [smem:[#allocation41_spill]] %s10574_s13  ;;  %s10507_s20 = smov 11  }
   0xa   :  { %13365 = sst [smem:[#allocation42_spill]] %s10579_s17  ;;  %s10509_s1 = smov 13  }
   0xb   :  { %s10594_s29 = sld [smem:[%s13324_s0 + %s10502_s26]]   ;;  %s10508_s26 = smov 12  }
   0xc   :  { %13366 = sst [smem:[#allocation43_spill]] %s10589_s25  ;;  %s10510_s7 = smov 14  }
   0xd   :  { %s10599_s3 = sld [smem:[%s13324_s0 + %s10503_s30]]   ;;  %s10512_s22 = smov 16  }
   0xe   :  { %s10604_s8 = sld [smem:[%s13324_s0 + %s10504_s4]]   ;;  %s10513_s28 = smov 17  }
   0xf   :  { %s10609_s14 = sld [smem:[%s13324_s0 + %s10505_s10]]  }
  0x10   :  { %s10614_s19 = sld [smem:[%s13324_s0 + %s10506_s15]]   ;;  %s10511_s15 = smov 15  }
  0x11   :  { %13367 = sst [smem:[#allocation44_spill]] %s10594_s29 }
  0x12   :  { %s10619_s24 = sld [smem:[%s13324_s0 + %s10507_s20]]  }
  0x13   :  { %s10624_s30 = sld [smem:[%s13324_s0 + %s10508_s26]]  }
  0x14   :  { %s10629_s6 = sld [smem:[%s13324_s0 + %s10509_s1]]  }
  0x15   :  { %s10634_s12 = sld [smem:[%s13324_s0 + %s10510_s7]]   ;;  %s10514_s7 = smov 18  }
  0x16   :  { %13368 = sst [smem:[#allocation45_spill]] %s10614_s19 }
  0x17   :  { %s10639_s20 = sld [smem:[%s13324_s0 + %s10511_s15]]   ;;  %s10515_s15 = smov 19  }
  0x18   :  { %s10644_s27 = sld [smem:[%s13324_s0 + %s10512_s22]]   ;;  %s10516_s22 = smov 20  }
  0x19   :  { %s10649_s4 = sld [smem:[%s13324_s0 + %s10513_s28]]   ;;  %s10517_s28 = smov 21  }
  0x1a   :  { %s10659_s19 = sld [smem:[%s13324_s0 + %s10515_s15]]   ;;  %s10519_s15 = smov 23  }
  0x1b   :  { %13369 = sst [smem:[#allocation46_spill]] %s10634_s12 }
  0x1c   :  { %s10654_s12 = sld [smem:[%s13324_s0 + %s10514_s7]]   ;;  %s10518_s7 = smov 22  }
  0x1d   :  { %s10664_s29 = sld [smem:[%s13324_s0 + %s10516_s22]]   ;;  %s10520_s22 = smov 24  }
  0x1e   :  { %s10684_s25 = sld [smem:[%s13324_s0 + %s10520_s22]]   ;;  %s10524_s22 = smov 28  }
  0x1f   :  { %13370 = sst [smem:[#allocation47_spill]] %s10649_s4 }
  0x20   :  { %13372 = sst [smem:[#allocation49_spill]] %s10659_s19 }
  0x21   :  { %s10669_s4 = sld [smem:[%s13324_s0 + %s10517_s28]]   ;;  %s10521_s28 = smov 25  }
  0x22   :  { %13371 = sst [smem:[#allocation48_spill]] %s10654_s12 }
  0x23   :  { %s10674_s12 = sld [smem:[%s13324_s0 + %s10518_s7]]   ;;  %s10522_s7 = smov 26  }
  0x24   :  { %s10679_s19 = sld [smem:[%s13324_s0 + %s10519_s15]]   ;;  %s10523_s15 = smov 27  }
  0x25   :  { %13374 = sst [smem:[#allocation51_spill]] %s10684_s25 }
  0x26   :  { %s10689_s17 = sld [smem:[%s13324_s0 + %s10521_s28]]   ;;  %s10525_s28 = smov 29  }
  0x27   :  { %s10699_s13 = sld [smem:[%s13324_s0 + %s10523_s15]]   ;;  %s10527_s15 = smov 31  }
  0x28   :  { %s10704_s25 = sld [smem:[%s13324_s0 + %s10524_s22]]   ;;  %s10528_s22 = smov 32  }
  0x29   :  { %13373 = sst [smem:[#allocation50_spill]] %s10674_s12 }
  0x2a   :  { %s10694_s12 = sld [smem:[%s13324_s0 + %s10522_s7]]   ;;  %s10526_s7 = smov 30  }
  0x2b   :  { %s10714_s5 = sld [smem:[%s13324_s0 + %s10526_s7]]  }
  0x2c   :  { %13375 = sst [smem:[#allocation52_spill]] %s10689_s17 }
  0x2d   :  { %13376 = sst [smem:[#allocation53_spill]] %s10699_s13 }
  0x2e   :  { %s10709_s17 = sld [smem:[%s13324_s0 + %s10525_s28]]   ;;  %s10529_s28 = smov 33  }
  0x2f   :  { %s10719_s13 = sld [smem:[%s13324_s0 + %s10527_s15]]  }
  0x30   :  { %s10724_s9 = sld [smem:[%s13324_s0 + %s10528_s22]]  }
  0x34   :  { %13377 = sst [smem:[#allocation54_spill]] %s10709_s17 }
  0x35   :  { %s10729_s17 = sld [smem:[%s13324_s0 + %s10529_s28]]  }
  0x36   :  { %72 = vsyncpa [#allocation3], 0 }
  0x37   :  { %73 = vsyncpa [#allocation6], 0 }
  0x38   :  { %74 = vsyncpa [#allocation9], 0 }
  0x39   :  { %75 = vsyncpa [#allocation12], 0 }
  0x3a   :  { %76 = vsyncpa [#allocation15], 0 }
  0x3b   :  { %77 = vsyncpa [#allocation18], 0 }
  0x3c   :  { %78 = vsyncpa [#allocation21], 0 }
  0x3d   :  { %79 = vsyncpa [#allocation24], 0 }
  0x3e   :  { %80 = vsyncpa [#allocation27], 0 }
  0x3f   :  { %81 = vsyncpa [#allocation4], 0  ;;  %s10530_s7 = smov [#allocation5]  }
  0x40   :  { %s111_s10 = sshll.u32 %s10530_s7, 4  ;;  %s112_s10 = int_to_ptr.vmem [resolvable:$true] %s111_s10 }
  0x41   :  { %s10145_s11 = scalar_lea.vmem %s112_s10, 1024  ;;  %p10150_p1 = scmp.lt.s32.totalorder %s112_s10, %s112_s10 }
  0x42   :  { %p10146_p0 = scmp.ne.s32.totalorder %s112_s10, %s10145_s11  ;;  %p10151_p2 = scmp.lt.s32.totalorder %s10145_s11, %s10145_s11 }
  0x44   :  { %p10152_p3 = por %p10151_p2, %p10150_p1 }
  0x46   :  { %p10153_p4 = pnand %p10152_p3, %p10146_p0 }
  0x48   :  { %10156 = shalt.err (!%p10153_p4)
}
  0x49   :  { %s10531_s0 = smov 256   ;;  %s10532_s15 = smov 16  }
  0x4a   :  { %117 = dma.hbm_to_vmem [thread:$0]  %s10599_s3, 1024, %s112_s10, [#allocation6], %s10531_s0, %s10531_s0, %s10532_s15  }
  0x4b   :  { %s10533_s16 = smov [#allocation8]   ;;  %s10534_s22 = smov [#allocation11]  }
  0x4c   :  { %s134_s18 = sshll.u32 %s10533_s16, 4  ;;  %s158_s23 = sshll.u32 %s10534_s22, 4  ;;  %s135_s18 = int_to_ptr.vmem [resolvable:$true] %s134_s18  ;;  %s159_s23 = int_to_ptr.vmem [resolvable:$true] %s158_s23 }
  0x4d   :  { %s10165_s26 = scalar_lea.vmem %s135_s18, 32  ;;  %p10170_p6 = scmp.lt.s32.totalorder %s135_s18, %s135_s18 }
  0x4e   :  { %p10166_p5 = scmp.ne.s32.totalorder %s135_s18, %s10165_s26  ;;  %p10171_p7 = scmp.lt.s32.totalorder %s10165_s26, %s10165_s26 }
  0x50   :  { %p10172_p8 = por %p10171_p7, %p10170_p6 }
  0x52   :  { %p10173_p9 = pnand %p10172_p8, %p10166_p5 }
  0x54   :  { %10176 = shalt.err (!%p10173_p9)
}
  0x55   :  { %137 = dma.hbm_to_vmem [thread:$0]  %s10609_s14, 32, %s135_s18, [#allocation9]  }
  0x56   :  { %s10185_s28 = scalar_lea.vmem %s159_s23, 32  ;;  %p10190_p11 = scmp.lt.s32.totalorder %s159_s23, %s159_s23 }
  0x57   :  { %p10186_p10 = scmp.ne.s32.totalorder %s159_s23, %s10185_s28  ;;  %p10191_p12 = scmp.lt.s32.totalorder %s10185_s28, %s10185_s28 }
  0x59   :  { %p10192_p13 = por %p10191_p12, %p10190_p11 }
  0x5b   :  { %p10193_p0 = pnand %p10192_p13, %p10186_p10 }
  0x5d   :  { %10196 = shalt.err (!%p10193_p0)
}
  0x5e   :  { %161 = dma.hbm_to_vmem [thread:$0]  %s10624_s30, 32, %s159_s23, [#allocation12]  }
  0x5f   :  { %s10535_s3 = smov [#allocation14]   ;;  %s10536_s2 = smov [#allocation17]  }
  0x60   :  { %s180_s1 = sshll.u32 %s10535_s3, 4  ;;  %s205_s7 = sshll.u32 %s10536_s2, 4  ;;  %s181_s1 = int_to_ptr.vmem [resolvable:$true] %s180_s1  ;;  %s206_s7 = int_to_ptr.vmem [resolvable:$true] %s205_s7 }
  0x61   :  { %s10205_s10 = scalar_lea.vmem %s181_s1, 16  ;;  %s10209_s11 = scalar_lea.vmem %s181_s1, 32 }
  0x62   :  { %p10206_p1 = scmp.ne.s32.totalorder %s181_s1, %s10205_s10  ;;  %p10210_p2 = scmp.lt.s32.totalorder %s181_s1, %s181_s1 }
  0x63   :  { %p10211_p3 = scmp.lt.s32.totalorder %s10209_s11, %s10205_s10 }
  0x65   :  { %p10212_p4 = por %p10211_p3, %p10210_p2 }
  0x67   :  { %p10213_p5 = pnand %p10212_p4, %p10206_p1 }
  0x69   :  { %10216 = shalt.err (!%p10213_p5)
}
  0x6a   :  { %183 = dma.hbm_to_vmem [thread:$0]  %s10639_s20, 16, %s181_s1, [#allocation15]  }
  0x6b   :  { %s10225_s14 = scalar_lea.vmem %s206_s7, 2304  ;;  %p10230_p7 = scmp.lt.s32.totalorder %s206_s7, %s206_s7 }
  0x6c   :  { %p10226_p6 = scmp.ne.s32.totalorder %s206_s7, %s10225_s14  ;;  %p10231_p8 = scmp.lt.s32.totalorder %s10225_s14, %s10225_s14 }
  0x6e   :  { %p10232_p9 = por %p10231_p8, %p10230_p7 }
  0x70   :  { %p10233_p10 = pnand %p10232_p9, %p10226_p6 }
  0x72   :  { %10236 = shalt.err (!%p10233_p10)
}
  0x73   :  { %s10537_s30 = smov 128   ;;  %s10538_s16 = smov 8  }
  0x74   :  { %211 = dma.hbm_to_vmem [thread:$0]  %s10664_s29, 2304, %s206_s7, [#allocation18], %s10537_s30, %s10537_s30, %s10538_s16  }
  0x75   :  { %s10539_s18 = smov [#allocation20]   ;;  %s10540_s23 = smov [#allocation23]  }
  0x76   :  { %s232_s22 = sshll.u32 %s10539_s18, 4  ;;  %s258_s20 = sshll.u32 %s10540_s23, 4  ;;  %s233_s22 = int_to_ptr.vmem [resolvable:$true] %s232_s22  ;;  %s259_s20 = int_to_ptr.vmem [resolvable:$true] %s258_s20 }
  0x77   :  { %s10245_s26 = scalar_lea.vmem %s233_s22, 48  ;;  %s10249_s28 = scalar_lea.vmem %s233_s22, 64 }
  0x78   :  { %p10246_p11 = scmp.ne.s32.totalorder %s233_s22, %s10245_s26  ;;  %p10250_p12 = scmp.lt.s32.totalorder %s233_s22, %s233_s22 }
  0x79   :  { %p10251_p13 = scmp.lt.s32.totalorder %s10249_s28, %s10245_s26 }
  0x7b   :  { %p10252_p0 = por %p10251_p13, %p10250_p12 }
  0x7d   :  { %p10253_p1 = pnand %p10252_p0, %p10246_p11 }
  0x7f   :  { %10256 = shalt.err (!%p10253_p1)
}
  0x80   :  { %235 = dma.hbm_to_vmem [thread:$0]  %s10679_s19, 48, %s233_s22, [#allocation21]  }
  0x81   :  { %s10265_s3 = scalar_lea.vmem %s259_s20, 160  ;;  %p10270_p3 = scmp.lt.s32.totalorder %s259_s20, %s259_s20 }
  0x82   :  { %p10266_p2 = scmp.ne.s32.totalorder %s259_s20, %s10265_s3  ;;  %p10271_p4 = scmp.lt.s32.totalorder %s10265_s3, %s10265_s3 }
  0x84   :  { %p10272_p5 = por %p10271_p4, %p10270_p3 }
  0x86   :  { %p10273_p6 = pnand %p10272_p5, %p10266_p2 }
  0x88   :  { %10276 = shalt.err (!%p10273_p6)
}
  0x89   :  { %261 = dma.hbm_to_vmem [thread:$0]  %s10704_s25, 160, %s259_s20, [#allocation24]  }
  0x8a   :  { %s10541_s29 = smov [#allocation2]  }
  0x8b   :  { %s95_s1 = sshll.u32 %s10541_s29, 4  ;;  %s96_s1 = int_to_ptr.vmem [resolvable:$true] %s95_s1 }
  0x8c   :  { %s10285_s2 = scalar_lea.vmem %s96_s1, 576  ;;  %p10290_p8 = scmp.lt.s32.totalorder %s96_s1, %s96_s1 }
  0x8d   :  { %p10286_p7 = scmp.ne.s32.totalorder %s96_s1, %s10285_s2  ;;  %p10291_p9 = scmp.lt.s32.totalorder %s10285_s2, %s10285_s2 }
  0x8f   :  { %p10292_p10 = por %p10291_p9, %p10290_p8 }
  0x91   :  { %p10293_p11 = pnand %p10292_p10, %p10286_p7 }
  0x93   :  { %10296 = shalt.err (!%p10293_p11)
}
  0x94   :  { %s10542_s19 = smov 64   ;;  %s10543_s7 = smov 4  }
  0x95   :  { %101 = dma.hbm_to_vmem [thread:$0]  %s10584_s21, 576, %s96_s1, [#allocation3], %s10542_s19, %s10542_s19, %s10543_s7  }
  0x96   :  { %s10544_s10 = smov [#allocation7]   ;;  %s10545_s14 = smov [#allocation10]  }
  0x97   :  { %s124_s11 = sshll.u32 %s10544_s10, 4  ;;  %s145_s18 = sshll.u32 %s10545_s14, 4  ;;  %s125_s11 = int_to_ptr.vmem [resolvable:$true] %s124_s11  ;;  %s146_s18 = int_to_ptr.vmem [resolvable:$true] %s145_s18 }
  0x98   :  { %s10305_s25 = scalar_lea.vmem %s125_s11, 32  ;;  %p10310_p13 = scmp.lt.s32.totalorder %s125_s11, %s125_s11 }
  0x99   :  { %p10306_p12 = scmp.ne.s32.totalorder %s125_s11, %s10305_s25  ;;  %p10311_p0 = scmp.lt.s32.totalorder %s10305_s25, %s10305_s25 }
  0x9b   :  { %p10312_p1 = por %p10311_p0, %p10310_p13 }
  0x9d   :  { %p10313_p2 = pnand %p10312_p1, %p10306_p12 }
  0x9f   :  { %10316 = shalt.err (!%p10313_p2)
}
  0xa0   :  { %127 = dma.hbm_to_vmem [thread:$0]  %s10604_s8, 32, %s125_s11, [#allocation6]  }
  0xa1   :  { %s10325_s22 = scalar_lea.vmem %s146_s18, 512  ;;  %p10330_p4 = scmp.lt.s32.totalorder %s146_s18, %s146_s18 }
  0xa2   :  { %p10326_p3 = scmp.ne.s32.totalorder %s146_s18, %s10325_s22  ;;  %p10331_p5 = scmp.lt.s32.totalorder %s10325_s22, %s10325_s22 }
  0xa4   :  { %p10332_p6 = por %p10331_p5, %p10330_p4 }
  0xa6   :  { %p10333_p7 = pnand %p10332_p6, %p10326_p3 }
  0xa8   :  { %10336 = shalt.err (!%p10333_p7)
}
  0xa9   :  { %151 = dma.hbm_to_vmem [thread:$0]  %s10619_s24, 512, %s146_s18, [#allocation9], %s10531_s0, %s10531_s0, %s10532_s15  }
  0xaa   :  { %s10546_s21 = smov [#allocation13]   ;;  %s10547_s20 = smov [#allocation16]  }
  0xab   :  { %s168_s23 = sshll.u32 %s10546_s21, 4  ;;  %s190_s26 = sshll.u32 %s10547_s20, 4  ;;  %s169_s23 = int_to_ptr.vmem [resolvable:$true] %s168_s23  ;;  %s191_s26 = int_to_ptr.vmem [resolvable:$true] %s190_s26 }
  0xac   :  { %s10345_s28 = scalar_lea.vmem %s169_s23, 32  ;;  %p10350_p9 = scmp.lt.s32.totalorder %s169_s23, %s169_s23 }
  0xad   :  { %p10346_p8 = scmp.ne.s32.totalorder %s169_s23, %s10345_s28  ;;  %p10351_p10 = scmp.lt.s32.totalorder %s10345_s28, %s10345_s28 }
  0xaf   :  { %p10352_p11 = por %p10351_p10, %p10350_p9 }
  0xb1   :  { %p10353_p12 = pnand %p10352_p11, %p10346_p8 }
  0xb3   :  { %10356 = shalt.err (!%p10353_p12)
}
  0xb4   :  { %171 = dma.hbm_to_vmem [thread:$0]  %s10629_s6, 32, %s169_s23, [#allocation12]  }
  0xb5   :  { %s10365_s8 = scalar_lea.vmem %s191_s26, 16  ;;  %s10369_s3 = scalar_lea.vmem %s191_s26, 32 }
  0xb6   :  { %p10366_p13 = scmp.ne.s32.totalorder %s191_s26, %s10365_s8  ;;  %p10370_p0 = scmp.lt.s32.totalorder %s191_s26, %s191_s26 }
  0xb7   :  { %p10371_p1 = scmp.lt.s32.totalorder %s10369_s3, %s10365_s8 }
  0xb9   :  { %p10372_p2 = por %p10371_p1, %p10370_p0 }
  0xbb   :  { %p10373_p3 = pnand %p10372_p2, %p10366_p13 }
  0xbd   :  { %10376 = shalt.err (!%p10373_p3)
}
  0xbe   :  { %193 = dma.hbm_to_vmem [thread:$0]  %s10644_s27, 16, %s191_s26, [#allocation15]  }
  0xbf   :  { %s10548_s24 = smov [#allocation19]  }
  0xc0   :  { %s217_s0 = sshll.u32 %s10548_s24, 4  ;;  %s218_s0 = int_to_ptr.vmem [resolvable:$true] %s217_s0 }
  0xc1   :  { %s10385_s15 = scalar_lea.vmem %s218_s0, 768  ;;  %p10390_p5 = scmp.lt.s32.totalorder %s218_s0, %s218_s0 }
  0xc2   :  { %p10386_p4 = scmp.ne.s32.totalorder %s218_s0, %s10385_s15  ;;  %p10391_p6 = scmp.lt.s32.totalorder %s10385_s15, %s10385_s15 }
  0xc4   :  { %p10392_p7 = por %p10391_p6, %p10390_p5 }
  0xc6   :  { %p10393_p8 = pnand %p10392_p7, %p10386_p4 }
  0xc8   :  { %10396 = shalt.err (!%p10393_p8)
}
  0xc9   :  { %s10549_s6 = smov 384   ;;  %s10550_s29 = smov 24  }
  0xca   :  { %223 = dma.hbm_to_vmem [thread:$0]  %s10669_s4, 768, %s218_s0, [#allocation18], %s10549_s6, %s10549_s6, %s10550_s29  }
  0xcb   :  { %s10551_s1 = smov [#allocation22]   ;;  %s10552_s19 = smov [#allocation25]  }
  0xcc   :  { %s246_s2 = sshll.u32 %s10551_s1, 4  ;;  %s268_s7 = sshll.u32 %s10552_s19, 4  ;;  %s247_s2 = int_to_ptr.vmem [resolvable:$true] %s246_s2  ;;  %s269_s7 = int_to_ptr.vmem [resolvable:$true] %s268_s7 }
  0xcd   :  { %s10405_s27 = scalar_lea.vmem %s247_s2, 16  ;;  %s10409_s10 = scalar_lea.vmem %s247_s2, 32 }
  0xce   :  { %p10406_p9 = scmp.ne.s32.totalorder %s247_s2, %s10405_s27  ;;  %p10410_p10 = scmp.lt.s32.totalorder %s247_s2, %s247_s2 }
  0xcf   :  { %p10411_p11 = scmp.lt.s32.totalorder %s10409_s10, %s10405_s27 }
  0xd1   :  { %p10412_p12 = por %p10411_p11, %p10410_p10 }
  0xd3   :  { %p10413_p13 = pnand %p10412_p12, %p10406_p9 }
  0xd5   :  { %10416 = shalt.err (!%p10413_p13)
}
  0xd6   :  { %249 = dma.hbm_to_vmem [thread:$0]  %s10694_s12, 16, %s247_s2, [#allocation21]  }
  0xd7   :  { %s10425_s11 = scalar_lea.vmem %s269_s7, 160  ;;  %p10430_p1 = scmp.lt.s32.totalorder %s269_s7, %s269_s7 }
  0xd8   :  { %p10426_p0 = scmp.ne.s32.totalorder %s269_s7, %s10425_s11  ;;  %p10431_p2 = scmp.lt.s32.totalorder %s10425_s11, %s10425_s11 }
  0xda   :  { %p10432_p3 = por %p10431_p2, %p10430_p1 }
  0xdc   :  { %p10433_p4 = pnand %p10432_p3, %p10426_p0 }
  0xde   :  { %10436 = shalt.err (!%p10433_p4)
}
  0xdf   :  { %s13378_s4 = sld [smem:[#allocation54_spill]]  ;;  %s10553_s14 = smov [#allocation26]  }
  0xe0   :  { %s278_s18 = sshll.u32 %s10553_s14, 4  ;;  %s279_s18 = int_to_ptr.vmem [resolvable:$true] %s278_s18 }
  0xe1   :  { %s10445_s25 = scalar_lea.vmem %s279_s18, 160  ;;  %p10450_p6 = scmp.lt.s32.totalorder %s279_s18, %s279_s18 }
  0xe2   :  { %p10446_p5 = scmp.ne.s32.totalorder %s279_s18, %s10445_s25  ;;  %p10451_p7 = scmp.lt.s32.totalorder %s10445_s25, %s10445_s25 }
  0xe4   :  { %p10452_p8 = por %p10451_p7, %p10450_p6 }
  0xe5   :  { %271 = dma.hbm_to_vmem [thread:$0]  %s13378_s4, 160, %s269_s7, [#allocation24]  }
  0xe6   :  { %p10453_p9 = pnand %p10452_p8, %p10446_p5 }
  0xe8   :  { %10456 = shalt.err (!%p10453_p9)
}
  0xe9   :  { %281 = dma.hbm_to_vmem [thread:$0]  %s10714_s5, 160, %s279_s18, [#allocation27]  }
  0xea   :  { %10477 = dma.done.wait [#allocation3], 576  }
  0xeb   :  { %10478 = vsyncadd [#allocation3], 4294966720 }
  0xec   :  { %10479 = dma.done.wait [#allocation6], 1056  }
  0xed   :  { %10480 = vsyncadd [#allocation6], 4294966240 }
  0xee   :  { %10481 = dma.done.wait [#allocation9], 544  }
  0xef   :  { %10482 = vsyncadd [#allocation9], 4294966752 }
  0xf0   :  { %10483 = dma.done.wait [#allocation12], 64  }
  0xf1   :  { %10484 = vsyncadd [#allocation12], 4294967232 }
  0xf2   :  { %10485 = dma.done.wait [#allocation15], 32  }
  0xf3   :  { %10486 = vsyncadd [#allocation15], 4294967264 }
  0xf4   :  { %10487 = dma.done.wait [#allocation18], 3072  }
  0xf5   :  { %10488 = vsyncadd [#allocation18], 4294964224 }
  0xf6   :  { %10489 = dma.done.wait [#allocation21], 64  }
  0xf7   :  { %10490 = vsyncadd [#allocation21], 4294967232 }
  0xf8   :  { %10491 = dma.done.wait [#allocation24], 320  }
  0xf9   :  { %10492 = vsyncadd [#allocation24], 4294966976 }
  0xfa   :  { %10493 = dma.done.wait [#allocation27], 160  }
  0xfb   :  { %10494 = vsyncadd [#allocation27], 4294967136  ;;  %s13379_s12 = sld [smem:[#allocation40_spill]]  ;;  %v13334_v0 = vmov 0.0   ;;  %vm544_vm0 = vcmask 130048   ;;  %vm1362_vm1 = vcmask 1043456  }
  0xfc   :  { %641 = vmatprep.subr.mxu0 %v13334_v0  ;;  %866 = vmatprep.subr.mxu1 %v13334_v0  ;;  %s13380_s5 = sld [smem:[#allocation39_spill]]  ;;  %vm1337_vm2 = vcmask 31744   ;;  %vm3453_vm3 = vcmask 261120   ;;  %vm3731_vm4 = vcmask 523264   ;;  %vm7428_vm5 = vcmask 785408  }
  0xfd   :  { %s13381_s22 = sld [smem:[#allocation41_spill]] }
  0xfe   :  { %s13382_s21 = sld [smem:[#allocation42_spill]] }
  0xff   :  { %s13402_s23 = sld [smem:[#allocation43_spill]] }
 0x100   :  { %s13403_s20 = sld [smem:[#allocation44_spill]] }
 0x101   :  { %v477_v1 = vld [vmem:[%s13379_s12 + $0x78] sm:$0xff]  ;;  %v476_v2 = vld [vmem:[%s13379_s12 + $0x70] sm:$0xff]  ;;  %v475_v3 = vld [vmem:[%s13379_s12 + $0x68] sm:$0xff]  ;;  %s13406_s26 = sld [smem:[#allocation45_spill]] }
 0x102   :  { %642 = vmatpush1.msra.mxu0 %v477_v1  ;;  %v474_v4 = vld [vmem:[%s13379_s12 + $0x60] sm:$0xff]  ;;  %v509_v5 = vld [vmem:[%s13379_s12 + $0x178] sm:$0xff]  ;;  %v508_v6 = vld [vmem:[%s13379_s12 + $0x170] sm:$0xff]  ;;  %s13407_s28 = sld [smem:[#allocation46_spill]] }
 0x103   :  { %643 = vmatprep.subr.mxu0 %v13334_v0  ;;  %v473_v7 = vld [vmem:[%s13379_s12 + $0x58] sm:$0xff]  ;;  %867 = vmatpush1.msra.mxu1 %v509_v5  ;;  %v507_v8 = vld [vmem:[%s13379_s12 + $0x168] sm:$0xff]  ;;  %v472_v9 = vld [vmem:[%s13379_s12 + $0x50] sm:$0xff]  ;;  %s13413_s8 = sld [smem:[#allocation47_spill]] }
 0x104   :  { %644 = vmatpush1.msra.mxu0 %v476_v2  ;;  %868 = vmatprep.subr.mxu1 %v13334_v0  ;;  %v506_v10 = vld [vmem:[%s13379_s12 + $0x160] sm:$0xff]  ;;  %v471_v11 = vld [vmem:[%s13379_s12 + $0x48] sm:$0xff]  ;;  %v505_v12 = vld [vmem:[%s13379_s12 + $0x158] sm:$0xff]  ;;  %s13414_s3 = sld [smem:[#allocation48_spill]] }
 0x105   :  { %645 = vmatprep.subr.mxu0 %v13334_v0  ;;  %869 = vmatpush1.msra.mxu1 %v508_v6  ;;  %v470_v13 = vld [vmem:[%s13379_s12 + $0x40] sm:$0xff]  ;;  %v504_v14 = vld [vmem:[%s13379_s12 + $0x150] sm:$0xff]  ;;  %v469_v15 = vld [vmem:[%s13379_s12 + $0x38] sm:$0xff]  ;;  %s13415_s24 = sld [smem:[#allocation49_spill]] }
 0x106   :  { %646 = vmatpush1.msra.mxu0 %v475_v3  ;;  %870 = vmatprep.subr.mxu1 %v13334_v0  ;;  %v503_v16 = vld [vmem:[%s13379_s12 + $0x148] sm:$0xff]  ;;  %v468_v17 = vld [vmem:[%s13379_s12 + $0x30] sm:$0xff]  ;;  %v502_v18 = vld [vmem:[%s13379_s12 + $0x140] sm:$0xff]  ;;  %s13416_s0 = sld [smem:[#allocation51_spill]] }
 0x107   :  { %647 = vmatprep.subr.mxu0 %v13334_v0  ;;  %871 = vmatpush1.msra.mxu1 %v507_v8  ;;  %v467_v19 = vld [vmem:[%s13379_s12 + $0x28] sm:$0xff]  ;;  %v501_v20 = vld [vmem:[%s13379_s12 + $0x138] sm:$0xff]  ;;  %v466_v21 = vld [vmem:[%s13379_s12 + $0x20] sm:$0xff]  ;;  %s13428_s15 = sld [smem:[#allocation50_spill]] }
 0x108   :  { %648 = vmatpush1.msra.mxu0 %v474_v4  ;;  %872 = vmatprep.subr.mxu1 %v13334_v0  ;;  %v500_v22 = vld [vmem:[%s13379_s12 + $0x130] sm:$0xff]  ;;  %v465_v23 = vld [vmem:[%s13379_s12 + $0x18] sm:$0xff]  ;;  %v499_v24 = vld [vmem:[%s13379_s12 + $0x128] sm:$0xff]  ;;  %s13432_s6 = sld [smem:[#allocation53_spill]] }
 0x109   :  { %649 = vmatprep.subr.mxu0 %v13334_v0  ;;  %873 = vmatpush1.msra.mxu1 %v506_v10  ;;  %v464_v25 = vld [vmem:[%s13379_s12 + $0x10] sm:$0xff]  ;;  %v498_v26 = vld [vmem:[%s13379_s12 + $0x120] sm:$0xff]  ;;  %v463_v27 = vld [vmem:[%s13379_s12 + $0x8] sm:$0xff]  ;;  %s13434_s29 = sld [smem:[#allocation52_spill]] }
 0x10a   :  { %650 = vmatpush1.msra.mxu0 %v473_v7  ;;  %874 = vmatprep.subr.mxu1 %v13334_v0  ;;  %v497_v28 = vld [vmem:[%s13379_s12 + $0x118] sm:$0xff]  ;;  %v462_v29 = vld [vmem:[%s13379_s12] sm:$0xff]  ;;  %v496_v30 = vld [vmem:[%s13379_s12 + $0x110] sm:$0xff] }
 0x10b   :  { %651 = vmatprep.subr.mxu0 %v13334_v0  ;;  %875 = vmatpush1.msra.mxu1 %v505_v12  ;;  %v493_v31 = vld [vmem:[%s13379_s12 + $0xf8] sm:$0xff]  ;;  %v495_v32 = vld [vmem:[%s13379_s12 + $0x108] sm:$0xff]  ;;  %v492_v33 = vld [vmem:[%s13379_s12 + $0xf0] sm:$0xff] }
 0x10c   :  { %652 = vmatpush1.msra.mxu0 %v472_v9  ;;  %876 = vmatprep.subr.mxu1 %v13334_v0  ;;  %v494_v34 = vld [vmem:[%s13379_s12 + $0x100] sm:$0xff]  ;;  %v491_v35 = vld [vmem:[%s13379_s12 + $0xe8] sm:$0xff]  ;;  %v489_v39 = vld [vmem:[%s13379_s12 + $0xd8] sm:$0xff] }
 0x10d   :  { %653 = vmatprep.subr.mxu0 %v13334_v0  ;;  %877 = vmatpush1.msra.mxu1 %v504_v14  ;;  %v511_v36 = vld [vmem:[%s13379_s12 + $0x188] sm:$0xff]  ;;  %v490_v37 = vld [vmem:[%s13379_s12 + $0xe0] sm:$0xff]  ;;  %v337_v41 = vld [vmem:[%s13380_s5 + $0x18] sm:$0xff] }
 0x10e   :  { %654 = vmatpush1.msra.mxu0 %v471_v11  ;;  %878 = vmatprep.subr.mxu1 %v13334_v0  ;;  %v335_v38 = vld [vmem:[%s13380_s5 + $0x8] sm:$0xff]  ;;  %v510_v40 = vld [vmem:[%s13379_s12 + $0x180] sm:$0xff]  ;;  %v488_v42 = vld [vmem:[%s13379_s12 + $0xd0] sm:$0xff] }
 0x10f   :  { %655 = vmatprep.subr.mxu0 %v13334_v0  ;;  %879 = vmatpush1.msra.mxu1 %v503_v16  ;;  %v336_v43 = vld [vmem:[%s13380_s5 + $0x10] sm:$0xff]  ;;  %v341_v44 = vld [vmem:[%s13380_s5 + $0x38] sm:$0xff]  ;;  %v487_v45 = vld [vmem:[%s13379_s12 + $0xc8] sm:$0xff] }
 0x110   :  { %656 = vmatpush1.msra.mxu0 %v470_v13  ;;  %880 = vmatprep.subr.mxu1 %v13334_v0  ;;  %v486_v46 = vld [vmem:[%s13379_s12 + $0xc0] sm:$0xff]  ;;  %v340_v47 = vld [vmem:[%s13380_s5 + $0x30] sm:$0xff]  ;;  %v345_v48 = vld [vmem:[%s13380_s5 + $0x58] sm:$0xff] }
 0x111   :  { %657 = vmatprep.subr.mxu0 %v13334_v0  ;;  %881 = vmatpush1.msra.mxu1 %v502_v18  ;;  %v485_v49 = vld [vmem:[%s13379_s12 + $0xb8] sm:$0xff]  ;;  %v484_v50 = vld [vmem:[%s13379_s12 + $0xb0] sm:$0xff]  ;;  %v483_v53 = vld [vmem:[%s13379_s12 + $0xa8] sm:$0xff] }
 0x112   :  { %658 = vmatpush1.msra.mxu0 %v469_v15  ;;  %882 = vmatprep.subr.mxu1 %v13334_v0  ;;  %v344_v51 = vld [vmem:[%s13380_s5 + $0x50] sm:$0xff]  ;;  %v349_v52 = vld [vmem:[%s13380_s5 + $0x78] sm:$0xff]  ;;  %v482_v54 = vld [vmem:[%s13379_s12 + $0xa0] sm:$0xff] }
 0x113   :  { %659 = vmatprep.subr.mxu0 %v13334_v0  ;;  %883 = vmatpush1.msra.mxu1 %v501_v20  ;;  %v348_v55 = vld [vmem:[%s13380_s5 + $0x70] sm:$0xff]  ;;  %v353_v56 = vld [vmem:[%s13380_s5 + $0x98] sm:$0xff]  ;;  %v479_v61 = vld [vmem:[%s13379_s12 + $0x88] sm:$0xff] }
 0x114   :  { %660 = vmatpush1.msra.mxu0 %v468_v17  ;;  %884 = vmatprep.subr.mxu1 %v13334_v0  ;;  %v481_v57 = vld [vmem:[%s13379_s12 + $0x98] sm:$0xff]  ;;  %v480_v58 = vld [vmem:[%s13379_s12 + $0x90] sm:$0xff]  ;;  %v478_v62 = vld [vmem:[%s13379_s12 + $0x80] sm:$0xff] }
 0x115   :  { %661 = vmatprep.subr.mxu0 %v13334_v0  ;;  %885 = vmatpush1.msra.mxu1 %v500_v22  ;;  %v352_v59 = vld [vmem:[%s13380_s5 + $0x90] sm:$0xff]  ;;  %v357_v60 = vld [vmem:[%s13380_s5 + $0xb8] sm:$0xff]  ;;  %v334_v1 = vld [vmem:[%s13380_s5] sm:$0xff] }
 0x116   :  { %662 = vmatpush1.msra.mxu0 %v467_v19  ;;  %886 = vmatprep.subr.mxu1 %v13334_v0  ;;  %v356_v63 = vld [vmem:[%s13380_s5 + $0xb0] sm:$0xff]  ;;  %v361_v2 = vld [vmem:[%s13380_s5 + $0xd8] sm:$0xff]  ;;  %v339_v3 = vld [vmem:[%s13380_s5 + $0x28] sm:$0xff] }
 0x117   :  { %663 = vmatprep.subr.mxu0 %v13334_v0  ;;  %887 = vmatpush1.msra.mxu1 %v499_v24  ;;  %v360_v4 = vld [vmem:[%s13380_s5 + $0xd0] sm:$0xff]  ;;  %v338_v5 = vld [vmem:[%s13380_s5 + $0x20] sm:$0xff]  ;;  %v365_v6 = vld [vmem:[%s13380_s5 + $0xf8] sm:$0xff] }
 0x118   :  { %664 = vmatpush1.msra.mxu0 %v466_v21  ;;  %888 = vmatprep.subr.mxu1 %v13334_v0  ;;  %v343_v7 = vld [vmem:[%s13380_s5 + $0x48] sm:$0xff]  ;;  %v364_v8 = vld [vmem:[%s13380_s5 + $0xf0] sm:$0xff]  ;;  %v342_v9 = vld [vmem:[%s13380_s5 + $0x40] sm:$0xff] }
 0x119   :  { %665 = vmatprep.subr.mxu0 %v13334_v0  ;;  %889 = vmatpush1.msra.mxu1 %v498_v26  ;;  %v369_v10 = vld [vmem:[%s13380_s5 + $0x118] sm:$0xff]  ;;  %v347_v11 = vld [vmem:[%s13380_s5 + $0x68] sm:$0xff]  ;;  %v368_v12 = vld [vmem:[%s13380_s5 + $0x110] sm:$0xff] }
 0x11a   :  { %666 = vmatpush1.msra.mxu0 %v465_v23  ;;  %890 = vmatprep.subr.mxu1 %v13334_v0  ;;  %v346_v13 = vld [vmem:[%s13380_s5 + $0x60] sm:$0xff]  ;;  %v373_v14 = vld [vmem:[%s13380_s5 + $0x138] sm:$0xff]  ;;  %v351_v15 = vld [vmem:[%s13380_s5 + $0x88] sm:$0xff] }
 0x11b   :  { %667 = vmatprep.subr.mxu0 %v13334_v0  ;;  %891 = vmatpush1.msra.mxu1 %v497_v28  ;;  %v372_v16 = vld [vmem:[%s13380_s5 + $0x130] sm:$0xff]  ;;  %v350_v17 = vld [vmem:[%s13380_s5 + $0x80] sm:$0xff]  ;;  %v377_v18 = vld [vmem:[%s13380_s5 + $0x158] sm:$0xff] }
 0x11c   :  { %668 = vmatpush1.msra.mxu0 %v464_v25  ;;  %892 = vmatprep.subr.mxu1 %v13334_v0  ;;  %v355_v19 = vld [vmem:[%s13380_s5 + $0xa8] sm:$0xff]  ;;  %v376_v20 = vld [vmem:[%s13380_s5 + $0x150] sm:$0xff]  ;;  %v354_v21 = vld [vmem:[%s13380_s5 + $0xa0] sm:$0xff] }
 0x11d   :  { %669 = vmatprep.subr.mxu0 %v13334_v0  ;;  %893 = vmatpush1.msra.mxu1 %v496_v30  ;;  %v381_v22 = vld [vmem:[%s13380_s5 + $0x178] sm:$0xff]  ;;  %v359_v23 = vld [vmem:[%s13380_s5 + $0xc8] sm:$0xff]  ;;  %v380_v24 = vld [vmem:[%s13380_s5 + $0x170] sm:$0xff] }
 0x11e   :  { %670 = vmatpush1.msra.mxu0 %v463_v27  ;;  %894 = vmatprep.subr.mxu1 %v13334_v0  ;;  %v358_v25 = vld [vmem:[%s13380_s5 + $0xc0] sm:$0xff]  ;;  %v385_v26 = vld [vmem:[%s13380_s5 + $0x198] sm:$0xff]  ;;  %v363_v27 = vld [vmem:[%s13380_s5 + $0xe8] sm:$0xff] }
 0x11f   :  { %671 = vmatprep.subr.mxu0 %v13334_v0  ;;  %895 = vmatpush1.msra.mxu1 %v495_v32  ;;  %v384_v28 = vld [vmem:[%s13380_s5 + $0x190] sm:$0xff]  ;;  %v389_v30 = vld [vmem:[%s13380_s5 + $0x1b8] sm:$0xff] }
 0x120   :  { %672 = vmatpush1.msra.mxu0 %v462_v29  ;;  %896 = vmatprep.subr.mxu1 %v13334_v0  ;;  %v362_v29 = vld [vmem:[%s13380_s5 + $0xe0] sm:$0xff]  ;;  %v388_v32 = vld [vmem:[%s13380_s5 + $0x1b0] sm:$0xff] }
 0x121   :  { %673 = vmatprep.subr.mxu0 %v13334_v0  ;;  %897 = vmatpush1.msra.mxu1 %v494_v34  ;;  %v393_v34 = vld [vmem:[%s13380_s5 + $0x1d8] sm:$0xff] }
 0x122   :  { %674 = vmatpush2.msra.mxu0 %v493_v31  ;;  %926 = vmatprep.subr.mxu1 %v13334_v0  ;;  %v367_v31 = vld [vmem:[%s13380_s5 + $0x108] sm:$0xff] }
 0x123   :  { %675 = vmatprep.subr.mxu0 %v13334_v0  ;;  %927 = vmatpush2.msra.mxu1 %v511_v36  ;;  %v392_v36 = vld [vmem:[%s13380_s5 + $0x1d0] sm:$0xff] }
 0x124   :  { %676 = vmatpush2.msra.mxu0 %v492_v33  ;;  %928 = vmatprep.subr.mxu1 %v13334_v0  ;;  %v366_v33 = vld [vmem:[%s13380_s5 + $0x100] sm:$0xff] }
 0x125   :  { %677 = vmatprep.subr.mxu0 %v13334_v0  ;;  %705 = vmatprep.mubr.f32.mxu0 %v335_v38  ;;  %v397_v38 = vld [vmem:[%s13380_s5 + $0x1f8] sm:$0xff] }
 0x126   :  { %678 = vmatpush2.msra.mxu0 %v491_v35  ;;  %929 = vmatpush2.msra.mxu1 %v510_v40  ;;  %v371_v35 = vld [vmem:[%s13380_s5 + $0x128] sm:$0xff]  ;;  %v396_v40 = vld [vmem:[%s13380_s5 + $0x1f0] sm:$0xff] }
 0x127   :  { %679 = vmatprep.subr.mxu0 %v13334_v0  ;;  %8728 = vmatprep.mubr.msk.f32.mxu1 %vm544_vm0, %v337_v41  ;;  %v374_v41 = vld [vmem:[%s13380_s5 + $0x140] sm:$0xff] }
 0x128   :  { %680 = vmatpush2.msra.mxu0 %v490_v37  ;;  %931 = vmatmul.mubr.f32.vlgmr.msra.gmra.mxu1 %v336_v43  ;;  %v370_v37 = vld [vmem:[%s13380_s5 + $0x120] sm:$0xff]  ;;  %v379_v43 = vld [vmem:[%s13380_s5 + $0x168] sm:$0xff] }
 0x129   :  { %681 = vmatprep.subr.mxu0 %v13334_v0  ;;  %8729 = vmatprep.mubr.msk.f32.mxu1 %vm544_vm0, %v341_v44  ;;  %v400_v44 = vld [vmem:[%s13380_s5 + $0x210] sm:$0xff] }
 0x12a   :  { %682 = vmatpush2.msra.mxu0 %v489_v39  ;;  %v375_v39 = vld [vmem:[%s13380_s5 + $0x148] sm:$0xff] }
 0x12b   :  { %683 = vmatprep.subr.mxu0 %v13334_v0 }
 0x12c   :  { %684 = vmatpush2.msra.mxu0 %v488_v42  ;;  %936 = vmatmul.mubr.f32.gmra.mxu1 %v340_v47  ;;  %v401_v42 = vld [vmem:[%s13380_s5 + $0x218] sm:$0xff]  ;;  %v383_v47 = vld [vmem:[%s13380_s5 + $0x188] sm:$0xff] }
 0x12d   :  { %685 = vmatprep.subr.mxu0 %v13334_v0  ;;  %8730 = vmatprep.mubr.msk.f32.mxu1 %vm544_vm0, %v345_v48  ;;  %v404_v48 = vld [vmem:[%s13380_s5 + $0x230] sm:$0xff] }
 0x12e   :  { %686 = vmatpush2.msra.mxu0 %v487_v45  ;;  %v378_v45 = vld [vmem:[%s13380_s5 + $0x160] sm:$0xff] }
 0x12f   :  { %687 = vmatprep.subr.mxu0 %v13334_v0 }
 0x130   :  { %688 = vmatpush2.msra.mxu0 %v486_v46  ;;  %941 = vmatmul.mubr.f32.gmra.mxu1 %v344_v51  ;;  %v405_v46 = vld [vmem:[%s13380_s5 + $0x238] sm:$0xff]  ;;  %v387_v51 = vld [vmem:[%s13380_s5 + $0x1a8] sm:$0xff] }
 0x131   :  { %689 = vmatprep.subr.mxu0 %v13334_v0  ;;  %8731 = vmatprep.mubr.msk.f32.mxu1 %vm544_vm0, %v349_v52  ;;  %v408_v52 = vld [vmem:[%s13380_s5 + $0x250] sm:$0xff] }
 0x132   :  { %690 = vmatpush2.msra.mxu0 %v485_v49  ;;  %v382_v49 = vld [vmem:[%s13380_s5 + $0x180] sm:$0xff] }
 0x133   :  { %691 = vmatprep.subr.mxu0 %v13334_v0 }
 0x134   :  { %692 = vmatpush2.msra.mxu0 %v484_v50  ;;  %946 = vmatmul.mubr.f32.gmra.mxu1 %v348_v55  ;;  %v409_v50 = vld [vmem:[%s13380_s5 + $0x258] sm:$0xff]  ;;  %v391_v55 = vld [vmem:[%s13380_s5 + $0x1c8] sm:$0xff] }
 0x135   :  { %693 = vmatprep.subr.mxu0 %v13334_v0  ;;  %8732 = vmatprep.mubr.msk.f32.mxu1 %vm544_vm0, %v353_v56  ;;  %v412_v56 = vld [vmem:[%s13380_s5 + $0x270] sm:$0xff] }
 0x136   :  { %694 = vmatpush2.msra.mxu0 %v483_v53  ;;  %v386_v53 = vld [vmem:[%s13380_s5 + $0x1a0] sm:$0xff] }
 0x137   :  { %695 = vmatprep.subr.mxu0 %v13334_v0 }
 0x138   :  { %696 = vmatpush2.msra.mxu0 %v482_v54  ;;  %951 = vmatmul.mubr.f32.gmra.mxu1 %v352_v59  ;;  %v413_v54 = vld [vmem:[%s13380_s5 + $0x278] sm:$0xff]  ;;  %v395_v59 = vld [vmem:[%s13380_s5 + $0x1e8] sm:$0xff] }
 0x139   :  { %697 = vmatprep.subr.mxu0 %v13334_v0  ;;  %8733 = vmatprep.mubr.msk.f32.mxu1 %vm544_vm0, %v357_v60  ;;  %v416_v60 = vld [vmem:[%s13380_s5 + $0x290] sm:$0xff] }
 0x13a   :  { %698 = vmatpush2.msra.mxu0 %v481_v57  ;;  %v390_v57 = vld [vmem:[%s13380_s5 + $0x1c0] sm:$0xff] }
 0x13b   :  { %699 = vmatprep.subr.mxu0 %v13334_v0 }
 0x13c   :  { %700 = vmatpush2.msra.mxu0 %v480_v58  ;;  %956 = vmatmul.mubr.f32.gmra.mxu1 %v356_v63  ;;  %v417_v58 = vld [vmem:[%s13380_s5 + $0x298] sm:$0xff]  ;;  %v399_v63 = vld [vmem:[%s13380_s5 + $0x208] sm:$0xff] }
 0x13d   :  { %701 = vmatprep.subr.mxu0 %v13334_v0  ;;  %8734 = vmatprep.mubr.msk.f32.mxu1 %vm544_vm0, %v361_v2  ;;  %v398_v2 = vld [vmem:[%s13380_s5 + $0x200] sm:$0xff] }
 0x13e   :  { %702 = vmatpush2.msra.mxu0 %v479_v61  ;;  %v394_v61 = vld [vmem:[%s13380_s5 + $0x1e0] sm:$0xff] }
 0x13f   :  { %703 = vmatprep.subr.mxu0 %v13334_v0 }
 0x140   :  { %704 = vmatpush2.msra.mxu0 %v478_v62  ;;  %961 = vmatmul.mubr.f32.gmra.mxu1 %v360_v4  ;;  %v421_v62 = vld [vmem:[%s13380_s5 + $0x2b8] sm:$0xff]  ;;  %v403_v4 = vld [vmem:[%s13380_s5 + $0x228] sm:$0xff] }
 0x141   :  { %706 = vmatmul.mubr.f32.vlgmr.msra.gmra.mxu0 %v334_v1  ;;  %8735 = vmatprep.mubr.msk.f32.mxu1 %vm544_vm0, %v365_v6  ;;  %v420_v1 = vld [vmem:[%s13380_s5 + $0x2b0] sm:$0xff]  ;;  %v402_v6 = vld [vmem:[%s13380_s5 + $0x220] sm:$0xff] }
 0x142   :  { %710 = vmatprep.mubr.f32.mxu0 %v339_v3  ;;  %v425_v3 = vld [vmem:[%s13380_s5 + $0x2d8] sm:$0xff] }
 0x144   :  { %966 = vmatmul.mubr.f32.gmra.mxu1 %v364_v8  ;;  %v407_v8 = vld [vmem:[%s13380_s5 + $0x248] sm:$0xff] }
 0x145   :  { %711 = vmatmul.mubr.f32.gmra.mxu0 %v338_v5  ;;  %8736 = vmatprep.mubr.msk.f32.mxu1 %vm544_vm0, %v369_v10  ;;  %v424_v5 = vld [vmem:[%s13380_s5 + $0x2d0] sm:$0xff]  ;;  %v406_v10 = vld [vmem:[%s13380_s5 + $0x240] sm:$0xff] }
 0x146   :  { %715 = vmatprep.mubr.f32.mxu0 %v343_v7  ;;  %v429_v7 = vld [vmem:[%s13380_s5 + $0x2f8] sm:$0xff] }
 0x148   :  { %971 = vmatmul.mubr.f32.gmra.mxu1 %v368_v12  ;;  %v411_v12 = vld [vmem:[%s13380_s5 + $0x268] sm:$0xff] }
 0x149   :  { %716 = vmatmul.mubr.f32.gmra.mxu0 %v342_v9  ;;  %8737 = vmatprep.mubr.msk.f32.mxu1 %vm544_vm0, %v373_v14  ;;  %v428_v9 = vld [vmem:[%s13380_s5 + $0x2f0] sm:$0xff]  ;;  %v410_v14 = vld [vmem:[%s13380_s5 + $0x260] sm:$0xff] }
 0x14a   :  { %720 = vmatprep.mubr.f32.mxu0 %v347_v11  ;;  %v433_v11 = vld [vmem:[%s13380_s5 + $0x318] sm:$0xff] }
 0x14c   :  { %976 = vmatmul.mubr.f32.gmra.mxu1 %v372_v16  ;;  %v415_v16 = vld [vmem:[%s13380_s5 + $0x288] sm:$0xff] }
 0x14d   :  { %721 = vmatmul.mubr.f32.gmra.mxu0 %v346_v13  ;;  %8738 = vmatprep.mubr.msk.f32.mxu1 %vm544_vm0, %v377_v18  ;;  %v432_v13 = vld [vmem:[%s13380_s5 + $0x310] sm:$0xff]  ;;  %v414_v18 = vld [vmem:[%s13380_s5 + $0x280] sm:$0xff] }
 0x14e   :  { %725 = vmatprep.mubr.f32.mxu0 %v351_v15  ;;  %v437_v15 = vld [vmem:[%s13380_s5 + $0x338] sm:$0xff] }
 0x150   :  { %981 = vmatmul.mubr.f32.gmra.mxu1 %v376_v20  ;;  %v419_v20 = vld [vmem:[%s13380_s5 + $0x2a8] sm:$0xff] }
 0x151   :  { %726 = vmatmul.mubr.f32.gmra.mxu0 %v350_v17  ;;  %8739 = vmatprep.mubr.msk.f32.mxu1 %vm544_vm0, %v381_v22  ;;  %v436_v17 = vld [vmem:[%s13380_s5 + $0x330] sm:$0xff]  ;;  %v418_v22 = vld [vmem:[%s13380_s5 + $0x2a0] sm:$0xff] }
 0x152   :  { %730 = vmatprep.mubr.f32.mxu0 %v355_v19  ;;  %v441_v19 = vld [vmem:[%s13380_s5 + $0x358] sm:$0xff] }
 0x154   :  { %986 = vmatmul.mubr.f32.gmra.mxu1 %v380_v24  ;;  %v423_v24 = vld [vmem:[%s13380_s5 + $0x2c8] sm:$0xff] }
 0x155   :  { %731 = vmatmul.mubr.f32.gmra.mxu0 %v354_v21  ;;  %8740 = vmatprep.mubr.msk.f32.mxu1 %vm544_vm0, %v385_v26  ;;  %v440_v21 = vld [vmem:[%s13380_s5 + $0x350] sm:$0xff]  ;;  %v422_v26 = vld [vmem:[%s13380_s5 + $0x2c0] sm:$0xff] }
 0x156   :  { %735 = vmatprep.mubr.f32.mxu0 %v359_v23  ;;  %v445_v23 = vld [vmem:[%s13380_s5 + $0x378] sm:$0xff] }
 0x158   :  { %991 = vmatmul.mubr.f32.gmra.mxu1 %v384_v28  ;;  %v427_v28 = vld [vmem:[%s13380_s5 + $0x2e8] sm:$0xff] }
 0x159   :  { %736 = vmatmul.mubr.f32.gmra.mxu0 %v358_v25  ;;  %8741 = vmatprep.mubr.msk.f32.mxu1 %vm544_vm0, %v389_v30  ;;  %v444_v25 = vld [vmem:[%s13380_s5 + $0x370] sm:$0xff]  ;;  %v426_v30 = vld [vmem:[%s13380_s5 + $0x2e0] sm:$0xff] }
 0x15a   :  { %740 = vmatprep.mubr.f32.mxu0 %v363_v27  ;;  %v449_v27 = vld [vmem:[%s13380_s5 + $0x398] sm:$0xff] }
 0x15c   :  { %996 = vmatmul.mubr.f32.gmra.mxu1 %v388_v32  ;;  %v431_v32 = vld [vmem:[%s13380_s5 + $0x308] sm:$0xff] }
 0x15d   :  { %741 = vmatmul.mubr.f32.gmra.mxu0 %v362_v29  ;;  %8742 = vmatprep.mubr.msk.f32.mxu1 %vm544_vm0, %v393_v34  ;;  %v448_v29 = vld [vmem:[%s13380_s5 + $0x390] sm:$0xff]  ;;  %v430_v34 = vld [vmem:[%s13380_s5 + $0x300] sm:$0xff] }
 0x15e   :  { %745 = vmatprep.mubr.f32.mxu0 %v367_v31  ;;  %v453_v31 = vld [vmem:[%s13380_s5 + $0x3b8] sm:$0xff] }
 0x160   :  { %1001 = vmatmul.mubr.f32.gmra.mxu1 %v392_v36  ;;  %v435_v36 = vld [vmem:[%s13380_s5 + $0x328] sm:$0xff] }
 0x161   :  { %746 = vmatmul.mubr.f32.gmra.mxu0 %v366_v33  ;;  %8743 = vmatprep.mubr.msk.f32.mxu1 %vm544_vm0, %v397_v38  ;;  %v452_v33 = vld [vmem:[%s13380_s5 + $0x3b0] sm:$0xff]  ;;  %v434_v38 = vld [vmem:[%s13380_s5 + $0x320] sm:$0xff] }
 0x162   :  { %750 = vmatprep.mubr.f32.mxu0 %v371_v35  ;;  %v457_v35 = vld [vmem:[%s13380_s5 + $0x3d8] sm:$0xff] }
 0x164   :  { %1006 = vmatmul.mubr.f32.gmra.mxu1 %v396_v40  ;;  %v439_v40 = vld [vmem:[%s13380_s5 + $0x348] sm:$0xff] }
 0x165   :  { %751 = vmatmul.mubr.f32.gmra.mxu0 %v370_v37  ;;  %8744 = vmatprep.mubr.msk.f32.mxu1 %vm544_vm0, %v401_v42  ;;  %v456_v37 = vld [vmem:[%s13380_s5 + $0x3d0] sm:$0xff]  ;;  %v438_v42 = vld [vmem:[%s13380_s5 + $0x340] sm:$0xff] }
 0x166   :  { %755 = vmatprep.mubr.f32.mxu0 %v375_v39  ;;  %v461_v39 = vld [vmem:[%s13380_s5 + $0x3f8] sm:$0xff] }
 0x168   :  { %1011 = vmatmul.mubr.f32.gmra.mxu1 %v400_v44  ;;  %v442_v44 = vld [vmem:[%s13380_s5 + $0x360] sm:$0xff] }
 0x169   :  { %756 = vmatmul.mubr.f32.gmra.mxu0 %v374_v41  ;;  %8745 = vmatprep.mubr.msk.f32.mxu1 %vm544_vm0, %v405_v46  ;;  %v460_v41 = vld [vmem:[%s13380_s5 + $0x3f0] sm:$0xff]  ;;  %v446_v46 = vld [vmem:[%s13380_s5 + $0x380] sm:$0xff] }
 0x16a   :  { %760 = vmatprep.mubr.f32.mxu0 %v379_v43  ;;  %v443_v43 = vld [vmem:[%s13380_s5 + $0x368] sm:$0xff] }
 0x16c   :  { %1016 = vmatmul.mubr.f32.gmra.mxu1 %v404_v48  ;;  %v450_v48 = vld [vmem:[%s13380_s5 + $0x3a0] sm:$0xff] }
 0x16d   :  { %761 = vmatmul.mubr.f32.gmra.mxu0 %v378_v45  ;;  %8746 = vmatprep.mubr.msk.f32.mxu1 %vm544_vm0, %v409_v50  ;;  %v447_v45 = vld [vmem:[%s13380_s5 + $0x388] sm:$0xff]  ;;  %v454_v50 = vld [vmem:[%s13380_s5 + $0x3c0] sm:$0xff] }
 0x16e   :  { %765 = vmatprep.mubr.f32.mxu0 %v383_v47  ;;  %v451_v47 = vld [vmem:[%s13380_s5 + $0x3a8] sm:$0xff] }
 0x170   :  { %1021 = vmatmul.mubr.f32.gmra.mxu1 %v408_v52  ;;  %v458_v52 = vld [vmem:[%s13380_s5 + $0x3e0] sm:$0xff] }
 0x171   :  { %766 = vmatmul.mubr.f32.gmra.mxu0 %v382_v49  ;;  %8747 = vmatprep.mubr.msk.f32.mxu1 %vm544_vm0, %v413_v54  ;;  %v455_v49 = vld [vmem:[%s13380_s5 + $0x3c8] sm:$0xff] }
 0x172   :  { %770 = vmatprep.mubr.f32.mxu0 %v387_v51  ;;  %v459_v51 = vld [vmem:[%s13380_s5 + $0x3e8] sm:$0xff] }
 0x174   :  { %1026 = vmatmul.mubr.f32.gmra.mxu1 %v412_v56 }
 0x175   :  { %771 = vmatmul.mubr.f32.gmra.mxu0 %v386_v53  ;;  %8748 = vmatprep.mubr.msk.f32.mxu1 %vm544_vm0, %v417_v58 }
 0x176   :  { %775 = vmatprep.mubr.f32.mxu0 %v391_v55 }
 0x178   :  { %1031 = vmatmul.mubr.f32.gmra.mxu1 %v416_v60 }
 0x179   :  { %776 = vmatmul.mubr.f32.gmra.mxu0 %v390_v57  ;;  %8749 = vmatprep.mubr.msk.f32.mxu1 %vm544_vm0, %v421_v62 }
 0x17a   :  { %780 = vmatprep.mubr.f32.mxu0 %v395_v59 }
 0x17c   :  { %1036 = vmatmul.mubr.f32.gmra.mxu1 %v420_v1 }
 0x17d   :  { %781 = vmatmul.mubr.f32.gmra.mxu0 %v394_v61  ;;  %8750 = vmatprep.mubr.msk.f32.mxu1 %vm544_vm0, %v425_v3 }
 0x17e   :  { %785 = vmatprep.mubr.f32.mxu0 %v399_v63  ;;  %v512_v63 = vld [vmem:[%s13381_s22] sm:$0xff] }
 0x180   :  { %1041 = vmatmul.mubr.f32.gmra.mxu1 %v424_v5 }
 0x181   :  { %786 = vmatmul.mubr.f32.gmra.mxu0 %v398_v2  ;;  %8751 = vmatprep.mubr.msk.f32.mxu1 %vm544_vm0, %v429_v7 }
 0x182   :  { %790 = vmatprep.mubr.f32.mxu0 %v403_v4 }
 0x184   :  { %1046 = vmatmul.mubr.f32.gmra.mxu1 %v428_v9 }
 0x185   :  { %791 = vmatmul.mubr.f32.gmra.mxu0 %v402_v6  ;;  %8752 = vmatprep.mubr.msk.f32.mxu1 %vm544_vm0, %v433_v11  ;;  %v513_v6 = vld [vmem:[%s13381_s22 + $0x8] sm:$0xff] }
 0x186   :  { %795 = vmatprep.mubr.f32.mxu0 %v407_v8 }
 0x188   :  { %1051 = vmatmul.mubr.f32.gmra.mxu1 %v432_v13  ;;  %v514_v13 = vld [vmem:[%s13381_s22 + $0x10] sm:$0xff] }
 0x189   :  { %796 = vmatmul.mubr.f32.gmra.mxu0 %v406_v10  ;;  %8753 = vmatprep.mubr.msk.f32.mxu1 %vm544_vm0, %v437_v15 }
 0x18a   :  { %800 = vmatprep.mubr.f32.mxu0 %v411_v12 }
 0x18c   :  { %1056 = vmatmul.mubr.f32.gmra.mxu1 %v436_v17 }
 0x18d   :  { %801 = vmatmul.mubr.f32.gmra.mxu0 %v410_v14  ;;  %8754 = vmatprep.mubr.msk.f32.mxu1 %vm544_vm0, %v441_v19 }
 0x18e   :  { %805 = vmatprep.mubr.f32.mxu0 %v415_v16 }
 0x190   :  { %1061 = vmatmul.mubr.f32.gmra.mxu1 %v440_v21 }
 0x191   :  { %806 = vmatmul.mubr.f32.gmra.mxu0 %v414_v18  ;;  %8755 = vmatprep.mubr.msk.f32.mxu1 %vm544_vm0, %v445_v23 }
 0x192   :  { %810 = vmatprep.mubr.f32.mxu0 %v419_v20  ;;  %v515_v20 = vld [vmem:[%s13381_s22 + $0x18] sm:$0xff] }
 0x194   :  { %1066 = vmatmul.mubr.f32.gmra.mxu1 %v444_v25 }
 0x195   :  { %811 = vmatmul.mubr.f32.gmra.mxu0 %v418_v22  ;;  %8756 = vmatprep.mubr.msk.f32.mxu1 %vm544_vm0, %v449_v27  ;;  %v516_v27 = vld [vmem:[%s13381_s22 + $0x20] sm:$0xff] }
 0x196   :  { %815 = vmatprep.mubr.f32.mxu0 %v423_v24 }
 0x198   :  { %1071 = vmatmul.mubr.f32.gmra.mxu1 %v448_v29 }
 0x199   :  { %816 = vmatmul.mubr.f32.gmra.mxu0 %v422_v26  ;;  %8757 = vmatprep.mubr.msk.f32.mxu1 %vm544_vm0, %v453_v31 }
 0x19a   :  { %820 = vmatprep.mubr.f32.mxu0 %v427_v28 }
 0x19c   :  { %1076 = vmatmul.mubr.f32.gmra.mxu1 %v452_v33 }
 0x19d   :  { %821 = vmatmul.mubr.f32.gmra.mxu0 %v426_v30  ;;  %8758 = vmatprep.mubr.msk.f32.mxu1 %vm544_vm0, %v457_v35 }
 0x19e   :  { %825 = vmatprep.mubr.f32.mxu0 %v431_v32 }
 0x1a0   :  { %1081 = vmatmul.mubr.f32.gmra.mxu1 %v456_v37 }
 0x1a1   :  { %826 = vmatmul.mubr.f32.gmra.mxu0 %v430_v34  ;;  %8759 = vmatprep.mubr.msk.f32.mxu1 %vm544_vm0, %v461_v39  ;;  %v517_v34 = vld [vmem:[%s13381_s22 + $0x28] sm:$0xff] }
 0x1a2   :  { %830 = vmatprep.mubr.f32.mxu0 %v435_v36 }
 0x1a4   :  { %1086 = vmatmul.mubr.f32.gmra.mxu1 %v460_v41  ;;  %v518_v41 = vld [vmem:[%s13381_s22 + $0x30] sm:$0xff] }
 0x1a5   :  { %831 = vmatmul.mubr.f32.gmra.mxu0 %v434_v38 }
 0x1a6   :  { %835 = vmatprep.mubr.f32.mxu0 %v439_v40 }
 0x1a9   :  { %836 = vmatmul.mubr.f32.gmra.mxu0 %v438_v42 }
 0x1aa   :  { %840 = vmatprep.mubr.f32.mxu0 %v443_v43 }
 0x1ad   :  { %841 = vmatmul.mubr.f32.gmra.mxu0 %v442_v44 }
 0x1ae   :  { %845 = vmatprep.mubr.f32.mxu0 %v447_v45 }
 0x1b1   :  { %846 = vmatmul.mubr.f32.gmra.mxu0 %v446_v46 }
 0x1b2   :  { %850 = vmatprep.mubr.f32.mxu0 %v451_v47 }
 0x1b5   :  { %851 = vmatmul.mubr.f32.gmra.mxu0 %v450_v48  ;;  %v519_v48 = vld [vmem:[%s13381_s22 + $0x38] sm:$0xff] }
 0x1b6   :  { %855 = vmatprep.mubr.f32.mxu0 %v455_v49 }
 0x1b9   :  { %856 = vmatmul.mubr.f32.gmra.mxu0 %v454_v50 }
 0x1ba   :  { %860 = vmatprep.mubr.f32.mxu0 %v459_v51 }
 0x1bd   :  { %861 = vmatmul.mubr.f32.gmra.mxu0 %v458_v52 }
 0x1e8   :  { %v932_v53 = vpop.f32.mrf.mxu1 }
 0x1ea   :  { %v934_v54 = vpop.f32.mrf.mxu1 }
 0x1ec   :  { %v937_v55 = vpop.f32.mrf.mxu1 }
 0x1ee   :  { %v939_v56 = vpop.f32.mrf.mxu1 }
 0x1f0   :  { %v942_v57 = vpop.f32.mrf.mxu1 }
 0x1f2   :  { %v944_v58 = vpop.f32.mrf.mxu1 }
 0x1f3   :  { %v8761_v58 = vld [vmem:[%s13382_s21 + $0x88] sm:$0xff] }
 0x1f4   :  { %v947_v59 = vpop.f32.mrf.mxu1  ;;  %1294 = vmatprep.mubr.f32.mxu0 %v8761_v58 }
 0x1f6   :  { %v949_v60 = vpop.f32.mrf.mxu1 }
 0x1f8   :  { %v952_v61 = vpop.f32.mrf.mxu1 }
 0x1fa   :  { %v954_v62 = vpop.f32.mrf.mxu1 }
 0x1fc   :  { %v957_v1 = vpop.f32.mrf.mxu1 }
 0x1fe   :  { %v959_v4 = vpop.f32.mrf.mxu1 }
 0x200   :  { %v962_v8 = vpop.f32.mrf.mxu1 }
 0x201   :  { %v707_v2 = vpop.f32.mrf.mxu0 }
 0x202   :  { %v708_v3 = vadd.f32 %v707_v2, %v512_v63  ;;  %v964_v11 = vpop.f32.mrf.mxu1  ;;  %v521_v63 = vld [vmem:[%s13381_s22 + $0x48] sm:$0xff] }
 0x203   :  { %v709_v5 = vpop.f32.mrf.mxu0 }
 0x204   :  { %v11018_v7 = vadd.f32 %v932_v53, %v708_v3  ;;  %v967_v15 = vpop.f32.mrf.mxu1 }
 0x205   :  { %v712_v9 = vpop.f32.mrf.mxu0 }
 0x206   :  { %v713_v10 = vadd.f32 %v712_v9, %v513_v6  ;;  %v969_v18 = vpop.f32.mrf.mxu1 }
 0x207   :  { %v714_v12 = vpop.f32.mrf.mxu0 }
 0x208   :  { %v11021_v14 = vadd.f32 %v937_v55, %v713_v10  ;;  %v972_v22 = vpop.f32.mrf.mxu1  ;;  %v520_v55 = vld [vmem:[%s13381_s22 + $0x40] sm:$0xff] }
 0x209   :  { %v717_v16 = vpop.f32.mrf.mxu0 }
 0x20a   :  { %v718_v17 = vadd.f32 %v717_v16, %v514_v13  ;;  %v974_v25 = vpop.f32.mrf.mxu1  ;;  %v523_v16 = vld [vmem:[%s13381_s22 + $0x58] sm:$0xff] }
 0x20b   :  { %v719_v19 = vpop.f32.mrf.mxu0 }
 0x20c   :  { %v11024_v21 = vadd.f32 %v942_v57, %v718_v17  ;;  %v977_v29 = vpop.f32.mrf.mxu1 }
 0x20d   :  { %v722_v23 = vpop.f32.mrf.mxu0 }
 0x20e   :  { %v723_v24 = vadd.f32 %v722_v23, %v515_v20  ;;  %v979_v32 = vpop.f32.mrf.mxu1 }
 0x20f   :  { %v724_v26 = vpop.f32.mrf.mxu0 }
 0x210   :  { %v11027_v28 = vadd.f32 %v947_v59, %v723_v24  ;;  %v982_v36 = vpop.f32.mrf.mxu1  ;;  %v524_v24 = vld [vmem:[%s13381_s22 + $0x60] sm:$0xff] }
 0x211   :  { %v727_v30 = vpop.f32.mrf.mxu0 }
 0x212   :  { %v728_v31 = vadd.f32 %v727_v30, %v516_v27  ;;  %v984_v39 = vpop.f32.mrf.mxu1  ;;  %v1092_v27 = vld [vmem:[%s13382_s21 + $0x8] sm:$0xff] }
 0x213   :  { %v729_v33 = vpop.f32.mrf.mxu0  ;;  %1171 = vmatprep.mubr.f32.mxu1 %v1092_v27 }
 0x214   :  { %v11030_v35 = vadd.f32 %v952_v61, %v728_v31  ;;  %v987_v43 = vpop.f32.mrf.mxu1  ;;  %v525_v33 = vld [vmem:[%s13381_s22 + $0x68] sm:$0xff] }
 0x215   :  { %v732_v37 = vpop.f32.mrf.mxu0 }
 0x216   :  { %v733_v38 = vadd.f32 %v732_v37, %v517_v34  ;;  %v989_v46 = vpop.f32.mrf.mxu1 }
 0x217   :  { %v734_v40 = vpop.f32.mrf.mxu0 }
 0x218   :  { %v11033_v42 = vadd.f32 %v957_v1, %v733_v38  ;;  %v992_v50 = vpop.f32.mrf.mxu1 }
 0x219   :  { %v737_v44 = vpop.f32.mrf.mxu0 }
 0x21a   :  { %v738_v45 = vadd.f32 %v737_v44, %v518_v41  ;;  %v994_v53 = vpop.f32.mrf.mxu1  ;;  %v526_v41 = vld [vmem:[%s13381_s22 + $0x70] sm:$0xff] }
 0x21b   :  { %v739_v47 = vpop.f32.mrf.mxu0 }
 0x21c   :  { %v11036_v49 = vadd.f32 %v962_v8, %v738_v45  ;;  %v997_v57 = vpop.f32.mrf.mxu1  ;;  %v522_v8 = vld [vmem:[%s13381_s22 + $0x50] sm:$0xff] }
 0x21d   :  { %v742_v51 = vpop.f32.mrf.mxu0 }
 0x21e   :  { %v743_v52 = vadd.f32 %v742_v51, %v519_v48  ;;  %v999_v61 = vpop.f32.mrf.mxu1  ;;  %v527_v51 = vld [vmem:[%s13381_s22 + $0x78] sm:$0xff] }
 0x21f   :  { %v744_v54 = vpop.f32.mrf.mxu0 }
 0x220   :  { %v11039_v56 = vadd.f32 %v967_v15, %v743_v52  ;;  %v1002_v2 = vpop.f32.mrf.mxu1 }
 0x221   :  { %v747_v59 = vpop.f32.mrf.mxu0 }
 0x222   :  { %v748_v60 = vadd.f32 %v747_v59, %v520_v55  ;;  %v1004_v5 = vpop.f32.mrf.mxu1  ;;  %v528_v59 = vld [vmem:[%s13381_s22 + $0x80] sm:$0xff] }
 0x223   :  { %v749_v62 = vpop.f32.mrf.mxu0 }
 0x224   :  { %v11043_v1 = vadd.f32 %v972_v22, %v748_v60  ;;  %v1007_v10 = vpop.f32.mrf.mxu1 }
 0x225   :  { %v752_v3 = vpop.f32.mrf.mxu0 }
 0x226   :  { %v753_v4 = vadd.f32 %v752_v3, %v521_v63  ;;  %v1009_v13 = vpop.f32.mrf.mxu1 }
 0x227   :  { %v754_v6 = vpop.f32.mrf.mxu0  ;;  %v530_v13 = vld [vmem:[%s13381_s22 + $0x90] sm:$0xff] }
 0x228   :  { %v11046_v9 = vadd.f32 %v977_v29, %v753_v4  ;;  %v1012_v18 = vpop.f32.mrf.mxu1  ;;  %v529_v4 = vld [vmem:[%s13381_s22 + $0x88] sm:$0xff] }
 0x229   :  { %v757_v11 = vpop.f32.mrf.mxu0 }
 0x22a   :  { %v758_v12 = vadd.f32 %v757_v11, %v522_v8  ;;  %v1014_v22 = vpop.f32.mrf.mxu1 }
 0x22b   :  { %v759_v15 = vpop.f32.mrf.mxu0 }
 0x22c   :  { %v11049_v17 = vadd.f32 %v982_v36, %v758_v12  ;;  %v1017_v26 = vpop.f32.mrf.mxu1 }
 0x22d   :  { %v762_v19 = vpop.f32.mrf.mxu0 }
 0x22e   :  { %v763_v20 = vadd.f32 %v762_v19, %v523_v16  ;;  %v1019_v31 = vpop.f32.mrf.mxu1 }
 0x22f   :  { %v764_v23 = vpop.f32.mrf.mxu0 }
 0x230   :  { %v11052_v25 = vadd.f32 %v987_v43, %v763_v20  ;;  %v1022_v36 = vpop.f32.mrf.mxu1  ;;  %v531_v23 = vld [vmem:[%s13381_s22 + $0x98] sm:$0xff] }
 0x231   :  { %v767_v29 = vpop.f32.mrf.mxu0 }
 0x232   :  { %v768_v30 = vadd.f32 %v767_v29, %v524_v24  ;;  %v1024_v39 = vpop.f32.mrf.mxu1 }
 0x233   :  { %v769_v32 = vpop.f32.mrf.mxu0 }
 0x234   :  { %v11056_v34 = vadd.f32 %v992_v50, %v768_v30  ;;  %v1027_v44 = vpop.f32.mrf.mxu1  ;;  %v532_v32 = vld [vmem:[%s13381_s22 + $0xa0] sm:$0xff] }
 0x235   :  { %v772_v37 = vpop.f32.mrf.mxu0 }
 0x236   :  { %v773_v38 = vadd.f32 %v772_v37, %v525_v33  ;;  %v1029_v47 = vpop.f32.mrf.mxu1 }
 0x237   :  { %v774_v40 = vpop.f32.mrf.mxu0 }
 0x238   :  { %v11059_v43 = vadd.f32 %v997_v57, %v773_v38  ;;  %v1032_v50 = vpop.f32.mrf.mxu1 }
 0x239   :  { %v777_v45 = vpop.f32.mrf.mxu0 }
 0x23a   :  { %v778_v46 = vadd.f32 %v777_v45, %v526_v41  ;;  %v1034_v55 = vpop.f32.mrf.mxu1 }
 0x23b   :  { %v779_v48 = vpop.f32.mrf.mxu0 }
 0x23c   :  { %v11062_v52 = vadd.f32 %v1002_v2, %v778_v46  ;;  %v11067_v57 = vpop.f32.mrf.mxu1 }
 0x23d   :  { %v782_v53 = vpop.f32.mrf.mxu0 }
 0x23e   :  { %v783_v54 = vadd.f32 %v782_v53, %v527_v51  ;;  %v1039_v63 = vpop.f32.mrf.mxu1 }
 0x23f   :  { %v784_v58 = vpop.f32.mrf.mxu0 }
 0x240   :  { %v11065_v60 = vadd.f32 %v1007_v10, %v783_v54  ;;  %v11072_v2 = vpop.f32.mrf.mxu1 }
 0x241   :  { %v787_v61 = vpop.f32.mrf.mxu0 }
 0x242   :  { %v788_v62 = vadd.f32 %v787_v61, %v528_v59  ;;  %v1044_v11 = vpop.f32.mrf.mxu1 }
 0x243   :  { %v789_v3 = vpop.f32.mrf.mxu0 }
 0x244   :  { %v11070_v5 = vadd.f32 %v1012_v18, %v788_v62  ;;  %v11077_v15 = vpop.f32.mrf.mxu1 }
 0x245   :  { %v792_v6 = vpop.f32.mrf.mxu0 }
 0x246   :  { %v793_v8 = vadd.f32 %v792_v6, %v529_v4  ;;  %v1049_v20 = vpop.f32.mrf.mxu1 }
 0x247   :  { %v794_v12 = vpop.f32.mrf.mxu0 }
 0x248   :  { %v11075_v10 = vadd.f32 %v1017_v26, %v793_v8  ;;  %v11082_v18 = vpop.f32.mrf.mxu1 }
 0x249   :  { %v797_v16 = vpop.f32.mrf.mxu0 }
 0x24a   :  { %v798_v19 = vadd.f32 %v797_v16, %v530_v13  ;;  %v1054_v30 = vpop.f32.mrf.mxu1 }
 0x24b   :  { %v799_v22 = vpop.f32.mrf.mxu0 }
 0x24c   :  { %v11080_v24 = vadd.f32 %v1022_v36, %v798_v19  ;;  %v11087_v26 = vpop.f32.mrf.mxu1 }
 0x24d   :  { %v802_v27 = vpop.f32.mrf.mxu0 }
 0x24e   :  { %v803_v29 = vadd.f32 %v802_v27, %v531_v23  ;;  %v1059_v39 = vpop.f32.mrf.mxu1 }
 0x24f   :  { %v804_v31 = vpop.f32.mrf.mxu0 }
 0x250   :  { %v11085_v33 = vadd.f32 %v1027_v44, %v803_v29  ;;  %v11091_v45 = vpop.f32.mrf.mxu1  ;;  %v542_v31 = vld [vmem:[%s13381_s22 + $0xf0] sm:$0xff] }
 0x251   :  { %v807_v37 = vpop.f32.mrf.mxu0 }
 0x252   :  { %v808_v38 = vadd.f32 %v807_v37, %v532_v32  ;;  %v1064_v46 = vpop.f32.mrf.mxu1  ;;  %v543_v37 = vld [vmem:[%s13381_s22 + $0xf8] sm:$0xff] }
 0x253   :  { %v809_v40 = vpop.f32.mrf.mxu0 }
 0x254   :  { %v11089_v41 = vadd.f32 %v1032_v50, %v808_v38  ;;  %v1067_v48 = vpop.f32.mrf.mxu1  ;;  %v541_v38 = vld [vmem:[%s13381_s22 + $0xe8] sm:$0xff] }
 0x255   :  { %v11093_v36 = vpop.f32.mrf.mxu0 }
 0x256   :  { %v1069_v53 = vpop.f32.mrf.mxu1 }
 0x257   :  { %v814_v47 = vpop.f32.mrf.mxu0 }
 0x258   :  { %v1072_v54 = vpop.f32.mrf.mxu1  ;;  %v540_v47 = vld [vmem:[%s13381_s22 + $0xe0] sm:$0xff] }
 0x259   :  { %v11095_v51 = vpop.f32.mrf.mxu0 }
 0x25a   :  { %v1074_v58 = vpop.f32.mrf.mxu1 }
 0x25b   :  { %v819_v44 = vpop.f32.mrf.mxu0 }
 0x25c   :  { %v1077_v61 = vpop.f32.mrf.mxu1 }
 0x25d   :  { %v11097_v55 = vpop.f32.mrf.mxu0 }
 0x25e   :  { %v1079_v50 = vpop.f32.mrf.mxu1 }
 0x25f   :  { %v824_v59 = vpop.f32.mrf.mxu0 }
 0x260   :  { %v1082_v3 = vpop.f32.mrf.mxu1  ;;  %v539_v59 = vld [vmem:[%s13381_s22 + $0xd8] sm:$0xff] }
 0x261   :  { %v827_v62 = vpop.f32.mrf.mxu0 }
 0x262   :  { %v1084_v6 = vpop.f32.mrf.mxu1 }
 0x263   :  { %v829_v63 = vpop.f32.mrf.mxu0  ;;  %v538_v6 = vld [vmem:[%s13381_s22 + $0xd0] sm:$0xff] }
 0x264   :  { %v1087_v11 = vpop.f32.mrf.mxu1 }
 0x265   :  { %v832_v4 = vpop.f32.mrf.mxu0 }
 0x266   :  { %v1089_v13 = vpop.f32.mrf.mxu1 }
 0x267   :  { %v834_v8 = vpop.f32.mrf.mxu0 }
 0x269   :  { %v837_v12 = vpop.f32.mrf.mxu0 }
 0x26b   :  { %v839_v16 = vpop.f32.mrf.mxu0 }
 0x26d   :  { %v842_v19 = vpop.f32.mrf.mxu0 }
 0x26e   :  { %v843_v8 = vadd.f32 %v842_v19, %v539_v59  ;;  %v8768_v59 = vld [vmem:[%s13382_s21 + $0xc0] sm:$0xff] }
 0x26f   :  { %v844_v20 = vpop.f32.mrf.mxu0 }
 0x270   :  { %v11127_v20 = vadd.f32 %v1067_v48, %v843_v8  ;;  %v534_v48 = vld [vmem:[%s13381_s22 + $0xb0] sm:$0xff]  ;;  %v1102_v8 = vld [vmem:[%s13382_s21 + $0x58] sm:$0xff] }
 0x271   :  { %v847_v22 = vpop.f32.mrf.mxu0 }
 0x272   :  { %v848_v50 = vadd.f32 %v847_v22, %v540_v47  ;;  %v8769_v47 = vld [vmem:[%s13382_s21 + $0xc8] sm:$0xff] }
 0x273   :  { %v849_v23 = vpop.f32.mrf.mxu0 }
 0x274   :  { %v11120_v16 = vadd.f32 %v1072_v54, %v848_v50  ;;  %v535_v54 = vld [vmem:[%s13381_s22 + $0xb8] sm:$0xff] }
 0x275   :  { %v852_v27 = vpop.f32.mrf.mxu0  ;;  %v8771_v50 = vld [vmem:[%s13382_s21 + $0xd8] sm:$0xff] }
 0x276   :  { %v853_v44 = vadd.f32 %v852_v27, %v541_v38  ;;  %v8767_v38 = vld [vmem:[%s13382_s21 + $0xb8] sm:$0xff] }
 0x277   :  { %v854_v29 = vpop.f32.mrf.mxu0 }
 0x278   :  { %v11113_v13 = vadd.f32 %v1077_v61, %v853_v44  ;;  %v536_v61 = vld [vmem:[%s13381_s22 + $0xc0] sm:$0xff]  ;;  %v8762_v29 = vld [vmem:[%s13382_s21 + $0x90] sm:$0xff]  ;;  %v1100_v44 = vld [vmem:[%s13382_s21 + $0x48] sm:$0xff] }
 0x279   :  { %v857_v30 = vpop.f32.mrf.mxu0 }
 0x27a   :  { %v858_v40 = vadd.f32 %v857_v30, %v542_v31  ;;  %v8765_v30 = vld [vmem:[%s13382_s21 + $0xa8] sm:$0xff]  ;;  %v1093_v31 = vld [vmem:[%s13382_s21 + $0x10] sm:$0xff] }
 0x27b   :  { %v859_v32 = vpop.f32.mrf.mxu0 }
 0x27c   :  { %v11106_v63 = vadd.f32 %v1082_v3, %v858_v40  ;;  %v537_v3 = vld [vmem:[%s13381_s22 + $0xc8] sm:$0xff]  ;;  %v1098_v40 = vld [vmem:[%s13382_s21 + $0x38] sm:$0xff] }
 0x27d   :  { %v862_v39 = vpop.f32.mrf.mxu0  ;;  %v833_v19 = vadd.f32 %v832_v4, %v537_v3  ;;  %v823_v4 = vadd.f32 %v11097_v55, %v535_v54  ;;  %v1096_v32 = vld [vmem:[%s13382_s21 + $0x28] sm:$0xff]  ;;  %v8770_v3 = vld [vmem:[%s13382_s21 + $0xd0] sm:$0xff]  ;;  %v8772_v54 = vld [vmem:[%s13382_s21 + $0xe0] sm:$0xff] }
 0x27e   :  { %v863_v46 = vadd.f32 %v862_v39, %v543_v37  ;;  %v8764_v37 = vld [vmem:[%s13382_s21 + $0xa0] sm:$0xff] }
 0x27f   :  { %v864_v53 = vpop.f32.mrf.mxu0  ;;  %v11144_v23 = vadd.f32 %v11087_v26, %v833_v19  ;;  %v11161_v55 = vadd.f32 %v11077_v15, %v823_v4  ;;  %v1095_v39 = vld [vmem:[%s13382_s21 + $0x20] sm:$0xff]  ;;  %v1104_v19 = vld [vmem:[%s13382_s21 + $0x68] sm:$0xff]  ;;  %v1106_v4 = vld [vmem:[%s13382_s21 + $0x78] sm:$0xff] }
 0x280   :  { %v11103_v58 = vadd.f32 %v1087_v11, %v863_v46  ;;  %v838_v11 = vadd.f32 %v837_v12, %v538_v6  ;;  %v828_v12 = vadd.f32 %v827_v62, %v536_v61  ;;  %v818_v62 = vadd.f32 %v11095_v51, %v534_v48  ;;  %v1094_v51 = vld [vmem:[%s13382_s21 + $0x18] sm:$0xff]  ;;  %v8766_v46 = vld [vmem:[%s13382_s21 + $0xb0] sm:$0xff]  ;;  %v1099_v6 = vld [vmem:[%s13382_s21 + $0x40] sm:$0xff] }
 0x281   :  { %v1097_v53 = vld [vmem:[%s13382_s21 + $0x30] sm:$0xff]  ;;  %v1103_v48 = vld [vmem:[%s13382_s21 + $0x60] sm:$0xff] }
 0x282   :  { %9078 = vmatprep.subr.mxu1 %v11103_v58  ;;  %9134 = vmatprep.subr.mxu0 %v11103_v58  ;;  %v11135_v22 = vadd.f32 %v11091_v45, %v838_v11  ;;  %v533_v45 = vld [vmem:[%s13381_s22 + $0xa8] sm:$0xff]  ;;  %v11153_v27 = vadd.f32 %v11082_v18, %v828_v12  ;;  %v11168_v18 = vadd.f32 %v11072_v2, %v818_v62  ;;  %v8763_v2 = vld [vmem:[%s13382_s21 + $0x98] sm:$0xff]  ;;  %v1101_v61 = vld [vmem:[%s13382_s21 + $0x50] sm:$0xff] }
 0x283   :  { %9079 = vmatpush3.msra.mxu1 %v11065_v60  ;;  %9135 = vmatpush3.msra.mxu0 %v11065_v60  ;;  %v813_v26 = vadd.f32 %v11093_v36, %v533_v45  ;;  %v1091_v36 = vld [vmem:[%s13382_s21] sm:$0xff]  ;;  %v8773_v11 = vld [vmem:[%s13382_s21 + $0xe8] sm:$0xff]  ;;  %v8775_v12 = vld [vmem:[%s13382_s21 + $0xf8] sm:$0xff] }
 0x284   :  { %9080 = vmatprep.subr.mxu1 %v11106_v63  ;;  %9136 = vmatprep.subr.mxu0 %v11106_v63  ;;  %v8774_v45 = vld [vmem:[%s13382_s21 + $0xf0] sm:$0xff]  ;;  %v8795_v62 = vld [vmem:[%s13382_s21 + $0x108] sm:$0xff] }
 0x285   :  { %9081 = vmatpush3.msra.mxu1 %v11062_v52  ;;  %9137 = vmatpush3.msra.mxu0 %v11062_v52  ;;  %v11175_v15 = vadd.f32 %v11067_v57, %v813_v26  ;;  %v8760_v57 = vld [vmem:[%s13382_s21 + $0x80] sm:$0xff]  ;;  %v1105_v26 = vld [vmem:[%s13382_s21 + $0x70] sm:$0xff] }
 0x286   :  { %9082 = vmatprep.subr.mxu1 %v11113_v13  ;;  %9138 = vmatprep.subr.mxu0 %v11113_v13 }
 0x287   :  { %9083 = vmatpush3.msra.mxu1 %v11059_v43  ;;  %9139 = vmatpush3.msra.mxu0 %v11059_v43 }
 0x288   :  { %9084 = vmatprep.subr.mxu1 %v11120_v16  ;;  %9140 = vmatprep.subr.mxu0 %v11120_v16 }
 0x289   :  { %9085 = vmatpush3.msra.mxu1 %v11056_v34  ;;  %9141 = vmatpush3.msra.mxu0 %v11056_v34 }
 0x28a   :  { %9086 = vmatprep.subr.mxu1 %v11127_v20  ;;  %9142 = vmatprep.subr.mxu0 %v11127_v20 }
 0x28b   :  { %9087 = vmatpush3.msra.mxu1 %v11052_v25  ;;  %9143 = vmatpush3.msra.mxu0 %v11052_v25 }
 0x28c   :  { %9088 = vmatprep.subr.mxu1 %v11135_v22  ;;  %9144 = vmatprep.subr.mxu0 %v11135_v22 }
 0x28d   :  { %9089 = vmatpush3.msra.mxu1 %v11049_v17  ;;  %9145 = vmatpush3.msra.mxu0 %v11049_v17 }
 0x28e   :  { %9090 = vmatprep.subr.mxu1 %v11144_v23  ;;  %9146 = vmatprep.subr.mxu0 %v11144_v23 }
 0x28f   :  { %9091 = vmatpush3.msra.mxu1 %v11046_v9  ;;  %9147 = vmatpush3.msra.mxu0 %v11046_v9 }
 0x290   :  { %9092 = vmatprep.subr.mxu1 %v11153_v27  ;;  %9148 = vmatprep.subr.mxu0 %v11153_v27 }
 0x291   :  { %9093 = vmatpush3.msra.mxu1 %v11043_v1  ;;  %9149 = vmatpush3.msra.mxu0 %v11043_v1 }
 0x292   :  { %9094 = vmatprep.subr.mxu1 %v11161_v55  ;;  %9150 = vmatprep.subr.mxu0 %v11161_v55 }
 0x293   :  { %9095 = vmatpush3.msra.mxu1 %v11039_v56  ;;  %9151 = vmatpush3.msra.mxu0 %v11039_v56 }
 0x294   :  { %9096 = vmatprep.subr.mxu1 %v11168_v18  ;;  %9152 = vmatprep.subr.mxu0 %v11168_v18 }
 0x295   :  { %9097 = vmatpush3.msra.mxu1 %v11036_v49  ;;  %9153 = vmatpush3.msra.mxu0 %v11036_v49 }
 0x296   :  { %9098 = vmatprep.subr.mxu1 %v11175_v15  ;;  %9154 = vmatprep.subr.mxu0 %v11175_v15 }
 0x297   :  { %9099 = vmatpush3.msra.mxu1 %v11033_v42  ;;  %9155 = vmatpush3.msra.mxu0 %v11033_v42 }
 0x298   :  { %9100 = vmatprep.subr.mxu1 %v11089_v41  ;;  %9156 = vmatprep.subr.mxu0 %v11089_v41 }
 0x299   :  { %9101 = vmatpush3.msra.mxu1 %v11030_v35  ;;  %9157 = vmatpush3.msra.mxu0 %v11030_v35 }
 0x29a   :  { %9102 = vmatprep.subr.mxu1 %v11085_v33  ;;  %9158 = vmatprep.subr.mxu0 %v11085_v33 }
 0x29b   :  { %9103 = vmatpush3.msra.mxu1 %v11027_v28  ;;  %9159 = vmatpush3.msra.mxu0 %v11027_v28 }
 0x29c   :  { %9104 = vmatprep.subr.mxu1 %v11080_v24  ;;  %9160 = vmatprep.subr.mxu0 %v11080_v24 }
 0x29d   :  { %9105 = vmatpush3.msra.mxu1 %v11024_v21  ;;  %9161 = vmatpush3.msra.mxu0 %v11024_v21 }
 0x29e   :  { %9106 = vmatprep.subr.mxu1 %v11075_v10  ;;  %9162 = vmatprep.subr.mxu0 %v11075_v10 }
 0x29f   :  { %9107 = vmatpush3.msra.mxu1 %v11021_v14  ;;  %9163 = vmatpush3.msra.mxu0 %v11021_v14 }
 0x2a0   :  { %9108 = vmatprep.subr.mxu1 %v11070_v5  ;;  %9164 = vmatprep.subr.mxu0 %v11070_v5 }
 0x2a1   :  { %9109 = vmatpush3.msra.mxu1 %v11018_v7  ;;  %9165 = vmatpush3.msra.mxu0 %v11018_v7 }
 0x2a2   :  { %1295 = vmatmul.mubr.f32.vlgmr.msra.gmra.mxu0 %v8760_v57  ;;  %9208 = vmatprep.subr.mxu0 %v11103_v58  ;;  %v8794_v57 = vld [vmem:[%s13382_s21 + $0x100] sm:$0xff] }
 0x2a3   :  { %9209 = vmatpush3.msra.mxu0 %v11065_v60  ;;  %1299 = vmatprep.mubr.f32.mxu0 %v8763_v2  ;;  %v8797_v2 = vld [vmem:[%s13382_s21 + $0x118] sm:$0xff] }
 0x2a4   :  { %9210 = vmatprep.subr.mxu0 %v11106_v63  ;;  %1172 = vmatmul.mubr.f32.vlgmr.msra.gmra.mxu1 %v1091_v36  ;;  %v8796_v36 = vld [vmem:[%s13382_s21 + $0x110] sm:$0xff] }
 0x2a5   :  { %9211 = vmatpush3.msra.mxu0 %v11062_v52  ;;  %1176 = vmatprep.mubr.f32.mxu1 %v1094_v51  ;;  %v8799_v51 = vld [vmem:[%s13382_s21 + $0x128] sm:$0xff] }
 0x2a6   :  { %1300 = vmatmul.mubr.f32.gmra.mxu0 %v8762_v29  ;;  %9212 = vmatprep.subr.mxu0 %v11113_v13  ;;  %v8798_v29 = vld [vmem:[%s13382_s21 + $0x120] sm:$0xff] }
 0x2a7   :  { %9213 = vmatpush3.msra.mxu0 %v11059_v43  ;;  %1304 = vmatprep.mubr.f32.mxu0 %v8765_v30  ;;  %v8801_v30 = vld [vmem:[%s13382_s21 + $0x138] sm:$0xff] }
 0x2a8   :  { %9214 = vmatprep.subr.mxu0 %v11120_v16  ;;  %1177 = vmatmul.mubr.f32.gmra.mxu1 %v1093_v31  ;;  %v8800_v31 = vld [vmem:[%s13382_s21 + $0x130] sm:$0xff] }
 0x2a9   :  { %9215 = vmatpush3.msra.mxu0 %v11056_v34  ;;  %1181 = vmatprep.mubr.f32.mxu1 %v1096_v32  ;;  %v8803_v32 = vld [vmem:[%s13382_s21 + $0x148] sm:$0xff] }
 0x2aa   :  { %1305 = vmatmul.mubr.f32.gmra.mxu0 %v8764_v37  ;;  %9216 = vmatprep.subr.mxu0 %v11127_v20  ;;  %v8802_v37 = vld [vmem:[%s13382_s21 + $0x140] sm:$0xff] }
 0x2ab   :  { %9217 = vmatpush3.msra.mxu0 %v11052_v25  ;;  %1309 = vmatprep.mubr.f32.mxu0 %v8767_v38  ;;  %v8805_v38 = vld [vmem:[%s13382_s21 + $0x158] sm:$0xff] }
 0x2ac   :  { %9218 = vmatprep.subr.mxu0 %v11135_v22  ;;  %1182 = vmatmul.mubr.f32.gmra.mxu1 %v1095_v39  ;;  %v8804_v39 = vld [vmem:[%s13382_s21 + $0x150] sm:$0xff] }
 0x2ad   :  { %9219 = vmatpush3.msra.mxu0 %v11049_v17  ;;  %1186 = vmatprep.mubr.f32.mxu1 %v1098_v40  ;;  %v8807_v40 = vld [vmem:[%s13382_s21 + $0x168] sm:$0xff] }
 0x2ae   :  { %1310 = vmatmul.mubr.f32.gmra.mxu0 %v8766_v46  ;;  %9220 = vmatprep.subr.mxu0 %v11144_v23  ;;  %v8806_v46 = vld [vmem:[%s13382_s21 + $0x160] sm:$0xff] }
 0x2af   :  { %9221 = vmatpush3.msra.mxu0 %v11046_v9  ;;  %1314 = vmatprep.mubr.f32.mxu0 %v8769_v47  ;;  %v8809_v47 = vld [vmem:[%s13382_s21 + $0x178] sm:$0xff] }
 0x2b0   :  { %9222 = vmatprep.subr.mxu0 %v11153_v27  ;;  %1187 = vmatmul.mubr.f32.gmra.mxu1 %v1097_v53  ;;  %v8808_v53 = vld [vmem:[%s13382_s21 + $0x170] sm:$0xff] }
 0x2b1   :  { %9223 = vmatpush3.msra.mxu0 %v11043_v1  ;;  %1191 = vmatprep.mubr.f32.mxu1 %v1100_v44  ;;  %v8820_v44 = vld [vmem:[%s13382_s21 + $0x188] sm:$0xff] }
 0x2b2   :  { %1315 = vmatmul.mubr.f32.gmra.mxu0 %v8768_v59  ;;  %9224 = vmatprep.subr.mxu0 %v11161_v55  ;;  %v8819_v59 = vld [vmem:[%s13382_s21 + $0x180] sm:$0xff] }
 0x2b3   :  { %9225 = vmatpush3.msra.mxu0 %v11039_v56  ;;  %1319 = vmatprep.mubr.f32.mxu0 %v8771_v50  ;;  %v8822_v50 = vld [vmem:[%s13382_s21 + $0x198] sm:$0xff] }
 0x2b4   :  { %9226 = vmatprep.subr.mxu0 %v11168_v18  ;;  %1192 = vmatmul.mubr.f32.gmra.mxu1 %v1099_v6  ;;  %v8821_v6 = vld [vmem:[%s13382_s21 + $0x190] sm:$0xff] }
 0x2b5   :  { %9227 = vmatpush3.msra.mxu0 %v11036_v49  ;;  %1196 = vmatprep.mubr.f32.mxu1 %v1102_v8  ;;  %v8824_v8 = vld [vmem:[%s13382_s21 + $0x1a8] sm:$0xff] }
 0x2b6   :  { %1320 = vmatmul.mubr.f32.gmra.mxu0 %v8770_v3  ;;  %9228 = vmatprep.subr.mxu0 %v11175_v15  ;;  %v8823_v3 = vld [vmem:[%s13382_s21 + $0x1a0] sm:$0xff] }
 0x2b7   :  { %9229 = vmatpush3.msra.mxu0 %v11033_v42  ;;  %1324 = vmatprep.mubr.f32.mxu0 %v8773_v11  ;;  %v8826_v11 = vld [vmem:[%s13382_s21 + $0x1b8] sm:$0xff] }
 0x2b8   :  { %9230 = vmatprep.subr.mxu0 %v11089_v41  ;;  %1197 = vmatmul.mubr.f32.gmra.mxu1 %v1101_v61  ;;  %v1336_v61 = vld [vmem:[#allocation2 + $0x4] sm:$0xf] }
 0x2b9   :  { %9231 = vmatpush3.msra.mxu0 %v11030_v35  ;;  %1201 = vmatprep.mubr.f32.mxu1 %v1104_v19  ;;  %v8825_v19 = vld [vmem:[%s13382_s21 + $0x1b0] sm:$0xff] }
 0x2ba   :  { %1325 = vmatmul.mubr.f32.gmra.mxu0 %v8772_v54  ;;  %9232 = vmatprep.subr.mxu0 %v11085_v33  ;;  %v8828_v54 = vld [vmem:[%s13382_s21 + $0x1c8] sm:$0xff] }
 0x2bb   :  { %9233 = vmatpush3.msra.mxu0 %v11027_v28  ;;  %1329 = vmatprep.mubr.f32.mxu0 %v8775_v12  ;;  %v8827_v12 = vld [vmem:[%s13382_s21 + $0x1c0] sm:$0xff] }
 0x2bc   :  { %9234 = vmatprep.subr.mxu0 %v11080_v24  ;;  %1202 = vmatmul.mubr.f32.gmra.mxu1 %v1103_v48  ;;  %v8830_v48 = vld [vmem:[%s13382_s21 + $0x1d8] sm:$0xff] }
 0x2bd   :  { %9235 = vmatpush3.msra.mxu0 %v11024_v21  ;;  %1206 = vmatprep.mubr.f32.mxu1 %v1106_v4  ;;  %v8829_v4 = vld [vmem:[%s13382_s21 + $0x1d0] sm:$0xff] }
 0x2be   :  { %1330 = vmatmul.mubr.f32.gmra.mxu0 %v8774_v45  ;;  %9236 = vmatprep.subr.mxu0 %v11075_v10  ;;  %v8832_v45 = vld [vmem:[%s13382_s21 + $0x1e8] sm:$0xff] }
 0x2bf   :  { %9237 = vmatpush3.msra.mxu0 %v11021_v14  ;;  %1684 = vmatprep.mubr.f32.mxu0 %v8795_v62  ;;  %v8831_v62 = vld [vmem:[%s13382_s21 + $0x1e0] sm:$0xff] }
 0x2c0   :  { %9238 = vmatprep.subr.mxu0 %v11070_v5  ;;  %1207 = vmatmul.mubr.f32.gmra.mxu1 %v1105_v26  ;;  %v8834_v26 = vld [vmem:[%s13382_s21 + $0x1f8] sm:$0xff] }
 0x2c1   :  { %9239 = vmatpush3.msra.mxu0 %v11018_v7  ;;  %9771 = vmatprep.subr.msk.mxu1 %vm1362_vm1, %v1336_v61 }
 0x2c2   :  { %1685 = vmatmul.mubr.f32.vlgmr.msra.gmra.mxu0 %v8794_v57  ;;  %9273 = vmatprep.subr.mxu0 %v11103_v58  ;;  %v8833_v57 = vld [vmem:[%s13382_s21 + $0x1f0] sm:$0xff] }
 0x2c3   :  { %9274 = vmatpush3.msra.mxu0 %v11065_v60  ;;  %1689 = vmatprep.mubr.f32.mxu0 %v8797_v2  ;;  %v1212_v2 = vld [vmem:[#allocation2] sm:$0xf] }
 0x2c4   :  { %9275 = vmatprep.subr.mxu0 %v11106_v63  ;;  %9772 = vmatpush3.msk.msra.mxu1 %vm1362_vm1, %v1336_v61 }
 0x2c5   :  { %9276 = vmatpush3.msra.mxu0 %v11062_v52  ;;  %9785 = vmatprep.subr.msk.mxu1 %vm1362_vm1, %v1212_v2 }
 0x2c6   :  { %1690 = vmatmul.mubr.f32.gmra.mxu0 %v8796_v36  ;;  %9277 = vmatprep.subr.mxu0 %v11113_v13 }
 0x2c7   :  { %9278 = vmatpush3.msra.mxu0 %v11059_v43  ;;  %1694 = vmatprep.mubr.f32.mxu0 %v8799_v51 }
 0x2c8   :  { %9279 = vmatprep.subr.mxu0 %v11120_v16 }
 0x2c9   :  { %9280 = vmatpush3.msra.mxu0 %v11056_v34 }
 0x2ca   :  { %1695 = vmatmul.mubr.f32.gmra.mxu0 %v8798_v29  ;;  %9281 = vmatprep.subr.mxu0 %v11127_v20 }
 0x2cb   :  { %9282 = vmatpush3.msra.mxu0 %v11052_v25  ;;  %1699 = vmatprep.mubr.f32.mxu0 %v8801_v30 }
 0x2cc   :  { %9283 = vmatprep.subr.mxu0 %v11135_v22 }
 0x2cd   :  { %9284 = vmatpush3.msra.mxu0 %v11049_v17 }
 0x2ce   :  { %1700 = vmatmul.mubr.f32.gmra.mxu0 %v8800_v31  ;;  %9285 = vmatprep.subr.mxu0 %v11144_v23 }
 0x2cf   :  { %9286 = vmatpush3.msra.mxu0 %v11046_v9  ;;  %1704 = vmatprep.mubr.f32.mxu0 %v8803_v32 }
 0x2d0   :  { %9287 = vmatprep.subr.mxu0 %v11153_v27 }
 0x2d1   :  { %9288 = vmatpush3.msra.mxu0 %v11043_v1 }
 0x2d2   :  { %1705 = vmatmul.mubr.f32.gmra.mxu0 %v8802_v37  ;;  %9289 = vmatprep.subr.mxu0 %v11161_v55 }
 0x2d3   :  { %9290 = vmatpush3.msra.mxu0 %v11039_v56  ;;  %1709 = vmatprep.mubr.f32.mxu0 %v8805_v38 }
 0x2d4   :  { %9291 = vmatprep.subr.mxu0 %v11168_v18 }
 0x2d5   :  { %9292 = vmatpush3.msra.mxu0 %v11036_v49 }
 0x2d6   :  { %1710 = vmatmul.mubr.f32.gmra.mxu0 %v8804_v39  ;;  %9293 = vmatprep.subr.mxu0 %v11175_v15 }
 0x2d7   :  { %9294 = vmatpush3.msra.mxu0 %v11033_v42  ;;  %1714 = vmatprep.mubr.f32.mxu0 %v8807_v40 }
 0x2d8   :  { %9295 = vmatprep.subr.mxu0 %v11089_v41 }
 0x2d9   :  { %9296 = vmatpush3.msra.mxu0 %v11030_v35 }
 0x2da   :  { %1715 = vmatmul.mubr.f32.gmra.mxu0 %v8806_v46  ;;  %9297 = vmatprep.subr.mxu0 %v11085_v33 }
 0x2db   :  { %9298 = vmatpush3.msra.mxu0 %v11027_v28  ;;  %1719 = vmatprep.mubr.f32.mxu0 %v8809_v47  ;;  %v1726_v47 = vld [vmem:[#allocation2 + $0x8] sm:$0xf] }
 0x2dc   :  { %9299 = vmatprep.subr.mxu0 %v11080_v24 }
 0x2dd   :  { %9300 = vmatpush3.msra.mxu0 %v11024_v21 }
 0x2de   :  { %1720 = vmatmul.mubr.f32.gmra.mxu0 %v8808_v53  ;;  %9301 = vmatprep.subr.mxu0 %v11075_v10 }
 0x2df   :  { %9302 = vmatpush3.msra.mxu0 %v11021_v14  ;;  %1948 = vmatprep.mubr.f32.mxu0 %v8820_v44 }
 0x2e0   :  { %9303 = vmatprep.subr.mxu0 %v11070_v5 }
 0x2e1   :  { %9304 = vmatpush3.msra.mxu0 %v11018_v7 }
 0x2e2   :  { %1949 = vmatmul.mubr.f32.vlgmr.msra.gmra.mxu0 %v8819_v59 }
 0x2e3   :  { %1953 = vmatprep.mubr.f32.mxu0 %v8822_v50 }
 0x2e6   :  { %1954 = vmatmul.mubr.f32.gmra.mxu0 %v8821_v6 }
 0x2e7   :  { %1958 = vmatprep.mubr.f32.mxu0 %v8824_v8 }
 0x2ea   :  { %1959 = vmatmul.mubr.f32.gmra.mxu0 %v8823_v3 }
 0x2eb   :  { %1963 = vmatprep.mubr.f32.mxu0 %v8826_v11 }
 0x2ee   :  { %1964 = vmatmul.mubr.f32.gmra.mxu0 %v8825_v19 }
 0x2ef   :  { %1968 = vmatprep.mubr.f32.mxu0 %v8828_v54 }
 0x2f2   :  { %1969 = vmatmul.mubr.f32.gmra.mxu0 %v8827_v12 }
 0x2f3   :  { %1973 = vmatprep.mubr.f32.mxu0 %v8830_v48 }
 0x2f6   :  { %1974 = vmatmul.mubr.f32.gmra.mxu0 %v8829_v4 }
 0x2f7   :  { %1978 = vmatprep.mubr.f32.mxu0 %v8832_v45 }
 0x2fa   :  { %1979 = vmatmul.mubr.f32.gmra.mxu0 %v8831_v62 }
 0x2fb   :  { %1983 = vmatprep.mubr.f32.mxu0 %v8834_v26 }
 0x2fe   :  { %1984 = vmatmul.mubr.f32.gmra.mxu0 %v8833_v57 }
 0x362   :  { %v9166_v36 = vpop.f32.mrf.mxu0 }
 0x364   :  { %v9167_v51 = vpop.f32.mrf.mxu0  ;;  %v9110_v29 = vpop.f32.mrf.mxu1 }
 0x365   :  { %v9168_v30 = vadd.f32 %v9167_v51, %v9166_v36 }
 0x366   :  { %v9169_v31 = vpop.f32.mrf.mxu0  ;;  %v9111_v32 = vpop.f32.mrf.mxu1 }
 0x367   :  { %9773 = vmatprep.mubr.msk.f32.mxu1 %vm1337_vm2, %v9168_v30 }
 0x368   :  { %v9170_v37 = vpop.f32.mrf.mxu0  ;;  %v9113_v38 = vpop.f32.mrf.mxu1 }
 0x369   :  { %v9171_v39 = vadd.f32 %v9170_v37, %v9169_v31 }
 0x36a   :  { %v9172_v40 = vpop.f32.mrf.mxu0  ;;  %v9114_v46 = vpop.f32.mrf.mxu1 }
 0x36b   :  { %9774 = vmatmul.mubr.msk.f32.vlgmr.msra.gmra.mxu1 %vm1337_vm2, %v9171_v39 }
 0x36c   :  { %v9173_v53 = vpop.f32.mrf.mxu0  ;;  %v9116_v44 = vpop.f32.mrf.mxu1  ;;  %9786 = vmatpush3.msk.msra.mxu1 %vm1362_vm1, %v1212_v2 }
 0x36d   :  { %v9174_v59 = vadd.f32 %v9173_v53, %v9172_v40  ;;  %9799 = vmatprep.subr.msk.mxu1 %vm1362_vm1, %v1726_v47  ;;  %v9112_v53 = vadd.f32 %v9111_v32, %v9110_v29 }
 0x36e   :  { %v9175_v50 = vpop.f32.mrf.mxu0  ;;  %v9117_v6 = vpop.f32.mrf.mxu1 }
 0x36f   :  { %9776 = vmatprep.mubr.msk.f32.mxu1 %vm1337_vm2, %v9174_v59 }
 0x370   :  { %v9176_v8 = vpop.f32.mrf.mxu0  ;;  %v9119_v3 = vpop.f32.mrf.mxu1 }
 0x371   :  { %v9177_v11 = vadd.f32 %v9176_v8, %v9175_v50 }
 0x372   :  { %v9178_v61 = vpop.f32.mrf.mxu0  ;;  %v9120_v19 = vpop.f32.mrf.mxu1 }
 0x373   :  { %9777 = vmatmul.mubr.msk.f32.gmra.mxu1 %vm1337_vm2, %v9177_v11  ;;  %v9115_v11 = vadd.f32 %v9114_v46, %v9113_v38  ;;  %v9121_v29 = vadd.f32 %v9120_v19, %v9119_v3 }
 0x374   :  { %v9179_v54 = vpop.f32.mrf.mxu0  ;;  %v9122_v12 = vpop.f32.mrf.mxu1 }
 0x375   :  { %v9180_v48 = vadd.f32 %v9179_v54, %v9178_v61  ;;  %v9118_v61 = vadd.f32 %v9117_v6, %v9116_v44 }
 0x376   :  { %v9181_v4 = vpop.f32.mrf.mxu0  ;;  %v9123_v45 = vpop.f32.mrf.mxu1 }
 0x377   :  { %9779 = vmatprep.mubr.msk.f32.mxu1 %vm1337_vm2, %v9180_v48  ;;  %v1990_v48 = vld [vmem:[#allocation2 + $0xc] sm:$0xf]  ;;  %v9124_v32 = vadd.f32 %v9123_v45, %v9122_v12 }
 0x378   :  { %v9182_v62 = vpop.f32.mrf.mxu0  ;;  %v9125_v26 = vpop.f32.mrf.mxu1 }
 0x379   :  { %v9183_v57 = vadd.f32 %v9182_v62, %v9181_v4 }
 0x37a   :  { %v9184_v2 = vpop.f32.mrf.mxu0  ;;  %v9126_v51 = vpop.f32.mrf.mxu1 }
 0x37b   :  { %9780 = vmatmul.mubr.msk.f32.gmra.mxu1 %vm1337_vm2, %v9183_v57  ;;  %v9127_v44 = vadd.f32 %v9126_v51, %v9125_v26 }
 0x37c   :  { %v9185_v36 = vpop.f32.mrf.mxu0  ;;  %v9128_v39 = vpop.f32.mrf.mxu1 }
 0x37d   :  { %v9186_v30 = vadd.f32 %v9185_v36, %v9184_v2 }
 0x37e   :  { %v9187_v31 = vpop.f32.mrf.mxu0  ;;  %v9129_v8 = vpop.f32.mrf.mxu1 }
 0x37f   :  { %9782 = vmatprep.mubr.msk.f32.mxu1 %vm1337_vm2, %v9186_v30  ;;  %v9130_v2 = vadd.f32 %v9129_v8, %v9128_v39 }
 0x380   :  { %v9188_v37 = vpop.f32.mrf.mxu0  ;;  %v9131_v62 = vpop.f32.mrf.mxu1 }
 0x381   :  { %v9189_v40 = vadd.f32 %v9188_v37, %v9187_v31 }
 0x382   :  { %v9240_v59 = vpop.f32.mrf.mxu0  ;;  %v9132_v46 = vpop.f32.mrf.mxu1 }
 0x383   :  { %9783 = vmatmul.mubr.msk.f32.gmra.mxu1 %vm1337_vm2, %v9189_v40  ;;  %v9133_v36 = vadd.f32 %v9132_v46, %v9131_v62 }
 0x384   :  { %v9241_v50 = vpop.f32.mrf.mxu0  ;;  %9787 = vmatprep.mubr.msk.f32.mxu1 %vm1337_vm2, %v9112_v53 }
 0x386   :  { %v9243_v54 = vpop.f32.mrf.mxu0 }
 0x387   :  { %9788 = vmatmul.mubr.msk.f32.vlgmr.msra.gmra.mxu1 %vm1337_vm2, %v9115_v11 }
 0x388   :  { %v9244_v4 = vpop.f32.mrf.mxu0  ;;  %9790 = vmatprep.mubr.msk.f32.mxu1 %vm1337_vm2, %v9118_v61  ;;  %9800 = vmatpush3.msk.msra.mxu1 %vm1362_vm1, %v1726_v47  ;;  %v9242_v47 = vadd.f32 %v9241_v50, %v9240_v59 }
 0x389   :  { %9813 = vmatprep.subr.msk.mxu1 %vm1362_vm1, %v1990_v48  ;;  %v9245_v12 = vadd.f32 %v9244_v4, %v9243_v54 }
 0x38a   :  { %v9246_v57 = vpop.f32.mrf.mxu0 }
 0x38b   :  { %9791 = vmatmul.mubr.msk.f32.gmra.mxu1 %vm1337_vm2, %v9121_v29 }
 0x38c   :  { %v9247_v38 = vpop.f32.mrf.mxu0  ;;  %9793 = vmatprep.mubr.msk.f32.mxu1 %vm1337_vm2, %v9124_v32 }
 0x38d   :  { %v9248_v45 = vadd.f32 %v9247_v38, %v9246_v57 }
 0x38e   :  { %v9249_v6 = vpop.f32.mrf.mxu0 }
 0x38f   :  { %9794 = vmatmul.mubr.msk.f32.gmra.mxu1 %vm1337_vm2, %v9127_v44 }
 0x390   :  { %v9250_v30 = vpop.f32.mrf.mxu0  ;;  %9796 = vmatprep.mubr.msk.f32.mxu1 %vm1337_vm2, %v9130_v2 }
 0x391   :  { %v9251_v51 = vadd.f32 %v9250_v30, %v9249_v6 }
 0x392   :  { %v9252_v3 = vpop.f32.mrf.mxu0 }
 0x393   :  { %9797 = vmatmul.mubr.msk.f32.gmra.mxu1 %vm1337_vm2, %v9133_v36 }
 0x394   :  { %v9253_v19 = vpop.f32.mrf.mxu0  ;;  %9801 = vmatprep.mubr.msk.f32.mxu1 %vm1337_vm2, %v9242_v47 }
 0x395   :  { %v9254_v37 = vadd.f32 %v9253_v19, %v9252_v3 }
 0x396   :  { %v9255_v31 = vpop.f32.mrf.mxu0 }
 0x397   :  { %9802 = vmatmul.mubr.msk.f32.vlgmr.msra.gmra.mxu1 %vm1337_vm2, %v9245_v12 }
 0x398   :  { %9814 = vmatpush3.msk.msra.mxu1 %vm1362_vm1, %v1990_v48  ;;  %v9256_v26 = vpop.f32.mrf.mxu0  ;;  %9804 = vmatprep.mubr.msk.f32.mxu1 %vm1337_vm2, %v9248_v45 }
 0x399   :  { %9338 = vmatprep.subr.mxu1 %v11103_v58  ;;  %v9257_v53 = vadd.f32 %v9256_v26, %v9255_v31 }
 0x39a   :  { %v9258_v39 = vpop.f32.mrf.mxu0 }
 0x39b   :  { %9805 = vmatmul.mubr.msk.f32.gmra.mxu1 %vm1337_vm2, %v9251_v51 }
 0x39c   :  { %v9259_v40 = vpop.f32.mrf.mxu0  ;;  %9807 = vmatprep.mubr.msk.f32.mxu1 %vm1337_vm2, %v9254_v37 }
 0x39d   :  { %v9260_v59 = vadd.f32 %v9259_v40, %v9258_v39  ;;  %v8845_v39 = vld [vmem:[%s13382_s21 + $0x208] sm:$0xff]  ;;  %v8844_v40 = vld [vmem:[%s13382_s21 + $0x200] sm:$0xff] }
 0x39e   :  { %v9261_v50 = vpop.f32.mrf.mxu0 }
 0x39f   :  { %9808 = vmatmul.mubr.msk.f32.gmra.mxu1 %vm1337_vm2, %v9257_v53  ;;  %v8847_v53 = vld [vmem:[%s13382_s21 + $0x218] sm:$0xff] }
 0x3a0   :  { %v9262_v8 = vpop.f32.mrf.mxu0  ;;  %9810 = vmatprep.mubr.msk.f32.mxu1 %vm1337_vm2, %v9260_v59  ;;  %v8846_v59 = vld [vmem:[%s13382_s21 + $0x210] sm:$0xff] }
 0x3a1   :  { %v9263_v11 = vadd.f32 %v9262_v8, %v9261_v50  ;;  %v8849_v50 = vld [vmem:[%s13382_s21 + $0x228] sm:$0xff]  ;;  %v8848_v8 = vld [vmem:[%s13382_s21 + $0x220] sm:$0xff] }
 0x3a2   :  { %v9305_v61 = vpop.f32.mrf.mxu0 }
 0x3a3   :  { %9811 = vmatmul.mubr.msk.f32.gmra.mxu1 %vm1337_vm2, %v9263_v11  ;;  %v8851_v11 = vld [vmem:[%s13382_s21 + $0x238] sm:$0xff] }
 0x3a4   :  { %v9306_v54 = vpop.f32.mrf.mxu0 }
 0x3a5   :  { %v9307_v48 = vadd.f32 %v9306_v54, %v9305_v61  ;;  %v8850_v61 = vld [vmem:[%s13382_s21 + $0x230] sm:$0xff]  ;;  %v8853_v54 = vld [vmem:[%s13382_s21 + $0x248] sm:$0xff] }
 0x3a6   :  { %v9308_v4 = vpop.f32.mrf.mxu0 }
 0x3a7   :  { %9815 = vmatprep.mubr.msk.f32.mxu1 %vm1337_vm2, %v9307_v48  ;;  %v8852_v48 = vld [vmem:[%s13382_s21 + $0x240] sm:$0xff] }
 0x3a8   :  { %v9309_v62 = vpop.f32.mrf.mxu0 }
 0x3a9   :  { %v9310_v29 = vadd.f32 %v9309_v62, %v9308_v4  ;;  %v8855_v4 = vld [vmem:[%s13382_s21 + $0x258] sm:$0xff]  ;;  %v8854_v62 = vld [vmem:[%s13382_s21 + $0x250] sm:$0xff] }
 0x3aa   :  { %v9311_v32 = vpop.f32.mrf.mxu0 }
 0x3ab   :  { %9816 = vmatmul.mubr.msk.f32.vlgmr.msra.gmra.mxu1 %vm1337_vm2, %v9310_v29  ;;  %v8857_v29 = vld [vmem:[%s13382_s21 + $0x268] sm:$0xff] }
 0x3ac   :  { %9339 = vmatpush3.msra.mxu1 %v11065_v60  ;;  %v9312_v57 = vpop.f32.mrf.mxu0 }
 0x3ad   :  { %9340 = vmatprep.subr.mxu1 %v11106_v63  ;;  %v9313_v2 = vadd.f32 %v9312_v57, %v9311_v32  ;;  %v8856_v32 = vld [vmem:[%s13382_s21 + $0x260] sm:$0xff]  ;;  %v8859_v57 = vld [vmem:[%s13382_s21 + $0x278] sm:$0xff] }
 0x3ae   :  { %9341 = vmatpush3.msra.mxu1 %v11062_v52  ;;  %v9314_v38 = vpop.f32.mrf.mxu0 }
 0x3af   :  { %9342 = vmatprep.subr.mxu1 %v11113_v13  ;;  %9818 = vmatprep.mubr.msk.f32.mxu1 %vm1337_vm2, %v9313_v2  ;;  %v8858_v2 = vld [vmem:[%s13382_s21 + $0x270] sm:$0xff] }
 0x3b0   :  { %9343 = vmatpush3.msra.mxu1 %v11059_v43  ;;  %v9315_v46 = vpop.f32.mrf.mxu0 }
 0x3b1   :  { %9344 = vmatprep.subr.mxu1 %v11120_v16  ;;  %v9316_v44 = vadd.f32 %v9315_v46, %v9314_v38  ;;  %v8870_v38 = vld [vmem:[%s13382_s21 + $0x288] sm:$0xff]  ;;  %v8869_v46 = vld [vmem:[%s13382_s21 + $0x280] sm:$0xff] }
 0x3b2   :  { %9345 = vmatpush3.msra.mxu1 %v11056_v34  ;;  %v9317_v6 = vpop.f32.mrf.mxu0 }
 0x3b3   :  { %9346 = vmatprep.subr.mxu1 %v11127_v20  ;;  %9819 = vmatmul.mubr.msk.f32.gmra.mxu1 %vm1337_vm2, %v9316_v44  ;;  %v8872_v44 = vld [vmem:[%s13382_s21 + $0x298] sm:$0xff] }
 0x3b4   :  { %9347 = vmatpush3.msra.mxu1 %v11052_v25  ;;  %v9318_v36 = vpop.f32.mrf.mxu0 }
 0x3b5   :  { %9348 = vmatprep.subr.mxu1 %v11135_v22  ;;  %v9319_v30 = vadd.f32 %v9318_v36, %v9317_v6  ;;  %v8871_v6 = vld [vmem:[%s13382_s21 + $0x290] sm:$0xff]  ;;  %v8874_v36 = vld [vmem:[%s13382_s21 + $0x2a8] sm:$0xff] }
 0x3b6   :  { %9349 = vmatpush3.msra.mxu1 %v11049_v17  ;;  %v9320_v47 = vpop.f32.mrf.mxu0 }
 0x3b7   :  { %9350 = vmatprep.subr.mxu1 %v11144_v23  ;;  %9821 = vmatprep.mubr.msk.f32.mxu1 %vm1337_vm2, %v9319_v30  ;;  %v8873_v30 = vld [vmem:[%s13382_s21 + $0x2a0] sm:$0xff] }
 0x3b8   :  { %9351 = vmatpush3.msra.mxu1 %v11046_v9  ;;  %v9321_v3 = vpop.f32.mrf.mxu0 }
 0x3b9   :  { %9352 = vmatprep.subr.mxu1 %v11153_v27  ;;  %v9322_v19 = vadd.f32 %v9321_v3, %v9320_v47  ;;  %v8876_v47 = vld [vmem:[%s13382_s21 + $0x2b8] sm:$0xff]  ;;  %v8875_v3 = vld [vmem:[%s13382_s21 + $0x2b0] sm:$0xff] }
 0x3ba   :  { %9353 = vmatpush3.msra.mxu1 %v11043_v1  ;;  %v9323_v12 = vpop.f32.mrf.mxu0 }
 0x3bb   :  { %9354 = vmatprep.subr.mxu1 %v11161_v55  ;;  %9822 = vmatmul.mubr.msk.f32.gmra.mxu1 %vm1337_vm2, %v9322_v19  ;;  %v8878_v19 = vld [vmem:[%s13382_s21 + $0x2c8] sm:$0xff] }
 0x3bc   :  { %9355 = vmatpush3.msra.mxu1 %v11039_v56  ;;  %v9324_v45 = vpop.f32.mrf.mxu0 }
 0x3bd   :  { %9356 = vmatprep.subr.mxu1 %v11168_v18  ;;  %v9325_v31 = vadd.f32 %v9324_v45, %v9323_v12  ;;  %v8877_v12 = vld [vmem:[%s13382_s21 + $0x2c0] sm:$0xff]  ;;  %v8880_v45 = vld [vmem:[%s13382_s21 + $0x2d8] sm:$0xff] }
 0x3be   :  { %9357 = vmatpush3.msra.mxu1 %v11036_v49  ;;  %v9326_v26 = vpop.f32.mrf.mxu0 }
 0x3bf   :  { %9358 = vmatprep.subr.mxu1 %v11175_v15  ;;  %9824 = vmatprep.mubr.msk.f32.mxu1 %vm1337_vm2, %v9325_v31  ;;  %v8879_v31 = vld [vmem:[%s13382_s21 + $0x2d0] sm:$0xff] }
 0x3c0   :  { %9359 = vmatpush3.msra.mxu1 %v11033_v42  ;;  %v9327_v51 = vpop.f32.mrf.mxu0 }
 0x3c1   :  { %9360 = vmatprep.subr.mxu1 %v11089_v41  ;;  %v9328_v37 = vadd.f32 %v9327_v51, %v9326_v26  ;;  %v8882_v26 = vld [vmem:[%s13382_s21 + $0x2e8] sm:$0xff]  ;;  %v8881_v51 = vld [vmem:[%s13382_s21 + $0x2e0] sm:$0xff] }
 0x3c2   :  { %9361 = vmatpush3.msra.mxu1 %v11030_v35 }
 0x3c3   :  { %9362 = vmatprep.subr.mxu1 %v11085_v33  ;;  %9825 = vmatmul.mubr.msk.f32.gmra.mxu1 %vm1337_vm2, %v9328_v37  ;;  %v8884_v37 = vld [vmem:[%s13382_s21 + $0x2f8] sm:$0xff] }
 0x3c4   :  { %9363 = vmatpush3.msra.mxu1 %v11027_v28  ;;  %2212 = vmatprep.mubr.f32.mxu1 %v8845_v39  ;;  %v8883_v39 = vld [vmem:[%s13382_s21 + $0x2f0] sm:$0xff] }
 0x3c5   :  { %9364 = vmatprep.subr.mxu1 %v11080_v24 }
 0x3c6   :  { %9365 = vmatpush3.msra.mxu1 %v11024_v21 }
 0x3c7   :  { %9366 = vmatprep.subr.mxu1 %v11075_v10 }
 0x3c8   :  { %9367 = vmatpush3.msra.mxu1 %v11021_v14 }
 0x3c9   :  { %9368 = vmatprep.subr.mxu1 %v11070_v5 }
 0x3ca   :  { %9369 = vmatpush3.msra.mxu1 %v11018_v7 }
 0x3cb   :  { %2213 = vmatmul.mubr.f32.vlgmr.msra.gmra.mxu1 %v8844_v40  ;;  %9403 = vmatprep.subr.mxu1 %v11103_v58  ;;  %v2254_v40 = vld [vmem:[#allocation2 + $0x10] sm:$0xf] }
 0x3cc   :  { %9404 = vmatpush3.msra.mxu1 %v11065_v60  ;;  %2217 = vmatprep.mubr.f32.mxu1 %v8847_v53  ;;  %v2518_v53 = vld [vmem:[#allocation2 + $0x14] sm:$0xf] }
 0x3cd   :  { %9405 = vmatprep.subr.mxu1 %v11106_v63  ;;  %9827 = vmatprep.subr.msk.mxu0 %vm1362_vm1, %v2254_v40 }
 0x3ce   :  { %9406 = vmatpush3.msra.mxu1 %v11062_v52  ;;  %9828 = vmatpush3.msk.msra.mxu0 %vm1362_vm1, %v2254_v40 }
 0x3cf   :  { %2218 = vmatmul.mubr.f32.gmra.mxu1 %v8846_v59  ;;  %9407 = vmatprep.subr.mxu1 %v11113_v13 }
 0x3d0   :  { %9408 = vmatpush3.msra.mxu1 %v11059_v43  ;;  %2222 = vmatprep.mubr.f32.mxu1 %v8849_v50 }
 0x3d1   :  { %9409 = vmatprep.subr.mxu1 %v11120_v16  ;;  %9841 = vmatprep.subr.msk.mxu0 %vm1362_vm1, %v2518_v53 }
 0x3d2   :  { %9410 = vmatpush3.msra.mxu1 %v11056_v34 }
 0x3d3   :  { %2223 = vmatmul.mubr.f32.gmra.mxu1 %v8848_v8  ;;  %9411 = vmatprep.subr.mxu1 %v11127_v20 }
 0x3d4   :  { %9412 = vmatpush3.msra.mxu1 %v11052_v25  ;;  %2227 = vmatprep.mubr.f32.mxu1 %v8851_v11 }
 0x3d5   :  { %9413 = vmatprep.subr.mxu1 %v11135_v22 }
 0x3d6   :  { %9414 = vmatpush3.msra.mxu1 %v11049_v17 }
 0x3d7   :  { %2228 = vmatmul.mubr.f32.gmra.mxu1 %v8850_v61  ;;  %9415 = vmatprep.subr.mxu1 %v11144_v23 }
 0x3d8   :  { %9416 = vmatpush3.msra.mxu1 %v11046_v9  ;;  %2232 = vmatprep.mubr.f32.mxu1 %v8853_v54 }
 0x3d9   :  { %9417 = vmatprep.subr.mxu1 %v11153_v27 }
 0x3da   :  { %9418 = vmatpush3.msra.mxu1 %v11043_v1 }
 0x3db   :  { %2233 = vmatmul.mubr.f32.gmra.mxu1 %v8852_v48  ;;  %9419 = vmatprep.subr.mxu1 %v11161_v55 }
 0x3dc   :  { %9420 = vmatpush3.msra.mxu1 %v11039_v56  ;;  %2237 = vmatprep.mubr.f32.mxu1 %v8855_v4 }
 0x3dd   :  { %9421 = vmatprep.subr.mxu1 %v11168_v18 }
 0x3de   :  { %9422 = vmatpush3.msra.mxu1 %v11036_v49 }
 0x3df   :  { %2238 = vmatmul.mubr.f32.gmra.mxu1 %v8854_v62  ;;  %9423 = vmatprep.subr.mxu1 %v11175_v15 }
 0x3e0   :  { %9424 = vmatpush3.msra.mxu1 %v11033_v42  ;;  %2242 = vmatprep.mubr.f32.mxu1 %v8857_v29 }
 0x3e1   :  { %9425 = vmatprep.subr.mxu1 %v11089_v41 }
 0x3e2   :  { %9426 = vmatpush3.msra.mxu1 %v11030_v35 }
 0x3e3   :  { %2243 = vmatmul.mubr.f32.gmra.mxu1 %v8856_v32  ;;  %9427 = vmatprep.subr.mxu1 %v11085_v33 }
 0x3e4   :  { %9428 = vmatpush3.msra.mxu1 %v11027_v28  ;;  %2247 = vmatprep.mubr.f32.mxu1 %v8859_v57 }
 0x3e5   :  { %9429 = vmatprep.subr.mxu1 %v11080_v24 }
 0x3e6   :  { %9430 = vmatpush3.msra.mxu1 %v11024_v21 }
 0x3e7   :  { %2248 = vmatmul.mubr.f32.gmra.mxu1 %v8858_v2  ;;  %9431 = vmatprep.subr.mxu1 %v11075_v10 }
 0x3e8   :  { %9432 = vmatpush3.msra.mxu1 %v11021_v14  ;;  %2476 = vmatprep.mubr.f32.mxu1 %v8870_v38 }
 0x3e9   :  { %9433 = vmatprep.subr.mxu1 %v11070_v5 }
 0x3ea   :  { %9434 = vmatpush3.msra.mxu1 %v11018_v7 }
 0x3eb   :  { %2477 = vmatmul.mubr.f32.vlgmr.msra.gmra.mxu1 %v8869_v46 }
 0x3ec   :  { %2481 = vmatprep.mubr.f32.mxu1 %v8872_v44 }
 0x3ef   :  { %2482 = vmatmul.mubr.f32.gmra.mxu1 %v8871_v6 }
 0x3f0   :  { %2486 = vmatprep.mubr.f32.mxu1 %v8874_v36 }
 0x3f3   :  { %2487 = vmatmul.mubr.f32.gmra.mxu1 %v8873_v30 }
 0x3f4   :  { %2491 = vmatprep.mubr.f32.mxu1 %v8876_v47 }
 0x3f7   :  { %2492 = vmatmul.mubr.f32.gmra.mxu1 %v8875_v3 }
 0x3f8   :  { %2496 = vmatprep.mubr.f32.mxu1 %v8878_v19 }
 0x3fb   :  { %2497 = vmatmul.mubr.f32.gmra.mxu1 %v8877_v12 }
 0x3fc   :  { %2501 = vmatprep.mubr.f32.mxu1 %v8880_v45 }
 0x3ff   :  { %2502 = vmatmul.mubr.f32.gmra.mxu1 %v8879_v31 }
 0x400   :  { %2506 = vmatprep.mubr.f32.mxu1 %v8882_v26 }
 0x403   :  { %2507 = vmatmul.mubr.f32.gmra.mxu1 %v8881_v51 }
 0x404   :  { %2511 = vmatprep.mubr.f32.mxu1 %v8884_v37 }
 0x407   :  { %2512 = vmatmul.mubr.f32.gmra.mxu1 %v8883_v39 }
 0x42b   :  { %v9775_v59 = vpop.f32.mrf.mxu1 }
 0x42d   :  { %v11470_v50 = vpop.f32.mrf.mxu1 }
 0x433   :  { %v9778_v8 = vpop.f32.mrf.mxu1 }
 0x435   :  { %v11472_v11 = vpop.f32.mrf.mxu1 }
 0x43b   :  { %v9781_v61 = vpop.f32.mrf.mxu1 }
 0x43d   :  { %v11474_v54 = vpop.f32.mrf.mxu1 }
 0x443   :  { %v9784_v48 = vpop.f32.mrf.mxu1 }
 0x445   :  { %v11476_v4 = vpop.f32.mrf.mxu1 }
 0x446   :  { %13383 = vst [vmem:[#allocation55_spill] sm:$0xff] %v11476_v4 }
 0x447   :  { %v9789_v62 = vpop.f32.mrf.mxu1 }
 0x448   :  { %v1570_v29 = vadd.f32 %v9789_v62, %v9775_v59 }
 0x449   :  { %v11478_v32 = vpop.f32.mrf.mxu1 }
 0x44b   :  { %v9792_v57 = vpop.f32.mrf.mxu1 }
 0x44c   :  { %v1580_v2 = vadd.f32 %v9792_v57, %v9778_v8 }
 0x44d   :  { %v11480_v38 = vpop.f32.mrf.mxu1 }
 0x44f   :  { %v9795_v46 = vpop.f32.mrf.mxu1 }
 0x450   :  { %v1590_v44 = vadd.f32 %v9795_v46, %v9781_v61 }
 0x451   :  { %v11482_v6 = vpop.f32.mrf.mxu1 }
 0x453   :  { %v9798_v36 = vpop.f32.mrf.mxu1 }
 0x454   :  { %v1600_v30 = vadd.f32 %v9798_v36, %v9784_v48 }
 0x455   :  { %v11484_v47 = vpop.f32.mrf.mxu1 }
 0x456   :  { %13384 = vst [vmem:[#allocation56_spill] sm:$0xff] %v11484_v47 }
 0x457   :  { %v9803_v3 = vpop.f32.mrf.mxu1 }
 0x458   :  { %v1860_v19 = vadd.f32 %v9803_v3, %v1570_v29 }
 0x459   :  { %v11486_v12 = vpop.f32.mrf.mxu1 }
 0x45b   :  { %v9806_v45 = vpop.f32.mrf.mxu1 }
 0x45c   :  { %v1862_v31 = vadd.f32 %v9806_v45, %v1580_v2 }
 0x45d   :  { %v11488_v26 = vpop.f32.mrf.mxu1 }
 0x45f   :  { %v9809_v51 = vpop.f32.mrf.mxu1 }
 0x460   :  { %v1864_v37 = vadd.f32 %v9809_v51, %v1590_v44 }
 0x461   :  { %v11490_v39 = vpop.f32.mrf.mxu1 }
 0x462   :  { %13385 = vst [vmem:[#allocation57_spill] sm:$0xff] %v11490_v39 }
 0x463   :  { %v9812_v40 = vpop.f32.mrf.mxu1 }
 0x464   :  { %v1866_v59 = vadd.f32 %v9812_v40, %v1600_v30 }
 0x465   :  { %v11492_v8 = vpop.f32.mrf.mxu1 }
 0x466   :  { %13386 = vst [vmem:[#allocation58_spill] sm:$0xff] %v11492_v8 }
 0x46b   :  { %v9817_v61 = vpop.f32.mrf.mxu1 }
 0x46c   :  { %v11494_v48 = vadd.f32 %v9817_v61, %v1860_v19 }
 0x46d   :  { %v11496_v62 = vpop.f32.mrf.mxu1 }
 0x473   :  { %v9820_v29 = vpop.f32.mrf.mxu1 }
 0x474   :  { %v11498_v57 = vadd.f32 %v9820_v29, %v1862_v31 }
 0x475   :  { %v11500_v46 = vpop.f32.mrf.mxu1 }
 0x47b   :  { %v9823_v2 = vpop.f32.mrf.mxu1 }
 0x47c   :  { %v11502_v36 = vadd.f32 %v9823_v2, %v1864_v37 }
 0x47d   :  { %v11504_v44 = vpop.f32.mrf.mxu1 }
 0x47e   :  { %13387 = vst [vmem:[#allocation59_spill] sm:$0xff] %v11504_v44 }
 0x483   :  { %v9826_v3 = vpop.f32.mrf.mxu1 }
 0x484   :  { %v11506_v45 = vadd.f32 %v9826_v3, %v1866_v59 }
 0x485   :  { %v11508_v30 = vpop.f32.mrf.mxu1 }
 0x486   :  { %13388 = vst [vmem:[#allocation60_spill] sm:$0xff] %v11508_v30 }
 0x48b   :  { %v9370_v51 = vpop.f32.mrf.mxu1 }
 0x48d   :  { %v9371_v19 = vpop.f32.mrf.mxu1 }
 0x48e   :  { %v9372_v40 = vadd.f32 %v9371_v19, %v9370_v51 }
 0x48f   :  { %v9373_v61 = vpop.f32.mrf.mxu1 }
 0x490   :  { %9829 = vmatprep.mubr.msk.f32.mxu0 %vm1337_vm2, %v9372_v40 }
 0x491   :  { %v9374_v31 = vpop.f32.mrf.mxu1 }
 0x492   :  { %v9375_v29 = vadd.f32 %v9374_v31, %v9373_v61 }
 0x493   :  { %v9376_v0 = vpop.f32.mrf.mxu1 }
 0x494   :  { %9830 = vmatmul.mubr.msk.f32.vlgmr.msra.gmra.mxu0 %vm1337_vm2, %v9375_v29 }
 0x495   :  { %9842 = vmatpush3.msk.msra.mxu0 %vm1362_vm1, %v2518_v53  ;;  %v9377_v37 = vpop.f32.mrf.mxu1 }
 0x496   :  { %v9378_v2 = vadd.f32 %v9377_v37, %v9376_v0  ;;  %9468 = vmatprep.subr.mxu0 %v11103_v58 }
 0x497   :  { %v9379_v59 = vpop.f32.mrf.mxu1 }
 0x498   :  { %9832 = vmatprep.mubr.msk.f32.mxu0 %vm1337_vm2, %v9378_v2 }
 0x499   :  { %v9380_v3 = vpop.f32.mrf.mxu1 }
 0x49a   :  { %v9381_v30 = vadd.f32 %v9380_v3, %v9379_v59 }
 0x49b   :  { %v9382_v51 = vpop.f32.mrf.mxu1 }
 0x49c   :  { %9833 = vmatmul.mubr.msk.f32.gmra.mxu0 %vm1337_vm2, %v9381_v30 }
 0x49d   :  { %v9383_v19 = vpop.f32.mrf.mxu1 }
 0x49e   :  { %v9384_v40 = vadd.f32 %v9383_v19, %v9382_v51 }
 0x49f   :  { %v9385_v61 = vpop.f32.mrf.mxu1 }
 0x4a0   :  { %9835 = vmatprep.mubr.msk.f32.mxu0 %vm1337_vm2, %v9384_v40 }
 0x4a1   :  { %v9386_v31 = vpop.f32.mrf.mxu1 }
 0x4a2   :  { %v9387_v29 = vadd.f32 %v9386_v31, %v9385_v61 }
 0x4a3   :  { %v9388_v53 = vpop.f32.mrf.mxu1 }
 0x4a4   :  { %9836 = vmatmul.mubr.msk.f32.gmra.mxu0 %vm1337_vm2, %v9387_v29 }
 0x4a5   :  { %v9389_v0 = vpop.f32.mrf.mxu1 }
 0x4a6   :  { %v9390_v37 = vadd.f32 %v9389_v0, %v9388_v53 }
 0x4a7   :  { %v9391_v8 = vpop.f32.mrf.mxu1 }
 0x4a8   :  { %9838 = vmatprep.mubr.msk.f32.mxu0 %vm1337_vm2, %v9390_v37 }
 0x4a9   :  { %v9392_v2 = vpop.f32.mrf.mxu1 }
 0x4aa   :  { %v9393_v59 = vadd.f32 %v9392_v2, %v9391_v8 }
 0x4ab   :  { %v9435_v3 = vpop.f32.mrf.mxu1 }
 0x4ac   :  { %9839 = vmatmul.mubr.msk.f32.gmra.mxu0 %vm1337_vm2, %v9393_v59 }
 0x4ad   :  { %v9436_v30 = vpop.f32.mrf.mxu1 }
 0x4ae   :  { %v9437_v51 = vadd.f32 %v9436_v30, %v9435_v3 }
 0x4af   :  { %v9438_v19 = vpop.f32.mrf.mxu1 }
 0x4b0   :  { %9843 = vmatprep.mubr.msk.f32.mxu0 %vm1337_vm2, %v9437_v51 }
 0x4b1   :  { %v9439_v40 = vpop.f32.mrf.mxu1 }
 0x4b2   :  { %v9440_v61 = vadd.f32 %v9439_v40, %v9438_v19 }
 0x4b3   :  { %v9441_v31 = vpop.f32.mrf.mxu1 }
 0x4b4   :  { %9844 = vmatmul.mubr.msk.f32.vlgmr.msra.gmra.mxu0 %vm1337_vm2, %v9440_v61 }
 0x4b5   :  { %9469 = vmatpush3.msra.mxu0 %v11065_v60  ;;  %v9442_v29 = vpop.f32.mrf.mxu1 }
 0x4b6   :  { %v9443_v53 = vadd.f32 %v9442_v29, %v9441_v31  ;;  %9470 = vmatprep.subr.mxu0 %v11106_v63 }
 0x4b7   :  { %9471 = vmatpush3.msra.mxu0 %v11062_v52  ;;  %v9444_v8 = vpop.f32.mrf.mxu1 }
 0x4b8   :  { %9472 = vmatprep.subr.mxu0 %v11113_v13  ;;  %9846 = vmatprep.mubr.msk.f32.mxu0 %vm1337_vm2, %v9443_v53 }
 0x4b9   :  { %9473 = vmatpush3.msra.mxu0 %v11059_v43  ;;  %v9445_v0 = vpop.f32.mrf.mxu1 }
 0x4ba   :  { %v9446_v37 = vadd.f32 %v9445_v0, %v9444_v8  ;;  %9474 = vmatprep.subr.mxu0 %v11120_v16  ;;  %v8895_v0 = vld [vmem:[%s13382_s21 + $0x308] sm:$0xff] }
 0x4bb   :  { %9475 = vmatpush3.msra.mxu0 %v11056_v34  ;;  %v9447_v2 = vpop.f32.mrf.mxu1 }
 0x4bc   :  { %9476 = vmatprep.subr.mxu0 %v11127_v20  ;;  %9847 = vmatmul.mubr.msk.f32.gmra.mxu0 %vm1337_vm2, %v9446_v37  ;;  %v8894_v37 = vld [vmem:[%s13382_s21 + $0x300] sm:$0xff] }
 0x4bd   :  { %9477 = vmatpush3.msra.mxu0 %v11052_v25  ;;  %v9448_v59 = vpop.f32.mrf.mxu1 }
 0x4be   :  { %v9449_v3 = vadd.f32 %v9448_v59, %v9447_v2  ;;  %9478 = vmatprep.subr.mxu0 %v11135_v22  ;;  %v8897_v2 = vld [vmem:[%s13382_s21 + $0x318] sm:$0xff]  ;;  %v8896_v59 = vld [vmem:[%s13382_s21 + $0x310] sm:$0xff] }
 0x4bf   :  { %9479 = vmatpush3.msra.mxu0 %v11049_v17  ;;  %v9450_v30 = vpop.f32.mrf.mxu1 }
 0x4c0   :  { %9480 = vmatprep.subr.mxu0 %v11144_v23  ;;  %9849 = vmatprep.mubr.msk.f32.mxu0 %vm1337_vm2, %v9449_v3  ;;  %v8899_v3 = vld [vmem:[%s13382_s21 + $0x328] sm:$0xff] }
 0x4c1   :  { %9481 = vmatpush3.msra.mxu0 %v11046_v9  ;;  %v9451_v51 = vpop.f32.mrf.mxu1 }
 0x4c2   :  { %v9452_v19 = vadd.f32 %v9451_v51, %v9450_v30  ;;  %9482 = vmatprep.subr.mxu0 %v11153_v27  ;;  %v8898_v30 = vld [vmem:[%s13382_s21 + $0x320] sm:$0xff]  ;;  %v8901_v51 = vld [vmem:[%s13382_s21 + $0x338] sm:$0xff] }
 0x4c3   :  { %9483 = vmatpush3.msra.mxu0 %v11043_v1  ;;  %v9453_v40 = vpop.f32.mrf.mxu1 }
 0x4c4   :  { %9484 = vmatprep.subr.mxu0 %v11161_v55  ;;  %9850 = vmatmul.mubr.msk.f32.gmra.mxu0 %vm1337_vm2, %v9452_v19  ;;  %v8900_v19 = vld [vmem:[%s13382_s21 + $0x330] sm:$0xff] }
 0x4c5   :  { %9485 = vmatpush3.msra.mxu0 %v11039_v56  ;;  %v9454_v61 = vpop.f32.mrf.mxu1 }
 0x4c6   :  { %v9455_v31 = vadd.f32 %v9454_v61, %v9453_v40  ;;  %9486 = vmatprep.subr.mxu0 %v11168_v18  ;;  %v8903_v40 = vld [vmem:[%s13382_s21 + $0x348] sm:$0xff]  ;;  %v8902_v61 = vld [vmem:[%s13382_s21 + $0x340] sm:$0xff] }
 0x4c7   :  { %9487 = vmatpush3.msra.mxu0 %v11036_v49  ;;  %v9456_v29 = vpop.f32.mrf.mxu1 }
 0x4c8   :  { %9488 = vmatprep.subr.mxu0 %v11175_v15  ;;  %9852 = vmatprep.mubr.msk.f32.mxu0 %vm1337_vm2, %v9455_v31  ;;  %v8905_v31 = vld [vmem:[%s13382_s21 + $0x358] sm:$0xff] }
 0x4c9   :  { %9489 = vmatpush3.msra.mxu0 %v11033_v42  ;;  %v9457_v53 = vpop.f32.mrf.mxu1 }
 0x4ca   :  { %v9458_v8 = vadd.f32 %v9457_v53, %v9456_v29  ;;  %9490 = vmatprep.subr.mxu0 %v11089_v41  ;;  %v8904_v29 = vld [vmem:[%s13382_s21 + $0x350] sm:$0xff]  ;;  %v8907_v53 = vld [vmem:[%s13382_s21 + $0x368] sm:$0xff] }
 0x4cb   :  { %9491 = vmatpush3.msra.mxu0 %v11030_v35 }
 0x4cc   :  { %9492 = vmatprep.subr.mxu0 %v11085_v33  ;;  %9853 = vmatmul.mubr.msk.f32.gmra.mxu0 %vm1337_vm2, %v9458_v8  ;;  %v8906_v8 = vld [vmem:[%s13382_s21 + $0x360] sm:$0xff] }
 0x4cd   :  { %9493 = vmatpush3.msra.mxu0 %v11027_v28  ;;  %2740 = vmatprep.mubr.f32.mxu0 %v8895_v0  ;;  %v8909_v0 = vld [vmem:[%s13382_s21 + $0x378] sm:$0xff] }
 0x4ce   :  { %9494 = vmatprep.subr.mxu0 %v11080_v24 }
 0x4cf   :  { %9495 = vmatpush3.msra.mxu0 %v11024_v21 }
 0x4d0   :  { %9496 = vmatprep.subr.mxu0 %v11075_v10 }
 0x4d1   :  { %9497 = vmatpush3.msra.mxu0 %v11021_v14 }
 0x4d2   :  { %9498 = vmatprep.subr.mxu0 %v11070_v5 }
 0x4d3   :  { %9499 = vmatpush3.msra.mxu0 %v11018_v7 }
 0x4d4   :  { %2741 = vmatmul.mubr.f32.vlgmr.msra.gmra.mxu0 %v8894_v37  ;;  %9533 = vmatprep.subr.mxu0 %v11103_v58  ;;  %v8908_v37 = vld [vmem:[%s13382_s21 + $0x370] sm:$0xff] }
 0x4d5   :  { %9534 = vmatpush3.msra.mxu0 %v11065_v60  ;;  %2745 = vmatprep.mubr.f32.mxu0 %v8897_v2  ;;  %v8920_v2 = vld [vmem:[%s13382_s21 + $0x388] sm:$0xff] }
 0x4d6   :  { %9535 = vmatprep.subr.mxu0 %v11106_v63 }
 0x4d7   :  { %9536 = vmatpush3.msra.mxu0 %v11062_v52 }
 0x4d8   :  { %2746 = vmatmul.mubr.f32.gmra.mxu0 %v8896_v59  ;;  %9537 = vmatprep.subr.mxu0 %v11113_v13  ;;  %v8919_v59 = vld [vmem:[%s13382_s21 + $0x380] sm:$0xff] }
 0x4d9   :  { %9538 = vmatpush3.msra.mxu0 %v11059_v43  ;;  %2750 = vmatprep.mubr.f32.mxu0 %v8899_v3  ;;  %v8922_v3 = vld [vmem:[%s13382_s21 + $0x398] sm:$0xff] }
 0x4da   :  { %9539 = vmatprep.subr.mxu0 %v11120_v16 }
 0x4db   :  { %9540 = vmatpush3.msra.mxu0 %v11056_v34 }
 0x4dc   :  { %2751 = vmatmul.mubr.f32.gmra.mxu0 %v8898_v30  ;;  %9541 = vmatprep.subr.mxu0 %v11127_v20  ;;  %v8921_v30 = vld [vmem:[%s13382_s21 + $0x390] sm:$0xff] }
 0x4dd   :  { %9542 = vmatpush3.msra.mxu0 %v11052_v25  ;;  %2755 = vmatprep.mubr.f32.mxu0 %v8901_v51  ;;  %v8924_v51 = vld [vmem:[%s13382_s21 + $0x3a8] sm:$0xff] }
 0x4de   :  { %9543 = vmatprep.subr.mxu0 %v11135_v22 }
 0x4df   :  { %9544 = vmatpush3.msra.mxu0 %v11049_v17 }
 0x4e0   :  { %2756 = vmatmul.mubr.f32.gmra.mxu0 %v8900_v19  ;;  %9545 = vmatprep.subr.mxu0 %v11144_v23  ;;  %v8923_v19 = vld [vmem:[%s13382_s21 + $0x3a0] sm:$0xff] }
 0x4e1   :  { %9546 = vmatpush3.msra.mxu0 %v11046_v9  ;;  %2760 = vmatprep.mubr.f32.mxu0 %v8903_v40  ;;  %v8926_v40 = vld [vmem:[%s13382_s21 + $0x3b8] sm:$0xff] }
 0x4e2   :  { %9547 = vmatprep.subr.mxu0 %v11153_v27 }
 0x4e3   :  { %9548 = vmatpush3.msra.mxu0 %v11043_v1 }
 0x4e4   :  { %2761 = vmatmul.mubr.f32.gmra.mxu0 %v8902_v61  ;;  %9549 = vmatprep.subr.mxu0 %v11161_v55  ;;  %v8925_v61 = vld [vmem:[%s13382_s21 + $0x3b0] sm:$0xff] }
 0x4e5   :  { %9550 = vmatpush3.msra.mxu0 %v11039_v56  ;;  %2765 = vmatprep.mubr.f32.mxu0 %v8905_v31  ;;  %v8928_v31 = vld [vmem:[%s13382_s21 + $0x3c8] sm:$0xff] }
 0x4e6   :  { %9551 = vmatprep.subr.mxu0 %v11168_v18 }
 0x4e7   :  { %9552 = vmatpush3.msra.mxu0 %v11036_v49 }
 0x4e8   :  { %2766 = vmatmul.mubr.f32.gmra.mxu0 %v8904_v29  ;;  %9553 = vmatprep.subr.mxu0 %v11175_v15  ;;  %v8927_v29 = vld [vmem:[%s13382_s21 + $0x3c0] sm:$0xff] }
 0x4e9   :  { %9554 = vmatpush3.msra.mxu0 %v11033_v42  ;;  %2770 = vmatprep.mubr.f32.mxu0 %v8907_v53  ;;  %v8930_v53 = vld [vmem:[%s13382_s21 + $0x3d8] sm:$0xff] }
 0x4ea   :  { %9555 = vmatprep.subr.mxu0 %v11089_v41 }
 0x4eb   :  { %9556 = vmatpush3.msra.mxu0 %v11030_v35 }
 0x4ec   :  { %2771 = vmatmul.mubr.f32.gmra.mxu0 %v8906_v8  ;;  %9557 = vmatprep.subr.mxu0 %v11085_v33  ;;  %v8929_v8 = vld [vmem:[%s13382_s21 + $0x3d0] sm:$0xff] }
 0x4ed   :  { %9558 = vmatpush3.msra.mxu0 %v11027_v28  ;;  %2775 = vmatprep.mubr.f32.mxu0 %v8909_v0  ;;  %v8932_v0 = vld [vmem:[%s13382_s21 + $0x3e8] sm:$0xff] }
 0x4ee   :  { %9559 = vmatprep.subr.mxu0 %v11080_v24 }
 0x4ef   :  { %9560 = vmatpush3.msra.mxu0 %v11024_v21 }
 0x4f0   :  { %2776 = vmatmul.mubr.f32.gmra.mxu0 %v8908_v37  ;;  %9561 = vmatprep.subr.mxu0 %v11075_v10  ;;  %v8931_v37 = vld [vmem:[%s13382_s21 + $0x3e0] sm:$0xff] }
 0x4f1   :  { %9562 = vmatpush3.msra.mxu0 %v11021_v14  ;;  %3004 = vmatprep.mubr.f32.mxu0 %v8920_v2  ;;  %v8934_v2 = vld [vmem:[%s13382_s21 + $0x3f8] sm:$0xff] }
 0x4f2   :  { %9563 = vmatprep.subr.mxu0 %v11070_v5 }
 0x4f3   :  { %9564 = vmatpush3.msra.mxu0 %v11018_v7 }
 0x4f4   :  { %3005 = vmatmul.mubr.f32.vlgmr.msra.gmra.mxu0 %v8919_v59  ;;  %v8933_v59 = vld [vmem:[%s13382_s21 + $0x3f0] sm:$0xff] }
 0x4f5   :  { %3009 = vmatprep.mubr.f32.mxu0 %v8922_v3  ;;  %v2782_v3 = vld [vmem:[#allocation2 + $0x18] sm:$0xf] }
 0x4f6   :  { %9855 = vmatprep.subr.msk.mxu1 %vm1362_vm1, %v2782_v3 }
 0x4f7   :  { %9856 = vmatpush3.msk.msra.mxu1 %vm1362_vm1, %v2782_v3 }
 0x4f8   :  { %3010 = vmatmul.mubr.f32.gmra.mxu0 %v8921_v30  ;;  %v3046_v30 = vld [vmem:[#allocation2 + $0x1c] sm:$0xf] }
 0x4f9   :  { %3014 = vmatprep.mubr.f32.mxu0 %v8924_v51  ;;  %9869 = vmatprep.subr.msk.mxu1 %vm1362_vm1, %v3046_v30 }
 0x4fc   :  { %3015 = vmatmul.mubr.f32.gmra.mxu0 %v8923_v19 }
 0x4fd   :  { %3019 = vmatprep.mubr.f32.mxu0 %v8926_v40 }
 0x500   :  { %3020 = vmatmul.mubr.f32.gmra.mxu0 %v8925_v61 }
 0x501   :  { %3024 = vmatprep.mubr.f32.mxu0 %v8928_v31 }
 0x504   :  { %3025 = vmatmul.mubr.f32.gmra.mxu0 %v8927_v29 }
 0x505   :  { %3029 = vmatprep.mubr.f32.mxu0 %v8930_v53 }
 0x508   :  { %3030 = vmatmul.mubr.f32.gmra.mxu0 %v8929_v8 }
 0x509   :  { %3034 = vmatprep.mubr.f32.mxu0 %v8932_v0 }
 0x50c   :  { %3035 = vmatmul.mubr.f32.gmra.mxu0 %v8931_v37 }
 0x50d   :  { %3039 = vmatprep.mubr.f32.mxu0 %v8934_v2 }
 0x510   :  { %3040 = vmatmul.mubr.f32.gmra.mxu0 %v8933_v59 }
 0x554   :  { %v9831_v51 = vpop.f32.mrf.mxu0 }
 0x555   :  { %v2388_v19 = vadd.f32 %v9831_v51, %v11494_v48 }
 0x556   :  { %v11627_v40 = vpop.f32.mrf.mxu0 }
 0x55c   :  { %v9834_v61 = vpop.f32.mrf.mxu0 }
 0x55d   :  { %v2390_v31 = vadd.f32 %v9834_v61, %v11498_v57 }
 0x55e   :  { %v11630_v29 = vpop.f32.mrf.mxu0 }
 0x564   :  { %v9837_v53 = vpop.f32.mrf.mxu0 }
 0x565   :  { %v2392_v8 = vadd.f32 %v9837_v53, %v11502_v36 }
 0x566   :  { %v11633_v0 = vpop.f32.mrf.mxu0 }
 0x567   :  { %13389 = vst [vmem:[#allocation61_spill] sm:$0xff] %v11633_v0 }
 0x56c   :  { %v9840_v37 = vpop.f32.mrf.mxu0 }
 0x56d   :  { %v2394_v2 = vadd.f32 %v9840_v37, %v11506_v45 }
 0x56e   :  { %v11636_v59 = vpop.f32.mrf.mxu0 }
 0x56f   :  { %13390 = vst [vmem:[#allocation62_spill] sm:$0xff] %v11636_v59 }
 0x574   :  { %v9845_v3 = vpop.f32.mrf.mxu0 }
 0x575   :  { %v11638_v47 = vadd.f32 %v9845_v3, %v2388_v19 }
 0x576   :  { %v11640_v48 = vpop.f32.mrf.mxu0 }
 0x57c   :  { %v9848_v51 = vpop.f32.mrf.mxu0 }
 0x57d   :  { %v11642_v4 = vadd.f32 %v9848_v51, %v2390_v31 }
 0x57e   :  { %v11644_v57 = vpop.f32.mrf.mxu0 }
 0x584   :  { %v9851_v61 = vpop.f32.mrf.mxu0 }
 0x585   :  { %v11646_v44 = vadd.f32 %v9851_v61, %v2392_v8 }
 0x586   :  { %v11648_v36 = vpop.f32.mrf.mxu0 }
 0x58c   :  { %v9854_v53 = vpop.f32.mrf.mxu0 }
 0x58d   :  { %v11650_v0 = vadd.f32 %v9854_v53, %v2394_v2 }
 0x58e   :  { %v11652_v45 = vpop.f32.mrf.mxu0 }
 0x58f   :  { %13391 = vst [vmem:[#allocation63_spill] sm:$0xff] %v11652_v45 }
 0x594   :  { %v9500_v37 = vpop.f32.mrf.mxu0 }
 0x596   :  { %v9501_v19 = vpop.f32.mrf.mxu0 }
 0x597   :  { %v9502_v3 = vadd.f32 %v9501_v19, %v9500_v37 }
 0x598   :  { %v9503_v59 = vpop.f32.mrf.mxu0 }
 0x599   :  { %9857 = vmatprep.mubr.msk.f32.mxu1 %vm1337_vm2, %v9502_v3 }
 0x59a   :  { %v9504_v31 = vpop.f32.mrf.mxu0 }
 0x59b   :  { %v9505_v51 = vadd.f32 %v9504_v31, %v9503_v59 }
 0x59c   :  { %v9506_v39 = vpop.f32.mrf.mxu0 }
 0x59d   :  { %9858 = vmatmul.mubr.msk.f32.vlgmr.msra.gmra.mxu1 %vm1337_vm2, %v9505_v51 }
 0x59e   :  { %9870 = vmatpush3.msk.msra.mxu1 %vm1362_vm1, %v3046_v30  ;;  %v9507_v8 = vpop.f32.mrf.mxu0 }
 0x59f   :  { %v9508_v61 = vadd.f32 %v9507_v8, %v9506_v39  ;;  %9598 = vmatprep.subr.mxu1 %v11103_v58 }
 0x5a0   :  { %v9509_v2 = vpop.f32.mrf.mxu0 }
 0x5a1   :  { %9860 = vmatprep.mubr.msk.f32.mxu1 %vm1337_vm2, %v9508_v61 }
 0x5a2   :  { %v9510_v53 = vpop.f32.mrf.mxu0 }
 0x5a3   :  { %v9511_v45 = vadd.f32 %v9510_v53, %v9509_v2 }
 0x5a4   :  { %v9512_v37 = vpop.f32.mrf.mxu0 }
 0x5a5   :  { %9861 = vmatmul.mubr.msk.f32.gmra.mxu1 %vm1337_vm2, %v9511_v45 }
 0x5a6   :  { %v9513_v19 = vpop.f32.mrf.mxu0 }
 0x5a7   :  { %v9514_v3 = vadd.f32 %v9513_v19, %v9512_v37 }
 0x5a8   :  { %v9515_v59 = vpop.f32.mrf.mxu0 }
 0x5a9   :  { %9863 = vmatprep.mubr.msk.f32.mxu1 %vm1337_vm2, %v9514_v3 }
 0x5aa   :  { %v9516_v31 = vpop.f32.mrf.mxu0 }
 0x5ab   :  { %v9517_v51 = vadd.f32 %v9516_v31, %v9515_v59 }
 0x5ac   :  { %v9518_v30 = vpop.f32.mrf.mxu0 }
 0x5ad   :  { %9864 = vmatmul.mubr.msk.f32.gmra.mxu1 %vm1337_vm2, %v9517_v51 }
 0x5ae   :  { %v9519_v39 = vpop.f32.mrf.mxu0 }
 0x5af   :  { %v9520_v58 = vadd.f32 %v9519_v39, %v9518_v30 }
 0x5b0   :  { %v9521_v8 = vpop.f32.mrf.mxu0 }
 0x5b1   :  { %9866 = vmatprep.mubr.msk.f32.mxu1 %vm1337_vm2, %v9520_v58 }
 0x5b2   :  { %v9522_v61 = vpop.f32.mrf.mxu0 }
 0x5b3   :  { %v9523_v2 = vadd.f32 %v9522_v61, %v9521_v8 }
 0x5b4   :  { %v9565_v53 = vpop.f32.mrf.mxu0 }
 0x5b5   :  { %9867 = vmatmul.mubr.msk.f32.gmra.mxu1 %vm1337_vm2, %v9523_v2 }
 0x5b6   :  { %v9566_v45 = vpop.f32.mrf.mxu0 }
 0x5b7   :  { %v9567_v37 = vadd.f32 %v9566_v45, %v9565_v53 }
 0x5b8   :  { %v9568_v19 = vpop.f32.mrf.mxu0 }
 0x5b9   :  { %9871 = vmatprep.mubr.msk.f32.mxu1 %vm1337_vm2, %v9567_v37 }
 0x5ba   :  { %v9569_v3 = vpop.f32.mrf.mxu0 }
 0x5bb   :  { %v9570_v59 = vadd.f32 %v9569_v3, %v9568_v19 }
 0x5bc   :  { %v9571_v31 = vpop.f32.mrf.mxu0 }
 0x5bd   :  { %9872 = vmatmul.mubr.msk.f32.vlgmr.msra.gmra.mxu1 %vm1337_vm2, %v9570_v59 }
 0x5be   :  { %9599 = vmatpush3.msra.mxu1 %v11065_v60  ;;  %v9572_v51 = vpop.f32.mrf.mxu0 }
 0x5bf   :  { %v9573_v30 = vadd.f32 %v9572_v51, %v9571_v31  ;;  %9600 = vmatprep.subr.mxu1 %v11106_v63  ;;  %v1565_v31 = vadd.f32 %v11478_v32, %v11470_v50 }
 0x5c0   :  { %9601 = vmatpush3.msra.mxu1 %v11062_v52  ;;  %v9574_v39 = vpop.f32.mrf.mxu0 }
 0x5c1   :  { %9602 = vmatprep.subr.mxu1 %v11113_v13  ;;  %9874 = vmatprep.mubr.msk.f32.mxu1 %vm1337_vm2, %v9573_v30  ;;  %v1859_v30 = vadd.f32 %v11486_v12, %v1565_v31 }
 0x5c2   :  { %9603 = vmatpush3.msra.mxu1 %v11059_v43  ;;  %v9575_v58 = vpop.f32.mrf.mxu0 }
 0x5c3   :  { %v9576_v8 = vadd.f32 %v9575_v58, %v9574_v39  ;;  %9604 = vmatprep.subr.mxu1 %v11120_v16  ;;  %v2123_v58 = vadd.f32 %v11496_v62, %v1859_v30 }
 0x5c4   :  { %9605 = vmatpush3.msra.mxu1 %v11056_v34  ;;  %v9577_v60 = vpop.f32.mrf.mxu0 }
 0x5c5   :  { %9606 = vmatprep.subr.mxu1 %v11127_v20  ;;  %9875 = vmatmul.mubr.msk.f32.gmra.mxu1 %vm1337_vm2, %v9576_v8 }
 0x5c6   :  { %9607 = vmatpush3.msra.mxu1 %v11052_v25  ;;  %v9578_v52 = vpop.f32.mrf.mxu0 }
 0x5c7   :  { %v9579_v63 = vadd.f32 %v9578_v52, %v9577_v60  ;;  %9608 = vmatprep.subr.mxu1 %v11135_v22  ;;  %v8956_v22 = vld [vmem:[%s13382_s21 + $0x460] sm:$0xff] }
 0x5c8   :  { %9609 = vmatpush3.msra.mxu1 %v11049_v17  ;;  %v9580_v43 = vpop.f32.mrf.mxu0 }
 0x5c9   :  { %9610 = vmatprep.subr.mxu1 %v11144_v23  ;;  %9877 = vmatprep.mubr.msk.f32.mxu1 %vm1337_vm2, %v9579_v63  ;;  %v8959_v23 = vld [vmem:[%s13382_s21 + $0x478] sm:$0xff] }
 0x5ca   :  { %9611 = vmatpush3.msra.mxu1 %v11046_v9  ;;  %v9581_v34 = vpop.f32.mrf.mxu0 }
 0x5cb   :  { %v9582_v13 = vadd.f32 %v9581_v34, %v9580_v43  ;;  %9612 = vmatprep.subr.mxu1 %v11153_v27  ;;  %v8958_v27 = vld [vmem:[%s13382_s21 + $0x470] sm:$0xff] }
 0x5cc   :  { %9613 = vmatpush3.msra.mxu1 %v11043_v1  ;;  %v9583_v25 = vpop.f32.mrf.mxu0 }
 0x5cd   :  { %9614 = vmatprep.subr.mxu1 %v11161_v55  ;;  %9878 = vmatmul.mubr.msk.f32.gmra.mxu1 %vm1337_vm2, %v9582_v13  ;;  %v13392_v55 = vmov 0.0  }
 0x5ce   :  { %9615 = vmatpush3.msra.mxu1 %v11039_v56  ;;  %v9584_v17 = vpop.f32.mrf.mxu0  ;;  %v8945_v56 = vld [vmem:[%s13382_s21 + $0x408] sm:$0xff] }
 0x5cf   :  { %v9585_v16 = vadd.f32 %v9584_v17, %v9583_v25  ;;  %9616 = vmatprep.subr.mxu1 %v11168_v18  ;;  %v3310_v18 = vld [vmem:[#allocation2 + $0x20] sm:$0xf]  ;;  %v13394_v25 = vld [vmem:[#allocation59_spill] sm:$0xff] }
 0x5d0   :  { %9617 = vmatpush3.msra.mxu1 %v11036_v49  ;;  %v9586_v9 = vpop.f32.mrf.mxu0  ;;  %v8949_v49 = vld [vmem:[%s13382_s21 + $0x428] sm:$0xff]  ;;  %9883 = vmatprep.subr.msk.mxu0 %vm1362_vm1, %v3310_v18 }
 0x5d1   :  { %9618 = vmatprep.subr.mxu1 %v11175_v15  ;;  %9880 = vmatprep.mubr.msk.f32.mxu1 %vm1337_vm2, %v9585_v16 }
 0x5d2   :  { %9619 = vmatpush3.msra.mxu1 %v11033_v42  ;;  %v9587_v1 = vpop.f32.mrf.mxu0  ;;  %v8947_v42 = vld [vmem:[%s13382_s21 + $0x418] sm:$0xff]  ;;  %9884 = vmatpush3.msk.msra.mxu0 %vm1362_vm1, %v3310_v18 }
 0x5d3   :  { %v9588_v20 = vadd.f32 %v9587_v1, %v9586_v9  ;;  %9620 = vmatprep.subr.mxu1 %v11089_v41  ;;  %v8957_v41 = vld [vmem:[%s13382_s21 + $0x468] sm:$0xff]  ;;  %v13396_v1 = vld [vmem:[#allocation55_spill] sm:$0xff] }
 0x5d4   :  { %9621 = vmatpush3.msra.mxu1 %v11030_v35  ;;  %v8944_v35 = vld [vmem:[%s13382_s21 + $0x400] sm:$0xff] }
 0x5d5   :  { %9622 = vmatprep.subr.mxu1 %v11085_v33  ;;  %9881 = vmatmul.mubr.msk.f32.gmra.mxu1 %vm1337_vm2, %v9588_v20  ;;  %v8954_v33 = vld [vmem:[%s13382_s21 + $0x450] sm:$0xff] }
 0x5d6   :  { %9623 = vmatpush3.msra.mxu1 %v11027_v28  ;;  %3268 = vmatprep.mubr.f32.mxu1 %v8945_v56  ;;  %v8946_v28 = vld [vmem:[%s13382_s21 + $0x410] sm:$0xff] }
 0x5d7   :  { %9624 = vmatprep.subr.mxu1 %v11080_v24  ;;  %v8955_v24 = vld [vmem:[%s13382_s21 + $0x458] sm:$0xff] }
 0x5d8   :  { %9625 = vmatpush3.msra.mxu1 %v11024_v21  ;;  %v8948_v21 = vld [vmem:[%s13382_s21 + $0x420] sm:$0xff] }
 0x5d9   :  { %9626 = vmatprep.subr.mxu1 %v11075_v10  ;;  %v8953_v10 = vld [vmem:[%s13382_s21 + $0x448] sm:$0xff] }
 0x5da   :  { %9627 = vmatpush3.msra.mxu1 %v11021_v14  ;;  %v8951_v14 = vld [vmem:[%s13382_s21 + $0x438] sm:$0xff] }
 0x5db   :  { %9628 = vmatprep.subr.mxu1 %v11070_v5  ;;  %v8950_v5 = vld [vmem:[%s13382_s21 + $0x430] sm:$0xff] }
 0x5dc   :  { %9629 = vmatpush3.msra.mxu1 %v11018_v7  ;;  %v8952_v7 = vld [vmem:[%s13382_s21 + $0x440] sm:$0xff] }
 0x5dd   :  { %3269 = vmatmul.mubr.f32.vlgmr.msra.gmra.mxu1 %v8944_v35 }
 0x5de   :  { %3273 = vmatprep.mubr.f32.mxu1 %v8947_v42 }
 0x5e1   :  { %3274 = vmatmul.mubr.f32.gmra.mxu1 %v8946_v28 }
 0x5e2   :  { %3278 = vmatprep.mubr.f32.mxu1 %v8949_v49  ;;  %v13399_v49 = vld [vmem:[#allocation60_spill] sm:$0xff] }
 0x5e5   :  { %3279 = vmatmul.mubr.f32.gmra.mxu1 %v8948_v21 }
 0x5e6   :  { %3283 = vmatprep.mubr.f32.mxu1 %v8951_v14 }
 0x5e9   :  { %3284 = vmatmul.mubr.f32.gmra.mxu1 %v8950_v5  ;;  %v13400_v5 = vld [vmem:[#allocation62_spill] sm:$0xff] }
 0x5ea   :  { %3288 = vmatprep.mubr.f32.mxu1 %v8953_v10 }
 0x5ed   :  { %3289 = vmatmul.mubr.f32.gmra.mxu1 %v8952_v7  ;;  %v13401_v7 = vld [vmem:[#allocation63_spill] sm:$0xff] }
 0x5ee   :  { %3293 = vmatprep.mubr.f32.mxu1 %v8955_v24 }
 0x5f1   :  { %3294 = vmatmul.mubr.f32.gmra.mxu1 %v8954_v33 }
 0x5f2   :  { %3298 = vmatprep.mubr.f32.mxu1 %v8957_v41 }
 0x5f5   :  { %3299 = vmatmul.mubr.f32.gmra.mxu1 %v8956_v22 }
 0x5f6   :  { %3303 = vmatprep.mubr.f32.mxu1 %v8959_v23 }
 0x5f9   :  { %3304 = vmatmul.mubr.f32.gmra.mxu1 %v8958_v27 }
 0x5fa   :  { %4011 = vmatprep.mubr.f32.mxu1 %v13392_v55 }
 0x65d   :  { %v9859_v15 = vpop.f32.mrf.mxu1 }
 0x65e   :  { %v2916_v61 = vadd.f32 %v9859_v15, %v11638_v47  ;;  %v2387_v47 = vadd.f32 %v11627_v40, %v2123_v58  ;;  %v1585_v40 = vadd.f32 %v11482_v6, %v11474_v54 }
 0x65f   :  { %v2876_v2 = vpop.f32.mrf.mxu1 }
 0x660   :  { %v2651_v60 = vadd.f32 %v11640_v48, %v2387_v47  ;;  %v13393_v48 = vld [vmem:[#allocation57_spill] sm:$0xff] }
 0x661   :  { %v1863_v43 = vadd.f32 %v13393_v48, %v1585_v40  ;;  %v3576_v40 = vld [vmem:[#allocation5 + $0x28] sm:$0xff]  ;;  %v3573_v48 = vld [vmem:[#allocation5 + $0x10] sm:$0xff] }
 0x662   :  { %v2915_v63 = vadd.f32 %v2876_v2, %v2651_v60 }
 0x663   :  { %v2127_v17 = vadd.f32 %v13394_v25, %v1863_v43  ;;  %v3572_v43 = vld [vmem:[#allocation5 + $0x8] sm:$0xff] }
 0x665   :  { %v9862_v53 = vpop.f32.mrf.mxu1 }
 0x666   :  { %v2918_v45 = vadd.f32 %v9862_v53, %v11642_v4  ;;  %v1575_v4 = vadd.f32 %v11480_v38, %v11472_v11 }
 0x667   :  { %v2886_v37 = vpop.f32.mrf.mxu1 }
 0x668   :  { %v1861_v52 = vadd.f32 %v11488_v26, %v1575_v4 }
 0x66a   :  { %v2125_v12 = vadd.f32 %v11500_v46, %v1861_v52  ;;  %v13395_v46 = vld [vmem:[#allocation61_spill] sm:$0xff] }
 0x66b   :  { %v2391_v9 = vadd.f32 %v13395_v46, %v2127_v17 }
 0x66c   :  { %v2389_v62 = vadd.f32 %v11630_v29, %v2125_v12  ;;  %v13397_v29 = vld [vmem:[#allocation56_spill] sm:$0xff] }
 0x66d   :  { %v9865_v19 = vpop.f32.mrf.mxu1  ;;  %v1595_v20 = vadd.f32 %v13397_v29, %v13396_v1  ;;  %v2655_v54 = vadd.f32 %v11648_v36, %v2391_v9  ;;  %v3578_v12 = vld [vmem:[#allocation5 + $0x38] sm:$0xff] }
 0x66e   :  { %v2920_v3 = vadd.f32 %v9865_v19, %v11646_v44  ;;  %v2653_v11 = vadd.f32 %v11644_v57, %v2389_v62  ;;  %v13398_v57 = vld [vmem:[#allocation58_spill] sm:$0xff]  ;;  %3627 = vmatprep.subr.mxu0 %v3578_v12  ;;  %v3577_v62 = vld [vmem:[#allocation5 + $0x30] sm:$0xff] }
 0x66f   :  { %v2896_v59 = vpop.f32.mrf.mxu1  ;;  %v1865_v56 = vadd.f32 %v13398_v57, %v1595_v20 }
 0x670   :  { %v2917_v34 = vadd.f32 %v2886_v37, %v2653_v11  ;;  %v2919_v35 = vadd.f32 %v2896_v59, %v2655_v54  ;;  %v3575_v11 = vld [vmem:[#allocation5 + $0x20] sm:$0xff] }
 0x671   :  { %v2129_v21 = vadd.f32 %v13399_v49, %v1865_v56 }
 0x673   :  { %v2393_v10 = vadd.f32 %v13400_v5, %v2129_v21 }
 0x675   :  { %v9868_v51 = vpop.f32.mrf.mxu1  ;;  %v2657_v24 = vadd.f32 %v13401_v7, %v2393_v10 }
 0x676   :  { %v2922_v39 = vadd.f32 %v9868_v51, %v11650_v0 }
 0x677   :  { %v2906_v8 = vpop.f32.mrf.mxu1 }
 0x678   :  { %v2921_v41 = vadd.f32 %v2906_v8, %v2657_v24 }
 0x67d   :  { %v9873_v44 = vpop.f32.mrf.mxu1 }
 0x67e   :  { %v11735_v50 = vadd.f32 %v9873_v44, %v2916_v61 }
 0x67f   :  { %v3140_v32 = vpop.f32.mrf.mxu1 }
 0x680   :  { %v11738_v0 = vadd.f32 %v3140_v32, %v2915_v63 }
 0x685   :  { %v9876_v38 = vpop.f32.mrf.mxu1 }
 0x686   :  { %v11745_v26 = vadd.f32 %v9876_v38, %v2918_v45  ;;  %v3574_v38 = vld [vmem:[#allocation5 + $0x18] sm:$0xff] }
 0x687   :  { %v3150_v13 = vpop.f32.mrf.mxu1 }
 0x688   :  { %v11748_v16 = vadd.f32 %v3150_v13, %v2917_v34  ;;  %v3571_v34 = vld [vmem:[#allocation5] sm:$0xff] }
 0x68d   :  { %v9879_v6 = vpop.f32.mrf.mxu1 }
 0x68e   :  { %v11755_v42 = vadd.f32 %v9879_v6, %v2920_v3 }
 0x68f   :  { %v3160_v28 = vpop.f32.mrf.mxu1 }
 0x690   :  { %v11758_v14 = vadd.f32 %v3160_v28, %v2919_v35 }
 0x695   :  { %v9882_v33 = vpop.f32.mrf.mxu1 }
 0x696   :  { %v11762_v22 = vadd.f32 %v9882_v33, %v2922_v39 }
 0x697   :  { %v3170_v36 = vpop.f32.mrf.mxu1 }
 0x698   :  { %v11764_v23 = vadd.f32 %v3170_v36, %v2921_v41 }
 0x69d   :  { %v9630_v27 = vpop.f32.mrf.mxu1 }
 0x69f   :  { %v9631_v18 = vpop.f32.mrf.mxu1 }
 0x6a0   :  { %v9632_v15 = vadd.f32 %v9631_v18, %v9630_v27 }
 0x6a1   :  { %v9633_v61 = vpop.f32.mrf.mxu1 }
 0x6a2   :  { %9885 = vmatprep.mubr.msk.f32.mxu0 %vm1337_vm2, %v9632_v15 }
 0x6a3   :  { %v9634_v2 = vpop.f32.mrf.mxu1 }
 0x6a4   :  { %v9635_v53 = vadd.f32 %v9634_v2, %v9633_v61 }
 0x6a5   :  { %v9636_v45 = vpop.f32.mrf.mxu1 }
 0x6a6   :  { %9886 = vmatmul.mubr.msk.f32.vlgmr.msra.gmra.mxu0 %vm1337_vm2, %v9635_v53 }
 0x6a7   :  { %v9637_v37 = vpop.f32.mrf.mxu1  ;;  %3628 = vmatpush1.msra.mxu0 %v3577_v62 }
 0x6a8   :  { %v9638_v19 = vadd.f32 %v9637_v37, %v9636_v45  ;;  %3629 = vmatprep.subr.mxu0 %v3576_v40 }
 0x6a9   :  { %v9639_v3 = vpop.f32.mrf.mxu1  ;;  %3630 = vmatpush1.msra.mxu0 %v3575_v11 }
 0x6aa   :  { %9888 = vmatprep.mubr.msk.f32.mxu0 %vm1337_vm2, %v9638_v19  ;;  %3631 = vmatprep.subr.mxu0 %v3574_v38 }
 0x6ab   :  { %v9640_v59 = vpop.f32.mrf.mxu1  ;;  %3632 = vmatpush1.msra.mxu0 %v3573_v48 }
 0x6ac   :  { %v9641_v31 = vadd.f32 %v9640_v59, %v9639_v3  ;;  %3633 = vmatprep.subr.mxu0 %v3572_v43 }
 0x6ad   :  { %v9642_v51 = vpop.f32.mrf.mxu1  ;;  %3634 = vmatpush1.msra.mxu0 %v3571_v34 }
 0x6ae   :  { %9889 = vmatmul.mubr.msk.f32.gmra.mxu0 %vm1337_vm2, %v9641_v31 }
 0x6af   :  { %v9643_v30 = vpop.f32.mrf.mxu1 }
 0x6b0   :  { %v9644_v39 = vadd.f32 %v9643_v30, %v9642_v51 }
 0x6b1   :  { %v9645_v58 = vpop.f32.mrf.mxu1 }
 0x6b2   :  { %9891 = vmatprep.mubr.msk.f32.mxu0 %vm1337_vm2, %v9644_v39 }
 0x6b3   :  { %v9646_v47 = vpop.f32.mrf.mxu1 }
 0x6b4   :  { %v9647_v8 = vadd.f32 %v9646_v47, %v9645_v58 }
 0x6b5   :  { %v9648_v4 = vpop.f32.mrf.mxu1 }
 0x6b6   :  { %9892 = vmatmul.mubr.msk.f32.gmra.mxu0 %vm1337_vm2, %v9647_v8 }
 0x6b7   :  { %v9649_v60 = vpop.f32.mrf.mxu1 }
 0x6b8   :  { %v9650_v44 = vadd.f32 %v9649_v60, %v9648_v4 }
 0x6b9   :  { %v9651_v52 = vpop.f32.mrf.mxu1 }
 0x6ba   :  { %9894 = vmatprep.mubr.msk.f32.mxu0 %vm1337_vm2, %v9650_v44 }
 0x6bb   :  { %v9652_v63 = vpop.f32.mrf.mxu1 }
 0x6bc   :  { %v9653_v32 = vadd.f32 %v9652_v63, %v9651_v52 }
 0x6be   :  { %9895 = vmatmul.mubr.msk.f32.gmra.mxu0 %vm1337_vm2, %v9653_v32 }
 0x6bf   :  { %3667 = vmatprep.mubr.f32.mxu0 %v13392_v55 }
 0x766   :  { %v9887_v13 = vpop.f32.mrf.mxu0 }
 0x767   :  { %v11776_v25 = vadd.f32 %v9887_v13, %v11735_v50 }
 0x768   :  { %v3404_v17 = vpop.f32.mrf.mxu0 }
 0x769   :  { %v3476_v46 = vmul.f32 %v11776_v25, %v11776_v25  ;;  %v11781_v9 = vadd.f32 %v3404_v17, %v11738_v0  ;;  %v3455_v1 = vsel %vm3453_vm3, %v11776_v25, 0.0 }
 0x76b   :  { %v3454_v29 = vsel %vm3453_vm3, %v11781_v9, 0.0  ;;  %v3475_v20 = vmul.f32 %v11781_v9, %v11781_v9  ;;  %v3484_v50 = vsel %vm3453_vm3, %v3476_v46, 0.0 }
 0x76c   :  { %v3456_v54 = vadd.f32 %v3455_v1, %v3454_v29 }
 0x76d   :  { %v3483_v6 = vsel %vm3453_vm3, %v3475_v20, 0.0 }
 0x76e   :  { %v3485_v57 = vadd.f32 %v3484_v50, %v3483_v6  ;;  %v9890_v56 = vpop.f32.mrf.mxu0 }
 0x76f   :  { %v11792_v35 = vadd.f32 %v9890_v56, %v11745_v26 }
 0x770   :  { %v3414_v0 = vpop.f32.mrf.mxu0 }
 0x771   :  { %v11795_v28 = vadd.f32 %v3414_v0, %v11748_v16  ;;  %v3478_v49 = vmul.f32 %v11792_v35, %v11792_v35  ;;  %v3459_v7 = vsel %vm3453_vm3, %v11792_v35, 0.0 }
 0x773   :  { %v3457_v21 = vsel %vm3453_vm3, %v11795_v28, 0.0  ;;  %v3477_v5 = vmul.f32 %v11795_v28, %v11795_v28  ;;  %v3488_v16 = vsel %vm3453_vm3, %v3478_v49, 0.0 }
 0x774   :  { %v3458_v10 = vadd.f32 %v3457_v21, %v3456_v54 }
 0x775   :  { %v3486_v26 = vsel %vm3453_vm3, %v3477_v5, 0.0 }
 0x776   :  { %v3487_v24 = vadd.f32 %v3486_v26, %v3485_v57  ;;  %v9893_v33 = vpop.f32.mrf.mxu0  ;;  %v3460_v41 = vadd.f32 %v3459_v7, %v3458_v10 }
 0x777   :  { %v11808_v36 = vadd.f32 %v9893_v33, %v11755_v42 }
 0x778   :  { %v3424_v27 = vpop.f32.mrf.mxu0  ;;  %v3489_v18 = vadd.f32 %v3488_v16, %v3487_v24  ;;  %v8969_v24 = vld [vmem:[%s13402_s23] ss:$0 sm:$0xff] }
 0x779   :  { %v3447_v15 = vadd.f32 %v3424_v27, %v11758_v14  ;;  %v3480_v61 = vmul.f32 %v11808_v36, %v11808_v36  ;;  %v3463_v37 = vsel %vm3453_vm3, %v11808_v36, 0.0 }
 0x77b   :  { %v3461_v2 = vsel %vm3453_vm3, %v3447_v15, 0.0  ;;  %v3479_v53 = vmul.f32 %v3447_v15, %v3447_v15  ;;  %v3492_v31 = vsel %vm3453_vm3, %v3480_v61, 0.0 }
 0x77c   :  { %v3462_v45 = vadd.f32 %v3461_v2, %v3460_v41 }
 0x77d   :  { %v3490_v19 = vsel %vm3453_vm3, %v3479_v53, 0.0 }
 0x77e   :  { %v3491_v3 = vadd.f32 %v3490_v19, %v3489_v18  ;;  %v9896_v59 = vpop.f32.mrf.mxu0  ;;  %v3464_v42 = vadd.f32 %v3463_v37, %v3462_v45 }
 0x77f   :  { %v3450_v51 = vadd.f32 %v9896_v59, %v11762_v22 }
 0x780   :  { %v3434_v14 = vpop.f32.mrf.mxu0  ;;  %v3493_v30 = vadd.f32 %v3492_v31, %v3491_v3 }
 0x781   :  { %v3449_v39 = vadd.f32 %v3434_v14, %v11764_v23  ;;  %v3482_v58 = vmul.f32 %v3450_v51, %v3450_v51  ;;  %v3467_v60 = vsel %vm3453_vm3, %v3450_v51, 0.0 }
 0x783   :  { %v3465_v47 = vsel %vm3453_vm3, %v3449_v39, 0.0  ;;  %v3481_v8 = vmul.f32 %v3449_v39, %v3449_v39  ;;  %v3496_v32 = vsel %vm3453_vm3, %v3482_v58, 0.0 }
 0x784   :  { %v3466_v4 = vadd.f32 %v3465_v47, %v3464_v42 }
 0x785   :  { %v3494_v44 = vsel %vm3453_vm3, %v3481_v8, 0.0 }
 0x786   :  { %v3468_v52 = vadd.f32 %v3467_v60, %v3466_v4  ;;  %v3495_v63 = vadd.f32 %v3494_v44, %v3493_v30 }
 0x788   :  { %v3469_v12 = vrot.slane %v3468_v52, 4  ;;  %v3497_v62 = vadd.f32 %v3496_v32, %v3495_v63 }
 0x78a   :  { %v3470_v22 = vadd.f32 %v3469_v12, %v3468_v52  ;;  %v3498_v40 = vrot.slane %v3497_v62, 4 }
 0x78c   :  { %v3471_v11 = vrot.slane %v3470_v22, 2  ;;  %v3499_v38 = vadd.f32 %v3498_v40, %v3497_v62 }
 0x78e   :  { %v3472_v23 = vadd.f32 %v3471_v11, %v3470_v22  ;;  %v3500_v48 = vrot.slane %v3499_v38, 2 }
 0x790   :  { %v3473_v43 = vrot.slane %v3472_v23, 1  ;;  %v3501_v34 = vadd.f32 %v3500_v48, %v3499_v38 }
 0x792   :  { %v3474_v13 = vadd.f32 %v3473_v43, %v3472_v23  ;;  %v3502_v17 = vrot.slane %v3501_v34, 1 }
 0x794   :  { %v3503_v46 = vadd.f32 %v3502_v17, %v3501_v34  ;;  %v3504_v1 = vmul.f32 0.015625, %v3474_v13 }
 0x796   :  { %v3505_v29 = vmul.f32 0.015625, %v3503_v46  ;;  %v3506_v20 = vmul.f32 %v3504_v1, %v3504_v1  ;;  %v3515_v54 = vsub.f32 %v3449_v39, %v3504_v1  ;;  %v3509_v50 = vsub.f32 %v11781_v9, %v3504_v1 }
 0x797   :  { %v3510_v6 = vsub.f32 %v11776_v25, %v3504_v1  ;;  %v3511_v57 = vsub.f32 %v11795_v28, %v3504_v1  ;;  %v3512_v56 = vsub.f32 %v11792_v35, %v3504_v1  ;;  %v3513_v0 = vsub.f32 %v3447_v15, %v3504_v1  ;;  %v8970_v25 = vld [vmem:[%s13403_s20] ss:$0 sm:$0xff] }
 0x798   :  { %v3507_v49 = vsub.f32 %v3505_v29, %v3506_v20  ;;  %v3514_v21 = vsub.f32 %v11808_v36, %v3504_v1  ;;  %v3516_v5 = vsub.f32 %v3450_v51, %v3504_v1 }
 0x79a   :  { %v3508_v10 = vmax.f32 %v3507_v49, 0.0 }
 0x79c   :  { %v3517_v7 = vadd.f32 1e-05, %v3508_v10 }
 0x79e   :  { %10083 = vrsqrt.f32 %v3517_v7 }
 0x7ab   :  { %v10084_v26 = vpop.eup %10083 }
 0x7ac   :  { %v3525_v33 = vmul.f32 %v10084_v26, %v3515_v54  ;;  %v3519_v41 = vmul.f32 %v10084_v26, %v3509_v50  ;;  %v3520_v9 = vmul.f32 %v10084_v26, %v3510_v6  ;;  %v3521_v16 = vmul.f32 %v10084_v26, %v3511_v57 }
 0x7ad   :  { %v3522_v27 = vmul.f32 %v10084_v26, %v3512_v56  ;;  %v3523_v18 = vmul.f32 %v10084_v26, %v3513_v0  ;;  %v3524_v28 = vmul.f32 %v10084_v26, %v3514_v21  ;;  %v3526_v61 = vmul.f32 %v10084_v26, %v3516_v5 }
 0x7ae   :  { %v3533_v35 = vmul.f32 %v8969_v24, %v3519_v41  ;;  %v3534_v15 = vmul.f32 %v8969_v24, %v3520_v9  ;;  %v3535_v36 = vmul.f32 %v8969_v24, %v3521_v16  ;;  %v3539_v8 = vmul.f32 %v8969_v24, %v3525_v33 }
 0x7af   :  { %v3536_v59 = vmul.f32 %v8969_v24, %v3522_v27  ;;  %v3537_v14 = vmul.f32 %v8969_v24, %v3523_v18  ;;  %v3538_v47 = vmul.f32 %v8969_v24, %v3524_v28  ;;  %v3540_v12 = vmul.f32 %v8969_v24, %v3526_v61 }
 0x7b0   :  { %v3547_v2 = vadd.f32 %v8970_v25, %v3533_v35  ;;  %v3548_v53 = vadd.f32 %v8970_v25, %v3534_v15  ;;  %v3549_v3 = vadd.f32 %v8970_v25, %v3535_v36  ;;  %v3553_v52 = vadd.f32 %v8970_v25, %v3539_v8 }
 0x7b1   :  { %v3550_v51 = vadd.f32 %v8970_v25, %v3536_v59  ;;  %v3551_v58 = vadd.f32 %v8970_v25, %v3537_v14  ;;  %v3552_v44 = vadd.f32 %v8970_v25, %v3538_v47  ;;  %v3554_v40 = vadd.f32 %v8970_v25, %v3540_v12 }
 0x7b2   :  { %v3555_v45 = vmax.f32 %v3547_v2, 0.0  ;;  %v3556_v19 = vmax.f32 %v3548_v53, 0.0  ;;  %v3557_v31 = vmax.f32 %v3549_v3, 0.0  ;;  %v3561_v62 = vmax.f32 %v3553_v52, 0.0 }
 0x7b3   :  { %v3558_v39 = vmax.f32 %v3550_v51, 0.0  ;;  %v3559_v60 = vmax.f32 %v3551_v58, 0.0  ;;  %v3560_v32 = vmax.f32 %v3552_v44, 0.0  ;;  %v3562_v38 = vmax.f32 %v3554_v40, 0.0 }
 0x7b4   :  { %v3563_v37 = vmin.f32 %v3555_v45, 6.0  ;;  %v3564_v42 = vmin.f32 %v3556_v19, 6.0  ;;  %v3565_v30 = vmin.f32 %v3557_v31, 6.0  ;;  %v3569_v11 = vmin.f32 %v3561_v62, 6.0 }
 0x7b5   :  { %v3566_v4 = vmin.f32 %v3558_v39, 6.0  ;;  %v3567_v63 = vmin.f32 %v3559_v60, 6.0  ;;  %v3568_v22 = vmin.f32 %v3560_v32, 6.0  ;;  %v3570_v23 = vmin.f32 %v3562_v38, 6.0 }
 0x7b6   :  { %8971 = vmatmul.mubr.msk.f32.vlgmr.msra.gmra.mxu0 %vm3453_vm3, %v3563_v37 }
 0x7b7   :  { %3673 = vmatprep.mubr.f32.mxu0 %v13392_v55 }
 0x7ba   :  { %8972 = vmatmul.mubr.msk.f32.gmra.mxu0 %vm3453_vm3, %v3564_v42 }
 0x7bb   :  { %3679 = vmatprep.mubr.f32.mxu0 %v13392_v55 }
 0x7be   :  { %8973 = vmatmul.mubr.msk.f32.gmra.mxu0 %vm3453_vm3, %v3565_v30 }
 0x7bf   :  { %3685 = vmatprep.mubr.f32.mxu0 %v13392_v55 }
 0x7c2   :  { %8974 = vmatmul.mubr.msk.f32.gmra.mxu0 %vm3453_vm3, %v3566_v4 }
 0x7c3   :  { %3691 = vmatprep.mubr.f32.mxu0 %v13392_v55 }
 0x7c6   :  { %8975 = vmatmul.mubr.msk.f32.gmra.mxu0 %vm3453_vm3, %v3567_v63 }
 0x7c7   :  { %3697 = vmatprep.mubr.f32.mxu0 %v13392_v55 }
 0x7ca   :  { %8976 = vmatmul.mubr.msk.f32.gmra.mxu0 %vm3453_vm3, %v3568_v22 }
 0x7cb   :  { %3703 = vmatprep.mubr.f32.mxu0 %v13392_v55 }
 0x7ce   :  { %8977 = vmatmul.mubr.msk.f32.gmra.mxu0 %vm3453_vm3, %v3569_v11 }
 0x7cf   :  { %3709 = vmatprep.mubr.f32.mxu0 %v13392_v55 }
 0x7d2   :  { %8978 = vmatmul.mubr.msk.f32.gmra.mxu0 %vm3453_vm3, %v3570_v23 }
 0x7d3   :  { %4211 = vmatprep.mubr.f32.mxu0 %v13392_v55 }
 0x876   :  { %v11847_v48 = vpop.f32.mrf.mxu0 }
 0x877   :  { %v3753_v50 = vmul.f32 %v11847_v48, %v11847_v48 }
 0x878   :  { %v11849_v43 = vpop.f32.mrf.mxu0 }
 0x879   :  { %v3754_v6 = vmul.f32 %v11849_v43, %v11849_v43  ;;  %v3732_v5 = vsel %vm3731_vm4, %v11849_v43, 0.0 }
 0x87a   :  { %v11851_v34 = vpop.f32.mrf.mxu0 }
 0x87b   :  { %v3755_v29 = vmul.f32 %v11851_v34, %v11851_v34  ;;  %v3718_v0 = vadd.f32 %v11851_v34, %v11847_v48  ;;  %v3782_v16 = vsel %vm3731_vm4, %v3754_v6, 0.0 }
 0x87c   :  { %v11853_v13 = vpop.f32.mrf.mxu0 }
 0x87d   :  { %v3756_v54 = vmul.f32 %v11853_v13, %v11853_v13  ;;  %v3733_v49 = vsel %vm3731_vm4, %v11853_v13, 0.0  ;;  %v3769_v10 = vadd.f32 %v3755_v29, %v3753_v50 }
 0x87e   :  { %v11855_v17 = vpop.f32.mrf.mxu0  ;;  %v3734_v25 = vadd.f32 %v3733_v49, %v3732_v5 }
 0x87f   :  { %v3757_v57 = vmul.f32 %v11855_v17, %v11855_v17  ;;  %v3783_v24 = vsel %vm3731_vm4, %v3756_v54, 0.0  ;;  %v3719_v33 = vadd.f32 %v3718_v0, %v11855_v17 }
 0x880   :  { %v11857_v46 = vpop.f32.mrf.mxu0  ;;  %v3784_v53 = vadd.f32 %v3783_v24, %v3782_v16 }
 0x881   :  { %v3758_v21 = vmul.f32 %v11857_v46, %v11857_v46  ;;  %v3735_v41 = vsel %vm3731_vm4, %v11857_v46, 0.0  ;;  %v3770_v27 = vadd.f32 %v3769_v10, %v3757_v57 }
 0x882   :  { %v11859_v1 = vpop.f32.mrf.mxu0  ;;  %v3736_v36 = vadd.f32 %v3735_v41, %v3734_v25 }
 0x883   :  { %v3759_v7 = vmul.f32 %v11859_v1, %v11859_v1  ;;  %v3785_v61 = vsel %vm3731_vm4, %v3758_v21, 0.0  ;;  %v3720_v35 = vadd.f32 %v3719_v33, %v11859_v1 }
 0x884   :  { %v11863_v20 = vpop.f32.mrf.mxu0  ;;  %v3786_v51 = vadd.f32 %v3785_v61, %v3784_v53 }
 0x885   :  { %v3760_v9 = vmul.f32 %v11863_v20, %v11863_v20  ;;  %v3737_v15 = vsel %vm3731_vm4, %v11863_v20, 0.0  ;;  %v3771_v45 = vadd.f32 %v3770_v27, %v3759_v7 }
 0x886   :  { %v11873_v56 = vpop.f32.mrf.mxu0  ;;  %v3738_v14 = vadd.f32 %v3737_v15, %v3736_v36 }
 0x887   :  { %v3761_v18 = vmul.f32 %v11873_v56, %v11873_v56  ;;  %v3787_v3 = vsel %vm3731_vm4, %v3760_v9, 0.0  ;;  %v3721_v59 = vadd.f32 %v3720_v35, %v11873_v56 }
 0x888   :  { %v11885_v26 = vpop.f32.mrf.mxu0  ;;  %v3788_v60 = vadd.f32 %v3787_v3, %v3786_v51 }
 0x889   :  { %v3762_v2 = vmul.f32 %v11885_v26, %v11885_v26  ;;  %v3739_v42 = vsel %vm3731_vm4, %v11885_v26, 0.0  ;;  %v3772_v30 = vadd.f32 %v3771_v45, %v3761_v18 }
 0x88a   :  { %v11896_v28 = vpop.f32.mrf.mxu0  ;;  %v3740_v44 = vadd.f32 %v3739_v42, %v3738_v14 }
 0x88b   :  { %v3763_v37 = vmul.f32 %v11896_v28, %v11896_v28  ;;  %v3789_v58 = vsel %vm3731_vm4, %v3762_v2, 0.0  ;;  %v3722_v47 = vadd.f32 %v3721_v59, %v11896_v28 }
 0x88c   :  { %v11906_v19 = vpop.f32.mrf.mxu0  ;;  %v3790_v40 = vadd.f32 %v3789_v58, %v3788_v60 }
 0x88d   :  { %v3764_v31 = vmul.f32 %v11906_v19, %v11906_v19  ;;  %v3741_v8 = vsel %vm3731_vm4, %v11906_v19, 0.0  ;;  %v3773_v52 = vadd.f32 %v3772_v30, %v3763_v37 }
 0x88e   :  { %v11914_v39 = vpop.f32.mrf.mxu0  ;;  %v3742_v11 = vadd.f32 %v3741_v8, %v3740_v44 }
 0x88f   :  { %v3765_v4 = vmul.f32 %v11914_v39, %v11914_v39  ;;  %v3791_v32 = vsel %vm3731_vm4, %v3764_v31, 0.0  ;;  %v3723_v12 = vadd.f32 %v3722_v47, %v11914_v39 }
 0x890   :  { %v11922_v63 = vpop.f32.mrf.mxu0  ;;  %v3792_v6 = vadd.f32 %v3791_v32, %v3790_v40 }
 0x891   :  { %v3743_v62 = vsel %vm3731_vm4, %v11922_v63, 0.0  ;;  %v3766_v22 = vmul.f32 %v11922_v63, %v11922_v63  ;;  %v3774_v23 = vadd.f32 %v3773_v52, %v3765_v4 }
 0x892   :  { %v11930_v38 = vpop.f32.mrf.mxu0  ;;  %v3744_v57 = vadd.f32 %v3743_v62, %v3742_v11 }
 0x893   :  { %v3793_v29 = vsel %vm3731_vm4, %v3766_v22, 0.0  ;;  %v3724_v54 = vadd.f32 %v3723_v12, %v11930_v38  ;;  %v3767_v50 = vmul.f32 %v11930_v38, %v11930_v38 }
 0x894   :  { %v11936_v0 = vpop.f32.mrf.mxu0  ;;  %v3794_v7 = vadd.f32 %v3793_v29, %v3792_v6 }
 0x895   :  { %v3725_v49 = vrot.slane %v3724_v54, 4  ;;  %v3775_v21 = vadd.f32 %v3774_v23, %v3767_v50  ;;  %v3745_v5 = vsel %vm3731_vm4, %v11936_v0, 0.0  ;;  %v3768_v10 = vmul.f32 %v11936_v0, %v11936_v0 }
 0x896   :  { %v3746_v24 = vadd.f32 %v3745_v5, %v3744_v57  ;;  %v3850_v23 = vlaneseq  ;;  %v3716_v57 = vld [vmem:[#allocation7] sm:$0x3] }
 0x897   :  { %v3726_v33 = vadd.f32 %v3725_v49, %v3724_v54  ;;  %v3776_v41 = vrot.slane %v3775_v21, 4  ;;  %v3795_v9 = vsel %vm3731_vm4, %v3768_v10, 0.0 }
 0x898   :  { %v3747_v16 = vrot.slane %v3746_v24, 4  ;;  %v3796_v25 = vadd.f32 %v3795_v9, %v3794_v7  ;;  %v11951_v50 = vshrl.u32 %v3850_v23, 7 }
 0x899   :  { %v3727_v27 = vrot.slane %v3726_v33, 2  ;;  %v3777_v18 = vadd.f32 %v3776_v41, %v3775_v21  ;;  %v3717_v21 = vld [vmem:[#allocation8] sm:$0x3] }
 0x89a   :  { %v3748_v61 = vadd.f32 %v3747_v16, %v3746_v24  ;;  %v3797_v35 = vrot.slane %v3796_v25, 4  ;;  %v11954_v6 = vsub.s32 0, %v11951_v50  ;;  %v11957_v49 = vsub.s32 1, %v11951_v50 }
 0x89b   :  { %v3728_v15 = vadd.f32 %v3727_v27, %v3726_v33  ;;  %v3778_v2 = vrot.slane %v3777_v18, 2 }
 0x89c   :  { %v3749_v53 = vrot.slane %v3748_v61, 2  ;;  %v3798_v36 = vadd.f32 %v3797_v35, %v3796_v25  ;;  %13404 = vst [vmem:[#allocation57_spill] sm:$0xff] %v11954_v6  ;;  %13405 = vst [vmem:[#allocation59_spill] sm:$0xff] %v11957_v49  ;;  %v11960_v5 = vrot.slane %v3716_v57, %v11954_v6  ;;  %v11965_v7 = vrot.slane %v3717_v21, %v11954_v6 }
 0x89d   :  { %v3729_v45 = vrot.slane %v3728_v15, 1  ;;  %v3779_v37 = vadd.f32 %v3778_v2, %v3777_v18  ;;  %v11968_v24 = vrot.slane %v3716_v57, %v11957_v49  ;;  %v11971_v33 = vrot.slane %v3717_v21, %v11957_v49 }
 0x89e   :  { %v3750_v3 = vadd.f32 %v3749_v53, %v3748_v61  ;;  %v3799_v59 = vrot.slane %v3798_v36, 2 }
 0x89f   :  { %v3730_v42 = vadd.f32 %v3729_v45, %v3728_v15  ;;  %v3780_v31 = vrot.slane %v3779_v37, 1 }
 0x8a0   :  { %v3751_v51 = vrot.slane %v3750_v3, 1  ;;  %v3800_v14 = vadd.f32 %v3799_v59, %v3798_v36 }
 0x8a1   :  { %v3781_v30 = vadd.f32 %v3780_v31, %v3779_v37  ;;  %v11943_v58 = vmul.f32 0.015625, %v3730_v42 }
 0x8a2   :  { %v3752_v47 = vadd.f32 %v3751_v51, %v3750_v3  ;;  %v3801_v8 = vrot.slane %v3800_v14, 1 }
 0x8a3   :  { %v3805_v4 = vmul.f32 0.015625, %v3781_v30  ;;  %v3807_v60 = vmul.f32 %v11943_v58, %v11943_v58  ;;  %v3827_v10 = vsub.f32 %v11930_v38, %v11943_v58  ;;  %v3825_v41 = vsub.f32 %v11914_v39, %v11943_v58 }
 0x8a4   :  { %v3802_v44 = vadd.f32 %v3801_v8, %v3800_v14  ;;  %v11947_v52 = vmul.f32 0.015625, %v3752_v47  ;;  %v3823_v9 = vsub.f32 %v11896_v28, %v11943_v58  ;;  %v3821_v16 = vsub.f32 %v11873_v56, %v11943_v58 }
 0x8a5   :  { %v3809_v32 = vsub.f32 %v3805_v4, %v3807_v60  ;;  %v3819_v38 = vsub.f32 %v11859_v1, %v11943_v58  ;;  %v3817_v61 = vsub.f32 %v11855_v17, %v11943_v58  ;;  %v3815_v39 = vsub.f32 %v11851_v34, %v11943_v58 }
 0x8a6   :  { %v3806_v12 = vmul.f32 0.015625, %v3802_v44  ;;  %v3808_v62 = vmul.f32 %v11947_v52, %v11947_v52  ;;  %v3828_v27 = vsub.f32 %v11936_v0, %v11947_v52  ;;  %v3826_v18 = vsub.f32 %v11922_v63, %v11947_v52 }
 0x8a7   :  { %v3811_v22 = vmax.f32 %v3809_v32, 0.0  ;;  %v3824_v1 = vsub.f32 %v11906_v19, %v11947_v52  ;;  %v3822_v2 = vsub.f32 %v11885_v26, %v11947_v52  ;;  %v3820_v0 = vsub.f32 %v11863_v20, %v11947_v52 }
 0x8a8   :  { %v3810_v40 = vsub.f32 %v3806_v12, %v3808_v62  ;;  %v3818_v63 = vsub.f32 %v11857_v46, %v11947_v52  ;;  %v3816_v46 = vsub.f32 %v11853_v13, %v11947_v52  ;;  %v3813_v60 = vsub.f32 %v11847_v48, %v11943_v58 }
 0x8a9   :  { %v3829_v11 = vadd.f32 1e-05, %v3811_v22 }
 0x8aa   :  { %v3812_v29 = vmax.f32 %v3810_v40, 0.0  ;;  %v3814_v40 = vsub.f32 %v11849_v43, %v11947_v52 }
 0x8ab   :  { %10085 = vrsqrt.f32 %v3829_v11 }
 0x8ac   :  { %v3830_v54 = vadd.f32 1e-05, %v3812_v29 }
 0x8ae   :  { %10087 = vrsqrt.f32 %v3830_v54 }
 0x8b8   :  { %v10086_v25 = vpop.eup %10085 }
 0x8b9   :  { %v3847_v28 = vmul.f32 %v10086_v25, %v3827_v10  ;;  %v3845_v35 = vmul.f32 %v10086_v25, %v3825_v41  ;;  %v3843_v15 = vmul.f32 %v10086_v25, %v3823_v9  ;;  %v3841_v56 = vmul.f32 %v10086_v25, %v3821_v16 }
 0x8ba   :  { %v3839_v8 = vmul.f32 %v10086_v25, %v3819_v38  ;;  %v3837_v4 = vmul.f32 %v10086_v25, %v3817_v61  ;;  %v3835_v22 = vmul.f32 %v10086_v25, %v3815_v39  ;;  %v3833_v11 = vmul.f32 %v10086_v25, %v3813_v60  ;;  %v3939_v60 = vld [vmem:[%s13406_s26] sm:$0xff] }
 0x8bb   :  { %v10088_v17 = vpop.eup %10087  ;;  %v3874_v53 = vmul.f32 %v11960_v5, %v3847_v28  ;;  %v3872_v34 = vmul.f32 %v11960_v5, %v3845_v35  ;;  %v3870_v36 = vmul.f32 %v11960_v5, %v3843_v15  ;;  %v3868_v45 = vmul.f32 %v11960_v5, %v3841_v56 }
 0x8bc   :  { %v3848_v37 = vmul.f32 %v10088_v17, %v3828_v27  ;;  %v3846_v19 = vmul.f32 %v10088_v17, %v3826_v18  ;;  %v3844_v3 = vmul.f32 %v10088_v17, %v3824_v1  ;;  %v3842_v59 = vmul.f32 %v10088_v17, %v3822_v2 }
 0x8bd   :  { %v3901_v26 = vadd.f32 %v11965_v7, %v3874_v53  ;;  %v3899_v20 = vadd.f32 %v11965_v7, %v3872_v34  ;;  %v3897_v42 = vadd.f32 %v11965_v7, %v3870_v36  ;;  %v3895_v47 = vadd.f32 %v11965_v7, %v3868_v45 }
 0x8be   :  { %v3875_v31 = vmul.f32 %v11968_v24, %v3848_v37  ;;  %v3873_v51 = vmul.f32 %v11968_v24, %v3846_v19  ;;  %v3871_v14 = vmul.f32 %v11968_v24, %v3844_v3  ;;  %v3869_v30 = vmul.f32 %v11968_v24, %v3842_v59 }
 0x8bf   :  { %v3917_v44 = vmax.f32 %v3901_v26, 0.0  ;;  %v3915_v54 = vmax.f32 %v3899_v20, 0.0  ;;  %v3913_v57 = vmax.f32 %v3897_v42, 0.0  ;;  %v3840_v21 = vmul.f32 %v10088_v17, %v3820_v0 }
 0x8c0   :  { %v3902_v32 = vadd.f32 %v11971_v33, %v3875_v31  ;;  %v3900_v13 = vadd.f32 %v11971_v33, %v3873_v51  ;;  %v3898_v12 = vadd.f32 %v11971_v33, %v3871_v14  ;;  %v3896_v62 = vadd.f32 %v11971_v33, %v3869_v30 }
 0x8c1   :  { %v3866_v48 = vmul.f32 %v11960_v5, %v3839_v8  ;;  %v3838_v58 = vmul.f32 %v10088_v17, %v3818_v63  ;;  %v3864_v10 = vmul.f32 %v11960_v5, %v3837_v4  ;;  %v12021_v41 = vmin.f32 %v3917_v44, 6.0  ;;  %v8985_v44 = vld [vmem:[%s13406_s26 + $0x20] sm:$0xff] }
 0x8c2   :  { %v3918_v23 = vmax.f32 %v3902_v32, 0.0  ;;  %v3916_v29 = vmax.f32 %v3900_v13, 0.0  ;;  %v3914_v16 = vmax.f32 %v3898_v12, 0.0  ;;  %v3911_v38 = vmax.f32 %v3895_v47, 0.0  ;;  %v3940_v32 = vld [vmem:[%s13406_s26 + $0x8] sm:$0xff]  ;;  %v8981_v12 = vld [vmem:[%s13406_s26 + $0x10] sm:$0xff] }
 0x8c3   :  { %v3912_v27 = vmax.f32 %v3896_v62, 0.0  ;;  %v3867_v43 = vmul.f32 %v11968_v24, %v3840_v21  ;;  %v3893_v52 = vadd.f32 %v11965_v7, %v3866_v48  ;;  %v3865_v25 = vmul.f32 %v11968_v24, %v3838_v58  ;;  %v8986_v13 = vld [vmem:[%s13406_s26 + $0x28] sm:$0xff]  ;;  %v8993_v62 = vld [vmem:[%s13406_s26 + $0x40] sm:$0xff]  ;;  %v8998_v21 = vld [vmem:[%s13406_s26 + $0x58] sm:$0xff] }
 0x8c4   :  { %v12023_v9 = vmin.f32 %v3918_v23, 6.0  ;;  %v12030_v18 = vmin.f32 %v3916_v29, 6.0  ;;  %v3836_v61 = vmul.f32 %v10088_v17, %v3816_v46  ;;  %v3862_v39 = vmul.f32 %v11960_v5, %v3835_v22  ;;  %v8982_v22 = vld [vmem:[%s13406_s26 + $0x18] sm:$0xff]  ;;  %v9001_v23 = vld [vmem:[%s13406_s26 + $0x60] sm:$0xff]  ;;  %v9010_v58 = vld [vmem:[%s13406_s26 + $0x88] sm:$0xff] }
 0x8c5   :  { %v3834_v28 = vmul.f32 %v10088_v17, %v3814_v40  ;;  %v12035_v35 = vmin.f32 %v3915_v54, 6.0  ;;  %v3894_v15 = vadd.f32 %v11971_v33, %v3867_v43  ;;  %v3892_v56 = vadd.f32 %v11971_v33, %v3865_v25  ;;  %v8994_v40 = vld [vmem:[%s13406_s26 + $0x48] sm:$0xff]  ;;  %v8990_v29 = vld [vmem:[%s13406_s26 + $0x38] sm:$0xff]  ;;  %v8997_v54 = vld [vmem:[%s13406_s26 + $0x50] sm:$0xff] }
 0x8c6   :  { %3963 = vmatprep.subr.mxu1 %v12023_v9  ;;  %4163 = vmatprep.subr.mxu0 %v12023_v9  ;;  %v3891_v1 = vadd.f32 %v11965_v7, %v3864_v10  ;;  %v12042_v2 = vmin.f32 %v3914_v16, 6.0  ;;  %v12044_v0 = vmin.f32 %v3913_v57, 6.0  ;;  %v3863_v63 = vmul.f32 %v11968_v24, %v3836_v61  ;;  %v9002_v57 = vld [vmem:[%s13406_s26 + $0x68] sm:$0xff]  ;;  %v9009_v48 = vld [vmem:[%s13406_s26 + $0x80] sm:$0xff]  ;;  %v9005_v10 = vld [vmem:[%s13406_s26 + $0x70] sm:$0xff] }
 0x8c7   :  { %3964 = vmatpush1.msra.mxu1 %v12021_v41  ;;  %4164 = vmatpush1.msra.mxu0 %v12021_v41  ;;  %v3861_v17 = vmul.f32 %v11968_v24, %v3834_v28  ;;  %v12050_v53 = vmin.f32 %v3912_v27, 6.0  ;;  %v3910_v34 = vmax.f32 %v3894_v15, 0.0  ;;  %v3909_v36 = vmax.f32 %v3893_v52, 0.0  ;;  %v4964_v16 = vld [vmem:[%s13407_s28 + $0x70] sm:$0xff]  ;;  %v4962_v27 = vld [vmem:[%s13407_s28 + $0x60] sm:$0xff]  ;;  %v4961_v43 = vld [vmem:[%s13407_s28 + $0x58] sm:$0xff] }
 0x8c8   :  { %3965 = vmatprep.subr.mxu1 %v12030_v18  ;;  %4165 = vmatprep.subr.mxu0 %v12030_v18  ;;  %v3889_v45 = vadd.f32 %v11965_v7, %v3862_v39  ;;  %v3908_v37 = vmax.f32 %v3892_v56, 0.0  ;;  %v3890_v19 = vadd.f32 %v11971_v33, %v3863_v63  ;;  %v3860_v24 = vmul.f32 %v11960_v5, %v3833_v11  ;;  %v8989_v11 = vld [vmem:[%s13406_s26 + $0x30] sm:$0xff]  ;;  %v4959_v25 = vld [vmem:[%s13407_s28 + $0x48] sm:$0xff]  ;;  %v4957_v61 = vld [vmem:[%s13407_s28 + $0x38] sm:$0xff] }
 0x8c9   :  { %3966 = vmatpush1.msra.mxu1 %v12035_v35  ;;  %4166 = vmatpush1.msra.mxu0 %v12035_v35  ;;  %v3888_v3 = vadd.f32 %v11971_v33, %v3861_v17  ;;  %v12060_v59 = vmin.f32 %v3911_v38, 6.0  ;;  %v3907_v26 = vmax.f32 %v3891_v1, 0.0  ;;  %v12064_v20 = vmin.f32 %v3910_v34, 6.0  ;;  %v4963_v38 = vld [vmem:[%s13407_s28 + $0x68] sm:$0xff]  ;;  %v4960_v52 = vld [vmem:[%s13407_s28 + $0x50] sm:$0xff]  ;;  %v4953_v15 = vld [vmem:[%s13407_s28 + $0x18] sm:$0xff] }
 0x8ca   :  { %3967 = vmatprep.subr.mxu1 %v12042_v2  ;;  %4167 = vmatprep.subr.mxu0 %v12042_v2  ;;  %v3906_v42 = vmax.f32 %v3890_v19, 0.0  ;;  %v3887_v46 = vadd.f32 %v11965_v7, %v3860_v24  ;;  %v12069_v5 = vmin.f32 %v3909_v36, 6.0  ;;  %v3905_v33 = vmax.f32 %v3889_v45, 0.0  ;;  %v4956_v39 = vld [vmem:[%s13407_s28 + $0x30] sm:$0xff]  ;;  %v4955_v28 = vld [vmem:[%s13407_s28 + $0x28] sm:$0xff]  ;;  %v4969_v34 = vld [vmem:[%s13407_s28 + $0x98] sm:$0xff] }
 0x8cb   :  { %3968 = vmatpush1.msra.mxu1 %v12044_v0  ;;  %4168 = vmatpush1.msra.mxu0 %v12044_v0  ;;  %v12073_v31 = vmin.f32 %v3908_v37, 6.0  ;;  %v3904_v51 = vmax.f32 %v3888_v3, 0.0  ;;  %v12077_v14 = vmin.f32 %v3907_v26, 6.0  ;;  %v4952_v56 = vld [vmem:[%s13407_s28 + $0x10] sm:$0xff]  ;;  %v4951_v1 = vld [vmem:[%s13407_s28 + $0x8] sm:$0xff]  ;;  %v4966_v37 = vld [vmem:[%s13407_s28 + $0x80] sm:$0xff] }
 0x8cc   :  { %3969 = vmatprep.subr.mxu1 %v12050_v53  ;;  %4169 = vmatprep.subr.mxu0 %v12050_v53  ;;  %v3903_v7 = vmax.f32 %v3887_v46, 0.0  ;;  %v12081_v30 = vmin.f32 %v3906_v42, 6.0  ;;  %v12085_v47 = vmin.f32 %v3905_v33, 6.0  ;;  %v4972_v63 = vld [vmem:[%s13407_s28 + $0xb0] sm:$0xff]  ;;  %v4971_v17 = vld [vmem:[%s13407_s28 + $0xa8] sm:$0xff] }
 0x8cd   :  { %3970 = vmatpush1.msra.mxu1 %v12060_v59  ;;  %4170 = vmatpush1.msra.mxu0 %v12060_v59  ;;  %v12089_v8 = vmin.f32 %v3904_v51, 6.0  ;;  %v4968_v36 = vld [vmem:[%s13407_s28 + $0x90] sm:$0xff]  ;;  %v4967_v45 = vld [vmem:[%s13407_s28 + $0x88] sm:$0xff] }
 0x8ce   :  { %3971 = vmatprep.subr.mxu1 %v12064_v20  ;;  %4171 = vmatprep.subr.mxu0 %v12064_v20  ;;  %v12093_v4 = vmin.f32 %v3903_v7, 6.0 }
 0x8cf   :  { %3972 = vmatpush1.msra.mxu1 %v12069_v5  ;;  %4172 = vmatpush1.msra.mxu0 %v12069_v5 }
 0x8d0   :  { %3973 = vmatprep.subr.mxu1 %v12073_v31  ;;  %4173 = vmatprep.subr.mxu0 %v12073_v31 }
 0x8d1   :  { %3974 = vmatpush1.msra.mxu1 %v12077_v14  ;;  %4174 = vmatpush1.msra.mxu0 %v12077_v14 }
 0x8d2   :  { %3975 = vmatprep.subr.mxu1 %v12081_v30  ;;  %4175 = vmatprep.subr.mxu0 %v12081_v30 }
 0x8d3   :  { %3976 = vmatpush1.msra.mxu1 %v12085_v47  ;;  %4176 = vmatpush1.msra.mxu0 %v12085_v47 }
 0x8d4   :  { %3977 = vmatprep.subr.mxu1 %v12089_v8  ;;  %4177 = vmatprep.subr.mxu0 %v12089_v8 }
 0x8d5   :  { %3978 = vmatpush1.msra.mxu1 %v12093_v4  ;;  %4178 = vmatpush1.msra.mxu0 %v12093_v4 }
 0x8d6   :  { %4061 = vmatprep.subr.mxu1 %v12023_v9  ;;  %4367 = vmatprep.subr.mxu0 %v12023_v9 }
 0x8d7   :  { %8979 = vmatmul.mubr.msk.f32.vlgmr.msra.gmra.mxu1 %vm3731_vm4, %v3939_v60  ;;  %8987 = vmatmul.mubr.msk.f32.vlgmr.msra.gmra.mxu0 %vm3731_vm4, %v8985_v44  ;;  %v12317_v44 = vsub.s32 2, %v11951_v50 }
 0x8d8   :  { %4062 = vmatpush1.msra.mxu1 %v12021_v41  ;;  %4368 = vmatpush1.msra.mxu0 %v12021_v41 }
 0x8d9   :  { %4063 = vmatprep.subr.mxu1 %v12030_v18  ;;  %4369 = vmatprep.subr.mxu0 %v12030_v18  ;;  %13408 = vst [vmem:[#allocation61_spill] sm:$0xff] %v12317_v44 }
 0x8da   :  { %4064 = vmatpush1.msra.mxu1 %v12035_v35  ;;  %4370 = vmatpush1.msra.mxu0 %v12035_v35 }
 0x8db   :  { %4065 = vmatprep.subr.mxu1 %v12042_v2  ;;  %4371 = vmatprep.subr.mxu0 %v12042_v2 }
 0x8dc   :  { %4066 = vmatpush1.msra.mxu1 %v12044_v0  ;;  %4372 = vmatpush1.msra.mxu0 %v12044_v0 }
 0x8dd   :  { %4067 = vmatprep.subr.mxu1 %v12050_v53  ;;  %4373 = vmatprep.subr.mxu0 %v12050_v53 }
 0x8de   :  { %4068 = vmatpush1.msra.mxu1 %v12060_v59  ;;  %4374 = vmatpush1.msra.mxu0 %v12060_v59 }
 0x8df   :  { %4069 = vmatprep.subr.mxu1 %v12064_v20  ;;  %4375 = vmatprep.subr.mxu0 %v12064_v20 }
 0x8e0   :  { %4070 = vmatpush1.msra.mxu1 %v12069_v5  ;;  %4376 = vmatpush1.msra.mxu0 %v12069_v5 }
 0x8e1   :  { %4071 = vmatprep.subr.mxu1 %v12073_v31  ;;  %4377 = vmatprep.subr.mxu0 %v12073_v31 }
 0x8e2   :  { %4072 = vmatpush1.msra.mxu1 %v12077_v14  ;;  %4378 = vmatpush1.msra.mxu0 %v12077_v14 }
 0x8e3   :  { %4017 = vmatprep.mubr.f32.mxu1 %v13392_v55  ;;  %4073 = vmatprep.subr.mxu1 %v12081_v30 }
 0x8e4   :  { %4217 = vmatprep.mubr.f32.mxu0 %v13392_v55  ;;  %4379 = vmatprep.subr.mxu0 %v12081_v30 }
 0x8e5   :  { %8980 = vmatmul.mubr.msk.f32.gmra.mxu1 %vm3731_vm4, %v3940_v32  ;;  %8988 = vmatmul.mubr.msk.f32.gmra.mxu0 %vm3731_vm4, %v8986_v13  ;;  %v12319_v32 = vld [vmem:[#allocation10 + $0x8] sm:$0xff] }
 0x8e6   :  { %4074 = vmatpush1.msra.mxu1 %v12085_v47  ;;  %4380 = vmatpush1.msra.mxu0 %v12085_v47 }
 0x8e7   :  { %4075 = vmatprep.subr.mxu1 %v12089_v8  ;;  %4381 = vmatprep.subr.mxu0 %v12089_v8 }
 0x8e8   :  { %4076 = vmatpush1.msra.mxu1 %v12093_v4  ;;  %4382 = vmatpush1.msra.mxu0 %v12093_v4 }
 0x8e9   :  { %4109 = vmatprep.mubr.f32.mxu1 %v13392_v55  ;;  %4265 = vmatprep.subr.mxu1 %v12023_v9 }
 0x8ea   :  { %4415 = vmatprep.mubr.f32.mxu0 %v13392_v55  ;;  %4571 = vmatprep.subr.mxu0 %v12023_v9 }
 0x8eb   :  { %8983 = vmatmul.mubr.msk.f32.vlgmr.msra.gmra.mxu1 %vm3731_vm4, %v8981_v12  ;;  %8995 = vmatmul.mubr.msk.f32.vlgmr.msra.gmra.mxu0 %vm3731_vm4, %v8993_v62  ;;  %v4129_v62 = vrot.slane %v12319_v32, %v11957_v49 }
 0x8ec   :  { %4266 = vmatpush1.msra.mxu1 %v12021_v41  ;;  %4572 = vmatpush1.msra.mxu0 %v12021_v41 }
 0x8ed   :  { %4267 = vmatprep.subr.mxu1 %v12030_v18  ;;  %4573 = vmatprep.subr.mxu0 %v12030_v18 }
 0x8ee   :  { %4268 = vmatpush1.msra.mxu1 %v12035_v35  ;;  %4574 = vmatpush1.msra.mxu0 %v12035_v35 }
 0x8ef   :  { %4269 = vmatprep.subr.mxu1 %v12042_v2  ;;  %4575 = vmatprep.subr.mxu0 %v12042_v2 }
 0x8f0   :  { %4270 = vmatpush1.msra.mxu1 %v12044_v0  ;;  %4576 = vmatpush1.msra.mxu0 %v12044_v0 }
 0x8f1   :  { %4271 = vmatprep.subr.mxu1 %v12050_v53  ;;  %4577 = vmatprep.subr.mxu0 %v12050_v53 }
 0x8f2   :  { %4272 = vmatpush1.msra.mxu1 %v12060_v59  ;;  %4578 = vmatpush1.msra.mxu0 %v12060_v59 }
 0x8f3   :  { %4273 = vmatprep.subr.mxu1 %v12064_v20  ;;  %4579 = vmatprep.subr.mxu0 %v12064_v20 }
 0x8f4   :  { %4274 = vmatpush1.msra.mxu1 %v12069_v5  ;;  %4580 = vmatpush1.msra.mxu0 %v12069_v5 }
 0x8f5   :  { %4275 = vmatprep.subr.mxu1 %v12073_v31  ;;  %4581 = vmatprep.subr.mxu0 %v12073_v31 }
 0x8f6   :  { %4276 = vmatpush1.msra.mxu1 %v12077_v14  ;;  %4582 = vmatpush1.msra.mxu0 %v12077_v14 }
 0x8f7   :  { %4115 = vmatprep.mubr.f32.mxu1 %v13392_v55  ;;  %4277 = vmatprep.subr.mxu1 %v12081_v30 }
 0x8f8   :  { %4421 = vmatprep.mubr.f32.mxu0 %v13392_v55  ;;  %4583 = vmatprep.subr.mxu0 %v12081_v30 }
 0x8f9   :  { %8984 = vmatmul.mubr.msk.f32.gmra.mxu1 %vm3731_vm4, %v8982_v22  ;;  %8996 = vmatmul.mubr.msk.f32.gmra.mxu0 %vm3731_vm4, %v8994_v40  ;;  %v12326_v22 = vsub.s32 3, %v11951_v50 }
 0x8fa   :  { %4278 = vmatpush1.msra.mxu1 %v12085_v47  ;;  %4584 = vmatpush1.msra.mxu0 %v12085_v47 }
 0x8fb   :  { %4279 = vmatprep.subr.mxu1 %v12089_v8  ;;  %4585 = vmatprep.subr.mxu0 %v12089_v8  ;;  %13409 = vst [vmem:[#allocation55_spill] sm:$0xff] %v12326_v22 }
 0x8fc   :  { %4280 = vmatpush1.msra.mxu1 %v12093_v4  ;;  %4586 = vmatpush1.msra.mxu0 %v12093_v4 }
 0x8fd   :  { %4313 = vmatprep.mubr.f32.mxu1 %v13392_v55  ;;  %4469 = vmatprep.subr.mxu1 %v12023_v9 }
 0x8fe   :  { %4619 = vmatprep.mubr.f32.mxu0 %v13392_v55  ;;  %4775 = vmatprep.subr.mxu0 %v12023_v9 }
 0x8ff   :  { %8991 = vmatmul.mubr.msk.f32.vlgmr.msra.gmra.mxu1 %vm3731_vm4, %v8989_v11  ;;  %9003 = vmatmul.mubr.msk.f32.vlgmr.msra.gmra.mxu0 %vm3731_vm4, %v9001_v23  ;;  %v4031_v23 = vrot.slane %v12319_v32, %v11954_v6 }
 0x900   :  { %4470 = vmatpush1.msra.mxu1 %v12021_v41  ;;  %4776 = vmatpush1.msra.mxu0 %v12021_v41 }
 0x901   :  { %4471 = vmatprep.subr.mxu1 %v12030_v18  ;;  %4777 = vmatprep.subr.mxu0 %v12030_v18 }
 0x902   :  { %4472 = vmatpush1.msra.mxu1 %v12035_v35  ;;  %4778 = vmatpush1.msra.mxu0 %v12035_v35 }
 0x903   :  { %4473 = vmatprep.subr.mxu1 %v12042_v2  ;;  %4779 = vmatprep.subr.mxu0 %v12042_v2 }
 0x904   :  { %4474 = vmatpush1.msra.mxu1 %v12044_v0  ;;  %4780 = vmatpush1.msra.mxu0 %v12044_v0 }
 0x905   :  { %4475 = vmatprep.subr.mxu1 %v12050_v53  ;;  %4781 = vmatprep.subr.mxu0 %v12050_v53 }
 0x906   :  { %4476 = vmatpush1.msra.mxu1 %v12060_v59  ;;  %4782 = vmatpush1.msra.mxu0 %v12060_v59 }
 0x907   :  { %4477 = vmatprep.subr.mxu1 %v12064_v20  ;;  %4783 = vmatprep.subr.mxu0 %v12064_v20 }
 0x908   :  { %4478 = vmatpush1.msra.mxu1 %v12069_v5  ;;  %4784 = vmatpush1.msra.mxu0 %v12069_v5 }
 0x909   :  { %4479 = vmatprep.subr.mxu1 %v12073_v31  ;;  %4785 = vmatprep.subr.mxu0 %v12073_v31 }
 0x90a   :  { %4480 = vmatpush1.msra.mxu1 %v12077_v14  ;;  %4786 = vmatpush1.msra.mxu0 %v12077_v14 }
 0x90b   :  { %4319 = vmatprep.mubr.f32.mxu1 %v13392_v55  ;;  %4481 = vmatprep.subr.mxu1 %v12081_v30 }
 0x90c   :  { %4787 = vmatprep.subr.mxu0 %v12081_v30  ;;  %8992 = vmatmul.mubr.msk.f32.gmra.mxu1 %vm3731_vm4, %v8990_v29 }
 0x90d   :  { %4482 = vmatpush1.msra.mxu1 %v12085_v47  ;;  %4788 = vmatpush1.msra.mxu0 %v12085_v47 }
 0x90e   :  { %4483 = vmatprep.subr.mxu1 %v12089_v8  ;;  %4789 = vmatprep.subr.mxu0 %v12089_v8 }
 0x90f   :  { %4484 = vmatpush1.msra.mxu1 %v12093_v4  ;;  %4790 = vmatpush1.msra.mxu0 %v12093_v4 }
 0x910   :  { %4517 = vmatprep.mubr.f32.mxu1 %v13392_v55  ;;  %4673 = vmatprep.subr.mxu1 %v12023_v9  ;;  %v4965_v9 = vld [vmem:[%s13407_s28 + $0x78] sm:$0xff] }
 0x911   :  { %8999 = vmatmul.mubr.msk.f32.vlgmr.msra.gmra.mxu1 %vm3731_vm4, %v8997_v54  ;;  %4625 = vmatprep.mubr.f32.mxu0 %v13392_v55 }
 0x912   :  { %4674 = vmatpush1.msra.mxu1 %v12021_v41  ;;  %4523 = vmatprep.mubr.f32.mxu1 %v13392_v55  ;;  %v9006_v41 = vld [vmem:[%s13406_s26 + $0x78] sm:$0xff] }
 0x913   :  { %4675 = vmatprep.subr.mxu1 %v12030_v18  ;;  %9004 = vmatmul.mubr.msk.f32.gmra.mxu0 %vm3731_vm4, %v9002_v57  ;;  %v4958_v18 = vld [vmem:[%s13407_s28 + $0x40] sm:$0xff]  ;;  %v12335_v57 = vsub.s32 4, %v11951_v50 }
 0x914   :  { %4676 = vmatpush1.msra.mxu1 %v12035_v35  ;;  %4823 = vmatprep.mubr.f32.mxu0 %v13392_v55  ;;  %v4954_v35 = vld [vmem:[%s13407_s28 + $0x20] sm:$0xff] }
 0x915   :  { %4677 = vmatprep.subr.mxu1 %v12042_v2  ;;  %9000 = vmatmul.mubr.msk.f32.gmra.mxu1 %vm3731_vm4, %v8998_v21  ;;  %v4950_v2 = vld [vmem:[%s13407_s28] sm:$0xff]  ;;  %13410 = vst [vmem:[#allocation56_spill] sm:$0xff] %v12335_v57 }
 0x916   :  { %4678 = vmatpush1.msra.mxu1 %v12044_v0  ;;  %4721 = vmatprep.mubr.f32.mxu1 %v13392_v55  ;;  %v4973_v0 = vld [vmem:[%s13407_s28 + $0xb8] sm:$0xff] }
 0x917   :  { %4679 = vmatprep.subr.mxu1 %v12050_v53  ;;  %9011 = vmatmul.mubr.msk.f32.vlgmr.msra.gmra.mxu0 %vm3731_vm4, %v9009_v48  ;;  %v4970_v53 = vld [vmem:[%s13407_s28 + $0xa0] sm:$0xff] }
 0x918   :  { %4680 = vmatpush1.msra.mxu1 %v12060_v59  ;;  %4829 = vmatprep.mubr.f32.mxu0 %v13392_v55 }
 0x919   :  { %4681 = vmatprep.subr.mxu1 %v12064_v20 }
 0x91a   :  { %4682 = vmatpush1.msra.mxu1 %v12069_v5 }
 0x91b   :  { %4683 = vmatprep.subr.mxu1 %v12073_v31  ;;  %9012 = vmatmul.mubr.msk.f32.gmra.mxu0 %vm3731_vm4, %v9010_v58 }
 0x91c   :  { %4684 = vmatpush1.msra.mxu1 %v12077_v14  ;;  %5198 = vmatprep.mubr.f32.mxu0 %v13392_v55 }
 0x91d   :  { %4685 = vmatprep.subr.mxu1 %v12081_v30 }
 0x91e   :  { %4686 = vmatpush1.msra.mxu1 %v12085_v47 }
 0x91f   :  { %4687 = vmatprep.subr.mxu1 %v12089_v8 }
 0x920   :  { %4688 = vmatpush1.msra.mxu1 %v12093_v4  ;;  %v12312_v4 = vld [vmem:[#allocation10] sm:$0xff] }
 0x921   :  { %9007 = vmatmul.mubr.msk.f32.vlgmr.msra.gmra.mxu1 %vm3731_vm4, %v9005_v10  ;;  %4980 = vmatprep.subr.mxu1 %v13392_v55  ;;  %v4125_v60 = vrot.slane %v12312_v4, %v11957_v49  ;;  %v4027_v12 = vrot.slane %v12312_v4, %v11954_v6  ;;  %v4227_v54 = vrot.slane %v12312_v4, %v12317_v44 }
 0x922   :  { %4727 = vmatprep.mubr.f32.mxu1 %v13392_v55  ;;  %4981 = vmatpush1.msra.mxu1 %v4965_v9  ;;  %v4231_v10 = vrot.slane %v12319_v32, %v12317_v44 }
 0x923   :  { %4982 = vmatprep.subr.mxu1 %v13392_v55 }
 0x924   :  { %4983 = vmatpush1.msra.mxu1 %v4964_v16  ;;  %v4333_v16 = vrot.slane %v12319_v32, %v12326_v22 }
 0x925   :  { %9008 = vmatmul.mubr.msk.f32.gmra.mxu1 %vm3731_vm4, %v9006_v41  ;;  %4984 = vmatprep.subr.mxu1 %v13392_v55  ;;  %v4329_v41 = vrot.slane %v12312_v4, %v12326_v22 }
 0x926   :  { %4985 = vmatpush1.msra.mxu1 %v4963_v38 }
 0x927   :  { %4986 = vmatprep.subr.mxu1 %v13392_v55 }
 0x928   :  { %4987 = vmatpush1.msra.mxu1 %v4962_v27 }
 0x929   :  { %4988 = vmatprep.subr.mxu1 %v13392_v55 }
 0x92a   :  { %4989 = vmatpush1.msra.mxu1 %v4961_v43 }
 0x92b   :  { %4990 = vmatprep.subr.mxu1 %v13392_v55 }
 0x92c   :  { %4991 = vmatpush1.msra.mxu1 %v4960_v52 }
 0x92d   :  { %4992 = vmatprep.subr.mxu1 %v13392_v55 }
 0x92e   :  { %4993 = vmatpush1.msra.mxu1 %v4959_v25 }
 0x92f   :  { %4994 = vmatprep.subr.mxu1 %v13392_v55 }
 0x930   :  { %4995 = vmatpush1.msra.mxu1 %v4958_v18  ;;  %v12344_v18 = vsub.s32 5, %v11951_v50 }
 0x931   :  { %4996 = vmatprep.subr.mxu1 %v13392_v55 }
 0x932   :  { %4997 = vmatpush1.msra.mxu1 %v4957_v61 }
 0x933   :  { %4998 = vmatprep.subr.mxu1 %v13392_v55 }
 0x934   :  { %4999 = vmatpush1.msra.mxu1 %v4956_v39  ;;  %v4431_v39 = vrot.slane %v12312_v4, %v12335_v57 }
 0x935   :  { %5000 = vmatprep.subr.mxu1 %v13392_v55 }
 0x936   :  { %5001 = vmatpush1.msra.mxu1 %v4955_v28 }
 0x937   :  { %5002 = vmatprep.subr.mxu1 %v13392_v55 }
 0x938   :  { %5003 = vmatpush1.msra.mxu1 %v4954_v35 }
 0x939   :  { %5004 = vmatprep.subr.mxu1 %v13392_v55 }
 0x93a   :  { %5005 = vmatpush1.msra.mxu1 %v4953_v15 }
 0x93b   :  { %5006 = vmatprep.subr.mxu1 %v13392_v55 }
 0x93c   :  { %5007 = vmatpush1.msra.mxu1 %v4952_v56 }
 0x93d   :  { %5008 = vmatprep.subr.mxu1 %v13392_v55 }
 0x93e   :  { %5009 = vmatpush1.msra.mxu1 %v4951_v1 }
 0x93f   :  { %5010 = vmatprep.subr.mxu1 %v13392_v55 }
 0x940   :  { %5011 = vmatpush1.msra.mxu1 %v4950_v2 }
 0x941   :  { %5028 = vmatprep.subr.mxu1 %v13392_v55 }
 0x942   :  { %5029 = vmatpush2.msra.mxu1 %v4973_v0  ;;  %v4435_v0 = vrot.slane %v12319_v32, %v12335_v57 }
 0x943   :  { %5030 = vmatprep.subr.mxu1 %v13392_v55 }
 0x944   :  { %5031 = vmatpush2.msra.mxu1 %v4972_v63 }
 0x945   :  { %5032 = vmatprep.subr.mxu1 %v13392_v55 }
 0x946   :  { %5033 = vmatpush2.msra.mxu1 %v4971_v17  ;;  %v12351_v17 = vsub.s32 6, %v11951_v50 }
 0x947   :  { %5034 = vmatprep.subr.mxu1 %v13392_v55 }
 0x948   :  { %5035 = vmatpush2.msra.mxu1 %v4970_v53  ;;  %13411 = vst [vmem:[#allocation58_spill] sm:$0xff] %v12351_v17 }
 0x949   :  { %5036 = vmatprep.subr.mxu1 %v13392_v55 }
 0x94a   :  { %5037 = vmatpush2.msra.mxu1 %v4969_v34 }
 0x94b   :  { %5038 = vmatprep.subr.mxu1 %v13392_v55 }
 0x94c   :  { %5039 = vmatpush2.msra.mxu1 %v4968_v36 }
 0x94d   :  { %5040 = vmatprep.subr.mxu1 %v13392_v55 }
 0x94e   :  { %5041 = vmatpush2.msra.mxu1 %v4967_v45 }
 0x94f   :  { %5042 = vmatprep.subr.mxu1 %v13392_v55 }
 0x950   :  { %5043 = vmatpush2.msra.mxu1 %v4966_v37  ;;  %v4533_v37 = vrot.slane %v12312_v4, %v12344_v18 }
 0x997   :  { %v4013_v19 = vpop.f32.mrf.mxu1  ;;  %v4213_v59 = vpop.f32.mrf.mxu0 }
 0x998   :  { %v4032_v48 = vmul.f32 %v4027_v12, %v4013_v19  ;;  %v4232_v25 = vmul.f32 %v4227_v54, %v4213_v59 }
 0x999   :  { %v4015_v3 = vpop.f32.mrf.mxu1  ;;  %v4215_v20 = vpop.f32.mrf.mxu0 }
 0x99a   :  { %v4033_v43 = vmul.f32 %v4031_v23, %v4015_v3  ;;  %v4233_v35 = vmul.f32 %v4231_v10, %v4215_v20 }
 0x9a5   :  { %v4019_v24 = vpop.f32.mrf.mxu1  ;;  %v4219_v46 = vpop.f32.mrf.mxu0 }
 0x9a6   :  { %v4034_v61 = vmul.f32 %v4027_v12, %v4019_v24  ;;  %v4234_v2 = vmul.f32 %v4227_v54, %v4219_v46  ;;  %v4537_v24 = vrot.slane %v12319_v32, %v12344_v18 }
 0x9a7   :  { %v4021_v26 = vpop.f32.mrf.mxu1  ;;  %v4221_v33 = vpop.f32.mrf.mxu0 }
 0x9a8   :  { %v4035_v34 = vmul.f32 %v4031_v23, %v4021_v26  ;;  %v4235_v19 = vmul.f32 %v4231_v10, %v4221_v33 }
 0x9ab   :  { %v4111_v42 = vpop.f32.mrf.mxu1  ;;  %v4417_v51 = vpop.f32.mrf.mxu0 }
 0x9ac   :  { %v4130_v29 = vmul.f32 %v4125_v60, %v4111_v42  ;;  %v4436_v46 = vmul.f32 %v4431_v39, %v4417_v51  ;;  %v4639_v51 = vrot.slane %v12319_v32, %v12351_v17 }
 0x9ad   :  { %v4113_v5 = vpop.f32.mrf.mxu1  ;;  %v4419_v7 = vpop.f32.mrf.mxu0 }
 0x9ae   :  { %v4131_v58 = vmul.f32 %v4129_v62, %v4113_v5  ;;  %v4134_v52 = vadd.f32 %v4130_v29, %v4032_v48 }
 0x9b0   :  { %v4135_v28 = vadd.f32 %v4131_v58, %v4033_v43  ;;  %v4236_v36 = vadd.f32 %v4232_v25, %v4134_v52 }
 0x9b2   :  { %v4237_v59 = vadd.f32 %v4233_v35, %v4135_v28 }
 0x9b9   :  { %v4117_v31 = vpop.f32.mrf.mxu1  ;;  %v4423_v47 = vpop.f32.mrf.mxu0 }
 0x9ba   :  { %v4132_v9 = vmul.f32 %v4125_v60, %v4117_v31  ;;  %v4635_v31 = vrot.slane %v12312_v4, %v12351_v17  ;;  %v4437_v60 = vmul.f32 %v4435_v0, %v4419_v7 }
 0x9bb   :  { %v4119_v14 = vpop.f32.mrf.mxu1  ;;  %v4425_v13 = vpop.f32.mrf.mxu0 }
 0x9bc   :  { %v4133_v15 = vmul.f32 %v4129_v62, %v4119_v14  ;;  %v4136_v1 = vadd.f32 %v4132_v9, %v4034_v61  ;;  %v4439_v58 = vmul.f32 %v4435_v0, %v4425_v13 }
 0x9be   :  { %v4137_v20 = vadd.f32 %v4133_v15, %v4035_v34  ;;  %v4238_v5 = vadd.f32 %v4234_v2, %v4136_v1 }
 0x9bf   :  { %v4315_v30 = vpop.f32.mrf.mxu1  ;;  %v12328_v11 = vpop.f32.mrf.mxu0 }
 0x9c0   :  { %v4334_v56 = vmul.f32 %v4329_v41, %v4315_v30  ;;  %v12360_v30 = vsub.s32 7, %v11951_v50  ;;  %v4239_v29 = vadd.f32 %v4235_v19, %v4137_v20 }
 0x9c1   :  { %v4317_v8 = vpop.f32.mrf.mxu1  ;;  %v4623_v27 = vpop.f32.mrf.mxu0 }
 0x9c2   :  { %v4335_v45 = vmul.f32 %v4333_v16, %v4317_v8  ;;  %v4338_v42 = vadd.f32 %v4334_v56, %v4236_v36  ;;  %13412 = vst [vmem:[#allocation60_spill] sm:$0xff] %v12360_v30  ;;  %v4737_v50 = vrot.slane %v12312_v4, %v12360_v30  ;;  %v4641_v52 = vmul.f32 %v4639_v51, %v4623_v27 }
 0x9c3   :  { %v4741_v61 = vrot.slane %v12319_v32, %v12360_v30 }
 0x9c4   :  { %v4339_v8 = vadd.f32 %v4335_v45, %v4237_v59  ;;  %v4440_v54 = vadd.f32 %v4436_v46, %v4338_v42 }
 0x9c6   :  { %v4441_v9 = vadd.f32 %v4437_v60, %v4339_v8 }
 0x9cc   :  { %v4321_v40 = vpop.f32.mrf.mxu1 }
 0x9cd   :  { %v4336_v3 = vmul.f32 %v4329_v41, %v4321_v40  ;;  %v4438_v40 = vmul.f32 %v4431_v39, %v4423_v47  ;;  %v9013_v39 = vld [vmem:[#allocation10 + $0x10] ss:$0 sm:$0xff] }
 0x9ce   :  { %v4323_v21 = vpop.f32.mrf.mxu1 }
 0x9cf   :  { %v4337_v33 = vmul.f32 %v4333_v16, %v4323_v21  ;;  %v4340_v62 = vadd.f32 %v4336_v3, %v4238_v5  ;;  %v4640_v21 = vmul.f32 %v4635_v31, %v12328_v11 }
 0x9d1   :  { %v4519_v38 = vpop.f32.mrf.mxu1  ;;  %v4341_v43 = vadd.f32 %v4337_v33, %v4239_v29  ;;  %v4442_v16 = vadd.f32 %v4438_v40, %v4340_v62 }
 0x9d2   :  { %v4538_v12 = vmul.f32 %v4533_v37, %v4519_v38 }
 0x9d3   :  { %v4521_v63 = vpop.f32.mrf.mxu1  ;;  %v4627_v53 = vpop.f32.mrf.mxu0  ;;  %v4443_v15 = vadd.f32 %v4439_v58, %v4341_v43 }
 0x9d4   :  { %v4539_v48 = vmul.f32 %v4537_v24, %v4521_v63  ;;  %v4542_v7 = vadd.f32 %v4538_v12, %v4440_v54  ;;  %v4642_v28 = vmul.f32 %v4635_v31, %v4627_v53  ;;  %v9014_v63 = vld [vmem:[#allocation10 + $0x18] ss:$0 sm:$0xff] }
 0x9d5   :  { %v4525_v14 = vpop.f32.mrf.mxu1  ;;  %v4629_v26 = vpop.f32.mrf.mxu0 }
 0x9d6   :  { %v4540_v10 = vmul.f32 %v4533_v37, %v4525_v14  ;;  %v4543_v38 = vadd.f32 %v4539_v48, %v4441_v9  ;;  %v4644_v56 = vadd.f32 %v4640_v21, %v4542_v7  ;;  %v4643_v1 = vmul.f32 %v4639_v51, %v4629_v26 }
 0x9d7   :  { %v4825_v23 = vpop.f32.mrf.mxu0  ;;  %v4527_v41 = vpop.f32.mrf.mxu1 }
 0x9d8   :  { %v4541_v25 = vmul.f32 %v4537_v24, %v4527_v41  ;;  %v4544_v13 = vadd.f32 %v4540_v10, %v4442_v16  ;;  %v4844_v0 = vmul.f32 %v9013_v39, %v4825_v23  ;;  %v4645_v34 = vadd.f32 %v4641_v52, %v4543_v38 }
 0x9d9   :  { %v4827_v47 = vpop.f32.mrf.mxu0 }
 0x9da   :  { %v4545_v36 = vadd.f32 %v4541_v25, %v4443_v15  ;;  %v4646_v37 = vadd.f32 %v4642_v28, %v4544_v13  ;;  %v4845_v24 = vmul.f32 %v9014_v63, %v4827_v47 }
 0x9db   :  { %v4831_v11 = vpop.f32.mrf.mxu0 }
 0x9dc   :  { %v4846_v59 = vmul.f32 %v9013_v39, %v4831_v11  ;;  %v4647_v46 = vadd.f32 %v4643_v1, %v4545_v36 }
 0x9dd   :  { %v4833_v42 = vpop.f32.mrf.mxu0 }
 0x9de   :  { %v4847_v60 = vmul.f32 %v9014_v63, %v4833_v42 }
 0x9e1   :  { %v4723_v35 = vpop.f32.mrf.mxu1 }
 0x9e2   :  { %v4742_v4 = vmul.f32 %v4737_v50, %v4723_v35 }
 0x9e3   :  { %v4725_v2 = vpop.f32.mrf.mxu1 }
 0x9e4   :  { %v4746_v45 = vadd.f32 %v4742_v4, %v4644_v56  ;;  %v4743_v27 = vmul.f32 %v4741_v61, %v4725_v2 }
 0x9e5   :  { %v4729_v19 = vpop.f32.mrf.mxu1 }
 0x9e6   :  { %v4747_v3 = vadd.f32 %v4743_v27, %v4645_v34  ;;  %v4744_v32 = vmul.f32 %v4737_v50, %v4729_v19  ;;  %v12369_v53 = vadd.f32 %v4844_v0, %v4746_v45 }
 0x9e7   :  { %v4731_v20 = vpop.f32.mrf.mxu1 }
 0x9e8   :  { %v4748_v5 = vadd.f32 %v4744_v32, %v4646_v37  ;;  %v12371_v31 = vadd.f32 %v4845_v24, %v4747_v3  ;;  %v4745_v14 = vmul.f32 %v4741_v61, %v4731_v20  ;;  %v4870_v33 = vmul.f32 %v12369_v53, %v12369_v53 }
 0x9ea   :  { %v4749_v26 = vadd.f32 %v4745_v14, %v4647_v46  ;;  %v4850_v8 = vadd.f32 %v4846_v59, %v4748_v5  ;;  %v4871_v12 = vmul.f32 %v12371_v31, %v12371_v31  ;;  %v4861_v29 = vsel %vm3731_vm4, %v12371_v31, 0.0  ;;  %v4852_v14 = vld [vmem:[#allocation11] sm:$0x3] }
 0x9ec   :  { %v4854_v62 = vadd.f32 %v4850_v8, %v12369_v53  ;;  %v4872_v40 = vmul.f32 %v4850_v8, %v4850_v8  ;;  %v4851_v23 = vadd.f32 %v4847_v60, %v4749_v26  ;;  %v4881_v41 = vsel %vm3731_vm4, %v4871_v12, 0.0  ;;  %v4853_v26 = vld [vmem:[#allocation13] sm:$0x3] }
 0x9ed   :  { %v4916_v12 = vrot.slane %v4852_v14, %v11954_v6 }
 0x9ee   :  { %v4855_v54 = vrot.slane %v4854_v62, 4  ;;  %v4874_v48 = vadd.f32 %v4872_v40, %v4870_v33  ;;  %v4862_v51 = vsel %vm3731_vm4, %v4851_v23, 0.0  ;;  %v4873_v58 = vmul.f32 %v4851_v23, %v4851_v23 }
 0x9ef   :  { %v4863_v10 = vadd.f32 %v4862_v51, %v4861_v29 }
 0x9f0   :  { %v4856_v50 = vadd.f32 %v4855_v54, %v4854_v62  ;;  %v4875_v9 = vrot.slane %v4874_v48, 4  ;;  %v4882_v43 = vsel %vm3731_vm4, %v4873_v58, 0.0  ;;  %v4931_v54 = vrot.slane %v4853_v26, %v11954_v6 }
 0x9f1   :  { %v4864_v7 = vrot.slane %v4863_v10, 4  ;;  %v4883_v21 = vadd.f32 %v4882_v43, %v4881_v41  ;;  %v4920_v58 = vrot.slane %v4852_v14, %v11957_v49  ;;  %v4935_v43 = vrot.slane %v4853_v26, %v11957_v49 }
 0x9f2   :  { %v4857_v16 = vrot.slane %v4856_v50, 2  ;;  %v4876_v47 = vadd.f32 %v4875_v9, %v4874_v48 }
 0x9f3   :  { %v4865_v38 = vadd.f32 %v4864_v7, %v4863_v10  ;;  %v4884_v52 = vrot.slane %v4883_v21, 4 }
 0x9f4   :  { %v4858_v25 = vadd.f32 %v4857_v16, %v4856_v50  ;;  %v4877_v61 = vrot.slane %v4876_v47, 2 }
 0x9f5   :  { %v4866_v39 = vrot.slane %v4865_v38, 2  ;;  %v4885_v13 = vadd.f32 %v4884_v52, %v4883_v21 }
 0x9f6   :  { %v4859_v28 = vrot.slane %v4858_v25, 1  ;;  %v4878_v35 = vadd.f32 %v4877_v61, %v4876_v47 }
 0x9f7   :  { %v4867_v15 = vadd.f32 %v4866_v39, %v4865_v38  ;;  %v4886_v56 = vrot.slane %v4885_v13, 2 }
 0x9f8   :  { %v4860_v4 = vadd.f32 %v4859_v28, %v4858_v25  ;;  %v4879_v1 = vrot.slane %v4878_v35, 1 }
 0x9f9   :  { %v4868_v2 = vrot.slane %v4867_v15, 1  ;;  %v4887_v0 = vadd.f32 %v4886_v56, %v4885_v13  ;;  %v5123_v56 = vld [vmem:[%s13413_s8 + $0x98] sm:$0xff] }
 0x9fa   :  { %v4880_v63 = vadd.f32 %v4879_v1, %v4878_v35  ;;  %v4890_v11 = vmul.f32 0.0625, %v4860_v4  ;;  %v5126_v35 = vld [vmem:[%s13413_s8 + $0xb0] sm:$0xff]  ;;  %v5120_v1 = vld [vmem:[%s13413_s8 + $0x80] sm:$0xff] }
 0x9fb   :  { %v4869_v34 = vadd.f32 %v4868_v2, %v4867_v15  ;;  %v4888_v36 = vrot.slane %v4887_v0, 1  ;;  %5150 = vmatprep.subr.mxu0 %v5126_v35  ;;  %v5125_v15 = vld [vmem:[%s13413_s8 + $0xa8] sm:$0xff]  ;;  %v5122_v4 = vld [vmem:[%s13413_s8 + $0x90] sm:$0xff]  ;;  %v5119_v2 = vld [vmem:[%s13413_s8 + $0x78] sm:$0xff] }
 0x9fc   :  { %v4892_v45 = vmul.f32 0.0625, %v4880_v63  ;;  %v4894_v27 = vmul.f32 %v4890_v11, %v4890_v11  ;;  %v4900_v60 = vsub.f32 %v12369_v53, %v4890_v11  ;;  %v4902_v33 = vsub.f32 %v4850_v8, %v4890_v11  ;;  %5151 = vmatpush1.msra.mxu0 %v5125_v15  ;;  %v5116_v63 = vld [vmem:[%s13413_s8 + $0x60] sm:$0xff]  ;;  %v5114_v11 = vld [vmem:[%s13413_s8 + $0x50] sm:$0xff] }
 0x9fd   :  { %v4889_v37 = vadd.f32 %v4888_v36, %v4887_v0  ;;  %v4891_v19 = vmul.f32 0.0625, %v4869_v34  ;;  %5152 = vmatprep.subr.mxu0 %v5123_v56  ;;  %v5117_v0 = vld [vmem:[%s13413_s8 + $0x68] sm:$0xff]  ;;  %v5111_v36 = vld [vmem:[%s13413_s8 + $0x38] sm:$0xff]  ;;  %v5124_v56 = vld [vmem:[%s13413_s8 + $0xa0] sm:$0xff] }
 0x9fe   :  { %v4896_v3 = vsub.f32 %v4892_v45, %v4894_v27  ;;  %5153 = vmatpush1.msra.mxu0 %v5122_v4  ;;  %v5113_v34 = vld [vmem:[%s13413_s8 + $0x48] sm:$0xff]  ;;  %v5110_v45 = vld [vmem:[%s13413_s8 + $0x30] sm:$0xff]  ;;  %v5108_v27 = vld [vmem:[%s13413_s8 + $0x20] sm:$0xff] }
 0x9ff   :  { %v4893_v32 = vmul.f32 0.0625, %v4889_v37  ;;  %v4895_v24 = vmul.f32 %v4891_v19, %v4891_v19  ;;  %v4903_v48 = vsub.f32 %v4851_v23, %v4891_v19  ;;  %v4901_v51 = vsub.f32 %v12371_v31, %v4891_v19  ;;  %5154 = vmatprep.subr.mxu0 %v5120_v1  ;;  %v5107_v37 = vld [vmem:[%s13413_s8 + $0x18] sm:$0xff]  ;;  %v5105_v19 = vld [vmem:[%s13413_s8 + $0x8] sm:$0xff] }
 0xa00   :  { %v4898_v59 = vmax.f32 %v4896_v3, 0.0  ;;  %5155 = vmatpush1.msra.mxu0 %v5119_v2  ;;  %v5104_v3 = vld [vmem:[%s13413_s8] sm:$0xff]  ;;  %v5121_v4 = vld [vmem:[%s13413_s8 + $0x88] sm:$0xff]  ;;  %v5118_v2 = vld [vmem:[%s13413_s8 + $0x70] sm:$0xff] }
 0xa01   :  { %v4897_v20 = vsub.f32 %v4893_v32, %v4895_v24  ;;  %5156 = vmatprep.subr.mxu0 %v5117_v0  ;;  %v5127_v32 = vld [vmem:[%s13413_s8 + $0xb8] sm:$0xff] }
 0xa02   :  { %v4904_v42 = vadd.f32 1e-05, %v4898_v59  ;;  %5157 = vmatpush1.msra.mxu0 %v5116_v63  ;;  %v5115_v0 = vld [vmem:[%s13413_s8 + $0x58] sm:$0xff]  ;;  %v5112_v63 = vld [vmem:[%s13413_s8 + $0x40] sm:$0xff] }
 0xa03   :  { %v4899_v46 = vmax.f32 %v4897_v20, 0.0  ;;  %5158 = vmatprep.subr.mxu0 %v5114_v11  ;;  %v5109_v11 = vld [vmem:[%s13413_s8 + $0x28] sm:$0xff] }
 0xa04   :  { %10089 = vrsqrt.f32 %v4904_v42  ;;  %5159 = vmatpush1.msra.mxu0 %v5113_v34  ;;  %v5106_v34 = vld [vmem:[%s13413_s8 + $0x10] sm:$0xff] }
 0xa05   :  { %v4905_v5 = vadd.f32 1e-05, %v4899_v46  ;;  %5160 = vmatprep.subr.mxu0 %v5111_v36  ;;  %v12425_v36 = vld [vmem:[#allocation17] sm:$0xff] }
 0xa06   :  { %5161 = vmatpush1.msra.mxu0 %v5110_v45 }
 0xa07   :  { %10091 = vrsqrt.f32 %v4905_v5  ;;  %5162 = vmatprep.subr.mxu0 %v5108_v27 }
 0xa08   :  { %5163 = vmatpush1.msra.mxu0 %v5107_v37 }
 0xa09   :  { %5164 = vmatprep.subr.mxu0 %v5105_v19 }
 0xa0a   :  { %5165 = vmatpush1.msra.mxu0 %v5104_v3 }
 0xa0b   :  { %9897 = vmatprep.subr.mxu0 %v5127_v32 }
 0xa11   :  { %v10090_v62 = vpop.eup %10089 }
 0xa12   :  { %v4908_v40 = vmul.f32 %v10090_v62, %v4900_v60  ;;  %v4910_v29 = vmul.f32 %v10090_v62, %v4902_v33 }
 0xa14   :  { %v10092_v10 = vpop.eup %10091  ;;  %v4923_v41 = vmul.f32 %v4916_v12, %v4908_v40  ;;  %v4925_v8 = vmul.f32 %v4916_v12, %v4910_v29 }
 0xa15   :  { %v4911_v50 = vmul.f32 %v10092_v10, %v4903_v48  ;;  %v4909_v9 = vmul.f32 %v10092_v10, %v4901_v51 }
 0xa16   :  { %v4938_v53 = vadd.f32 %v4931_v54, %v4923_v41  ;;  %v4940_v23 = vadd.f32 %v4931_v54, %v4925_v8 }
 0xa17   :  { %v4924_v7 = vmul.f32 %v4920_v58, %v4909_v9  ;;  %v4926_v21 = vmul.f32 %v4920_v58, %v4911_v50 }
 0xa18   :  { %v4942_v38 = vmax.f32 %v4938_v53, 0.0  ;;  %v4944_v39 = vmax.f32 %v4940_v23, 0.0 }
 0xa19   :  { %v4939_v16 = vadd.f32 %v4935_v43, %v4924_v7  ;;  %v4941_v47 = vadd.f32 %v4935_v43, %v4926_v21 }
 0xa1a   :  { %v4946_v61 = vmin.f32 %v4942_v38, 6.0  ;;  %v4948_v28 = vmin.f32 %v4944_v39, 6.0 }
 0xa1b   :  { %v4943_v52 = vmax.f32 %v4939_v16, 0.0  ;;  %v4945_v31 = vmax.f32 %v4941_v47, 0.0 }
 0xa1d   :  { %v4947_v25 = vmin.f32 %v4943_v52, 6.0  ;;  %v4949_v13 = vmin.f32 %v4945_v31, 6.0 }
 0xa1f   :  { %9015 = vmatprep.mubr.msk.f32.mxu1 %vm3731_vm4, %v4947_v25  ;;  %v9017_v25 = vld [vmem:[#allocation14] ss:$0 sm:$0xff] }
 0xa20   :  { %5045 = vmatmul.mubr.f32.vlgmr.msra.gmra.mxu1 %v4946_v61 }
 0xa21   :  { %9016 = vmatprep.mubr.msk.f32.mxu1 %vm3731_vm4, %v4949_v13  ;;  %v9018_v13 = vld [vmem:[#allocation16] ss:$0 sm:$0xff] }
 0xa24   :  { %5050 = vmatmul.mubr.f32.gmra.mxu1 %v4948_v28 }
 0xa25   :  { %5503 = vmatprep.mubr.f32.mxu1 %v13392_v55 }
 0xae0   :  { %v5046_v24 = vpop.f32.mrf.mxu1 }
 0xae1   :  { %v5066_v20 = vmul.f32 %v5046_v24, %v5046_v24  ;;  %v5057_v46 = vsel %vm3731_vm4, %v5046_v24, 0.0 }
 0xae2   :  { %v5048_v59 = vpop.f32.mrf.mxu1 }
 0xae3   :  { %v5068_v33 = vsel %vm3731_vm4, %v5066_v20, 0.0 }
 0xae4   :  { %v5051_v42 = vpop.f32.mrf.mxu1 }
 0xae5   :  { %v5058_v5 = vsel %vm3731_vm4, %v5051_v42, 0.0  ;;  %v5067_v14 = vmul.f32 %v5051_v42, %v5051_v42 }
 0xae6   :  { %v5059_v26 = vadd.f32 %v5058_v5, %v5057_v46  ;;  %v5053_v60 = vpop.f32.mrf.mxu1 }
 0xae7   :  { %v5069_v12 = vsel %vm3731_vm4, %v5067_v14, 0.0 }
 0xae8   :  { %v5060_v62 = vrot.slane %v5059_v26, 4  ;;  %v5070_v40 = vadd.f32 %v5069_v12, %v5068_v33 }
 0xaea   :  { %v5061_v29 = vadd.f32 %v5060_v62, %v5059_v26  ;;  %v5071_v54 = vrot.slane %v5070_v40, 4 }
 0xaec   :  { %v5062_v48 = vrot.slane %v5061_v29, 2  ;;  %v5072_v51 = vadd.f32 %v5071_v54, %v5070_v40 }
 0xaee   :  { %v5063_v58 = vadd.f32 %v5062_v48, %v5061_v29  ;;  %v5073_v10 = vrot.slane %v5072_v51, 2 }
 0xaf0   :  { %v5064_v41 = vrot.slane %v5063_v58, 1  ;;  %v5074_v50 = vadd.f32 %v5073_v10, %v5072_v51 }
 0xaf2   :  { %v5065_v9 = vadd.f32 %v5064_v41, %v5063_v58  ;;  %v5075_v43 = vrot.slane %v5074_v50, 1 }
 0xaf4   :  { %v5076_v53 = vadd.f32 %v5075_v43, %v5074_v50  ;;  %v5077_v8 = vmul.f32 0.0625, %v5065_v9 }
 0xaf6   :  { %v5078_v7 = vmul.f32 0.0625, %v5076_v53  ;;  %v5079_v21 = vmul.f32 %v5077_v8, %v5077_v8  ;;  %v5082_v23 = vsub.f32 %v5046_v24, %v5077_v8  ;;  %v5083_v52 = vsub.f32 %v5051_v42, %v5077_v8 }
 0xaf8   :  { %v5080_v16 = vsub.f32 %v5078_v7, %v5079_v21 }
 0xafa   :  { %v5081_v47 = vmax.f32 %v5080_v16, 0.0 }
 0xafc   :  { %v5084_v38 = vadd.f32 1e-05, %v5081_v47 }
 0xafe   :  { %10093 = vrsqrt.f32 %v5084_v38 }
 0xb0b   :  { %v10094_v31 = vpop.eup %10093 }
 0xb0c   :  { %v5086_v61 = vmul.f32 %v10094_v31, %v5082_v23  ;;  %v5087_v39 = vmul.f32 %v10094_v31, %v5083_v52 }
 0xb0e   :  { %v5094_v28 = vmul.f32 %v9017_v25, %v5086_v61  ;;  %v5095_v35 = vmul.f32 %v9017_v25, %v5087_v39 }
 0xb10   :  { %v5102_v15 = vadd.f32 %v9018_v13, %v5094_v28  ;;  %v5103_v1 = vadd.f32 %v9018_v13, %v5095_v35 }
 0xb12   :  { %9019 = vmatmul.mubr.msk.f32.vlgmr.msra.gmra.mxu0 %vm3731_vm4, %v5102_v15 }
 0xb13   :  { %9898 = vmatpush3.msra.mxu0 %v5127_v32  ;;  %5204 = vmatprep.mubr.f32.mxu0 %v13392_v55 }
 0xb14   :  { %9899 = vmatprep.subr.mxu0 %v5124_v56 }
 0xb15   :  { %9900 = vmatpush3.msra.mxu0 %v5124_v56 }
 0xb16   :  { %9901 = vmatprep.subr.mxu0 %v5121_v4  ;;  %9020 = vmatmul.mubr.msk.f32.gmra.mxu0 %vm3731_vm4, %v5103_v1 }
 0xb17   :  { %9902 = vmatpush3.msra.mxu0 %v5121_v4  ;;  %9913 = vmatprep.mubr.msk.f32.mxu0 %vm3731_vm4, %v5102_v15 }
 0xb18   :  { %9903 = vmatprep.subr.mxu0 %v5118_v2 }
 0xb19   :  { %9904 = vmatpush3.msra.mxu0 %v5118_v2 }
 0xb1a   :  { %9905 = vmatprep.subr.mxu0 %v5115_v0 }
 0xb1b   :  { %9906 = vmatpush3.msra.mxu0 %v5115_v0 }
 0xb1c   :  { %9907 = vmatprep.subr.mxu0 %v5112_v63 }
 0xb1d   :  { %9908 = vmatpush3.msra.mxu0 %v5112_v63 }
 0xb1e   :  { %9909 = vmatprep.subr.mxu0 %v5109_v11 }
 0xb1f   :  { %9910 = vmatpush3.msra.mxu0 %v5109_v11 }
 0xb20   :  { %9911 = vmatprep.subr.mxu0 %v5106_v34 }
 0xb21   :  { %9912 = vmatpush3.msra.mxu0 %v5106_v34 }
 0xb22   :  { %9914 = vmatmul.mubr.msk.f32.vlgmr.msra.gmra.mxu0 %vm3731_vm4, %v5103_v1 }
 0xb23   :  { %9920 = vmatprep.mubr.msk.f32.mxu0 %vm544_vm0, %v12425_v36 }
 0xbd2   :  { %v12429_v45 = vpop.f32.mrf.mxu0 }
 0xbd3   :  { %v5309_v19 = vmul.f32 %v12429_v45, %v12429_v45 }
 0xbd4   :  { %v12431_v27 = vpop.f32.mrf.mxu0 }
 0xbd5   :  { %v5310_v24 = vmul.f32 %v12431_v27, %v12431_v27 }
 0xbd6   :  { %v12433_v37 = vpop.f32.mrf.mxu0 }
 0xbd7   :  { %v5288_v3 = vadd.f32 %v12433_v37, %v12429_v45  ;;  %v5312_v32 = vmul.f32 %v12433_v37, %v12433_v37 }
 0xbd8   :  { %v12443_v59 = vpop.f32.mrf.mxu0 }
 0xbd9   :  { %v5289_v20 = vrot.slane %v5288_v3, 4  ;;  %v5315_v42 = vadd.f32 %v5312_v32, %v5309_v19  ;;  %v5295_v46 = vadd.f32 %v12443_v59, %v12431_v27  ;;  %v5313_v5 = vmul.f32 %v12443_v59, %v12443_v59 }
 0xbdb   :  { %v5290_v14 = vadd.f32 %v5289_v20, %v5288_v3  ;;  %v5316_v26 = vrot.slane %v5315_v42, 4  ;;  %v5296_v60 = vrot.slane %v5295_v46, 4  ;;  %v5322_v33 = vadd.f32 %v5313_v5, %v5310_v24 }
 0xbdd   :  { %v5291_v12 = vrot.slane %v5290_v14, 2  ;;  %v5317_v62 = vadd.f32 %v5316_v26, %v5315_v42  ;;  %v5297_v40 = vadd.f32 %v5296_v60, %v5295_v46  ;;  %v5323_v29 = vrot.slane %v5322_v33, 4 }
 0xbdf   :  { %v5292_v54 = vadd.f32 %v5291_v12, %v5290_v14  ;;  %v5318_v48 = vrot.slane %v5317_v62, 2  ;;  %v5298_v51 = vrot.slane %v5297_v40, 2  ;;  %v5324_v58 = vadd.f32 %v5323_v29, %v5322_v33  ;;  %v5286_v29 = vld [vmem:[%s13414_s3] sm:$0x7] }
 0xbe1   :  { %v5293_v10 = vrot.slane %v5292_v54, 1  ;;  %v5319_v41 = vadd.f32 %v5318_v48, %v5317_v62  ;;  %v5299_v50 = vadd.f32 %v5298_v51, %v5297_v40  ;;  %v5325_v9 = vrot.slane %v5324_v58, 2  ;;  %v5287_v48 = vld [vmem:[%s13415_s24] sm:$0x7] }
 0xbe2   :  { %v12449_v43 = vpop.f32.mrf.mxu0 }
 0xbe3   :  { %v5294_v53 = vadd.f32 %v5293_v10, %v5292_v54  ;;  %v5320_v8 = vrot.slane %v5319_v41, 1  ;;  %v5300_v7 = vrot.slane %v5299_v50, 1  ;;  %v5326_v21 = vadd.f32 %v5325_v9, %v5324_v58 }
 0xbe4   :  { %v12451_v16 = vpop.f32.mrf.mxu0  ;;  %v5314_v31 = vmul.f32 %v12449_v43, %v12449_v43  ;;  %v5373_v10 = vrot.slane %v5286_v29, %v11954_v6 }
 0xbe5   :  { %v5321_v47 = vadd.f32 %v5320_v8, %v5319_v41  ;;  %v5336_v38 = vmul.f32 0.0625, %v5294_v53  ;;  %v5301_v23 = vadd.f32 %v5300_v7, %v5299_v50  ;;  %v5327_v52 = vrot.slane %v5326_v21, 1 }
 0xbe6   :  { %v5302_v25 = vadd.f32 %v12449_v43, %v12451_v16  ;;  %v5311_v61 = vmul.f32 %v12451_v16, %v12451_v16  ;;  %v5395_v8 = vrot.slane %v5287_v48, %v11954_v6 }
 0xbe7   :  { %v5339_v39 = vmul.f32 0.0625, %v5321_v47  ;;  %v5342_v13 = vmul.f32 %v5336_v38, %v5336_v38  ;;  %v5328_v28 = vadd.f32 %v5327_v52, %v5326_v21  ;;  %v5337_v35 = vmul.f32 0.0625, %v5301_v23 }
 0xbe8   :  { %v5303_v15 = vrot.slane %v5302_v25, 4  ;;  %v5329_v56 = vadd.f32 %v5314_v31, %v5311_v61  ;;  %v5351_v51 = vsub.f32 %v12429_v45, %v5336_v38  ;;  %v5354_v58 = vsub.f32 %v12433_v37, %v5336_v38 }
 0xbe9   :  { %v5345_v4 = vsub.f32 %v5339_v39, %v5342_v13  ;;  %v5340_v1 = vmul.f32 0.0625, %v5328_v28  ;;  %v5343_v2 = vmul.f32 %v5337_v35, %v5337_v35  ;;  %v5352_v21 = vsub.f32 %v12431_v27, %v5337_v35 }
 0xbea   :  { %v5304_v63 = vadd.f32 %v5303_v15, %v5302_v25  ;;  %v5330_v11 = vrot.slane %v5329_v56, 4  ;;  %v5355_v47 = vsub.f32 %v12443_v59, %v5337_v35  ;;  %v5377_v23 = vrot.slane %v5286_v29, %v11957_v49 }
 0xbeb   :  { %v5348_v0 = vmax.f32 %v5345_v4, 0.0  ;;  %v5346_v34 = vsub.f32 %v5340_v1, %v5343_v2  ;;  %v5399_v25 = vrot.slane %v5287_v48, %v11957_v49 }
 0xbec   :  { %v5305_v3 = vrot.slane %v5304_v63, 2  ;;  %v5331_v32 = vadd.f32 %v5330_v11, %v5329_v56 }
 0xbed   :  { %v5357_v19 = vadd.f32 1e-05, %v5348_v0  ;;  %v5349_v24 = vmax.f32 %v5346_v34, 0.0 }
 0xbee   :  { %v5306_v20 = vadd.f32 %v5305_v3, %v5304_v63  ;;  %v5332_v42 = vrot.slane %v5331_v32, 2 }
 0xbef   :  { %10095 = vrsqrt.f32 %v5357_v19  ;;  %v5358_v46 = vadd.f32 1e-05, %v5349_v24  ;;  %v5381_v19 = vrot.slane %v5286_v29, %v12317_v44  ;;  %v5980_v29 = vld [vmem:[#allocation17 + $0x30] sm:$0xff] }
 0xbf0   :  { %v5307_v5 = vrot.slane %v5306_v20, 1  ;;  %v5333_v14 = vadd.f32 %v5332_v42, %v5331_v32  ;;  %v5432_v42 = vld [vmem:[#allocation17 + $0x8] sm:$0xff] }
 0xbf1   :  { %10097 = vrsqrt.f32 %v5358_v46 }
 0xbf2   :  { %v5308_v26 = vadd.f32 %v5307_v5, %v5306_v20  ;;  %v5334_v60 = vrot.slane %v5333_v14, 1  ;;  %v5403_v20 = vrot.slane %v5287_v48, %v12317_v44  ;;  %v6165_v48 = vld [vmem:[#allocation17 + $0x40] sm:$0xff] }
 0xbf4   :  { %v5335_v33 = vadd.f32 %v5334_v60, %v5333_v14  ;;  %v5338_v12 = vmul.f32 0.0625, %v5308_v26 }
 0xbf6   :  { %v5341_v62 = vmul.f32 0.0625, %v5335_v33  ;;  %v5344_v40 = vmul.f32 %v5338_v12, %v5338_v12  ;;  %v5353_v11 = vsub.f32 %v12451_v16, %v5338_v12  ;;  %v5356_v34 = vsub.f32 %v12449_v43, %v5338_v12  ;;  %v5611_v12 = vld [vmem:[#allocation17 + $0x18] sm:$0xff] }
 0xbf8   :  { %v5347_v54 = vsub.f32 %v5341_v62, %v5344_v40  ;;  %v5795_v62 = vld [vmem:[#allocation17 + $0x20] sm:$0xff]  ;;  %v5796_v40 = vld [vmem:[#allocation17 + $0x28] sm:$0xff] }
 0xbfa   :  { %v5350_v41 = vmax.f32 %v5347_v54, 0.0  ;;  %v5981_v54 = vld [vmem:[#allocation17 + $0x38] sm:$0xff] }
 0xbfc   :  { %v10096_v50 = vpop.eup %10095  ;;  %v5359_v7 = vadd.f32 1e-05, %v5350_v41  ;;  %v6535_v41 = vld [vmem:[#allocation17 + $0x60] sm:$0xff] }
 0xbfd   :  { %v5363_v9 = vmul.f32 %v10096_v50, %v5351_v51  ;;  %v5366_v53 = vmul.f32 %v10096_v50, %v5354_v58  ;;  %v6166_v51 = vld [vmem:[#allocation17 + $0x48] sm:$0xff]  ;;  %v6350_v58 = vld [vmem:[#allocation17 + $0x50] sm:$0xff] }
 0xbfe   :  { %v10098_v52 = vpop.eup %10097  ;;  %10099 = vrsqrt.f32 %v5359_v7  ;;  %v6536_v50 = vld [vmem:[#allocation17 + $0x68] sm:$0xff] }
 0xbff   :  { %v5385_v31 = vmul.f32 %v5373_v10, %v5363_v9  ;;  %v5388_v45 = vmul.f32 %v5373_v10, %v5366_v53  ;;  %v5364_v37 = vmul.f32 %v10098_v52, %v5352_v21  ;;  %v5367_v38 = vmul.f32 %v10098_v52, %v5355_v47  ;;  %v6351_v10 = vld [vmem:[#allocation17 + $0x58] sm:$0xff]  ;;  %v6720_v9 = vld [vmem:[#allocation17 + $0x70] sm:$0xff]  ;;  %v6906_v7 = vld [vmem:[#allocation17 + $0x88] sm:$0xff] }
 0xc00   :  { %v6721_v53 = vld [vmem:[#allocation17 + $0x78] sm:$0xff]  ;;  %v7275_v21 = vld [vmem:[%s13416_s0 + $0x178] sm:$0xff]  ;;  %v7274_v47 = vld [vmem:[%s13416_s0 + $0x170] sm:$0xff] }
 0xc01   :  { %v5410_v61 = vadd.f32 %v5395_v8, %v5388_v45  ;;  %v5386_v39 = vmul.f32 %v5377_v23, %v5364_v37  ;;  %v5389_v13 = vmul.f32 %v5377_v23, %v5367_v38  ;;  %v5407_v28 = vadd.f32 %v5395_v8, %v5385_v31  ;;  %v6905_v8 = vld [vmem:[#allocation17 + $0x80] sm:$0xff]  ;;  %v7273_v23 = vld [vmem:[%s13416_s0 + $0x168] sm:$0xff]  ;;  %v7259_v52 = vld [vmem:[%s13416_s0 + $0xf8] sm:$0xff] }
 0xc02   :  { %v7272_v31 = vld [vmem:[%s13416_s0 + $0x160] sm:$0xff]  ;;  %v7243_v45 = vld [vmem:[%s13416_s0 + $0x78] sm:$0xff]  ;;  %v7258_v37 = vld [vmem:[%s13416_s0 + $0xf0] sm:$0xff] }
 0xc03   :  { %v5408_v15 = vadd.f32 %v5399_v25, %v5386_v39  ;;  %v5411_v56 = vadd.f32 %v5399_v25, %v5389_v13  ;;  %v5416_v4 = vmax.f32 %v5410_v61, 0.0  ;;  %v5413_v59 = vmax.f32 %v5407_v28, 0.0  ;;  %v7271_v38 = vld [vmem:[%s13416_s0 + $0x158] sm:$0xff]  ;;  %v7242_v25 = vld [vmem:[%s13416_s0 + $0x70] sm:$0xff]  ;;  %v7257_v61 = vld [vmem:[%s13416_s0 + $0xe8] sm:$0xff] }
 0xc04   :  { %v7270_v39 = vld [vmem:[%s13416_s0 + $0x150] sm:$0xff]  ;;  %v7241_v13 = vld [vmem:[%s13416_s0 + $0x68] sm:$0xff]  ;;  %v7256_v28 = vld [vmem:[%s13416_s0 + $0xe0] sm:$0xff] }
 0xc05   :  { %v5414_v27 = vmax.f32 %v5408_v15, 0.0  ;;  %v5417_v1 = vmax.f32 %v5411_v56, 0.0  ;;  %v12471_v2 = vmin.f32 %v5416_v4, 6.0  ;;  %v12476_v63 = vmin.f32 %v5413_v59, 6.0  ;;  %v7269_v15 = vld [vmem:[%s13416_s0 + $0x148] sm:$0xff]  ;;  %v7240_v56 = vld [vmem:[%s13416_s0 + $0x60] sm:$0xff] }
 0xc06   :  { %v7255_v4 = vld [vmem:[%s13416_s0 + $0xd8] sm:$0xff]  ;;  %v7254_v59 = vld [vmem:[%s13416_s0 + $0xd0] sm:$0xff] }
 0xc07   :  { %v12469_v35 = vmin.f32 %v5417_v1, 6.0  ;;  %v12473_v0 = vmin.f32 %v5414_v27, 6.0  ;;  %v7268_v27 = vld [vmem:[%s13416_s0 + $0x140] sm:$0xff]  ;;  %v7239_v1 = vld [vmem:[%s13416_s0 + $0x58] sm:$0xff] }
 0xc09   :  { %5467 = vmatprep.subr.mxu1 %v12469_v35 }
 0xc0a   :  { %5468 = vmatpush1.msra.mxu1 %v12471_v2 }
 0xc0b   :  { %v10100_v3 = vpop.eup %10099  ;;  %5469 = vmatprep.subr.mxu1 %v12473_v0 }
 0xc0c   :  { %v5365_v32 = vmul.f32 %v10100_v3, %v5353_v11  ;;  %v5368_v24 = vmul.f32 %v10100_v3, %v5356_v34  ;;  %5470 = vmatpush1.msra.mxu1 %v12476_v63  ;;  %v7237_v11 = vld [vmem:[%s13416_s0 + $0x48] sm:$0xff]  ;;  %v7252_v34 = vld [vmem:[%s13416_s0 + $0xc0] sm:$0xff] }
 0xc0d   :  { %9023 = vmatmul.mubr.msk.f32.vlgmr.msra.gmra.mxu1 %vm544_vm0, %v12425_v36  ;;  %5646 = vmatprep.subr.mxu1 %v12469_v35  ;;  %v5610_v36 = vld [vmem:[#allocation17 + $0x10] sm:$0xff] }
 0xc0e   :  { %v5387_v16 = vmul.f32 %v5381_v19, %v5365_v32  ;;  %v5390_v43 = vmul.f32 %v5381_v19, %v5368_v24  ;;  %5647 = vmatpush1.msra.mxu1 %v12471_v2  ;;  %5509 = vmatprep.mubr.f32.mxu1 %v13392_v55  ;;  %v7265_v19 = vld [vmem:[%s13416_s0 + $0x128] sm:$0xff]  ;;  %v7236_v3 = vld [vmem:[%s13416_s0 + $0x40] sm:$0xff]  ;;  %v7251_v32 = vld [vmem:[%s13416_s0 + $0xb8] sm:$0xff] }
 0xc0f   :  { %5648 = vmatprep.subr.mxu1 %v12473_v0  ;;  %v7264_v24 = vld [vmem:[%s13416_s0 + $0x120] sm:$0xff] }
 0xc10   :  { %v5409_v46 = vadd.f32 %v5403_v20, %v5387_v16  ;;  %v5412_v5 = vadd.f32 %v5403_v20, %v5390_v43  ;;  %5649 = vmatpush1.msra.mxu1 %v12476_v63  ;;  %v7235_v20 = vld [vmem:[%s13416_s0 + $0x38] sm:$0xff]  ;;  %v7250_v16 = vld [vmem:[%s13416_s0 + $0xb0] sm:$0xff] }
 0xc11   :  { %9024 = vmatmul.mubr.msk.f32.gmra.mxu1 %vm544_vm0, %v5432_v42  ;;  %v7263_v43 = vld [vmem:[%s13416_s0 + $0x118] sm:$0xff] }
 0xc12   :  { %v5415_v14 = vmax.f32 %v5409_v46, 0.0  ;;  %v5418_v26 = vmax.f32 %v5412_v5, 0.0  ;;  %5682 = vmatprep.mubr.f32.mxu1 %v13392_v55  ;;  %v7249_v46 = vld [vmem:[%s13416_s0 + $0xa8] sm:$0xff] }
 0xc13   :  { %v7233_v5 = vld [vmem:[%s13416_s0 + $0x28] sm:$0xff] }
 0xc14   :  { %v12494_v60 = vmin.f32 %v5418_v26, 6.0  ;;  %v12497_v33 = vmin.f32 %v5415_v14, 6.0  ;;  %v7248_v14 = vld [vmem:[%s13416_s0 + $0xa0] sm:$0xff] }
 0xc15   :  { %9027 = vmatmul.mubr.msk.f32.vlgmr.msra.gmra.mxu1 %vm544_vm0, %v5610_v36  ;;  %v7232_v26 = vld [vmem:[%s13416_s0 + $0x20] sm:$0xff] }
 0xc16   :  { %9916 = vmatprep.subr.mxu0 %v12494_v60  ;;  %9930 = vmatprep.subr.mxu1 %v12494_v60 }
 0xc17   :  { %9917 = vmatpush3.msra.mxu0 %v12494_v60  ;;  %9931 = vmatpush3.msra.mxu1 %v12494_v60 }
 0xc18   :  { %9918 = vmatprep.subr.mxu0 %v12497_v33  ;;  %9932 = vmatprep.subr.mxu1 %v12497_v33 }
 0xc19   :  { %9919 = vmatpush3.msra.mxu0 %v12497_v33  ;;  %9933 = vmatpush3.msra.mxu1 %v12497_v33 }
 0xc1a   :  { %9921 = vmatmul.mubr.msk.f32.vlgmr.msra.gmra.mxu0 %vm544_vm0, %v5432_v42  ;;  %5688 = vmatprep.mubr.f32.mxu1 %v13392_v55  ;;  %v7234_v42 = vld [vmem:[%s13416_s0 + $0x30] sm:$0xff] }
 0xc1b   :  { %9923 = vmatprep.subr.mxu0 %v12494_v60  ;;  %6016 = vmatprep.subr.mxu1 %v12469_v35 }
 0xc1c   :  { %9028 = vmatmul.mubr.msk.f32.gmra.mxu1 %vm544_vm0, %v5611_v12  ;;  %9924 = vmatpush3.msra.mxu0 %v12494_v60 }
 0xc1d   :  { %9925 = vmatprep.subr.mxu0 %v12497_v33  ;;  %9927 = vmatprep.mubr.msk.f32.mxu0 %vm544_vm0, %v5610_v36  ;;  %v7247_v36 = vld [vmem:[%s13416_s0 + $0x98] sm:$0xff] }
 0xc1e   :  { %9926 = vmatpush3.msra.mxu0 %v12497_v33  ;;  %9934 = vmatprep.mubr.msk.f32.mxu1 %vm544_vm0, %v5795_v62 }
 0xc1f   :  { %9928 = vmatmul.mubr.msk.f32.vlgmr.msra.gmra.mxu0 %vm544_vm0, %v5611_v12  ;;  %5831 = vmatprep.subr.mxu0 %v12469_v35  ;;  %v7261_v12 = vld [vmem:[%s13416_s0 + $0x108] sm:$0xff] }
 0xc20   :  { %5832 = vmatpush1.msra.mxu0 %v12471_v2  ;;  %9935 = vmatmul.mubr.msk.f32.vlgmr.msra.gmra.mxu1 %vm544_vm0, %v5796_v40 }
 0xc21   :  { %6017 = vmatpush1.msra.mxu1 %v12471_v2  ;;  %5833 = vmatprep.subr.mxu0 %v12473_v0 }
 0xc22   :  { %6018 = vmatprep.subr.mxu1 %v12473_v0  ;;  %5834 = vmatpush1.msra.mxu0 %v12476_v63 }
 0xc23   :  { %5867 = vmatprep.mubr.f32.mxu0 %v13392_v55  ;;  %6019 = vmatpush1.msra.mxu1 %v12476_v63 }
 0xc24   :  { %9031 = vmatmul.mubr.msk.f32.vlgmr.msra.gmra.mxu0 %vm544_vm0, %v5795_v62  ;;  %6052 = vmatprep.mubr.f32.mxu1 %v13392_v55  ;;  %v7246_v62 = vld [vmem:[%s13416_s0 + $0x90] sm:$0xff] }
 0xc25   :  { %9937 = vmatprep.subr.mxu0 %v12494_v60  ;;  %9944 = vmatprep.subr.mxu1 %v12494_v60 }
 0xc26   :  { %9035 = vmatmul.mubr.msk.f32.vlgmr.msra.gmra.mxu1 %vm544_vm0, %v5980_v29  ;;  %9938 = vmatpush3.msra.mxu0 %v12494_v60 }
 0xc27   :  { %9945 = vmatpush3.msra.mxu1 %v12494_v60  ;;  %9939 = vmatprep.subr.mxu0 %v12497_v33 }
 0xc28   :  { %9946 = vmatprep.subr.mxu1 %v12497_v33  ;;  %5873 = vmatprep.mubr.f32.mxu0 %v13392_v55 }
 0xc29   :  { %9940 = vmatpush3.msra.mxu0 %v12497_v33  ;;  %9947 = vmatpush3.msra.mxu1 %v12497_v33 }
 0xc2a   :  { %9032 = vmatmul.mubr.msk.f32.gmra.mxu0 %vm544_vm0, %v5796_v40  ;;  %6058 = vmatprep.mubr.f32.mxu1 %v13392_v55  ;;  %v7230_v40 = vld [vmem:[%s13416_s0 + $0x10] sm:$0xff] }
 0xc2b   :  { %6201 = vmatprep.subr.mxu0 %v12469_v35  ;;  %6386 = vmatprep.subr.mxu1 %v12469_v35 }
 0xc2c   :  { %9036 = vmatmul.mubr.msk.f32.gmra.mxu1 %vm544_vm0, %v5981_v54  ;;  %9941 = vmatprep.mubr.msk.f32.mxu0 %vm544_vm0, %v5980_v29  ;;  %v7260_v29 = vld [vmem:[%s13416_s0 + $0x100] sm:$0xff] }
 0xc2d   :  { %9948 = vmatprep.mubr.msk.f32.mxu1 %vm544_vm0, %v6165_v48 }
 0xc2e   :  { %9942 = vmatmul.mubr.msk.f32.vlgmr.msra.gmra.mxu0 %vm544_vm0, %v5981_v54  ;;  %v7245_v54 = vld [vmem:[%s13416_s0 + $0x88] sm:$0xff] }
 0xc2f   :  { %6202 = vmatpush1.msra.mxu0 %v12471_v2  ;;  %6237 = vmatprep.mubr.f32.mxu0 %v13392_v55 }
 0xc30   :  { %6203 = vmatprep.subr.mxu0 %v12473_v0  ;;  %9949 = vmatmul.mubr.msk.f32.vlgmr.msra.gmra.mxu1 %vm544_vm0, %v6166_v51 }
 0xc31   :  { %6387 = vmatpush1.msra.mxu1 %v12471_v2  ;;  %6204 = vmatpush1.msra.mxu0 %v12476_v63 }
 0xc32   :  { %6388 = vmatprep.subr.mxu1 %v12473_v0  ;;  %9951 = vmatprep.subr.mxu0 %v12494_v60 }
 0xc33   :  { %6389 = vmatpush1.msra.mxu1 %v12476_v63  ;;  %9039 = vmatmul.mubr.msk.f32.vlgmr.msra.gmra.mxu0 %vm544_vm0, %v6165_v48  ;;  %v7229_v48 = vld [vmem:[%s13416_s0 + $0x8] sm:$0xff] }
 0xc34   :  { %6422 = vmatprep.mubr.f32.mxu1 %v13392_v55  ;;  %9952 = vmatpush3.msra.mxu0 %v12494_v60 }
 0xc35   :  { %9958 = vmatprep.subr.mxu1 %v12494_v60  ;;  %9043 = vmatmul.mubr.msk.f32.vlgmr.msra.gmra.mxu1 %vm544_vm0, %v6350_v58 }
 0xc36   :  { %9953 = vmatprep.subr.mxu0 %v12497_v33  ;;  %9959 = vmatpush3.msra.mxu1 %v12494_v60 }
 0xc37   :  { %9954 = vmatpush3.msra.mxu0 %v12497_v33  ;;  %9960 = vmatprep.subr.mxu1 %v12497_v33 }
 0xc38   :  { %6243 = vmatprep.mubr.f32.mxu0 %v13392_v55  ;;  %6571 = vmatprep.subr.mxu0 %v12469_v35 }
 0xc39   :  { %9961 = vmatpush3.msra.mxu1 %v12497_v33  ;;  %9040 = vmatmul.mubr.msk.f32.gmra.mxu0 %vm544_vm0, %v6166_v51  ;;  %v7244_v51 = vld [vmem:[%s13416_s0 + $0x80] sm:$0xff] }
 0xc3a   :  { %6428 = vmatprep.mubr.f32.mxu1 %v13392_v55  ;;  %6756 = vmatprep.subr.mxu1 %v12469_v35 }
 0xc3b   :  { %9044 = vmatmul.mubr.msk.f32.gmra.mxu1 %vm544_vm0, %v6351_v10  ;;  %9955 = vmatprep.mubr.msk.f32.mxu0 %vm544_vm0, %v6350_v58  ;;  %v7228_v58 = vld [vmem:[%s13416_s0] sm:$0xff] }
 0xc3c   :  { %9962 = vmatprep.mubr.msk.f32.mxu1 %vm544_vm0, %v6535_v41 }
 0xc3d   :  { %9956 = vmatmul.mubr.msk.f32.vlgmr.msra.gmra.mxu0 %vm544_vm0, %v6351_v10 }
 0xc3e   :  { %6572 = vmatpush1.msra.mxu0 %v12471_v2  ;;  %6607 = vmatprep.mubr.f32.mxu0 %v13392_v55 }
 0xc3f   :  { %6573 = vmatprep.subr.mxu0 %v12473_v0  ;;  %9963 = vmatmul.mubr.msk.f32.vlgmr.msra.gmra.mxu1 %vm544_vm0, %v6536_v50 }
 0xc40   :  { %6757 = vmatpush1.msra.mxu1 %v12471_v2  ;;  %6574 = vmatpush1.msra.mxu0 %v12476_v63 }
 0xc41   :  { %6758 = vmatprep.subr.mxu1 %v12473_v0  ;;  %9965 = vmatprep.subr.mxu0 %v12494_v60 }
 0xc42   :  { %6759 = vmatpush1.msra.mxu1 %v12476_v63  ;;  %9047 = vmatmul.mubr.msk.f32.vlgmr.msra.gmra.mxu0 %vm544_vm0, %v6535_v41 }
 0xc43   :  { %6792 = vmatprep.mubr.f32.mxu1 %v13392_v55  ;;  %9966 = vmatpush3.msra.mxu0 %v12494_v60 }
 0xc44   :  { %9972 = vmatprep.subr.mxu1 %v12494_v60  ;;  %9051 = vmatmul.mubr.msk.f32.vlgmr.msra.gmra.mxu1 %vm544_vm0, %v6720_v9 }
 0xc45   :  { %9967 = vmatprep.subr.mxu0 %v12497_v33  ;;  %9973 = vmatpush3.msra.mxu1 %v12494_v60  ;;  %v7231_v60 = vld [vmem:[%s13416_s0 + $0x18] sm:$0xff] }
 0xc46   :  { %9968 = vmatpush3.msra.mxu0 %v12497_v33  ;;  %9974 = vmatprep.subr.mxu1 %v12497_v33 }
 0xc47   :  { %6613 = vmatprep.mubr.f32.mxu0 %v13392_v55  ;;  %6941 = vmatprep.subr.mxu0 %v12469_v35  ;;  %v7267_v35 = vld [vmem:[%s13416_s0 + $0x138] sm:$0xff] }
 0xc48   :  { %9975 = vmatpush3.msra.mxu1 %v12497_v33  ;;  %9048 = vmatmul.mubr.msk.f32.gmra.mxu0 %vm544_vm0, %v6536_v50  ;;  %v7262_v33 = vld [vmem:[%s13416_s0 + $0x110] sm:$0xff] }
 0xc49   :  { %9969 = vmatprep.mubr.msk.f32.mxu0 %vm544_vm0, %v6720_v9  ;;  %6798 = vmatprep.mubr.f32.mxu1 %v13392_v55 }
 0xc4a   :  { %9052 = vmatmul.mubr.msk.f32.gmra.mxu1 %vm544_vm0, %v6721_v53  ;;  %9979 = vmatprep.subr.mxu1 %v7275_v21 }
 0xc4b   :  { %9976 = vmatprep.mubr.msk.f32.mxu1 %vm544_vm0, %v6905_v8 }
 0xc4c   :  { %9970 = vmatmul.mubr.msk.f32.vlgmr.msra.gmra.mxu0 %vm544_vm0, %v6721_v53 }
 0xc4d   :  { %6942 = vmatpush1.msra.mxu0 %v12471_v2  ;;  %6977 = vmatprep.mubr.f32.mxu0 %v13392_v55  ;;  %v7238_v2 = vld [vmem:[%s13416_s0 + $0x50] sm:$0xff] }
 0xc4e   :  { %6943 = vmatprep.subr.mxu0 %v12473_v0  ;;  %9977 = vmatmul.mubr.msk.f32.vlgmr.msra.gmra.mxu1 %vm544_vm0, %v6906_v7  ;;  %v7253_v0 = vld [vmem:[%s13416_s0 + $0xc8] sm:$0xff] }
 0xc4f   :  { %6944 = vmatpush1.msra.mxu0 %v12476_v63  ;;  %9980 = vmatpush3.msra.mxu1 %v7275_v21  ;;  %v7266_v63 = vld [vmem:[%s13416_s0 + $0x130] sm:$0xff] }
 0xc50   :  { %9055 = vmatmul.mubr.msk.f32.vlgmr.msra.gmra.mxu0 %vm544_vm0, %v6905_v8  ;;  %9981 = vmatprep.subr.mxu1 %v7274_v47 }
 0xc51   :  { %6983 = vmatprep.mubr.f32.mxu0 %v13392_v55  ;;  %9982 = vmatpush3.msra.mxu1 %v7274_v47 }
 0xc52   :  { %9983 = vmatprep.subr.mxu1 %v7273_v23  ;;  %9709 = vmatprep.subr.mxu0 %v7259_v52 }
 0xc53   :  { %9984 = vmatpush3.msra.mxu1 %v7273_v23  ;;  %9710 = vmatpush3.msra.mxu0 %v7243_v45 }
 0xc54   :  { %9056 = vmatmul.mubr.msk.f32.gmra.mxu0 %vm544_vm0, %v6906_v7  ;;  %9985 = vmatprep.subr.mxu1 %v7272_v31 }
 0xc55   :  { %9986 = vmatpush3.msra.mxu1 %v7272_v31  ;;  %9711 = vmatprep.subr.mxu0 %v7258_v37 }
 0xc56   :  { %9987 = vmatprep.subr.mxu1 %v7271_v38  ;;  %9712 = vmatpush3.msra.mxu0 %v7242_v25 }
 0xc57   :  { %9988 = vmatpush3.msra.mxu1 %v7271_v38  ;;  %9713 = vmatprep.subr.mxu0 %v7257_v61 }
 0xc58   :  { %9989 = vmatprep.subr.mxu1 %v7270_v39  ;;  %9714 = vmatpush3.msra.mxu0 %v7241_v13 }
 0xc59   :  { %9990 = vmatpush3.msra.mxu1 %v7270_v39  ;;  %9715 = vmatprep.subr.mxu0 %v7256_v28 }
 0xc5a   :  { %9991 = vmatprep.subr.mxu1 %v7269_v15  ;;  %9716 = vmatpush3.msra.mxu0 %v7240_v56 }
 0xc5b   :  { %9992 = vmatpush3.msra.mxu1 %v7269_v15  ;;  %9717 = vmatprep.subr.mxu0 %v7255_v4 }
 0xc5c   :  { %9993 = vmatprep.subr.mxu1 %v7268_v27  ;;  %9718 = vmatpush3.msra.mxu0 %v7239_v1 }
 0xc5d   :  { %9994 = vmatpush3.msra.mxu1 %v7268_v27  ;;  %9719 = vmatprep.subr.mxu0 %v7254_v59  ;;  %v12668_v59 = vld [vmem:[#allocation19] sm:$0xff] }
 0xc5e   :  { %9995 = vmatprep.subr.mxu1 %v7267_v35  ;;  %9720 = vmatpush3.msra.mxu0 %v7238_v2  ;;  %v12672_v2 = vld [vmem:[#allocation19 + $0x8] sm:$0xff] }
 0xc5f   :  { %9996 = vmatpush3.msra.mxu1 %v7267_v35  ;;  %9721 = vmatprep.subr.mxu0 %v7253_v0  ;;  %13417 = vst [vmem:[#allocation62_spill] sm:$0xff] %v12672_v2  ;;  %v12674_v0 = vld [vmem:[#allocation19 + $0x10] sm:$0xff] }
 0xc60   :  { %9997 = vmatprep.subr.mxu1 %v7266_v63  ;;  %9722 = vmatpush3.msra.mxu0 %v7237_v11  ;;  %v5594_v11 = vrot.slane %v12668_v59, %v11954_v6 }
 0xc61   :  { %9998 = vmatpush3.msra.mxu1 %v7266_v63  ;;  %9723 = vmatprep.subr.mxu0 %v7252_v34  ;;  %v5781_v34 = vrot.slane %v12674_v0, %v11957_v49 }
 0xc62   :  { %9999 = vmatprep.subr.mxu1 %v7265_v19  ;;  %9724 = vmatpush3.msra.mxu0 %v7236_v3 }
 0xc63   :  { %10000 = vmatpush3.msra.mxu1 %v7265_v19  ;;  %9725 = vmatprep.subr.mxu0 %v7251_v32  ;;  %v5598_v32 = vrot.slane %v12672_v2, %v11954_v6 }
 0xc64   :  { %10001 = vmatprep.subr.mxu1 %v7264_v24  ;;  %9726 = vmatpush3.msra.mxu0 %v7235_v20  ;;  %v5773_v20 = vrot.slane %v12668_v59, %v11957_v49 }
 0xc65   :  { %10002 = vmatpush3.msra.mxu1 %v7264_v24  ;;  %9727 = vmatprep.subr.mxu0 %v7250_v16  ;;  %v5602_v24 = vrot.slane %v12674_v0, %v11954_v6  ;;  %v5777_v16 = vrot.slane %v12672_v2, %v11957_v49 }
 0xc66   :  { %10003 = vmatprep.subr.mxu1 %v7263_v43  ;;  %9728 = vmatpush3.msra.mxu0 %v7234_v42  ;;  %v5962_v42 = vrot.slane %v12672_v2, %v12317_v44 }
 0xc67   :  { %10004 = vmatpush3.msra.mxu1 %v7263_v43  ;;  %9729 = vmatprep.subr.mxu0 %v7249_v46  ;;  %v5958_v43 = vrot.slane %v12668_v59, %v12317_v44  ;;  %v5966_v46 = vrot.slane %v12674_v0, %v12317_v44 }
 0xc68   :  { %9730 = vmatpush3.msra.mxu0 %v7233_v5  ;;  %10005 = vmatprep.subr.mxu1 %v7262_v33  ;;  %v6143_v5 = vrot.slane %v12668_v59, %v12326_v22 }
 0xc69   :  { %9731 = vmatprep.subr.mxu0 %v7248_v14  ;;  %10006 = vmatpush3.msra.mxu1 %v7262_v33  ;;  %v12712_v33 = vrot.slane %v12672_v2, %v12335_v57 }
 0xc6a   :  { %9732 = vmatpush3.msra.mxu0 %v7232_v26  ;;  %10007 = vmatprep.subr.mxu1 %v7261_v12  ;;  %v6151_v26 = vrot.slane %v12674_v0, %v12326_v22 }
 0xc6b   :  { %9733 = vmatprep.subr.mxu0 %v7247_v36  ;;  %10008 = vmatpush3.msra.mxu1 %v7261_v12  ;;  %v6147_v36 = vrot.slane %v12672_v2, %v12326_v22  ;;  %v12722_v22 = vrot.slane %v12672_v2, %v12344_v18 }
 0xc6c   :  { %9734 = vmatpush3.msra.mxu0 %v7231_v60  ;;  %10009 = vmatprep.subr.mxu1 %v7260_v29  ;;  %v6328_v60 = vrot.slane %v12668_v59, %v12335_v57 }
 0xc6d   :  { %9735 = vmatprep.subr.mxu0 %v7246_v62  ;;  %10010 = vmatpush3.msra.mxu1 %v7260_v29  ;;  %v6336_v29 = vrot.slane %v12674_v0, %v12335_v57  ;;  %13421 = vst [vmem:[#allocation66_spill] sm:$0xff] %v12722_v22 }
 0xc6e   :  { %9736 = vmatpush3.msra.mxu0 %v7230_v40 }
 0xc6f   :  { %9737 = vmatprep.subr.mxu0 %v7245_v54  ;;  %v12718_v54 = vrot.slane %v12668_v59, %v12344_v18 }
 0xc70   :  { %9738 = vmatpush3.msra.mxu0 %v7229_v48 }
 0xc71   :  { %9739 = vmatprep.subr.mxu0 %v7244_v51  ;;  %13420 = vst [vmem:[#allocation65_spill] sm:$0xff] %v12718_v54 }
 0xc72   :  { %9740 = vmatpush3.msra.mxu0 %v7228_v58 }
 0xccd   :  { %v5505_v10 = vpop.f32.mrf.mxu1 }
 0xcce   :  { %v5603_v48 = vmul.f32 %v5594_v11, %v5505_v10 }
 0xccf   :  { %v5507_v41 = vpop.f32.mrf.mxu1 }
 0xcd0   :  { %v5604_v51 = vmul.f32 %v5598_v32, %v5507_v41 }
 0xcd1   :  { %v5511_v50 = vpop.f32.mrf.mxu1 }
 0xcd2   :  { %v5606_v58 = vmul.f32 %v5594_v11, %v5511_v50 }
 0xcd3   :  { %v5513_v9 = vpop.f32.mrf.mxu1 }
 0xcd4   :  { %v5607_v6 = vmul.f32 %v5598_v32, %v5513_v9  ;;  %v6521_v9 = vrot.slane %v12674_v0, %v12344_v18 }
 0xcd5   :  { %v5684_v53 = vpop.f32.mrf.mxu1 }
 0xcd7   :  { %v5686_v8 = vpop.f32.mrf.mxu1 }
 0xcd8   :  { %v5783_v44 = vmul.f32 %v5777_v16, %v5686_v8 }
 0xcda   :  { %v9922_v7 = vpop.f32.mrf.mxu0 }
 0xcdb   :  { %v5608_v55 = vmul.f32 %v9922_v7, %v5602_v24 }
 0xcdc   :  { %v5582_v21 = vpop.f32.mrf.mxu0  ;;  %v5690_v47 = vpop.f32.mrf.mxu1 }
 0xcdd   :  { %v5605_v49 = vmul.f32 %v5602_v24, %v5582_v21  ;;  %v5785_v57 = vmul.f32 %v5773_v20, %v5690_v47 }
 0xcde   :  { %v5692_v23 = vpop.f32.mrf.mxu1 }
 0xcdf   :  { %v9929_v52 = vpop.f32.mrf.mxu0 }
 0xce0   :  { %v9936_v31 = vpop.f32.mrf.mxu1  ;;  %v5787_v12 = vmul.f32 %v9929_v52, %v5781_v34  ;;  %v5782_v52 = vmul.f32 %v5773_v20, %v5684_v53  ;;  %v12732_v53 = vrot.slane %v12668_v59, %v12351_v17 }
 0xce1   :  { %v5761_v45 = vpop.f32.mrf.mxu0 }
 0xce2   :  { %v5946_v37 = vpop.f32.mrf.mxu1  ;;  %v5784_v62 = vmul.f32 %v5781_v34, %v5761_v45  ;;  %v5793_v30 = vadd.f32 %v5787_v12, %v5608_v55  ;;  %v5788_v8 = vadd.f32 %v5782_v52, %v5603_v48  ;;  %v13425_v48 = vld [vmem:[#allocation65_spill] sm:$0xff] }
 0xce3   :  { %v5969_v41 = vmul.f32 %v5966_v46, %v5946_v37 }
 0xce4   :  { %v5869_v38 = vpop.f32.mrf.mxu0  ;;  %v5790_v54 = vadd.f32 %v5784_v62, %v5605_v49  ;;  %v6706_v49 = vrot.slane %v12674_v0, %v12351_v17  ;;  %v13423_v62 = vld [vmem:[#allocation60_spill] sm:$0xff] }
 0xce5   :  { %v5967_v10 = vmul.f32 %v5958_v43, %v5869_v38 }
 0xce6   :  { %v5871_v25 = vpop.f32.mrf.mxu0  ;;  %v12658_v61 = vpop.f32.mrf.mxu1  ;;  %v5975_v32 = vadd.f32 %v5969_v41, %v5790_v54 }
 0xce7   :  { %v5968_v2 = vmul.f32 %v5962_v42, %v5871_v25  ;;  %v5973_v25 = vadd.f32 %v5967_v10, %v5788_v8  ;;  %v6152_v24 = vmul.f32 %v6143_v5, %v12658_v61 }
 0xce8   :  { %v12660_v39 = vpop.f32.mrf.mxu1 }
 0xcea   :  { %v5875_v13 = vpop.f32.mrf.mxu0 }
 0xceb   :  { %v5970_v22 = vmul.f32 %v5958_v43, %v5875_v13 }
 0xcec   :  { %v5877_v28 = vpop.f32.mrf.mxu0  ;;  %v12662_v15 = vpop.f32.mrf.mxu1 }
 0xced   :  { %v5971_v7 = vmul.f32 %v5962_v42, %v5877_v28  ;;  %v6153_v28 = vmul.f32 %v6147_v36, %v12660_v39  ;;  %v6158_v39 = vadd.f32 %v6152_v24, %v5973_v25 }
 0xcee   :  { %v9943_v56 = vpop.f32.mrf.mxu0  ;;  %v12664_v4 = vpop.f32.mrf.mxu1 }
 0xcef   :  { %v6157_v21 = vmul.f32 %v9943_v56, %v6151_v26  ;;  %v6155_v56 = vmul.f32 %v6143_v5, %v12662_v15  ;;  %v6156_v61 = vmul.f32 %v6147_v36, %v12664_v4  ;;  %v13422_v5 = vld [vmem:[#allocation62_spill] sm:$0xff] }
 0xcf0   :  { %v6131_v27 = vpop.f32.mrf.mxu0  ;;  %v12666_v1 = vpop.f32.mrf.mxu1 }
 0xcf1   :  { %v6154_v38 = vmul.f32 %v6151_v26, %v6131_v27 }
 0xcf2   :  { %v12670_v35 = vpop.f32.mrf.mxu1 }
 0xcf3   :  { %v12676_v63 = vpop.f32.mrf.mxu0  ;;  %v6339_v27 = vmul.f32 %v6336_v29, %v12670_v35 }
 0xcf5   :  { %v12682_v19 = vpop.f32.mrf.mxu0  ;;  %v12684_v3 = vpop.f32.mrf.mxu1 }
 0xcf6   :  { %13418 = vst [vmem:[#allocation63_spill] sm:$0xff] %v12684_v3  ;;  %v5972_v3 = vmul.f32 %v9936_v31, %v5966_v46  ;;  %v5791_v31 = vadd.f32 %v5785_v57, %v5606_v58  ;;  %v6160_v57 = vadd.f32 %v6154_v38, %v5975_v32 }
 0xcf7   :  { %v12702_v14 = vpop.f32.mrf.mxu1 }
 0xcf8   :  { %13419 = vst [vmem:[#allocation64_spill] sm:$0xff] %v12702_v14  ;;  %v5786_v14 = vmul.f32 %v5777_v16, %v5692_v23  ;;  %v5789_v23 = vadd.f32 %v5783_v44, %v5604_v51  ;;  %v5978_v13 = vadd.f32 %v5972_v3, %v5793_v30  ;;  %v5976_v43 = vadd.f32 %v5970_v22, %v5791_v31 }
 0xcf9   :  { %v6245_v40 = vpop.f32.mrf.mxu0  ;;  %v6337_v44 = vmul.f32 %v6328_v60, %v12676_v63  ;;  %v6338_v30 = vmul.f32 %v12712_v33, %v12682_v19  ;;  %v6883_v19 = vrot.slane %v12668_v59, %v13423_v62  ;;  %v6345_v52 = vadd.f32 %v6339_v27, %v6160_v57 }
 0xcfa   :  { %v5792_v37 = vadd.f32 %v5786_v14, %v5607_v6  ;;  %v5974_v16 = vadd.f32 %v5968_v2, %v5789_v23  ;;  %v6163_v12 = vadd.f32 %v6157_v21, %v5978_v13  ;;  %v6342_v6 = vmul.f32 %v12666_v1, %v6336_v29 }
 0xcfb   :  { %v6247_v45 = vpop.f32.mrf.mxu0  ;;  %v12724_v34 = vpop.f32.mrf.mxu1  ;;  %v6340_v3 = vmul.f32 %v6328_v60, %v6245_v40  ;;  %v6702_v14 = vrot.slane %v13422_v5, %v12351_v17  ;;  %v6891_v1 = vrot.slane %v12674_v0, %v13423_v62  ;;  %v6343_v4 = vadd.f32 %v6337_v44, %v6158_v39  ;;  %v13427_v0 = vld [vmem:[#allocation66_spill] sm:$0xff] }
 0xcfc   :  { %v5977_v46 = vadd.f32 %v5971_v7, %v5792_v37  ;;  %v6159_v26 = vadd.f32 %v6153_v28, %v5974_v16  ;;  %v6161_v36 = vadd.f32 %v6155_v56, %v5976_v43  ;;  %v6348_v35 = vadd.f32 %v6342_v6, %v6163_v12  ;;  %v9061_v16 = vld [vmem:[#allocation19 + $0x28] ss:$0 sm:$0xff]  ;;  %v9059_v12 = vld [vmem:[#allocation19 + $0x18] ss:$0 sm:$0xff] }
 0xcfd   :  { %v9957_v50 = vpop.f32.mrf.mxu0  ;;  %v12726_v11 = vpop.f32.mrf.mxu1  ;;  %v13424_v29 = vld [vmem:[#allocation63_spill] sm:$0xff]  ;;  %v6341_v58 = vmul.f32 %v12712_v33, %v6247_v45  ;;  %v6887_v33 = vrot.slane %v13422_v5, %v13423_v62 }
 0xcfe   :  { %v6527_v15 = vmul.f32 %v9957_v50, %v6521_v9  ;;  %v6522_v51 = vmul.f32 %v13425_v48, %v13424_v29  ;;  %v6344_v60 = vadd.f32 %v6338_v30, %v6159_v26  ;;  %v6162_v40 = vadd.f32 %v6156_v61, %v5977_v46 }
 0xcff   :  { %v6501_v47 = vpop.f32.mrf.mxu0  ;;  %v9964_v55 = vpop.f32.mrf.mxu1  ;;  %v6346_v41 = vadd.f32 %v6340_v3, %v6161_v36  ;;  %v6526_v13 = vmul.f32 %v13427_v0, %v12726_v11  ;;  %v9060_v3 = vld [vmem:[#allocation19 + $0x20] ss:$0 sm:$0xff] }
 0xd00   :  { %v6524_v63 = vmul.f32 %v6521_v9, %v6501_v47  ;;  %v6533_v50 = vadd.f32 %v6527_v15, %v6348_v35  ;;  %v13426_v9 = vld [vmem:[#allocation64_spill] sm:$0xff]  ;;  %v6712_v7 = vmul.f32 %v9964_v55, %v6706_v49  ;;  %v6525_v47 = vmul.f32 %v13425_v48, %v12724_v34 }
 0xd01   :  { %v6686_v20 = vpop.f32.mrf.mxu1  ;;  %v6523_v8 = vmul.f32 %v13427_v0, %v13426_v9  ;;  %v6528_v38 = vadd.f32 %v6522_v51, %v6343_v4  ;;  %v6347_v45 = vadd.f32 %v6341_v58, %v6162_v40 }
 0xd02   :  { %v6609_v42 = vpop.f32.mrf.mxu0  ;;  %v6530_v59 = vadd.f32 %v6524_v63, %v6345_v52  ;;  %v6709_v31 = vmul.f32 %v6706_v49, %v6686_v20  ;;  %v6718_v28 = vadd.f32 %v6712_v7, %v6533_v50  ;;  %v6531_v49 = vadd.f32 %v6525_v47, %v6346_v41 }
 0xd03   :  { %v6707_v21 = vmul.f32 %v12732_v53, %v6609_v42  ;;  %v6529_v43 = vadd.f32 %v6523_v8, %v6344_v60  ;;  %v6532_v27 = vadd.f32 %v6526_v13, %v6347_v45 }
 0xd04   :  { %v6611_v22 = vpop.f32.mrf.mxu0  ;;  %v6794_v2 = vpop.f32.mrf.mxu1  ;;  %v6715_v20 = vadd.f32 %v6709_v31, %v6530_v59 }
 0xd05   :  { %v6708_v25 = vmul.f32 %v6702_v14, %v6611_v22  ;;  %v6713_v56 = vadd.f32 %v6707_v21, %v6528_v38  ;;  %v6892_v42 = vmul.f32 %v6883_v19, %v6794_v2 }
 0xd06   :  { %v6796_v54 = vpop.f32.mrf.mxu1 }
 0xd07   :  { %v6714_v11 = vadd.f32 %v6708_v25, %v6529_v43  ;;  %v6893_v22 = vmul.f32 %v6887_v33, %v6796_v54  ;;  %v6898_v36 = vadd.f32 %v6892_v42, %v6713_v56 }
 0xd08   :  { %v6615_v10 = vpop.f32.mrf.mxu0 }
 0xd09   :  { %v6710_v55 = vmul.f32 %v12732_v53, %v6615_v10  ;;  %v6899_v51 = vadd.f32 %v6893_v22, %v6714_v11 }
 0xd0a   :  { %v6617_v23 = vpop.f32.mrf.mxu0  ;;  %v6800_v37 = vpop.f32.mrf.mxu1 }
 0xd0b   :  { %v6711_v6 = vmul.f32 %v6702_v14, %v6617_v23  ;;  %v6716_v53 = vadd.f32 %v6710_v55, %v6531_v49  ;;  %v6895_v63 = vmul.f32 %v6883_v19, %v6800_v37 }
 0xd0c   :  { %v9971_v32 = vpop.f32.mrf.mxu0  ;;  %v6802_v24 = vpop.f32.mrf.mxu1 }
 0xd0d   :  { %v6897_v34 = vmul.f32 %v9971_v32, %v6891_v1  ;;  %v6717_v29 = vadd.f32 %v6711_v6, %v6532_v27  ;;  %v6896_v48 = vmul.f32 %v6887_v33, %v6802_v24  ;;  %v6901_v40 = vadd.f32 %v6895_v63, %v6716_v53 }
 0xd0e   :  { %v6871_v46 = vpop.f32.mrf.mxu0  ;;  %v9978_v44 = vpop.f32.mrf.mxu1 }
 0xd0f   :  { %v6903_v57 = vadd.f32 %v6897_v34, %v6718_v28  ;;  %v6894_v30 = vmul.f32 %v6891_v1, %v6871_v46  ;;  %v7082_v61 = vmul.f32 %v9978_v44, %v9061_v16  ;;  %v6902_v9 = vadd.f32 %v6896_v48, %v6717_v29 }
 0xd10   :  { %v6979_v39 = vpop.f32.mrf.mxu0  ;;  %v7056_v15 = vpop.f32.mrf.mxu1 }
 0xd11   :  { %v6900_v5 = vadd.f32 %v6894_v30, %v6715_v20  ;;  %v7077_v26 = vmul.f32 %v9059_v12, %v6979_v39  ;;  %v7079_v4 = vmul.f32 %v9061_v16, %v7056_v15  ;;  %v12764_v35 = vadd.f32 %v7082_v61, %v6903_v57 }
 0xd12   :  { %v6981_v2 = vpop.f32.mrf.mxu0 }
 0xd13   :  { %v7078_v14 = vmul.f32 %v9060_v3, %v6981_v2  ;;  %v12766_v1 = vadd.f32 %v7079_v4, %v6900_v5  ;;  %v12768_v60 = vadd.f32 %v7077_v26, %v6898_v36  ;;  %v7117_v41 = vmul.f32 %v12764_v35, %v12764_v35 }
 0xd14   :  { %v6985_v54 = vpop.f32.mrf.mxu0 }
 0xd15   :  { %v7080_v58 = vmul.f32 %v9059_v12, %v6985_v54  ;;  %v7105_v52 = vadd.f32 %v12764_v35, %v12766_v1  ;;  %v12772_v19 = vadd.f32 %v7078_v14, %v6899_v51  ;;  %v7114_v50 = vmul.f32 %v12766_v1, %v12766_v1 }
 0xd16   :  { %v6987_v10 = vpop.f32.mrf.mxu0  ;;  %v7112_v59 = vmul.f32 %v12768_v60, %v12768_v60 }
 0xd17   :  { %v12778_v0 = vadd.f32 %v7080_v58, %v6901_v40  ;;  %v7081_v8 = vmul.f32 %v9060_v3, %v6987_v10  ;;  %v7106_v7 = vrot.slane %v7105_v52, 4  ;;  %v7132_v21 = vadd.f32 %v7117_v41, %v7114_v50 }
 0xd18   :  { %v7113_v38 = vmul.f32 %v12772_v19, %v12772_v19 }
 0xd19   :  { %v7091_v47 = vadd.f32 %v12778_v0, %v12768_v60  ;;  %v7115_v23 = vmul.f32 %v12778_v0, %v12778_v0  ;;  %v12786_v31 = vadd.f32 %v7081_v8, %v6902_v9  ;;  %v7107_v37 = vadd.f32 %v7106_v7, %v7105_v52 }
 0xd1a   :  { %v7133_v33 = vrot.slane %v7132_v21, 4 }
 0xd1b   :  { %v7092_v45 = vrot.slane %v7091_v47, 4  ;;  %v7118_v25 = vadd.f32 %v7115_v23, %v7112_v59  ;;  %v7098_v13 = vadd.f32 %v12786_v31, %v12772_v19  ;;  %v7116_v55 = vmul.f32 %v12786_v31, %v12786_v31 }
 0xd1c   :  { %v7108_v32 = vrot.slane %v7107_v37, 2  ;;  %v7134_v24 = vadd.f32 %v7133_v33, %v7132_v21 }
 0xd1d   :  { %v7093_v16 = vadd.f32 %v7092_v45, %v7091_v47  ;;  %v7119_v43 = vrot.slane %v7118_v25, 4  ;;  %v7099_v28 = vrot.slane %v7098_v13, 4  ;;  %v7125_v34 = vadd.f32 %v7116_v55, %v7113_v38  ;;  %v7089_v45 = vld [vmem:[%s13428_s15] sm:$0x7] }
 0xd1e   :  { %v7109_v56 = vadd.f32 %v7108_v32, %v7107_v37  ;;  %v7135_v49 = vrot.slane %v7134_v24, 2  ;;  %v13429_v32 = vld [vmem:[#allocation61_spill] sm:$0xff] }
 0xd1f   :  { %v7094_v20 = vrot.slane %v7093_v16, 2  ;;  %v7120_v42 = vadd.f32 %v7119_v43, %v7118_v25  ;;  %v7100_v46 = vadd.f32 %v7099_v28, %v7098_v13  ;;  %v7126_v12 = vrot.slane %v7125_v34, 4  ;;  %v7090_v25 = vld [vmem:[#allocation20] sm:$0x7] }
 0xd20   :  { %v7110_v44 = vrot.slane %v7109_v56, 1  ;;  %v7136_v6 = vadd.f32 %v7135_v49, %v7134_v24  ;;  %v7184_v24 = vrot.slane %v7089_v45, %v13429_v32 }
 0xd21   :  { %v7095_v57 = vadd.f32 %v7094_v20, %v7093_v16  ;;  %v7121_v30 = vrot.slane %v7120_v42, 2  ;;  %v7101_v61 = vrot.slane %v7100_v46, 2  ;;  %v7127_v11 = vadd.f32 %v7126_v12, %v7125_v34  ;;  %v13430_v20 = vld [vmem:[#allocation57_spill] sm:$0xff] }
 0xd22   :  { %v7111_v27 = vadd.f32 %v7110_v44, %v7109_v56  ;;  %v7137_v53 = vrot.slane %v7136_v6, 1  ;;  %v7206_v34 = vrot.slane %v7090_v25, %v13429_v32 }
 0xd23   :  { %v7096_v22 = vrot.slane %v7095_v57, 1  ;;  %v7122_v39 = vadd.f32 %v7121_v30, %v7120_v42  ;;  %v7102_v3 = vadd.f32 %v7101_v61, %v7100_v46  ;;  %v7128_v15 = vrot.slane %v7127_v11, 2 }
 0xd24   :  { %v7138_v5 = vadd.f32 %v7137_v53, %v7136_v6  ;;  %v7141_v26 = vmul.f32 0.0625, %v7111_v27  ;;  %v7176_v42 = vrot.slane %v7089_v45, %v13430_v20  ;;  %v7198_v30 = vrot.slane %v7090_v25, %v13430_v20 }
 0xd25   :  { %v7097_v63 = vadd.f32 %v7096_v22, %v7095_v57  ;;  %v7123_v4 = vrot.slane %v7122_v39, 1  ;;  %v7103_v36 = vrot.slane %v7102_v3, 1  ;;  %v7129_v2 = vadd.f32 %v7128_v15, %v7127_v11  ;;  %v13431_v57 = vld [vmem:[#allocation59_spill] sm:$0xff] }
 0xd26   :  { %v7144_v29 = vmul.f32 0.0625, %v7138_v5  ;;  %v7147_v14 = vmul.f32 %v7141_v26, %v7141_v26  ;;  %v7156_v13 = vsub.f32 %v12766_v1, %v7141_v26  ;;  %v7159_v55 = vsub.f32 %v12764_v35, %v7141_v26 }
 0xd27   :  { %v7124_v48 = vadd.f32 %v7123_v4, %v7122_v39  ;;  %v7139_v51 = vmul.f32 0.0625, %v7097_v63  ;;  %v7104_v54 = vadd.f32 %v7103_v36, %v7102_v3  ;;  %v7130_v40 = vrot.slane %v7129_v2, 1 }
 0xd28   :  { %v7150_v58 = vsub.f32 %v7144_v29, %v7147_v14  ;;  %v7180_v35 = vrot.slane %v7089_v45, %v13431_v57  ;;  %v7566_v45 = vld [vmem:[%s13432_s6 + $0x2d0] sm:$0xff] }
 0xd29   :  { %v7142_v52 = vmul.f32 0.0625, %v7124_v48  ;;  %v7145_v10 = vmul.f32 %v7139_v51, %v7139_v51  ;;  %v7131_v41 = vadd.f32 %v7130_v40, %v7129_v2  ;;  %v7140_v50 = vmul.f32 0.0625, %v7104_v54 }
 0xd2a   :  { %v7153_v9 = vmax.f32 %v7150_v58, 0.0  ;;  %v7154_v56 = vsub.f32 %v12768_v60, %v7139_v51  ;;  %v7157_v49 = vsub.f32 %v12778_v0, %v7139_v51  ;;  %v7202_v0 = vrot.slane %v7090_v25, %v13431_v57  ;;  %v7568_v25 = vld [vmem:[%s13432_s6 + $0x2e0] sm:$0xff] }
 0xd2b   :  { %v7148_v8 = vsub.f32 %v7142_v52, %v7145_v10  ;;  %v7143_v7 = vmul.f32 0.0625, %v7131_v41  ;;  %v7146_v59 = vmul.f32 %v7140_v50, %v7140_v50  ;;  %v7158_v61 = vsub.f32 %v12786_v31, %v7140_v50 }
 0xd2c   :  { %v7162_v21 = vadd.f32 1e-05, %v7153_v9  ;;  %v7155_v11 = vsub.f32 %v12772_v19, %v7140_v50  ;;  %v13433_v40 = vmov 0.0   ;;  %v7587_v9 = vld [vmem:[%s13432_s6 + $0x378] sm:$0xff] }
 0xd2d   :  { %v7151_v47 = vmax.f32 %v7148_v8, 0.0  ;;  %v7149_v23 = vsub.f32 %v7143_v7, %v7146_v59  ;;  %v7589_v8 = vld [vmem:[%s13432_s6 + $0x388] sm:$0xff]  ;;  %7610 = vmatprep.subr.mxu0 %v7587_v9  ;;  %v7586_v7 = vld [vmem:[%s13432_s6 + $0x370] sm:$0xff]  ;;  %v7588_v59 = vld [vmem:[%s13432_s6 + $0x380] sm:$0xff] }
 0xd2e   :  { %10101 = vrsqrt.f32 %v7162_v21  ;;  %7687 = vmatprep.subr.mxu1 %v7589_v8  ;;  %v7577_v21 = vld [vmem:[%s13432_s6 + $0x328] sm:$0xff] }
 0xd2f   :  { %v7160_v37 = vadd.f32 1e-05, %v7151_v47  ;;  %v7152_v38 = vmax.f32 %v7149_v23, 0.0  ;;  %v7579_v47 = vld [vmem:[%s13432_s6 + $0x338] sm:$0xff]  ;;  %v7576_v23 = vld [vmem:[%s13432_s6 + $0x320] sm:$0xff] }
 0xd31   :  { %10103 = vrsqrt.f32 %v7160_v37  ;;  %v7161_v33 = vadd.f32 1e-05, %v7152_v38  ;;  %v7578_v37 = vld [vmem:[%s13432_s6 + $0x330] sm:$0xff]  ;;  %v7567_v38 = vld [vmem:[%s13432_s6 + $0x2d8] sm:$0xff] }
 0xd33   :  { %10105 = vrsqrt.f32 %v7161_v33  ;;  %v7569_v33 = vld [vmem:[%s13432_s6 + $0x2e8] sm:$0xff] }
 0xd3b   :  { %v10102_v16 = vpop.eup %10101 }
 0xd3c   :  { %v7168_v43 = vmul.f32 %v10102_v16, %v7156_v13  ;;  %v7171_v28 = vmul.f32 %v10102_v16, %v7159_v55  ;;  %v7557_v13 = vld [vmem:[%s13432_s6 + $0x288] sm:$0xff]  ;;  %v7559_v55 = vld [vmem:[%s13432_s6 + $0x298] sm:$0xff]  ;;  %v7558_v16 = vld [vmem:[%s13432_s6 + $0x290] sm:$0xff] }
 0xd3e   :  { %v10104_v46 = vpop.eup %10103  ;;  %v7190_v12 = vmul.f32 %v7184_v24, %v7168_v43  ;;  %v7193_v44 = vmul.f32 %v7184_v24, %v7171_v28  ;;  %v7556_v24 = vld [vmem:[%s13432_s6 + $0x280] sm:$0xff]  ;;  %v7547_v43 = vld [vmem:[%s13432_s6 + $0x238] sm:$0xff]  ;;  %v7549_v28 = vld [vmem:[%s13432_s6 + $0x248] sm:$0xff] }
 0xd3f   :  { %v7169_v6 = vmul.f32 %v10104_v46, %v7157_v49  ;;  %v7166_v1 = vmul.f32 %v10104_v46, %v7154_v56  ;;  %v7548_v56 = vld [vmem:[%s13432_s6 + $0x240] sm:$0xff]  ;;  %v7537_v49 = vld [vmem:[%s13432_s6 + $0x1e8] sm:$0xff] }
 0xd40   :  { %v7212_v27 = vadd.f32 %v7206_v34, %v7190_v12  ;;  %v7215_v53 = vadd.f32 %v7206_v34, %v7193_v44  ;;  %v10106_v60 = vpop.eup %10105  ;;  %v7546_v34 = vld [vmem:[%s13432_s6 + $0x230] sm:$0xff]  ;;  %v7536_v46 = vld [vmem:[%s13432_s6 + $0x1e0] sm:$0xff]  ;;  %v7527_v44 = vld [vmem:[%s13432_s6 + $0x198] sm:$0xff] }
 0xd41   :  { %v7188_v22 = vmul.f32 %v7176_v42, %v7166_v1  ;;  %v7167_v39 = vmul.f32 %v10106_v60, %v7155_v11  ;;  %v7170_v3 = vmul.f32 %v10106_v60, %v7158_v61  ;;  %v7191_v63 = vmul.f32 %v7176_v42, %v7169_v6  ;;  %v7539_v42 = vld [vmem:[%s13432_s6 + $0x1f8] sm:$0xff]  ;;  %v7538_v12 = vld [vmem:[%s13432_s6 + $0x1f0] sm:$0xff]  ;;  %v7529_v6 = vld [vmem:[%s13432_s6 + $0x1a8] sm:$0xff] }
 0xd42   :  { %v7218_v15 = vmax.f32 %v7212_v27, 0.0  ;;  %v7221_v5 = vmax.f32 %v7215_v53, 0.0  ;;  %v7526_v1 = vld [vmem:[%s13432_s6 + $0x190] sm:$0xff]  ;;  %v7519_v61 = vld [vmem:[%s13432_s6 + $0x158] sm:$0xff]  ;;  %v7516_v11 = vld [vmem:[%s13432_s6 + $0x140] sm:$0xff] }
 0xd43   :  { %v7210_v26 = vadd.f32 %v7198_v30, %v7188_v22  ;;  %v7189_v4 = vmul.f32 %v7180_v35, %v7167_v39  ;;  %v7192_v36 = vmul.f32 %v7180_v35, %v7170_v3  ;;  %v7213_v48 = vadd.f32 %v7198_v30, %v7191_v63  ;;  %v7528_v35 = vld [vmem:[%s13432_s6 + $0x1a0] sm:$0xff]  ;;  %v7517_v30 = vld [vmem:[%s13432_s6 + $0x148] sm:$0xff]  ;;  %v7518_v27 = vld [vmem:[%s13432_s6 + $0x150] sm:$0xff] }
 0xd44   :  { %v7224_v2 = vmin.f32 %v7218_v15, 6.0  ;;  %v7227_v29 = vmin.f32 %v7221_v5, 6.0  ;;  %v7507_v53 = vld [vmem:[%s13432_s6 + $0xf8] sm:$0xff]  ;;  %v7509_v60 = vld [vmem:[%s13432_s6 + $0x108] sm:$0xff]  ;;  %v7506_v22 = vld [vmem:[%s13432_s6 + $0xf0] sm:$0xff] }
 0xd45   :  { %v7211_v14 = vadd.f32 %v7202_v0, %v7189_v4  ;;  %v7214_v31 = vadd.f32 %v7202_v0, %v7192_v36  ;;  %v7216_v19 = vmax.f32 %v7210_v26, 0.0  ;;  %v7219_v10 = vmax.f32 %v7213_v48, 0.0  ;;  %v7508_v0 = vld [vmem:[%s13432_s6 + $0x100] sm:$0xff]  ;;  %v7497_v39 = vld [vmem:[%s13432_s6 + $0xa8] sm:$0xff]  ;;  %v7499_v3 = vld [vmem:[%s13432_s6 + $0xb8] sm:$0xff] }
 0xd46   :  { %10011 = vmatprep.mubr.f32.mxu1 %v7224_v2  ;;  %v7496_v15 = vld [vmem:[%s13432_s6 + $0xa0] sm:$0xff]  ;;  %v7498_v5 = vld [vmem:[%s13432_s6 + $0xb0] sm:$0xff]  ;;  %v7487_v26 = vld [vmem:[%s13432_s6 + $0x58] sm:$0xff] }
 0xd47   :  { %10012 = vmatmul.mubr.f32.vlgmr.msra.gmra.mxu1 %v7227_v29  ;;  %v7217_v51 = vmax.f32 %v7211_v14, 0.0  ;;  %v7220_v54 = vmax.f32 %v7214_v31, 0.0  ;;  %v7222_v52 = vmin.f32 %v7216_v19, 6.0  ;;  %v7225_v50 = vmin.f32 %v7219_v10, 6.0  ;;  %v7489_v63 = vld [vmem:[%s13432_s6 + $0x68] sm:$0xff]  ;;  %v7486_v4 = vld [vmem:[%s13432_s6 + $0x50] sm:$0xff] }
 0xd48   :  { %7743 = vmatprep.mubr.f32.mxu1 %v13433_v40  ;;  %7688 = vmatpush1.msra.mxu1 %v7588_v59  ;;  %v7488_v36 = vld [vmem:[%s13432_s6 + $0x60] sm:$0xff]  ;;  %v7477_v2 = vld [vmem:[%s13432_s6 + $0x8] sm:$0xff]  ;;  %v7479_v29 = vld [vmem:[%s13432_s6 + $0x18] sm:$0xff] }
 0xd49   :  { %v7223_v58 = vmin.f32 %v7217_v51, 6.0  ;;  %v7226_v41 = vmin.f32 %v7220_v54, 6.0  ;;  %7689 = vmatprep.subr.mxu1 %v7579_v47  ;;  %v7476_v14 = vld [vmem:[%s13432_s6] sm:$0xff]  ;;  %v7478_v31 = vld [vmem:[%s13432_s6 + $0x10] sm:$0xff]  ;;  %v7591_v19 = vld [vmem:[%s13432_s6 + $0x398] sm:$0xff] }
 0xd4a   :  { %7690 = vmatpush1.msra.mxu1 %v7578_v37  ;;  %v7593_v48 = vld [vmem:[%s13432_s6 + $0x3a8] sm:$0xff] }
 0xd4b   :  { %7340 = vmatprep.mubr.f32.mxu0 %v7223_v58  ;;  %7691 = vmatprep.subr.mxu1 %v7569_v33 }
 0xd4c   :  { %7341 = vmatmul.mubr.f32.vlgmr.msra.gmra.mxu0 %v7222_v52  ;;  %7692 = vmatpush1.msra.mxu1 %v7568_v25 }
 0xd4d   :  { %7345 = vmatprep.mubr.f32.mxu0 %v7226_v41  ;;  %7611 = vmatpush1.msra.mxu0 %v7586_v7 }
 0xd4e   :  { %7612 = vmatprep.subr.mxu0 %v7577_v21  ;;  %7693 = vmatprep.subr.mxu1 %v7559_v55 }
 0xd4f   :  { %7613 = vmatpush1.msra.mxu0 %v7576_v23  ;;  %7694 = vmatpush1.msra.mxu1 %v7558_v16 }
 0xd50   :  { %7346 = vmatmul.mubr.f32.gmra.mxu0 %v7225_v50  ;;  %7614 = vmatprep.subr.mxu0 %v7567_v38 }
 0xd51   :  { %7666 = vmatprep.mubr.f32.mxu0 %v13433_v40  ;;  %7615 = vmatpush1.msra.mxu0 %v7566_v45 }
 0xd52   :  { %7616 = vmatprep.subr.mxu0 %v7557_v13  ;;  %7695 = vmatprep.subr.mxu1 %v7549_v28 }
 0xd53   :  { %7617 = vmatpush1.msra.mxu0 %v7556_v24  ;;  %7696 = vmatpush1.msra.mxu1 %v7548_v56 }
 0xd54   :  { %7618 = vmatprep.subr.mxu0 %v7547_v43  ;;  %7697 = vmatprep.subr.mxu1 %v7539_v42 }
 0xd55   :  { %7619 = vmatpush1.msra.mxu0 %v7546_v34  ;;  %7698 = vmatpush1.msra.mxu1 %v7538_v12 }
 0xd56   :  { %7620 = vmatprep.subr.mxu0 %v7537_v49  ;;  %7699 = vmatprep.subr.mxu1 %v7529_v6 }
 0xd57   :  { %7621 = vmatpush1.msra.mxu0 %v7536_v46  ;;  %7700 = vmatpush1.msra.mxu1 %v7528_v35 }
 0xd58   :  { %7622 = vmatprep.subr.mxu0 %v7527_v44  ;;  %7701 = vmatprep.subr.mxu1 %v7519_v61 }
 0xd59   :  { %7623 = vmatpush1.msra.mxu0 %v7526_v1  ;;  %7702 = vmatpush1.msra.mxu1 %v7518_v27  ;;  %v9062_v27 = vld [vmem:[%s13434_s29] ss:$0 sm:$0xff] }
 0xd5a   :  { %7624 = vmatprep.subr.mxu0 %v7517_v30  ;;  %7703 = vmatprep.subr.mxu1 %v7509_v60 }
 0xd5b   :  { %7625 = vmatpush1.msra.mxu0 %v7516_v11  ;;  %7704 = vmatpush1.msra.mxu1 %v7508_v0 }
 0xd5c   :  { %7626 = vmatprep.subr.mxu0 %v7507_v53  ;;  %7705 = vmatprep.subr.mxu1 %v7499_v3 }
 0xd5d   :  { %7627 = vmatpush1.msra.mxu0 %v7506_v22  ;;  %7706 = vmatpush1.msra.mxu1 %v7498_v5  ;;  %v9063_v22 = vld [vmem:[#allocation22] ss:$0 sm:$0xff]  ;;  %v7592_v5 = vld [vmem:[%s13432_s6 + $0x3a0] sm:$0xff] }
 0xd5e   :  { %7628 = vmatprep.subr.mxu0 %v7497_v39  ;;  %7707 = vmatprep.subr.mxu1 %v7489_v63  ;;  %v7583_v63 = vld [vmem:[%s13432_s6 + $0x358] sm:$0xff] }
 0xd5f   :  { %7629 = vmatpush1.msra.mxu0 %v7496_v15  ;;  %7708 = vmatpush1.msra.mxu1 %v7488_v36  ;;  %v7590_v15 = vld [vmem:[%s13432_s6 + $0x390] sm:$0xff]  ;;  %v7580_v36 = vld [vmem:[%s13432_s6 + $0x340] sm:$0xff] }
 0xd60   :  { %7630 = vmatprep.subr.mxu0 %v7487_v26  ;;  %7709 = vmatprep.subr.mxu1 %v7479_v29  ;;  %v7581_v26 = vld [vmem:[%s13432_s6 + $0x348] sm:$0xff]  ;;  %v7571_v29 = vld [vmem:[%s13432_s6 + $0x2f8] sm:$0xff] }
 0xd61   :  { %7631 = vmatpush1.msra.mxu0 %v7486_v4  ;;  %7710 = vmatpush1.msra.mxu1 %v7478_v31 }
 0xd62   :  { %7632 = vmatprep.subr.mxu0 %v7477_v2  ;;  %7841 = vmatprep.subr.mxu1 %v7593_v48  ;;  %v7582_v2 = vld [vmem:[%s13432_s6 + $0x350] sm:$0xff]  ;;  %v7572_v48 = vld [vmem:[%s13432_s6 + $0x300] sm:$0xff] }
 0xd63   :  { %7633 = vmatpush1.msra.mxu0 %v7476_v14  ;;  %v7573_v14 = vld [vmem:[%s13432_s6 + $0x308] sm:$0xff] }
 0xd64   :  { %7764 = vmatprep.subr.mxu0 %v7591_v19  ;;  %v7570_v19 = vld [vmem:[%s13432_s6 + $0x2f0] sm:$0xff] }
 0xe07   :  { %v10013_v54 = vpop.f32.mrf.mxu1 }
 0xe09   :  { %v7417_v41 = vpop.f32.mrf.mxu1 }
 0xe0c   :  { %v9741_v51 = vpop.f32.mrf.mxu0 }
 0xe0e   :  { %v9742_v58 = vpop.f32.mrf.mxu0 }
 0xe0f   :  { %v9743_v52 = vadd.f32 %v9742_v58, %v9741_v51  ;;  %v7561_v51 = vld [vmem:[%s13432_s6 + $0x2a8] sm:$0xff]  ;;  %v7560_v58 = vld [vmem:[%s13432_s6 + $0x2a0] sm:$0xff] }
 0xe10   :  { %v9744_v10 = vpop.f32.mrf.mxu0 }
 0xe11   :  { %v7418_v50 = vadd.f32 %v9743_v52, %v7417_v41  ;;  %v7562_v52 = vld [vmem:[%s13432_s6 + $0x2b0] sm:$0xff]  ;;  %v7553_v41 = vld [vmem:[%s13432_s6 + $0x268] sm:$0xff] }
 0xe12   :  { %v9745_v9 = vpop.f32.mrf.mxu0 }
 0xe13   :  { %v9746_v8 = vadd.f32 %v9745_v9, %v9744_v10  ;;  %v7438_v59 = vmul.f32 %v7418_v50, %v7418_v50  ;;  %v7429_v23 = vsel %vm7428_vm5, %v7418_v50, 0.0  ;;  %v7551_v10 = vld [vmem:[%s13432_s6 + $0x258] sm:$0xff]  ;;  %v7552_v9 = vld [vmem:[%s13432_s6 + $0x260] sm:$0xff] }
 0xe15   :  { %v7423_v7 = vadd.f32 %v10013_v54, %v9746_v8  ;;  %v7440_v33 = vsel %vm7428_vm5, %v7438_v59, 0.0  ;;  %v7563_v54 = vld [vmem:[%s13432_s6 + $0x2b8] sm:$0xff]  ;;  %v7541_v8 = vld [vmem:[%s13432_s6 + $0x208] sm:$0xff]  ;;  %v7540_v59 = vld [vmem:[%s13432_s6 + $0x200] sm:$0xff] }
 0xe17   :  { %v7430_v21 = vsel %vm7428_vm5, %v7423_v7, 0.0  ;;  %v7439_v47 = vmul.f32 %v7423_v7, %v7423_v7 }
 0xe18   :  { %v7431_v37 = vadd.f32 %v7430_v21, %v7429_v23  ;;  %v7542_v21 = vld [vmem:[%s13432_s6 + $0x210] sm:$0xff]  ;;  %v7533_v23 = vld [vmem:[%s13432_s6 + $0x1c8] sm:$0xff] }
 0xe19   :  { %v7441_v38 = vsel %vm7428_vm5, %v7439_v47, 0.0  ;;  %v7531_v47 = vld [vmem:[%s13432_s6 + $0x1b8] sm:$0xff] }
 0xe1a   :  { %v7432_v45 = vrot.slane %v7431_v37, 4  ;;  %v7442_v25 = vadd.f32 %v7441_v38, %v7440_v33  ;;  %v7532_v38 = vld [vmem:[%s13432_s6 + $0x1c0] sm:$0xff]  ;;  %v7521_v33 = vld [vmem:[%s13432_s6 + $0x168] sm:$0xff] }
 0xe1c   :  { %v7433_v13 = vadd.f32 %v7432_v45, %v7431_v37  ;;  %v7443_v55 = vrot.slane %v7442_v25, 4  ;;  %v7530_v37 = vld [vmem:[%s13432_s6 + $0x1b0] sm:$0xff]  ;;  %v7523_v45 = vld [vmem:[%s13432_s6 + $0x178] sm:$0xff] }
 0xe1e   :  { %v7434_v24 = vrot.slane %v7433_v13, 2  ;;  %v7444_v16 = vadd.f32 %v7443_v55, %v7442_v25  ;;  %v7520_v25 = vld [vmem:[%s13432_s6 + $0x160] sm:$0xff]  ;;  %v7511_v55 = vld [vmem:[%s13432_s6 + $0x118] sm:$0xff] }
 0xe20   :  { %v7435_v43 = vadd.f32 %v7434_v24, %v7433_v13  ;;  %v7445_v28 = vrot.slane %v7444_v16, 2  ;;  %v7522_v13 = vld [vmem:[%s13432_s6 + $0x170] sm:$0xff]  ;;  %v7513_v24 = vld [vmem:[%s13432_s6 + $0x128] sm:$0xff] }
 0xe22   :  { %v7436_v34 = vrot.slane %v7435_v43, 1  ;;  %v7446_v56 = vadd.f32 %v7445_v28, %v7444_v16  ;;  %v7510_v16 = vld [vmem:[%s13432_s6 + $0x110] sm:$0xff]  ;;  %v7501_v28 = vld [vmem:[%s13432_s6 + $0xc8] sm:$0xff] }
 0xe24   :  { %v7437_v49 = vadd.f32 %v7436_v34, %v7435_v43  ;;  %v7447_v42 = vrot.slane %v7446_v56, 1  ;;  %v7512_v43 = vld [vmem:[%s13432_s6 + $0x120] sm:$0xff]  ;;  %v7503_v34 = vld [vmem:[%s13432_s6 + $0xd8] sm:$0xff] }
 0xe26   :  { %v7448_v46 = vadd.f32 %v7447_v42, %v7446_v56  ;;  %v7449_v12 = vmul.f32 0.0625, %v7437_v49  ;;  %v7500_v56 = vld [vmem:[%s13432_s6 + $0xc0] sm:$0xff]  ;;  %v7502_v49 = vld [vmem:[%s13432_s6 + $0xd0] sm:$0xff]  ;;  %v7491_v42 = vld [vmem:[%s13432_s6 + $0x78] sm:$0xff] }
 0xe28   :  { %v7450_v44 = vmul.f32 0.0625, %v7448_v46  ;;  %v7451_v6 = vmul.f32 %v7449_v12, %v7449_v12  ;;  %v7454_v61 = vsub.f32 %v7418_v50, %v7449_v12  ;;  %v7455_v53 = vsub.f32 %v7423_v7, %v7449_v12  ;;  %v7550_v50 = vld [vmem:[%s13432_s6 + $0x250] sm:$0xff]  ;;  %v7543_v7 = vld [vmem:[%s13432_s6 + $0x218] sm:$0xff]  ;;  %v7493_v46 = vld [vmem:[%s13432_s6 + $0x88] sm:$0xff] }
 0xe29   :  { %v7490_v12 = vld [vmem:[%s13432_s6 + $0x70] sm:$0xff] }
 0xe2a   :  { %v7452_v1 = vsub.f32 %v7450_v44, %v7451_v6  ;;  %v7492_v44 = vld [vmem:[%s13432_s6 + $0x80] sm:$0xff]  ;;  %v7481_v6 = vld [vmem:[%s13432_s6 + $0x28] sm:$0xff] }
 0xe2c   :  { %v7453_v35 = vmax.f32 %v7452_v1, 0.0  ;;  %v7483_v1 = vld [vmem:[%s13432_s6 + $0x38] sm:$0xff] }
 0xe2e   :  { %v7456_v30 = vadd.f32 1e-05, %v7453_v35  ;;  %v7480_v35 = vld [vmem:[%s13432_s6 + $0x20] sm:$0xff] }
 0xe30   :  { %10107 = vrsqrt.f32 %v7456_v30  ;;  %v7482_v30 = vld [vmem:[%s13432_s6 + $0x30] sm:$0xff] }
 0xe3d   :  { %v10108_v11 = vpop.eup %10107 }
 0xe3e   :  { %v7458_v60 = vmul.f32 %v10108_v11, %v7454_v61  ;;  %v7459_v0 = vmul.f32 %v10108_v11, %v7455_v53  ;;  %v7595_v61 = vld [vmem:[%s13432_s6 + $0x3b8] sm:$0xff]  ;;  %v7594_v11 = vld [vmem:[%s13432_s6 + $0x3b0] sm:$0xff]  ;;  %v7584_v53 = vld [vmem:[%s13432_s6 + $0x360] sm:$0xff] }
 0xe40   :  { %v7466_v39 = vmul.f32 %v9062_v27, %v7458_v60  ;;  %v7467_v4 = vmul.f32 %v9062_v27, %v7459_v0  ;;  %v7585_v27 = vld [vmem:[%s13432_s6 + $0x368] sm:$0xff]  ;;  %v7575_v60 = vld [vmem:[%s13432_s6 + $0x318] sm:$0xff] }
 0xe41   :  { %v7565_v0 = vld [vmem:[%s13432_s6 + $0x2c8] sm:$0xff] }
 0xe42   :  { %v12864_v3 = vadd.f32 %v9063_v22, %v7466_v39  ;;  %v12880_v31 = vadd.f32 %v9063_v22, %v7467_v4  ;;  %v7574_v22 = vld [vmem:[%s13432_s6 + $0x310] sm:$0xff]  ;;  %v7564_v39 = vld [vmem:[%s13432_s6 + $0x2c0] sm:$0xff]  ;;  %v7535_v4 = vld [vmem:[%s13432_s6 + $0x1d8] sm:$0xff] }
 0xe44   :  { %9064 = vmatmul.mubr.msk.f32.vlgmr.msra.gmra.mxu0 %vm7428_vm5, %v12864_v3  ;;  %9066 = vmatmul.mubr.msk.f32.vlgmr.msra.gmra.mxu1 %vm7428_vm5, %v12864_v3 }
 0xe45   :  { %7765 = vmatpush1.msra.mxu0 %v7590_v15  ;;  %7842 = vmatpush1.msra.mxu1 %v7592_v5  ;;  %v7555_v15 = vld [vmem:[%s13432_s6 + $0x278] sm:$0xff]  ;;  %v7554_v5 = vld [vmem:[%s13432_s6 + $0x270] sm:$0xff] }
 0xe46   :  { %7766 = vmatprep.subr.mxu0 %v7581_v26  ;;  %7843 = vmatprep.subr.mxu1 %v7583_v63  ;;  %v7545_v26 = vld [vmem:[%s13432_s6 + $0x228] sm:$0xff]  ;;  %v7544_v63 = vld [vmem:[%s13432_s6 + $0x220] sm:$0xff] }
 0xe47   :  { %7767 = vmatpush1.msra.mxu0 %v7580_v36  ;;  %7844 = vmatpush1.msra.mxu1 %v7582_v2  ;;  %v7534_v36 = vld [vmem:[%s13432_s6 + $0x1d0] sm:$0xff]  ;;  %v7525_v2 = vld [vmem:[%s13432_s6 + $0x188] sm:$0xff] }
 0xe48   :  { %7672 = vmatprep.mubr.f32.mxu0 %v13433_v40  ;;  %7749 = vmatprep.mubr.f32.mxu1 %v13433_v40 }
 0xe49   :  { %7768 = vmatprep.subr.mxu0 %v7571_v29  ;;  %7845 = vmatprep.subr.mxu1 %v7573_v14  ;;  %v7524_v29 = vld [vmem:[%s13432_s6 + $0x180] sm:$0xff]  ;;  %v7515_v14 = vld [vmem:[%s13432_s6 + $0x138] sm:$0xff] }
 0xe4a   :  { %9065 = vmatmul.mubr.msk.f32.gmra.mxu0 %vm7428_vm5, %v12880_v31  ;;  %9067 = vmatmul.mubr.msk.f32.gmra.mxu1 %vm7428_vm5, %v12880_v31 }
 0xe4b   :  { %7769 = vmatpush1.msra.mxu0 %v7570_v19  ;;  %7846 = vmatpush1.msra.mxu1 %v7572_v48  ;;  %v7514_v19 = vld [vmem:[%s13432_s6 + $0x130] sm:$0xff]  ;;  %v7505_v48 = vld [vmem:[%s13432_s6 + $0xe8] sm:$0xff] }
 0xe4c   :  { %7770 = vmatprep.subr.mxu0 %v7561_v51  ;;  %7847 = vmatprep.subr.mxu1 %v7563_v54  ;;  %v7504_v51 = vld [vmem:[%s13432_s6 + $0xe0] sm:$0xff]  ;;  %v7495_v54 = vld [vmem:[%s13432_s6 + $0x98] sm:$0xff] }
 0xe4d   :  { %7771 = vmatpush1.msra.mxu0 %v7560_v58  ;;  %7848 = vmatpush1.msra.mxu1 %v7562_v52  ;;  %v7494_v58 = vld [vmem:[%s13432_s6 + $0x90] sm:$0xff]  ;;  %v7485_v52 = vld [vmem:[%s13432_s6 + $0x48] sm:$0xff] }
 0xe4e   :  { %7772 = vmatprep.subr.mxu0 %v7551_v10  ;;  %7849 = vmatprep.subr.mxu1 %v7553_v41  ;;  %v7484_v10 = vld [vmem:[%s13432_s6 + $0x40] sm:$0xff] }
 0xe4f   :  { %7773 = vmatpush1.msra.mxu0 %v7550_v50  ;;  %7850 = vmatpush1.msra.mxu1 %v7552_v9 }
 0xe50   :  { %7774 = vmatprep.subr.mxu0 %v7541_v8  ;;  %7851 = vmatprep.subr.mxu1 %v7543_v7 }
 0xe51   :  { %7775 = vmatpush1.msra.mxu0 %v7540_v59  ;;  %7852 = vmatpush1.msra.mxu1 %v7542_v21 }
 0xe52   :  { %7776 = vmatprep.subr.mxu0 %v7531_v47  ;;  %7853 = vmatprep.subr.mxu1 %v7533_v23 }
 0xe53   :  { %7777 = vmatpush1.msra.mxu0 %v7530_v37  ;;  %7854 = vmatpush1.msra.mxu1 %v7532_v38 }
 0xe54   :  { %7778 = vmatprep.subr.mxu0 %v7521_v33  ;;  %7855 = vmatprep.subr.mxu1 %v7523_v45 }
 0xe55   :  { %7779 = vmatpush1.msra.mxu0 %v7520_v25  ;;  %7856 = vmatpush1.msra.mxu1 %v7522_v13 }
 0xe56   :  { %7780 = vmatprep.subr.mxu0 %v7511_v55  ;;  %7857 = vmatprep.subr.mxu1 %v7513_v24 }
 0xe57   :  { %7781 = vmatpush1.msra.mxu0 %v7510_v16  ;;  %7858 = vmatpush1.msra.mxu1 %v7512_v43 }
 0xe58   :  { %7782 = vmatprep.subr.mxu0 %v7501_v28  ;;  %7859 = vmatprep.subr.mxu1 %v7503_v34 }
 0xe59   :  { %7783 = vmatpush1.msra.mxu0 %v7500_v56  ;;  %7860 = vmatpush1.msra.mxu1 %v7502_v49 }
 0xe5a   :  { %7784 = vmatprep.subr.mxu0 %v7491_v42  ;;  %7861 = vmatprep.subr.mxu1 %v7493_v46 }
 0xe5b   :  { %7785 = vmatpush1.msra.mxu0 %v7490_v12  ;;  %7862 = vmatpush1.msra.mxu1 %v7492_v44 }
 0xe5c   :  { %7786 = vmatprep.subr.mxu0 %v7481_v6  ;;  %7863 = vmatprep.subr.mxu1 %v7483_v1 }
 0xe5d   :  { %7787 = vmatpush1.msra.mxu0 %v7480_v35  ;;  %7820 = vmatprep.mubr.f32.mxu0 %v13433_v40 }
 0xe5e   :  { %7864 = vmatpush1.msra.mxu1 %v7482_v30  ;;  %7897 = vmatprep.mubr.f32.mxu1 %v13433_v40 }
 0xe5f   :  { %9068 = vmatmul.mubr.msk.f32.vlgmr.msra.gmra.mxu0 %vm7428_vm5, %v12864_v3  ;;  %9070 = vmatmul.mubr.msk.f32.vlgmr.msra.gmra.mxu1 %vm7428_vm5, %v12864_v3 }
 0xe60   :  { %7918 = vmatprep.subr.mxu0 %v7595_v61  ;;  %7826 = vmatprep.mubr.f32.mxu0 %v13433_v40 }
 0xe61   :  { %7919 = vmatpush1.msra.mxu0 %v7594_v11  ;;  %7903 = vmatprep.mubr.f32.mxu1 %v13433_v40 }
 0xe62   :  { %7920 = vmatprep.subr.mxu0 %v7585_v27 }
 0xe63   :  { %7921 = vmatpush1.msra.mxu0 %v7584_v53  ;;  %9071 = vmatmul.mubr.msk.f32.gmra.mxu1 %vm7428_vm5, %v12880_v31 }
 0xe64   :  { %9069 = vmatmul.mubr.msk.f32.gmra.mxu0 %vm7428_vm5, %v12880_v31  ;;  %7922 = vmatprep.subr.mxu0 %v7575_v60 }
 0xe65   :  { %7923 = vmatpush1.msra.mxu0 %v7574_v22  ;;  %7974 = vmatprep.mubr.f32.mxu0 %v13433_v40 }
 0xe66   :  { %7924 = vmatprep.subr.mxu0 %v7565_v0 }
 0xe67   :  { %7925 = vmatpush1.msra.mxu0 %v7564_v39 }
 0xe68   :  { %7926 = vmatprep.subr.mxu0 %v7555_v15 }
 0xe69   :  { %7927 = vmatpush1.msra.mxu0 %v7554_v5 }
 0xe6a   :  { %7928 = vmatprep.subr.mxu0 %v7545_v26 }
 0xe6b   :  { %7929 = vmatpush1.msra.mxu0 %v7544_v63 }
 0xe6c   :  { %7930 = vmatprep.subr.mxu0 %v7535_v4 }
 0xe6d   :  { %7931 = vmatpush1.msra.mxu0 %v7534_v36 }
 0xe6e   :  { %7932 = vmatprep.subr.mxu0 %v7525_v2 }
 0xe6f   :  { %7933 = vmatpush1.msra.mxu0 %v7524_v29 }
 0xe70   :  { %7934 = vmatprep.subr.mxu0 %v7515_v14 }
 0xe71   :  { %7935 = vmatpush1.msra.mxu0 %v7514_v19 }
 0xe72   :  { %7936 = vmatprep.subr.mxu0 %v7505_v48 }
 0xe73   :  { %7937 = vmatpush1.msra.mxu0 %v7504_v51 }
 0xe74   :  { %7938 = vmatprep.subr.mxu0 %v7495_v54 }
 0xe75   :  { %7939 = vmatpush1.msra.mxu0 %v7494_v58 }
 0xe76   :  { %7940 = vmatprep.subr.mxu0 %v7485_v52 }
 0xe77   :  { %7941 = vmatpush1.msra.mxu0 %v7484_v10 }
 0xe78   :  { %9072 = vmatmul.mubr.msk.f32.vlgmr.msra.gmra.mxu0 %vm7428_vm5, %v12864_v3 }
 0xe79   :  { %7980 = vmatprep.mubr.f32.mxu0 %v13433_v40 }
 0xe7c   :  { %9073 = vmatmul.mubr.msk.f32.gmra.mxu0 %vm7428_vm5, %v12880_v31 }
 0xf04   :  { %v12966_v41 = vpop.f32.mrf.mxu0  ;;  %v12968_v50 = vpop.f32.mrf.mxu1 }
 0xf05   :  { %v8061_v7 = vmul.f32 %v12966_v41, %v12966_v41  ;;  %v8063_v59 = vmul.f32 %v12968_v50, %v12968_v50 }
 0xf06   :  { %v12970_v9 = vpop.f32.mrf.mxu0  ;;  %v12972_v8 = vpop.f32.mrf.mxu1 }
 0xf07   :  { %v8062_v37 = vmul.f32 %v12970_v9, %v12970_v9  ;;  %v8064_v38 = vmul.f32 %v12972_v8, %v12972_v8 }
 0xf0a   :  { %v12978_v3 = vpop.f32.mrf.mxu0  ;;  %v12980_v40 = vpop.f32.mrf.mxu1 }
 0xf0b   :  { %v7991_v31 = vadd.f32 %v12978_v3, %v12966_v41  ;;  %v8071_v21 = vmul.f32 %v12978_v3, %v12978_v3  ;;  %v8005_v47 = vadd.f32 %v12980_v40, %v12968_v50  ;;  %v8073_v23 = vmul.f32 %v12980_v40, %v12980_v40 }
 0xf0c   :  { %v12994_v33 = vpop.f32.mrf.mxu0  ;;  %v12996_v45 = vpop.f32.mrf.mxu1 }
 0xf0d   :  { %v7992_v25 = vrot.slane %v7991_v31, 4  ;;  %v8081_v13 = vadd.f32 %v8071_v21, %v8061_v7  ;;  %v8006_v55 = vrot.slane %v8005_v47, 4  ;;  %v8095_v24 = vadd.f32 %v8073_v23, %v8063_v59 }
 0xf0e   :  { %v7998_v16 = vadd.f32 %v12994_v33, %v12970_v9  ;;  %v8072_v43 = vmul.f32 %v12994_v33, %v12994_v33  ;;  %v8012_v28 = vadd.f32 %v12996_v45, %v12972_v8  ;;  %v8074_v34 = vmul.f32 %v12996_v45, %v12996_v45 }
 0xf0f   :  { %v7993_v56 = vadd.f32 %v7992_v25, %v7991_v31  ;;  %v8082_v49 = vrot.slane %v8081_v13, 4  ;;  %v8007_v42 = vadd.f32 %v8006_v55, %v8005_v47  ;;  %v8096_v46 = vrot.slane %v8095_v24, 4 }
 0xf10   :  { %v7999_v12 = vrot.slane %v7998_v16, 4  ;;  %v8088_v44 = vadd.f32 %v8072_v43, %v8062_v37  ;;  %v8013_v6 = vrot.slane %v8012_v28, 4  ;;  %v8102_v1 = vadd.f32 %v8074_v34, %v8064_v38 }
 0xf11   :  { %v7994_v35 = vrot.slane %v7993_v56, 2  ;;  %v8083_v30 = vadd.f32 %v8082_v49, %v8081_v13  ;;  %v8008_v61 = vrot.slane %v8007_v42, 2  ;;  %v8097_v11 = vadd.f32 %v8096_v46, %v8095_v24 }
 0xf12   :  { %v8000_v27 = vadd.f32 %v7999_v12, %v7998_v16  ;;  %v8089_v53 = vrot.slane %v8088_v44, 4  ;;  %v8014_v60 = vadd.f32 %v8013_v6, %v8012_v28  ;;  %v8103_v22 = vrot.slane %v8102_v1, 4 }
 0xf13   :  { %v7995_v0 = vadd.f32 %v7994_v35, %v7993_v56  ;;  %v8084_v39 = vrot.slane %v8083_v30, 2  ;;  %v8009_v15 = vadd.f32 %v8008_v61, %v8007_v42  ;;  %v8098_v5 = vrot.slane %v8097_v11, 2 }
 0xf14   :  { %v8001_v26 = vrot.slane %v8000_v27, 2  ;;  %v8090_v63 = vadd.f32 %v8089_v53, %v8088_v44  ;;  %v8015_v4 = vrot.slane %v8014_v60, 2  ;;  %v8104_v36 = vadd.f32 %v8103_v22, %v8102_v1 }
 0xf15   :  { %v7996_v2 = vrot.slane %v7995_v0, 1  ;;  %v8085_v29 = vadd.f32 %v8084_v39, %v8083_v30  ;;  %v8010_v14 = vrot.slane %v8009_v15, 1  ;;  %v8099_v19 = vadd.f32 %v8098_v5, %v8097_v11  ;;  %v13030_v5 = vld [vmem:[#allocation23] sm:$0xff] }
 0xf16   :  { %v8002_v48 = vadd.f32 %v8001_v26, %v8000_v27  ;;  %v8091_v51 = vrot.slane %v8090_v63, 2  ;;  %v8016_v54 = vadd.f32 %v8015_v4, %v8014_v60  ;;  %v8105_v58 = vrot.slane %v8104_v36, 2 }
 0xf17   :  { %v7997_v52 = vadd.f32 %v7996_v2, %v7995_v0  ;;  %v8086_v10 = vrot.slane %v8085_v29, 1  ;;  %v8011_v7 = vadd.f32 %v8010_v14, %v8009_v15  ;;  %v8100_v59 = vrot.slane %v8099_v19, 1 }
 0xf18   :  { %v8003_v31 = vrot.slane %v8002_v48, 1  ;;  %v8092_v21 = vadd.f32 %v8091_v51, %v8090_v63  ;;  %v8017_v47 = vrot.slane %v8016_v54, 1  ;;  %v8106_v23 = vadd.f32 %v8105_v58, %v8104_v36  ;;  %v13034_v36 = vld [vmem:[#allocation25] sm:$0xff] }
 0xf19   :  { %v8087_v37 = vadd.f32 %v8086_v10, %v8085_v29  ;;  %v13006_v38 = vmul.f32 0.0625, %v7997_v52  ;;  %v8101_v25 = vadd.f32 %v8100_v59, %v8099_v19  ;;  %v13008_v13 = vmul.f32 0.0625, %v8011_v7 }
 0xf1a   :  { %v8004_v55 = vadd.f32 %v8003_v31, %v8002_v48  ;;  %v8093_v24 = vrot.slane %v8092_v21, 1  ;;  %v8018_v16 = vadd.f32 %v8017_v47, %v8016_v54  ;;  %v8107_v43 = vrot.slane %v8106_v23, 1 }
 0xf1b   :  { %v8161_v28 = vmul.f32 0.0625, %v8087_v37  ;;  %v8171_v34 = vmul.f32 %v13006_v38, %v13006_v38  ;;  %v8163_v56 = vmul.f32 0.0625, %v8101_v25  ;;  %v8173_v49 = vmul.f32 %v13008_v13, %v13008_v13 }
 0xf1c   :  { %v8094_v46 = vadd.f32 %v8093_v24, %v8092_v21  ;;  %v13014_v12 = vmul.f32 0.0625, %v8004_v55  ;;  %v8108_v44 = vadd.f32 %v8107_v43, %v8106_v23  ;;  %v13016_v1 = vmul.f32 0.0625, %v8018_v16 }
 0xf1d   :  { %v8181_v42 = vsub.f32 %v8161_v28, %v8171_v34  ;;  %v8183_v6 = vsub.f32 %v8163_v56, %v8173_v49  ;;  %v13052_v52 = vrot.slane %v13030_v5, %v13430_v20  ;;  %v13056_v59 = vrot.slane %v13034_v36, %v13430_v20  ;;  %v13436_v56 = vld [vmem:[#allocation55_spill] sm:$0xff] }
 0xf1e   :  { %v8162_v30 = vmul.f32 0.0625, %v8094_v46  ;;  %v8172_v61 = vmul.f32 %v13014_v12, %v13014_v12  ;;  %v8164_v60 = vmul.f32 0.0625, %v8108_v44  ;;  %v8174_v22 = vmul.f32 %v13016_v1, %v13016_v1  ;;  %v13076_v44 = vld [vmem:[#allocation26] sm:$0xff] }
 0xf1f   :  { %v8191_v35 = vmax.f32 %v8181_v42, 0.0  ;;  %v13020_v11 = vpop.f32.mrf.mxu0  ;;  %v13022_v27 = vpop.f32.mrf.mxu1  ;;  %v8193_v53 = vmax.f32 %v8183_v6, 0.0  ;;  %v13060_v55 = vrot.slane %v13030_v5, %v13429_v32  ;;  %v13064_v24 = vrot.slane %v13034_v36, %v13429_v32 }
 0xf20   :  { %13435 = vst [vmem:[#allocation62_spill] sm:$0xff] %v13022_v27  ;;  %v8182_v63 = vsub.f32 %v8162_v30, %v8172_v61  ;;  %v8184_v2 = vsub.f32 %v8164_v60, %v8174_v22  ;;  %v8067_v29 = vmul.f32 %v13022_v27, %v13022_v27  ;;  %v8065_v51 = vmul.f32 %v13020_v11, %v13020_v11 }
 0xf21   :  { %v8221_v0 = vadd.f32 1e-05, %v8191_v35  ;;  %v13026_v39 = vpop.f32.mrf.mxu0  ;;  %v13028_v15 = vpop.f32.mrf.mxu1  ;;  %v8223_v26 = vadd.f32 1e-05, %v8193_v53  ;;  %v13070_v34 = vrot.slane %v13030_v5, %v13431_v57  ;;  %v13074_v49 = vrot.slane %v13030_v5, %v13436_v56 }
 0xf22   :  { %v8192_v31 = vmax.f32 %v8182_v63, 0.0  ;;  %v8194_v23 = vmax.f32 %v8184_v2, 0.0  ;;  %v13080_v35 = vrot.slane %v13034_v36, %v13431_v57  ;;  %v13088_v63 = vrot.slane %v13034_v36, %v13436_v56 }
 0xf23   :  { %v13032_v4 = vpop.f32.mrf.mxu1  ;;  %10109 = vrsqrt.f32 %v8221_v0 }
 0xf24   :  { %v13038_v14 = vpop.f32.mrf.mxu0  ;;  %v8033_v19 = vadd.f32 %v13032_v4, %v13022_v27  ;;  %v8077_v48 = vmul.f32 %v13032_v4, %v13032_v4  ;;  %10111 = vrsqrt.f32 %v8223_v26  ;;  %v8222_v6 = vadd.f32 1e-05, %v8192_v31 }
 0xf25   :  { %v8019_v54 = vadd.f32 %v13038_v14, %v13020_v11  ;;  %v8075_v58 = vmul.f32 %v13038_v14, %v13038_v14  ;;  %v13082_v53 = vpop.f32.mrf.mxu1  ;;  %v8224_v60 = vadd.f32 1e-05, %v8194_v23 }
 0xf26   :  { %v8034_v10 = vrot.slane %v8033_v19, 4  ;;  %v8123_v7 = vadd.f32 %v8077_v48, %v8067_v29  ;;  %v13066_v28 = vpop.f32.mrf.mxu0  ;;  %13437 = vst [vmem:[#allocation60_spill] sm:$0xff] %v13082_v53  ;;  %v13094_v48 = vrot.slane %v13076_v44, %v13430_v20  ;;  %10113 = vrsqrt.f32 %v8222_v6 }
 0xf27   :  { %v8020_v21 = vrot.slane %v8019_v54, 4  ;;  %v8109_v47 = vadd.f32 %v8075_v58, %v8065_v51  ;;  %v8026_v26 = vadd.f32 %v13066_v28, %v13026_v39  ;;  %v13098_v51 = vrot.slane %v13076_v44, %v13429_v32  ;;  %v13439_v32 = vld [vmem:[#allocation56_spill] sm:$0xff] }
 0xf28   :  { %v8035_v37 = vadd.f32 %v8034_v10, %v8033_v19  ;;  %v8124_v25 = vrot.slane %v8123_v7, 4  ;;  %v8076_v19 = vmul.f32 %v13066_v28, %v13066_v28  ;;  %v8040_v58 = vadd.f32 %v13082_v53, %v13028_v15 }
 0xf29   :  { %v8021_v16 = vadd.f32 %v8020_v21, %v8019_v54  ;;  %v8110_v43 = vrot.slane %v8109_v47, 4  ;;  %v13102_v54 = vrot.slane %v13076_v44, %v13431_v57  ;;  %v8066_v10 = vmul.f32 %v13026_v39, %v13026_v39 }
 0xf2a   :  { %v8036_v42 = vrot.slane %v8035_v37, 2  ;;  %v8125_v46 = vadd.f32 %v8124_v25, %v8123_v7  ;;  %10115 = vrsqrt.f32 %v8224_v60  ;;  %v13110_v21 = vrot.slane %v13076_v44, %v13436_v56 }
 0xf2b   :  { %v8022_v30 = vrot.slane %v8021_v16, 2  ;;  %v8111_v61 = vadd.f32 %v8110_v43, %v8109_v47  ;;  %v13114_v47 = vrot.slane %v13030_v5, %v13439_v32  ;;  %v8027_v23 = vrot.slane %v8026_v26, 4 }
 0xf2c   :  { %v8037_v22 = vadd.f32 %v8036_v42, %v8035_v37  ;;  %v8126_v0 = vrot.slane %v8125_v46, 2  ;;  %13438 = vst [vmem:[#allocation63_spill] sm:$0xff] %v13110_v21  ;;  %v8116_v43 = vadd.f32 %v8076_v19, %v8066_v10  ;;  %v13126_v56 = vrot.slane %v13034_v36, %v12351_v17 }
 0xf2d   :  { %v8023_v2 = vadd.f32 %v8022_v30, %v8021_v16  ;;  %v8112_v29 = vrot.slane %v8111_v61, 2  ;;  %v13118_v16 = vrot.slane %v13034_v36, %v13439_v32  ;;  %v8041_v6 = vrot.slane %v8040_v58, 4 }
 0xf2e   :  { %v8038_v7 = vrot.slane %v8037_v22, 1  ;;  %v8127_v31 = vadd.f32 %v8126_v0, %v8125_v46  ;;  %v13122_v46 = vrot.slane %v13030_v5, %v12351_v17  ;;  %13441 = vst [vmem:[#allocation64_spill] sm:$0xff] %v13126_v56  ;;  %v8078_v30 = vmul.f32 %v13082_v53, %v13082_v53 }
 0xf2f   :  { %v8024_v37 = vrot.slane %v8023_v2, 1  ;;  %v8113_v25 = vadd.f32 %v8112_v29, %v8111_v61  ;;  %v8201_v61 = vsub.f32 %v12966_v41, %v13006_v38  ;;  %v13134_v29 = vrot.slane %v13030_v5, %v12344_v18 }
 0xf30   :  { %v10110_v42 = vpop.eup %10109  ;;  %13440 = vst [vmem:[#allocation65_spill] sm:$0xff] %v13122_v46  ;;  %v8039_v60 = vadd.f32 %v8038_v7, %v8037_v22  ;;  %v8128_v0 = vrot.slane %v8127_v31, 1  ;;  %v8211_v19 = vsub.f32 %v12978_v3, %v13006_v38  ;;  %v8203_v10 = vsub.f32 %v12968_v50, %v13008_v13 }
 0xf31   :  { %13442 = vst [vmem:[#allocation66_spill] sm:$0xff] %v13134_v29  ;;  %v8068_v57 = vmul.f32 %v13028_v15, %v13028_v15  ;;  %v8028_v20 = vadd.f32 %v8027_v23, %v8026_v26  ;;  %v10112_v17 = vpop.eup %10111  ;;  %v8241_v21 = vmul.f32 %v10110_v42, %v8201_v61  ;;  %v8025_v56 = vadd.f32 %v8024_v37, %v8023_v2 }
 0xf32   :  { %v8114_v41 = vrot.slane %v8113_v25, 1  ;;  %v8117_v22 = vrot.slane %v8116_v43, 4  ;;  %v8251_v7 = vmul.f32 %v10110_v42, %v8211_v19  ;;  %v8213_v53 = vsub.f32 %v12980_v40, %v13008_v13 }
 0xf33   :  { %v8042_v29 = vadd.f32 %v8041_v6, %v8040_v58  ;;  %v8130_v46 = vadd.f32 %v8078_v30, %v8068_v57  ;;  %v8129_v27 = vadd.f32 %v8128_v0, %v8127_v31  ;;  %v13144_v3 = vmul.f32 0.0625, %v8039_v60 }
 0xf34   :  { %v13148_v50 = vrot.slane %v13034_v36, %v12344_v18  ;;  %v13152_v38 = vrot.slane %v13030_v5, %v13423_v62  ;;  %v8243_v26 = vmul.f32 %v10112_v17, %v8203_v10  ;;  %v8253_v2 = vmul.f32 %v10112_v17, %v8213_v53 }
 0xf35   :  { %v8029_v23 = vrot.slane %v8028_v20, 2  ;;  %v13158_v40 = vrot.slane %v13034_v36, %v13423_v62  ;;  %v8313_v57 = vmul.f32 %v13052_v52, %v8241_v21  ;;  %v8115_v13 = vadd.f32 %v8114_v41, %v8113_v25 }
 0xf36   :  { %v13161_v58 = vmul.f32 0.0625, %v8025_v56  ;;  %v8118_v31 = vadd.f32 %v8117_v22, %v8116_v43  ;;  %v8323_v42 = vmul.f32 %v13052_v52, %v8251_v7  ;;  %v8043_v6 = vrot.slane %v8042_v29, 2  ;;  %v10114_v43 = vpop.eup %10113 }
 0xf37   :  { %v8131_v5 = vrot.slane %v8130_v46, 4  ;;  %v13168_v17 = vrot.slane %v13076_v44, %v13439_v32  ;;  %v8202_v36 = vsub.f32 %v12970_v9, %v13014_v12  ;;  %v8212_v53 = vsub.f32 %v12994_v33, %v13014_v12  ;;  %v10116_v60 = vpop.eup %10115 }
 0xf38   :  { %v13154_v37 = vpop.f32.mrf.mxu0  ;;  %v8167_v21 = vmul.f32 0.0625, %v8129_v27  ;;  %v8177_v25 = vmul.f32 %v13144_v3, %v13144_v3  ;;  %v8315_v52 = vmul.f32 %v13060_v55, %v8243_v26  ;;  %v8325_v56 = vmul.f32 %v13060_v55, %v8253_v2 }
 0xf39   :  { %v8204_v61 = vsub.f32 %v12972_v8, %v13016_v1  ;;  %v8030_v32 = vadd.f32 %v8029_v23, %v8028_v20  ;;  %v13181_v0 = vadd.f32 %v13056_v59, %v8313_v57  ;;  %v8165_v9 = vmul.f32 0.0625, %v8115_v13 }
 0xf3a   :  { %v13164_v30 = vpop.f32.mrf.mxu0  ;;  %v8175_v33 = vmul.f32 %v13161_v58, %v13161_v58  ;;  %v8119_v12 = vrot.slane %v8118_v31, 2  ;;  %v13186_v27 = vadd.f32 %v13056_v59, %v8323_v42  ;;  %v8214_v19 = vsub.f32 %v12996_v45, %v13016_v1 }
 0xf3b   :  { %v8044_v55 = vadd.f32 %v8043_v6, %v8042_v29  ;;  %v8132_v10 = vadd.f32 %v8131_v5, %v8130_v46  ;;  %v8242_v20 = vmul.f32 %v10114_v43, %v8202_v36  ;;  %v8252_v8 = vmul.f32 %v10114_v43, %v8212_v53 }
 0xf3c   :  { %v13190_v41 = vpop.f32.mrf.mxu0  ;;  %v8185_v22 = vsub.f32 %v8165_v9, %v8175_v33  ;;  %v8187_v7 = vsub.f32 %v8167_v21, %v8177_v25  ;;  %v13193_v26 = vadd.f32 %v13064_v24, %v8315_v52  ;;  %v13196_v2 = vadd.f32 %v13064_v24, %v8325_v56 }
 0xf3d   :  { %v8244_v23 = vmul.f32 %v10116_v60, %v8204_v61  ;;  %v8031_v59 = vrot.slane %v8030_v32, 1  ;;  %v8405_v57 = vmax.f32 %v13181_v0, 0.0  ;;  %v8254_v13 = vmul.f32 %v10116_v60, %v8214_v19 }
 0xf3e   :  { %v8195_v45 = vmax.f32 %v8185_v22, 0.0  ;;  %v8120_v1 = vadd.f32 %v8119_v12, %v8118_v31  ;;  %v8197_v46 = vmax.f32 %v8187_v7, 0.0  ;;  %v8045_v42 = vrot.slane %v8044_v55, 1  ;;  %v13199_v5 = vpop.f32.mrf.mxu0 }
 0xf3f   :  { %v8032_v29 = vadd.f32 %v8031_v59, %v8030_v32  ;;  %v8133_v6 = vrot.slane %v8132_v10, 2  ;;  %v8314_v53 = vmul.f32 %v13070_v34, %v8242_v20  ;;  %v8047_v56 = vadd.f32 %v13190_v41, %v13154_v37 }
 0xf40   :  { %v8225_v21 = vadd.f32 1e-05, %v8195_v45  ;;  %v8121_v24 = vrot.slane %v8120_v1, 1  ;;  %v8046_v43 = vadd.f32 %v8045_v42, %v8044_v55  ;;  %v8079_v61 = vmul.f32 %v13190_v41, %v13190_v41 }
 0xf41   :  { %v13203_v25 = vmul.f32 0.0625, %v8032_v29  ;;  %v8134_v52 = vadd.f32 %v8133_v6, %v8132_v10  ;;  %v8054_v32 = vadd.f32 %v13199_v5, %v13164_v30  ;;  %v8324_v60 = vmul.f32 %v13070_v34, %v8252_v8 }
 0xf42   :  { %10117 = vrsqrt.f32 %v8225_v21  ;;  %v8122_v31 = vadd.f32 %v8121_v24, %v8120_v1  ;;  %v8227_v0 = vadd.f32 1e-05, %v8197_v46  ;;  %v8069_v33 = vmul.f32 %v13154_v37, %v13154_v37 }
 0xf43   :  { %v8176_v9 = vmul.f32 %v13203_v25, %v13203_v25  ;;  %v8135_v19 = vrot.slane %v8134_v52, 1  ;;  %v13216_v55 = vmul.f32 0.0625, %v8046_v43  ;;  %v8048_v10 = vrot.slane %v8047_v56, 4 }
 0xf44   :  { %v8166_v12 = vmul.f32 0.0625, %v8122_v31  ;;  %v8137_v22 = vadd.f32 %v8079_v61, %v8069_v33  ;;  %v8055_v7 = vrot.slane %v8054_v32, 4  ;;  %v8080_v59 = vmul.f32 %v13199_v5, %v13199_v5 }
 0xf45   :  { %v8136_v8 = vadd.f32 %v8135_v19, %v8134_v52  ;;  %v8178_v45 = vmul.f32 %v13216_v55, %v13216_v55  ;;  %v8070_v1 = vmul.f32 %v13164_v30, %v13164_v30  ;;  %v8417_v46 = vmax.f32 %v13196_v2, 0.0 }
 0xf46   :  { %v8186_v34 = vsub.f32 %v8166_v12, %v8176_v9  ;;  %v8049_v29 = vadd.f32 %v8048_v10, %v8047_v56  ;;  %v8138_v42 = vrot.slane %v8137_v22, 4  ;;  %v8056_v6 = vadd.f32 %v8055_v7, %v8054_v32 }
 0xf47   :  { %10119 = vrsqrt.f32 %v8227_v0  ;;  %v8168_v24 = vmul.f32 0.0625, %v8136_v8  ;;  %v8144_v43 = vadd.f32 %v8080_v59, %v8070_v1  ;;  %v8316_v31 = vmul.f32 %v13074_v49, %v8244_v23 }
 0xf48   :  { %v8196_v21 = vmax.f32 %v8186_v34, 0.0  ;;  %v8050_v61 = vrot.slane %v8049_v29, 2  ;;  %v8139_v9 = vadd.f32 %v8138_v42, %v8137_v22  ;;  %v8057_v52 = vrot.slane %v8056_v6, 2 }
 0xf49   :  { %v8396_v33 = vadd.f32 %v13080_v35, %v8324_v60  ;;  %v8188_v19 = vsub.f32 %v8168_v24, %v8178_v45  ;;  %v8145_v20 = vrot.slane %v8144_v43, 4  ;;  %v8326_v36 = vmul.f32 %v13074_v49, %v8254_v13 }
 0xf4a   :  { %v8226_v12 = vadd.f32 1e-05, %v8196_v21  ;;  %v8051_v2 = vadd.f32 %v8050_v61, %v8049_v29  ;;  %v8140_v56 = vrot.slane %v8139_v9, 2  ;;  %v8058_v10 = vadd.f32 %v8057_v52, %v8056_v6 }
 0xf4b   :  { %v8425_v32 = vmin.f32 %v8405_v57, 6.0  ;;  %v8198_v0 = vmax.f32 %v8188_v19, 0.0  ;;  %v8146_v7 = vadd.f32 %v8145_v20, %v8144_v43  ;;  %v8386_v59 = vadd.f32 %v13080_v35, %v8314_v53 }
 0xf4c   :  { %10121 = vrsqrt.f32 %v8226_v12  ;;  %v8052_v23 = vrot.slane %v8051_v2, 1  ;;  %v8141_v34 = vadd.f32 %v8140_v56, %v8139_v9  ;;  %v8059_v22 = vrot.slane %v8058_v10, 1 }
 0xf4d   :  { %v8416_v8 = vmax.f32 %v8396_v33, 0.0  ;;  %v8215_v60 = vsub.f32 %v13038_v14, %v13161_v58  ;;  %v8228_v45 = vadd.f32 1e-05, %v8198_v0  ;;  %v8147_v1 = vrot.slane %v8146_v7, 2 }
 0xf4e   :  { %v8205_v49 = vsub.f32 %v13020_v11, %v13161_v58  ;;  %v8053_v13 = vadd.f32 %v8052_v23, %v8051_v2  ;;  %v8142_v57 = vrot.slane %v8141_v34, 1  ;;  %v8060_v29 = vadd.f32 %v8059_v22, %v8058_v10 }
 0xf4f   :  { %v10118_v42 = vpop.eup %10117  ;;  %v13443_v20 = vmax.f32 %v13186_v27, 0.0  ;;  %10123 = vrsqrt.f32 %v8228_v45  ;;  %v8148_v53 = vadd.f32 %v8147_v1, %v8146_v7  ;;  %v8437_v21 = vmin.f32 %v8417_v46, 6.0 }
 0xf50   :  { %v8255_v35 = vmul.f32 %v10118_v42, %v8215_v60  ;;  %v8245_v24 = vmul.f32 %v10118_v42, %v8205_v49  ;;  %v8143_v43 = vadd.f32 %v8142_v57, %v8141_v34  ;;  %v13236_v61 = vmul.f32 0.0625, %v8053_v13  ;;  %v13445_v13 = vld [vmem:[#allocation62_spill] sm:$0xff] }
 0xf51   :  { %v8435_v6 = vmin.f32 %v13443_v20, 6.0  ;;  %v8406_v14 = vmax.f32 %v8386_v59, 0.0  ;;  %v8149_v52 = vrot.slane %v8148_v53, 1  ;;  %v13239_v33 = vmul.f32 0.0625, %v8060_v29 }
 0xf52   :  { %v8327_v9 = vmul.f32 %v13114_v47, %v8255_v35  ;;  %v8436_v11 = vmin.f32 %v8416_v8, 6.0  ;;  %v8388_v58 = vadd.f32 %v13088_v63, %v8316_v31  ;;  %v8169_v12 = vmul.f32 0.0625, %v8143_v43  ;;  %v13446_v43 = vld [vmem:[#allocation65_spill] sm:$0xff] }
 0xf53   :  { %v8179_v27 = vmul.f32 %v13236_v61, %v13236_v61  ;;  %v8499_v19 = vmul.f32 %v13094_v48, %v8425_v32  ;;  %v8509_v46 = vmul.f32 %v13094_v48, %v8435_v6  ;;  %v13444_v2 = vmax.f32 %v13193_v26, 0.0 }
 0xf54   :  { %v8398_v10 = vadd.f32 %v13088_v63, %v8326_v36  ;;  %v10120_v0 = vpop.eup %10119  ;;  %v8317_v7 = vmul.f32 %v13114_v47, %v8245_v24  ;;  %v8150_v23 = vadd.f32 %v8149_v52, %v8148_v53  ;;  %v8180_v31 = vmul.f32 %v13239_v33, %v13239_v33 }
 0xf55   :  { %v8427_v56 = vmin.f32 %v13444_v2, 6.0  ;;  %v8189_v59 = vsub.f32 %v8169_v12, %v8179_v27  ;;  %v8511_v34 = vmul.f32 %v13098_v51, %v8437_v21  ;;  %v8426_v22 = vmin.f32 %v8406_v14, 6.0 }
 0xf56   :  { %v8399_v32 = vadd.f32 %v13118_v16, %v8327_v9  ;;  %v8217_v48 = vsub.f32 %v13032_v4, %v13144_v3  ;;  %v8510_v26 = vmul.f32 %v13102_v54, %v8436_v11  ;;  %v8408_v8 = vmax.f32 %v8388_v58, 0.0  ;;  %v13448_v9 = vld [vmem:[#allocation60_spill] sm:$0xff] }
 0xf57   :  { %v8199_v63 = vmax.f32 %v8189_v59, 0.0  ;;  %v8170_v36 = vmul.f32 0.0625, %v8150_v23  ;;  %v8418_v60 = vmax.f32 %v8398_v10, 0.0  ;;  %v8206_v45 = vsub.f32 %v13026_v39, %v13203_v25  ;;  %v13449_v23 = vld [vmem:[#allocation64_spill] sm:$0xff] }
 0xf58   :  { %v8257_v47 = vmul.f32 %v10120_v0, %v8217_v48  ;;  %v8216_v1 = vsub.f32 %v13066_v28, %v13203_v25  ;;  %v8389_v49 = vadd.f32 %v13118_v16, %v8317_v7  ;;  %v8207_v57 = vsub.f32 %v13445_v13, %v13144_v3  ;;  %v13447_v28 = vld [vmem:[#allocation66_spill] sm:$0xff] }
 0xf59   :  { %v10122_v42 = vpop.eup %10121  ;;  %v8229_v4 = vadd.f32 1e-05, %v8199_v63  ;;  %v8190_v29 = vsub.f32 %v8170_v36, %v8180_v31  ;;  %v8500_v20 = vmul.f32 %v13102_v54, %v8426_v22  ;;  %v8419_v6 = vmax.f32 %v8399_v32, 0.0 }
 0xf5a   :  { %v8246_v35 = vmul.f32 %v10122_v42, %v8206_v45  ;;  %v8256_v53 = vmul.f32 %v10122_v42, %v8216_v1  ;;  %v8530_v21 = vadd.f32 %v8510_v26, %v8509_v46  ;;  %v8247_v24 = vmul.f32 %v10120_v0, %v8207_v57  ;;  %v13450_v26 = vld [vmem:[#allocation63_spill] sm:$0xff] }
 0xf5b   :  { %10125 = vrsqrt.f32 %v8229_v4  ;;  %v8200_v39 = vmax.f32 %v8190_v29, 0.0  ;;  %v8329_v14 = vmul.f32 %v13446_v43, %v8257_v47  ;;  %v8218_v3 = vsub.f32 %v13448_v9, %v13216_v55  ;;  %v7990_v4 = vld [vmem:[#allocation25 + $0x8] sm:$0x3] }
 0xf5c   :  { %v8318_v25 = vmul.f32 %v13447_v28, %v8246_v35  ;;  %v8328_v16 = vmul.f32 %v13447_v28, %v8256_v53  ;;  %v10124_v52 = vpop.eup %10123  ;;  %v8438_v11 = vmin.f32 %v8418_v60, 6.0  ;;  %v8409_v58 = vmax.f32 %v8389_v49, 0.0  ;;  %v7988_v49 = vld [vmem:[#allocation23 + $0x8] sm:$0x3] }
 0xf5d   :  { %v8208_v54 = vsub.f32 %v13028_v15, %v13216_v55  ;;  %v8230_v12 = vadd.f32 1e-05, %v8200_v39  ;;  %v8439_v27 = vmin.f32 %v8419_v6, 6.0  ;;  %v8258_v10 = vmul.f32 %v10124_v52, %v8218_v3 }
 0xf5e   :  { %v8390_v46 = vadd.f32 %v13148_v50, %v8318_v25  ;;  %v8400_v2 = vadd.f32 %v13148_v50, %v8328_v16  ;;  %v8319_v0 = vmul.f32 %v13446_v43, %v8247_v24  ;;  %v8531_v7 = vadd.f32 %v8530_v21, %v8511_v34  ;;  %v13452_v21 = vld [vmem:[#allocation57_spill] sm:$0xff]  ;;  %v13453_v16 = vld [vmem:[#allocation59_spill] sm:$0xff] }
 0xf5f   :  { %10127 = vrsqrt.f32 %v8230_v12  ;;  %v8519_v59 = vadd.f32 %v8500_v20, %v8499_v19  ;;  %v8401_v31 = vadd.f32 %v13449_v23, %v8329_v14  ;;  %v8248_v32 = vmul.f32 %v10124_v52, %v8208_v54 }
 0xf60   :  { %v8420_v22 = vmax.f32 %v8400_v2, 0.0  ;;  %v8330_v48 = vmul.f32 %v13152_v38, %v8258_v10  ;;  %v8501_v15 = vmul.f32 %v13098_v51, %v8427_v56  ;;  %v8428_v55 = vmin.f32 %v8408_v8, 6.0  ;;  %v13451_v56 = vld [vmem:[#allocation58_spill] sm:$0xff] }
 0xf61   :  { %v8512_v63 = vmul.f32 %v13450_v26, %v8438_v11  ;;  %v8472_v50 = vrot.slane %v13076_v44, %v12344_v18  ;;  %v8429_v36 = vmin.f32 %v8409_v58, 6.0  ;;  %v8513_v47 = vmul.f32 %v13168_v17, %v8439_v27 }
 0xf62   :  { %v8440_v60 = vmin.f32 %v8420_v22, 6.0  ;;  %v8410_v34 = vmax.f32 %v8390_v46, 0.0  ;;  %v8520_v45 = vadd.f32 %v8519_v59, %v8501_v15  ;;  %v8421_v1 = vmax.f32 %v8401_v31, 0.0 }
 0xf63   :  { %v8532_v19 = vadd.f32 %v8531_v7, %v8512_v63  ;;  %v8320_v42 = vmul.f32 %v13152_v38, %v8248_v32  ;;  %v8402_v13 = vadd.f32 %v13158_v40, %v8330_v48  ;;  %v8391_v51 = vadd.f32 %v13449_v23, %v8319_v0 }
 0xf64   :  { %v8476_v8 = vrot.slane %v13076_v44, %v13451_v56  ;;  %v8480_v18 = vrot.slane %v13076_v44, %v13423_v62  ;;  %v8502_v57 = vmul.f32 %v13450_v26, %v8428_v55  ;;  %v8514_v29 = vmul.f32 %v8472_v50, %v8440_v60 }
 0xf65   :  { %v8533_v20 = vadd.f32 %v8532_v19, %v8513_v47  ;;  %v8430_v6 = vmin.f32 %v8410_v34, 6.0  ;;  %v8503_v35 = vmul.f32 %v13168_v17, %v8429_v36  ;;  %v8209_v38 = vsub.f32 %v13154_v37, %v13236_v61 }
 0xf66   :  { %v8219_v53 = vsub.f32 %v13190_v41, %v13236_v61  ;;  %v8298_v24 = vrot.slane %v7988_v49, %v13452_v21  ;;  %v8521_v39 = vadd.f32 %v8520_v45, %v8502_v57  ;;  %v8422_v14 = vmax.f32 %v8402_v13, 0.0 }
 0xf67   :  { %v8441_v62 = vmin.f32 %v8421_v1, 6.0  ;;  %v8392_v44 = vadd.f32 %v13158_v40, %v8320_v42  ;;  %v8411_v28 = vmax.f32 %v8391_v51, 0.0  ;;  %v8302_v9 = vrot.slane %v7988_v49, %v13453_v16  ;;  %v8446_v40 = vld [vmem:[#allocation26 + $0x8] sm:$0x3] }
 0xf68   :  { %v10126_v43 = vpop.eup %10125  ;;  %v8370_v17 = vrot.slane %v7990_v4, %v13452_v21  ;;  %v8374_v37 = vrot.slane %v7990_v4, %v13453_v16  ;;  %v8534_v52 = vadd.f32 %v8533_v20, %v8514_v29  ;;  %v8504_v11 = vmul.f32 %v8472_v50, %v8430_v6 }
 0xf69   :  { %v8259_v25 = vmul.f32 %v10126_v43, %v8219_v53  ;;  %v8249_v3 = vmul.f32 %v10126_v43, %v8209_v38  ;;  %v8522_v41 = vadd.f32 %v8521_v39, %v8503_v35  ;;  %v8210_v58 = vsub.f32 %v13164_v30, %v13239_v33  ;;  %v8541_v53 = vld [vmem:[%s10724_s9] sm:$0xff] }
 0xf6a   :  { %v8220_v54 = vsub.f32 %v13199_v5, %v13239_v33  ;;  %v8442_v46 = vmin.f32 %v8422_v14, 6.0  ;;  %v8515_v2 = vmul.f32 %v8476_v8, %v8441_v62  ;;  %v8412_v10 = vmax.f32 %v8392_v44, 0.0  ;;  %10018 = vmatprep.mubr.msk.f32.mxu1 %vm544_vm0, %v8541_v53  ;;  %v8545_v39 = vld [vmem:[%s10719_s13] sm:$0xff]  ;;  %v8542_v62 = vld [vmem:[%s10724_s9 + $0x8] sm:$0xff]  ;;  %v8543_v44 = vld [vmem:[%s10724_s9 + $0x10] sm:$0xff] }
 0xf6b   :  { %v8331_v61 = vmul.f32 %v8298_v24, %v8259_v25  ;;  %v8321_v12 = vmul.f32 %v8298_v24, %v8249_v3  ;;  %v8431_v0 = vmin.f32 %v8411_v28, 6.0  ;;  %v8484_v22 = vrot.slane %v8446_v40, %v13452_v21  ;;  %v8544_v28 = vld [vmem:[%s10724_s9 + $0x18] sm:$0xff]  ;;  %s10555_s9 = smov [#allocation28]  }
 0xf6c   :  { %v10128_v27 = vpop.eup %10127  ;;  %v8535_v32 = vadd.f32 %v8534_v52, %v8515_v2  ;;  %v8523_v48 = vadd.f32 %v8522_v41, %v8504_v11  ;;  %v8516_v5 = vmul.f32 %v8480_v18, %v8442_v46  ;;  %v8432_v33 = vmin.f32 %v8412_v10, 6.0 }
 0xf6d   :  { %v8260_v7 = vmul.f32 %v10128_v27, %v8220_v54  ;;  %v8403_v59 = vadd.f32 %v8370_v17, %v8331_v61  ;;  %v8250_v23 = vmul.f32 %v10128_v27, %v8210_v58  ;;  %v8393_v31 = vadd.f32 %v8370_v17, %v8321_v12 }
 0xf6e   :  { %v8505_v63 = vmul.f32 %v8476_v8, %v8431_v0  ;;  %v8488_v34 = vrot.slane %v8446_v40, %v13453_v16  ;;  %v8536_v42 = vadd.f32 %v8535_v32, %v8516_v5  ;;  %v8506_v13 = vmul.f32 %v8480_v18, %v8432_v33  ;;  %v8546_v18 = vld [vmem:[%s10719_s13 + $0x8] sm:$0xff]  ;;  %s8675_s13 = sshll.u32 %s10555_s9, 4  ;;  %s8676_s13 = int_to_ptr.vmem [resolvable:$true] %s8675_s13 }
 0xf6f   :  { %v8332_v15 = vmul.f32 %v8302_v9, %v8260_v7  ;;  %v8423_v30 = vmax.f32 %v8403_v59, 0.0  ;;  %v8322_v55 = vmul.f32 %v8302_v9, %v8250_v23  ;;  %v8413_v26 = vmax.f32 %v8393_v31, 0.0  ;;  %s10457_s1 = scalar_lea.vmem %s8676_s13, 512  ;;  %p10462_p11 = scmp.lt.s32.totalorder %s8676_s13, %s8676_s13 }
 0xf70   :  { %v8524_v19 = vadd.f32 %v8523_v48, %v8505_v63  ;;  %p10458_p10 = scmp.ne.s32.totalorder %s8676_s13, %s10457_s1  ;;  %p10463_p12 = scmp.lt.s32.totalorder %s10457_s1, %s10457_s1 }
 0xf71   :  { %v8404_v50 = vadd.f32 %v8374_v37, %v8332_v15  ;;  %v8443_v36 = vmin.f32 %v8423_v30, 6.0  ;;  %v8394_v60 = vadd.f32 %v8374_v37, %v8322_v55  ;;  %v8433_v47 = vmin.f32 %v8413_v26, 6.0 }
 0xf72   :  { %v8525_v29 = vadd.f32 %v8524_v19, %v8506_v13  ;;  %p10464_p13 = por %p10463_p12, %p10462_p11 }
 0xf73   :  { %v8424_v45 = vmax.f32 %v8404_v50, 0.0  ;;  %v8517_v1 = vmul.f32 %v8484_v22, %v8443_v36  ;;  %v8414_v49 = vmax.f32 %v8394_v60, 0.0  ;;  %v8507_v4 = vmul.f32 %v8484_v22, %v8433_v47 }
 0xf74   :  { %p10465_p0 = pnand %p10464_p13, %p10458_p10 }
 0xf75   :  { %v8444_v51 = vmin.f32 %v8424_v45, 6.0  ;;  %v8537_v56 = vadd.f32 %v8536_v42, %v8517_v1  ;;  %v8434_v57 = vmin.f32 %v8414_v49, 6.0  ;;  %v8526_v35 = vadd.f32 %v8525_v29, %v8507_v4 }
 0xf77   :  { %v8518_v8 = vmul.f32 %v8488_v34, %v8444_v51  ;;  %v8508_v6 = vmul.f32 %v8488_v34, %v8434_v57 }
 0xf79   :  { %v8538_v20 = vadd.f32 %v8537_v56, %v8518_v8  ;;  %v8527_v38 = vadd.f32 %v8526_v35, %v8508_v6 }
 0xf7b   :  { %8539 = vadd.xlane.f32.xlu0 %v8538_v20 }
 0xf7f   :  { %8528 = vadd.xlane.f32.xlu0 %v8527_v38 }
0x1004   :  { %v8540_v21 = vpop.xlane.xlu0 %8539 }
0x1005   :  { %v8548_v24 = vmul.f32 %v8546_v18, %v8540_v21 }
0x1007   :  { %10014 = vmatprep.subr.mxu1 %v8548_v24 }
0x1008   :  { %10015 = vmatpush3.msra.mxu1 %v8548_v24  ;;  %v8529_v43 = vpop.xlane.xlu0 %8528 }
0x1009   :  { %v8547_v14 = vmul.f32 %v8545_v39, %v8529_v43 }
0x100b   :  { %10016 = vmatprep.subr.mxu1 %v8547_v14 }
0x100c   :  { %10017 = vmatpush3.msra.mxu1 %v8547_v14 }
0x100d   :  { %10019 = vmatmul.mubr.msk.f32.vlgmr.msra.gmra.mxu1 %vm544_vm0, %v8542_v62 }
0x100e   :  { %10021 = vmatprep.mubr.msk.f32.mxu1 %vm544_vm0, %v8543_v44 }
0x1011   :  { %10022 = vmatmul.mubr.msk.f32.gmra.mxu1 %vm544_vm0, %v8544_v28 }
0x10cd   :  { %v10020_v25 = vpop.f32.mrf.mxu1 }
0x10ce   :  { %10129 = vtanh.f32 %v10020_v25 }
0x10cf   :  { %v8627_v16 = vpop.f32.mrf.mxu1 }
0x10d0   :  { %10131 = vtanh.f32 %v8627_v16 }
0x10d1   :  { %v10023_v9 = vpop.f32.mrf.mxu1 }
0x10d2   :  { %10133 = vtanh.f32 %v10023_v9 }
0x10d3   :  { %v8637_v17 = vpop.f32.mrf.mxu1 }
0x10d4   :  { %10135 = vtanh.f32 %v8637_v17 }
0x10db   :  { %v10130_v3 = vpop.eup %10129 }
0x10dc   :  { %v8651_v37 = vmul.f32 4.0, %v10130_v3 }
0x10dd   :  { %v10132_v52 = vpop.eup %10131 }
0x10de   :  { %v8655_v11 = vadd.f32 7.0, %v8651_v37  ;;  %v8650_v41 = vmul.f32 4.0, %v10132_v52 }
0x10df   :  { %v10134_v61 = vpop.eup %10133 }
0x10e0   :  { %v8659_v58 = vmul.f32 0.5, %v8655_v11  ;;  %v8654_v54 = vadd.f32 7.0, %v8650_v41  ;;  %v8653_v40 = vmul.f32 4.0, %v10134_v61 }
0x10e1   :  { %v10136_v12 = vpop.eup %10135 }
0x10e2   :  { %v8663_v27 = vmul.f32 1000.0, %v8659_v58  ;;  %v8658_v46 = vmul.f32 0.5, %v8654_v54  ;;  %v8657_v2 = vadd.f32 7.0, %v8653_v40  ;;  %v8652_v10 = vmul.f32 4.0, %v10136_v12 }
0x10e4   :  { %8667 = vst.msk [vmem:[#allocation28 + $0x8] sm:$0xff] %vm3453_vm3, %v8663_v27  ;;  %v8662_v0 = vmul.f32 1000.0, %v8658_v46  ;;  %v8661_v7 = vmul.f32 0.5, %v8657_v2  ;;  %v8656_v59 = vadd.f32 7.0, %v8652_v10 }
0x10e6   :  { %8666 = vst.msk [vmem:[#allocation28] sm:$0xff] %vm3453_vm3, %v8662_v0  ;;  %v8665_v23 = vmul.f32 1000.0, %v8661_v7  ;;  %v8660_v31 = vmul.f32 0.5, %v8656_v59 }
0x10e8   :  { %8669 = vst.msk [vmem:[#allocation28 + $0x18] sm:$0xff] %vm3453_vm3, %v8665_v23  ;;  %v8664_v22 = vmul.f32 1000.0, %v8660_v31 }
0x10ea   :  { %8668 = vst.msk [vmem:[#allocation28 + $0x10] sm:$0xff] %vm3453_vm3, %v8664_v22 }
0x10eb   :  { %10468 = shalt.err (!%p10465_p0)
}
0x10ec   :  { %8681 = dma.vmem_to_hbm [thread:$0]  %s8676_s13, 512, %s10729_s17, [#allocation4], %s10537_s30, %s10537_s30, %s10538_s16  }
0x10ed   :  { %10495 = dma.done.wait [#allocation4], 512  }
0x10ee   :  { %10496 = vsyncadd [#allocation4], 4294966784 }
0x10ef   :  { %8685 = vsyncpa [#allocation3], 1 }
0x10f0   :  { %8686 = vsyncpa [#allocation6], 1 }
0x10f1   :  { %8687 = vsyncpa [#allocation9], 1 }
0x10f2   :  { %8688 = vsyncpa [#allocation12], 1 }
0x10f3   :  { %8689 = vsyncpa [#allocation15], 1 }
0x10f4   :  { %8690 = vsyncpa [#allocation18], 1 }
0x10f5   :  { %8691 = vsyncpa [#allocation21], 1 }
0x10f6   :  { %8692 = vsyncpa [#allocation24], 1 }
0x10f7   :  { %8693 = vsyncpa [#allocation27], 1 }
0x10f8   :  { %8694 = vsyncpa [#allocation4], 1 }

</bundles_post_ra>
